<compile_context>
chip_gen: v5e
topology: v5e:2x2
jax: 0.10.0
libtpu: 0.0.40
codegen_flags: <defaults>
</compile_context>

<pallas_src>
import jax
import jax.numpy as jnp
import numpy as np
from jax import lax
from jax.experimental import pallas as pl
from jax.experimental.pallas import tpu as pltpu


# ----------------------------------------------------------------------------
# Fused per-batch kernel: 3x3 conv (fused im2col) + BN + ReLU -> non-local -> 1x1 cls
# ----------------------------------------------------------------------------
def _make_nl_head_kernel(H, W, inter):
    HW = H * W

    def kernel(xw_ref, wctx_ref, bctx_ref, wtpg_ref, btpg_ref,
               wout_ref, bout_ref, wcls_ref, o_ref):
        # ---- context: 3x3 conv as 3 vertical-tap matmuls + folded BN + ReLU ----
        # xw_ref: ((H+2)*W, 3*Cin) bf16 ; wctx_ref: (3, 3*Cin, nl_in) bf16 (BN scale folded)
        acc = jnp.dot(xw_ref[0:HW, :], wctx_ref[0],
                      preferred_element_type=jnp.float32)
        for ky in (1, 2):
            acc = acc + jnp.dot(xw_ref[ky * W: ky * W + HW, :], wctx_ref[ky],
                                preferred_element_type=jnp.float32)
        ctx = jnp.maximum(acc + bctx_ref[...], 0.0)                   # (HW, nl_in) f32

        # ---- non-local block: merged theta/phi/g projection (1/sqrt(d) folded in theta) ----
        tpg = jnp.dot(ctx, wtpg_ref[...],
                      preferred_element_type=jnp.float32) + btpg_ref[...]   # (HW, 3*inter)
        th = tpg[:, 0:inter]
        ph = tpg[:, inter:2 * inter]
        g = tpg[:, 2 * inter:3 * inter]

        # logits = th @ ph^T (contraction on dim 1, no explicit transpose)
        logits = lax.dot_general(th, ph, (((1,), (1,)), ((), ())),
                                 preferred_element_type=jnp.float32)        # (HW, HW)
        m = jnp.max(logits, axis=-1, keepdims=True)
        e = jnp.exp(logits - m)
        attn = e * pl.reciprocal(jnp.sum(e, axis=-1, keepdims=True), approx=True)

        y = jnp.dot(attn, g, preferred_element_type=jnp.float32)            # (HW, inter)
        z = jnp.dot(y, wout_ref[...],
                    preferred_element_type=jnp.float32) + bout_ref[...]     # (HW, nl_out)
        nl = jnp.maximum(z + ctx, 0.0)       # residual (requires nl_in == nl_out), ReLU

        # ---- 1x1 classifier (bias-free) ----
        o_ref[...] = jnp.dot(nl, wcls_ref[...],
                             preferred_element_type=jnp.float32).astype(o_ref.dtype)

    return kernel


def nl_head_forward(res4_nchw, kp):
    B, Cin, H, W = res4_nchw.shape
    HW = H * W
    HWp = (H + 2) * W
    C3 = 3 * Cin
    nl_in = kp["w_ctx"].shape[-1]
    inter, nl_out = kp["w_out"].shape
    num_classes = kp["w_cls"].shape[1]
    assert nl_in == nl_out, "residual connection requires NL_INPUT == NL_OUTPUT"
    assert kp["w_ctx"].shape == (3, C3, nl_in)

    # NCHW -> NHWC, pad spatially, width-only im2col (3x) and flatten tokens (bf16).
    x = jnp.transpose(res4_nchw, (0, 2, 3, 1)).astype(jnp.float32)
    xp = jnp.pad(x, ((0, 0), (1, 1), (1, 1), (0, 0)))                 # (B, H+2, W+2, C)
    xw = jnp.concatenate([xp[:, :, k:k + W, :] for k in range(3)], axis=-1)
    xw = xw.reshape(B, HWp, C3).astype(jnp.bfloat16)                  # (B, (H+2)*W, 3C)

    kernel = _make_nl_head_kernel(H, W, inter)
    pred = pl.pallas_call(
        kernel,
        out_shape=jax.ShapeDtypeStruct((B, HW, num_classes), jnp.float32),
        grid_spec=pltpu.PrefetchScalarGridSpec(
            num_scalar_prefetch=0,
            grid=(B,),
            in_specs=[
                pl.BlockSpec((None, HWp, C3), lambda b: (b, 0, 0)),       # per-batch input
                pl.BlockSpec((3, C3, nl_in), lambda b: (0, 0, 0)),        # folded conv weight
                pl.BlockSpec((1, nl_in), lambda b: (0, 0)),               # folded conv/BN bias
                pl.BlockSpec((nl_in, 3 * inter), lambda b: (0, 0)),       # merged theta/phi/g W
                pl.BlockSpec((1, 3 * inter), lambda b: (0, 0)),           # merged theta/phi/g b
                pl.BlockSpec((inter, nl_out), lambda b: (0, 0)),          # folded out-conv W
                pl.BlockSpec((1, nl_out), lambda b: (0, 0)),              # folded out BN bias
                pl.BlockSpec((nl_out, num_classes), lambda b: (0, 0)),    # classifier W
            ],
            out_specs=pl.BlockSpec((None, HW, num_classes), lambda b: (b, 0, 0)),
        ),
        compiler_params=pltpu.CompilerParams(
            dimension_semantics=("parallel",),   # B shards across TensorCores on v7x
        ),
    )(xw, kp["w_ctx"], kp["b_ctx"], kp["w_tpg"], kp["b_tpg"],
      kp["w_out"], kp["b_out"], kp["w_cls"])

    pred = pred.reshape(B, H, W, num_classes)
    return jnp.transpose(pred, (0, 3, 1, 2))                          # NHWC -> NCHW


# ----------------------------------------------------------------------------
# Parameters: raw (PyTorch-like) params and host-side folding/rearranging
# ----------------------------------------------------------------------------
def init_raw_params(key, cin, nl_in, nl_inter, nl_out, num_classes, eps=1e-5):
    ks = jax.random.split(key, 20)
    f32 = jnp.float32
    raw = {"eps": eps}
    # context: Conv2d(cin, nl_in, 3, padding=1) + BatchNorm2d(nl_in)
    raw["w_conv"] = jax.random.normal(ks[0], (nl_in, cin, 3, 3), f32) * 0.01
    raw["b_conv"] = jax.random.normal(ks[1], (nl_in,), f32) * 0.1
    raw["ctx_gamma"] = 1.0 + 0.1 * jax.random.normal(ks[2], (nl_in,), f32)
    raw["ctx_beta"] = 0.1 * jax.random.normal(ks[3], (nl_in,), f32)
    raw["ctx_mean"] = 0.1 * jax.random.normal(ks[4], (nl_in,), f32)
    raw["ctx_var"] = 1.0 + 0.5 * jax.random.uniform(ks[5], (nl_in,), f32)
    # non-local: theta/phi/g 1x1 convs (with bias), out 1x1 conv (no bias) + BN
    raw["w_theta"] = jax.random.normal(ks[6], (nl_in, nl_inter), f32) / float(np.sqrt(nl_in))
    raw["b_theta"] = 0.05 * jax.random.normal(ks[7], (nl_inter,), f32)
    raw["w_phi"] = jax.random.normal(ks[8], (nl_in, nl_inter), f32) / float(np.sqrt(nl_in))
    raw["b_phi"] = 0.05 * jax.random.normal(ks[9], (nl_inter,), f32)
    raw["w_g"] = jax.random.normal(ks[10], (nl_in, nl_inter), f32) / float(np.sqrt(nl_in))
    raw["b_g"] = 0.05 * jax.random.normal(ks[11], (nl_inter,), f32)
    raw["w_out"] = jax.random.normal(ks[12], (nl_inter, nl_out), f32) / float(np.sqrt(nl_inter))
    raw["out_gamma"] = 1.0 + 0.1 * jax.random.normal(ks[13], (nl_out,), f32)
    raw["out_beta"] = 0.1 * jax.random.normal(ks[14], (nl_out,), f32)
    raw["out_mean"] = 0.1 * jax.random.normal(ks[15], (nl_out,), f32)
    raw["out_var"] = 1.0 + 0.5 * jax.random.uniform(ks[16], (nl_out,), f32)
    # classifier: Conv2d(nl_out, num_classes, 1, bias=False)
    raw["w_cls"] = jax.random.normal(ks[17], (nl_out, num_classes), f32) / float(np.sqrt(nl_out))
    return raw


def prep_kernel_params(raw):
    eps = raw["eps"]
    nl_in, cin = raw["w_conv"].shape[0], raw["w_conv"].shape[1]
    inter = raw["w_theta"].shape[1]

    # context conv + BN fold; rearrange OIHW -> (ky, kx*C + c, O) to match width-im2col layout
    ctx_scale = raw["ctx_gamma"] / jnp.sqrt(raw["ctx_var"] + eps)                 # (nl_in,)
    w_k = jnp.transpose(raw["w_conv"], (2, 3, 1, 0)).reshape(3, 3 * cin, nl_in)   # (ky, kx*C+c, O)
    w_ctx = (w_k * ctx_scale[None, None, :]).astype(jnp.bfloat16)
    b_ctx = (raw["ctx_beta"] + (raw["b_conv"] - raw["ctx_mean"]) * ctx_scale)[None, :]

    # merged theta/phi/g; fold 1/sqrt(dim_inter) into theta weight+bias
    inv_sqrt_d = 1.0 / float(np.sqrt(inter))
    w_tpg = jnp.concatenate([raw["w_theta"] * inv_sqrt_d, raw["w_phi"], raw["w_g"]], axis=1)
    b_tpg = jnp.concatenate([raw["b_theta"] * inv_sqrt_d, raw["b_phi"], raw["b_g"]])[None, :]

    # out conv + BN fold
    out_scale = raw["out_gamma"] / jnp.sqrt(raw["out_var"] + eps)
    w_out = raw["w_out"] * out_scale[None, :]
    b_out = (raw["out_beta"] - raw["out_mean"] * out_scale)[None, :]

    f32 = jnp.float32
    return {
        "w_ctx": w_ctx, "b_ctx": b_ctx.astype(f32),
        "w_tpg": w_tpg.astype(f32), "b_tpg": b_tpg.astype(f32),
        "w_out": w_out.astype(f32), "b_out": b_out.astype(f32),
        "w_cls": raw["w_cls"].astype(f32),
    }


# ----------------------------------------------------------------------------
# Pure-JAX reference (unfolded params, f32) for a sanity check
# ----------------------------------------------------------------------------
def nl_head_reference(res4_nchw, raw):
    eps = raw["eps"]
    x = res4_nchw.astype(jnp.float32)
    ctx = lax.conv_general_dilated(x, raw["w_conv"], window_strides=(1, 1), padding="SAME",
                                   dimension_numbers=("NCHW", "OIHW", "NCHW"))
    ctx = ctx + raw["b_conv"][None, :, None, None]
    scale = raw["ctx_gamma"] / jnp.sqrt(raw["ctx_var"] + eps)
    ctx = (ctx - raw["ctx_mean"][None, :, None, None]) * scale[None, :, None, None] \
        + raw["ctx_beta"][None, :, None, None]
    ctx = jnp.maximum(ctx, 0.0)

    B, Cn, H, W = ctx.shape
    xb = jnp.transpose(ctx, (0, 2, 3, 1)).reshape(B, H * W, Cn)
    th = xb @ raw["w_theta"] + raw["b_theta"]
    ph = xb @ raw["w_phi"] + raw["b_phi"]
    g = xb @ raw["w_g"] + raw["b_g"]
    logits = jnp.einsum("bqd,bkd->bqk", th, ph) / jnp.sqrt(jnp.float32(th.shape[-1]))
    attn = jax.nn.softmax(logits, axis=-1)
    y = jnp.einsum("bqk,bkd->bqd", attn, g)
    z = y @ raw["w_out"]
    oscale = raw["out_gamma"] / jnp.sqrt(raw["out_var"] + eps)
    z = (z - raw["out_mean"]) * oscale + raw["out_beta"]
    out = jnp.maximum(z + xb, 0.0)
    pred = (out @ raw["w_cls"]).reshape(B, H, W, -1)
    return jnp.transpose(pred, (0, 3, 1, 2))


if __name__ == "__main__":
    # cfg: NL_INPUT=32, NL_INTER=16, NL_OUTPUT=32, NUM_CLASSES=8; res4 channels (2048) fixed by module
    B, CIN, H, W = 2, 2048, 8, 8
    NL_INPUT, NL_INTER, NL_OUTPUT, NUM_CLASSES = 32, 16, 32, 8

    key = jax.random.PRNGKey(0)
    k_in, k_p = jax.random.split(key)
    res4 = jax.random.normal(k_in, (B, CIN, H, W), jnp.float32)

    raw = init_raw_params(k_p, CIN, NL_INPUT, NL_INTER, NL_OUTPUT, NUM_CLASSES)
    kp = prep_kernel_params(raw)

    fwd = jax.jit(lambda x: nl_head_forward(x, kp))
    pred = jax.block_until_ready(fwd(res4))
    assert pred.shape == (B, NUM_CLASSES, H, W), pred.shape

    ref = jax.block_until_ready(nl_head_reference(res4, raw))
    np.testing.assert_allclose(np.asarray(pred), np.asarray(ref), rtol=5e-2, atol=5e-2)

    print("KERNEL_OK")
</pallas_src>

<mosaic_0001>
module attributes {stable_mosaic.version = 11 : i64} {
  func.func @kernel(%arg0: i32, %arg1: memref<1x80x6144xbf16, #tpu.memory_space<vmem>>, %arg2: memref<3x6144x32xbf16, #tpu.memory_space<vmem>>, %arg3: memref<1x32xf32, #tpu.memory_space<vmem>>, %arg4: memref<32x48xf32, #tpu.memory_space<vmem>>, %arg5: memref<1x48xf32, #tpu.memory_space<vmem>>, %arg6: memref<16x32xf32, #tpu.memory_space<vmem>>, %arg7: memref<1x32xf32, #tpu.memory_space<vmem>>, %arg8: memref<32x8xf32, #tpu.memory_space<vmem>>, %arg9: memref<1x64x8xf32, #tpu.memory_space<vmem>>) attributes {dimension_semantics = [#tpu.dimension_semantics<parallel>], iteration_bounds = array<i64: 2>, scalar_prefetch = 0 : i64, scratch_operands = 0 : i64, tpu.core_type = #tpu.core_type<tc>, window_params = [{transform_indices = @transform_0, window_bounds = array<i64: 1, 80, 6144>}, {pipeline_mode = #tpu.pipeline_mode<synchronous>, transform_indices = @transform_1, window_bounds = array<i64: 3, 6144, 32>}, {pipeline_mode = #tpu.pipeline_mode<synchronous>, transform_indices = @transform_2, window_bounds = array<i64: 1, 32>}, {pipeline_mode = #tpu.pipeline_mode<synchronous>, transform_indices = @transform_3, window_bounds = array<i64: 32, 48>}, {pipeline_mode = #tpu.pipeline_mode<synchronous>, transform_indices = @transform_4, window_bounds = array<i64: 1, 48>}, {pipeline_mode = #tpu.pipeline_mode<synchronous>, transform_indices = @transform_5, window_bounds = array<i64: 16, 32>}, {pipeline_mode = #tpu.pipeline_mode<synchronous>, transform_indices = @transform_6, window_bounds = array<i64: 1, 32>}, {pipeline_mode = #tpu.pipeline_mode<synchronous>, transform_indices = @transform_7, window_bounds = array<i64: 32, 8>}, {transform_indices = @transform_8, window_bounds = array<i64: 1, 64, 8>}]} {
    %c0 = arith.constant 0 : index
    %c0_0 = arith.constant 0 : index
    %c0_1 = arith.constant 0 : index
    %0 = vector.load %arg1[%c0, %c0_0, %c0_1] : memref<1x80x6144xbf16, #tpu.memory_space<vmem>>, vector<1x64x6144xbf16>
    %1 = vector.shape_cast %0 : vector<1x64x6144xbf16> to vector<64x6144xbf16>
    %c0_2 = arith.constant 0 : index
    %c0_3 = arith.constant 0 : index
    %c0_4 = arith.constant 0 : index
    %2 = vector.load %arg2[%c0_2, %c0_3, %c0_4] : memref<3x6144x32xbf16, #tpu.memory_space<vmem>>, vector<1x6144x32xbf16>
    %3 = vector.shape_cast %2 : vector<1x6144x32xbf16> to vector<6144x32xbf16>
    %cst = arith.constant dense<0.000000e+00> : vector<64x32xf32>
    %4 = tpu.matmul %1, %3, %cst {dimension_numbers = #tpu.dot_dimension_numbers<[1], [0], [0], [1], [0, 0, 1, 1], [], []>} : vector<64x6144xbf16>, vector<6144x32xbf16>, vector<64x32xf32> -> vector<64x32xf32>
    %c0_5 = arith.constant 0 : index
    %c8 = arith.constant 8 : index
    %c0_6 = arith.constant 0 : index
    %5 = vector.load %arg1[%c0_5, %c8, %c0_6] : memref<1x80x6144xbf16, #tpu.memory_space<vmem>>, vector<1x64x6144xbf16>
    %6 = vector.shape_cast %5 : vector<1x64x6144xbf16> to vector<64x6144xbf16>
    %c1 = arith.constant 1 : index
    %c0_7 = arith.constant 0 : index
    %c0_8 = arith.constant 0 : index
    %7 = vector.load %arg2[%c1, %c0_7, %c0_8] : memref<3x6144x32xbf16, #tpu.memory_space<vmem>>, vector<1x6144x32xbf16>
    %8 = vector.shape_cast %7 : vector<1x6144x32xbf16> to vector<6144x32xbf16>
    %cst_9 = arith.constant dense<0.000000e+00> : vector<64x32xf32>
    %9 = tpu.matmul %6, %8, %cst_9 {dimension_numbers = #tpu.dot_dimension_numbers<[1], [0], [0], [1], [0, 0, 1, 1], [], []>} : vector<64x6144xbf16>, vector<6144x32xbf16>, vector<64x32xf32> -> vector<64x32xf32>
    %10 = arith.addf %4, %9 : vector<64x32xf32>
    %c0_10 = arith.constant 0 : index
    %c16 = arith.constant 16 : index
    %c0_11 = arith.constant 0 : index
    %11 = vector.load %arg1[%c0_10, %c16, %c0_11] : memref<1x80x6144xbf16, #tpu.memory_space<vmem>>, vector<1x64x6144xbf16>
    %12 = vector.shape_cast %11 : vector<1x64x6144xbf16> to vector<64x6144xbf16>
    %c2 = arith.constant 2 : index
    %c0_12 = arith.constant 0 : index
    %c0_13 = arith.constant 0 : index
    %13 = vector.load %arg2[%c2, %c0_12, %c0_13] : memref<3x6144x32xbf16, #tpu.memory_space<vmem>>, vector<1x6144x32xbf16>
    %14 = vector.shape_cast %13 : vector<1x6144x32xbf16> to vector<6144x32xbf16>
    %cst_14 = arith.constant dense<0.000000e+00> : vector<64x32xf32>
    %15 = tpu.matmul %12, %14, %cst_14 {dimension_numbers = #tpu.dot_dimension_numbers<[1], [0], [0], [1], [0, 0, 1, 1], [], []>} : vector<64x6144xbf16>, vector<6144x32xbf16>, vector<64x32xf32> -> vector<64x32xf32>
    %16 = arith.addf %10, %15 : vector<64x32xf32>
    %c0_15 = arith.constant 0 : index
    %c0_16 = arith.constant 0 : index
    %17 = vector.load %arg3[%c0_15, %c0_16] : memref<1x32xf32, #tpu.memory_space<vmem>>, vector<1x32xf32>
    %18 = vector.broadcast %17 : vector<1x32xf32> to vector<64x32xf32>
    %19 = arith.addf %16, %18 : vector<64x32xf32>
    %cst_17 = arith.constant 0.000000e+00 : f32
    %20 = vector.broadcast %cst_17 : f32 to vector<64x32xf32>
    %21 = arith.maximumf %19, %20 : vector<64x32xf32>
    %c0_18 = arith.constant 0 : index
    %c0_19 = arith.constant 0 : index
    %22 = vector.load %arg4[%c0_18, %c0_19] : memref<32x48xf32, #tpu.memory_space<vmem>>, vector<32x48xf32>
    %cst_20 = arith.constant dense<0.000000e+00> : vector<64x48xf32>
    %23 = tpu.matmul %21, %22, %cst_20 {dimension_numbers = #tpu.dot_dimension_numbers<[1], [0], [0], [1], [0, 0, 1, 1], [], []>} : vector<64x32xf32>, vector<32x48xf32>, vector<64x48xf32> -> vector<64x48xf32>
    %c0_21 = arith.constant 0 : index
    %c0_22 = arith.constant 0 : index
    %24 = vector.load %arg5[%c0_21, %c0_22] : memref<1x48xf32, #tpu.memory_space<vmem>>, vector<1x48xf32>
    %25 = vector.broadcast %24 : vector<1x48xf32> to vector<64x48xf32>
    %26 = arith.addf %23, %25 : vector<64x48xf32>
    %27 = vector.extract_strided_slice %26 {offsets = [0, 0], sizes = [64, 16], strides = [1, 1]} : vector<64x48xf32> to vector<64x16xf32>
    %28 = vector.extract_strided_slice %26 {offsets = [0, 16], sizes = [64, 16], strides = [1, 1]} : vector<64x48xf32> to vector<64x16xf32>
    %29 = vector.extract_strided_slice %26 {offsets = [0, 32], sizes = [64, 16], strides = [1, 1]} : vector<64x48xf32> to vector<64x16xf32>
    %cst_23 = arith.constant dense<0.000000e+00> : vector<64x64xf32>
    %30 = tpu.matmul %27, %28, %cst_23 {dimension_numbers = #tpu.dot_dimension_numbers<[1], [1], [0], [0], [0, 0, 1, 0], [], []>} : vector<64x16xf32>, vector<64x16xf32>, vector<64x64xf32> -> vector<64x64xf32>
    %cst_24 = arith.constant dense<0xFF800000> : vector<64xf32>
    %31 = vector.multi_reduction <maximumf>, %30, %cst_24 [1] : vector<64x64xf32> to vector<64xf32>
    %32 = vector.shape_cast %31 : vector<64xf32> to vector<64x1xf32>
    %33 = vector.broadcast %32 : vector<64x1xf32> to vector<64x64xf32>
    %34 = arith.subf %30, %33 : vector<64x64xf32>
    %35 = math.exp %34 : vector<64x64xf32>
    %cst_25 = arith.constant dense<0.000000e+00> : vector<64xf32>
    %36 = vector.multi_reduction <add>, %35, %cst_25 [1] : vector<64x64xf32> to vector<64xf32>
    %37 = vector.shape_cast %36 : vector<64xf32> to vector<64x1xf32>
    %38 = tpu.reciprocal %37 {approx = true} : vector<64x1xf32> -> vector<64x1xf32>
    %39 = vector.broadcast %38 : vector<64x1xf32> to vector<64x64xf32>
    %40 = arith.mulf %35, %39 : vector<64x64xf32>
    %cst_26 = arith.constant dense<0.000000e+00> : vector<64x16xf32>
    %41 = tpu.matmul %40, %29, %cst_26 {dimension_numbers = #tpu.dot_dimension_numbers<[1], [0], [0], [1], [0, 0, 1, 1], [], []>} : vector<64x64xf32>, vector<64x16xf32>, vector<64x16xf32> -> vector<64x16xf32>
    %c0_27 = arith.constant 0 : index
    %c0_28 = arith.constant 0 : index
    %42 = vector.load %arg6[%c0_27, %c0_28] : memref<16x32xf32, #tpu.memory_space<vmem>>, vector<16x32xf32>
    %cst_29 = arith.constant dense<0.000000e+00> : vector<64x32xf32>
    %43 = tpu.matmul %41, %42, %cst_29 {dimension_numbers = #tpu.dot_dimension_numbers<[1], [0], [0], [1], [0, 0, 1, 1], [], []>} : vector<64x16xf32>, vector<16x32xf32>, vector<64x32xf32> -> vector<64x32xf32>
    %c0_30 = arith.constant 0 : index
    %c0_31 = arith.constant 0 : index
    %44 = vector.load %arg7[%c0_30, %c0_31] : memref<1x32xf32, #tpu.memory_space<vmem>>, vector<1x32xf32>
    %45 = vector.broadcast %44 : vector<1x32xf32> to vector<64x32xf32>
    %46 = arith.addf %43, %45 : vector<64x32xf32>
    %47 = arith.addf %46, %21 : vector<64x32xf32>
    %cst_32 = arith.constant 0.000000e+00 : f32
    %48 = vector.broadcast %cst_32 : f32 to vector<64x32xf32>
    %49 = arith.maximumf %47, %48 : vector<64x32xf32>
    %c0_33 = arith.constant 0 : index
    %c0_34 = arith.constant 0 : index
    %50 = vector.load %arg8[%c0_33, %c0_34] : memref<32x8xf32, #tpu.memory_space<vmem>>, vector<32x8xf32>
    %cst_35 = arith.constant dense<0.000000e+00> : vector<64x8xf32>
    %51 = tpu.matmul %49, %50, %cst_35 {dimension_numbers = #tpu.dot_dimension_numbers<[1], [0], [0], [1], [0, 0, 1, 1], [], []>} : vector<64x32xf32>, vector<32x8xf32>, vector<64x8xf32> -> vector<64x8xf32>
    %c0_36 = arith.constant 0 : index
    %c0_37 = arith.constant 0 : index
    %c0_38 = arith.constant 0 : index
    %52 = vector.load %arg9[%c0_36, %c0_37, %c0_38] : memref<1x64x8xf32, #tpu.memory_space<vmem>>, vector<1x64x8xf32>
    %53 = vector.shape_cast %52 : vector<1x64x8xf32> to vector<64x8xf32>
    %54 = vector.shape_cast %51 : vector<64x8xf32> to vector<1x64x8xf32>
    tpu.vector_store %arg9[%c0_36, %c0_37, %c0_38], %54 {strides = array<i32>} : memref<1x64x8xf32, #tpu.memory_space<vmem>>, vector<1x64x8xf32>,
    return
  }
  func.func @transform_0(%arg0: i32) -> (i32, i32, i32) {
    %c0_i32 = arith.constant 0 : i32
    %c0_i32_0 = arith.constant 0 : i32
    %c0_i32_1 = arith.constant 0 : i32
    return %arg0, %c0_i32, %c0_i32_0 : i32, i32, i32
  }
  func.func @transform_1(%arg0: i32) -> (i32, i32, i32) {
    %c0_i32 = arith.constant 0 : i32
    %c0_i32_0 = arith.constant 0 : i32
    %c0_i32_1 = arith.constant 0 : i32
    %c0_i32_2 = arith.constant 0 : i32
    return %c0_i32, %c0_i32_0, %c0_i32_1 : i32, i32, i32
  }
  func.func @transform_2(%arg0: i32) -> (i32, i32) {
    %c0_i32 = arith.constant 0 : i32
    %c0_i32_0 = arith.constant 0 : i32
    %c0_i32_1 = arith.constant 0 : i32
    return %c0_i32, %c0_i32_0 : i32, i32
  }
  func.func @transform_3(%arg0: i32) -> (i32, i32) {
    %c0_i32 = arith.constant 0 : i32
    %c0_i32_0 = arith.constant 0 : i32
    %c0_i32_1 = arith.constant 0 : i32
    return %c0_i32, %c0_i32_0 : i32, i32
  }
  func.func @transform_4(%arg0: i32) -> (i32, i32) {
    %c0_i32 = arith.constant 0 : i32
    %c0_i32_0 = arith.constant 0 : i32
    %c0_i32_1 = arith.constant 0 : i32
    return %c0_i32, %c0_i32_0 : i32, i32
  }
  func.func @transform_5(%arg0: i32) -> (i32, i32) {
    %c0_i32 = arith.constant 0 : i32
    %c0_i32_0 = arith.constant 0 : i32
    %c0_i32_1 = arith.constant 0 : i32
    return %c0_i32, %c0_i32_0 : i32, i32
  }
  func.func @transform_6(%arg0: i32) -> (i32, i32) {
    %c0_i32 = arith.constant 0 : i32
    %c0_i32_0 = arith.constant 0 : i32
    %c0_i32_1 = arith.constant 0 : i32
    return %c0_i32, %c0_i32_0 : i32, i32
  }
  func.func @transform_7(%arg0: i32) -> (i32, i32) {
    %c0_i32 = arith.constant 0 : i32
    %c0_i32_0 = arith.constant 0 : i32
    %c0_i32_1 = arith.constant 0 : i32
    return %c0_i32, %c0_i32_0 : i32, i32
  }
  func.func @transform_8(%arg0: i32) -> (i32, i32, i32) {
    %c0_i32 = arith.constant 0 : i32
    %c0_i32_0 = arith.constant 0 : i32
    %c0_i32_1 = arith.constant 0 : i32
    return %arg0, %c0_i32, %c0_i32_0 : i32, i32, i32
  }
}

</mosaic_0001>

<bundles_post_ra>
// kernel: _lambda_.1
= control target key start
LH: loop header
LB: loop body
LE: loop exit
PB: predicated region body
PF: predicated region fallthrough
CT: control target
= control target key end

     0   :  { %s25541_s27 = smov 0   ;;  %s34261_s0 = inlined_call_operand.vmem [shape: bf16[2,80,6144], index: 0, kind: input, shape index: {}]   ;;  %s34262_s1 = inlined_call_operand.vmem [shape: bf16[3,6144,32], index: 1, kind: input, shape index: {}]   ;;  %s34263_s2 = inlined_call_operand.vmem [shape: f32[1,32], index: 2, kind: input, shape index: {}]   ;;  %s34264_s3 = inlined_call_operand.vmem [shape: f32[32,48], index: 3, kind: input, shape index: {}]   ;;  %s34265_s4 = inlined_call_operand.vmem [shape: f32[1,48], index: 4, kind: input, shape index: {}]   ;;  %s34266_s5 = inlined_call_operand.vmem [shape: f32[16,32], index: 5, kind: input, shape index: {}]   ;;  %s34267_s6 = inlined_call_operand.vmem [shape: f32[1,32], index: 6, kind: input, shape index: {}]   ;;  %s34268_s7 = inlined_call_operand.vmem [shape: f32[32,8], index: 7, kind: input, shape index: {}]   ;;  %s34269_s8 = inlined_call_operand.vmem [shape: f32[2,64,8], index: 8, kind: output, shape index: {}]  }
   0x1 LB: > { %s17082_s28 = sadd.s32 4294967295, %s25492_s27   ;;  %p17086_p0 = scmp.ge.s32.totalorder %s25492_s27, 1  ;;  %s25492_s27 = sphi %s25541_s27, %s18_s27  }
   0x2   : > { %p262_p1 = scmp.lt.s32.totalorder %s25492_s27, 3 }
   0x4   : > { %p263_p2 = pnand %p17086_p0, %p262_p1 }
   0x6   : > { %266 = sbr.rel (%p263_p2) target bundleno = 3675 (0xe5b), region = 52 }
   0xb   : > { %v24444_v0 = vld [vmem:[%s34262_s1 + $0xc38] sm:$0xff]  ;;  %p296_p3 = scmp.lt.s32.totalorder %s17082_s28, 1  ;;  %v24443_v1 = vld [vmem:[%s34262_s1 + $0xc30] sm:$0xff]  ;;  %v24442_v6 = vld [vmem:[%s34262_s1 + $0xc28] sm:$0xff]  ;;  %vm16520_vm0 = vcmask 261120   ;;  %s25494_s29 = smov 112  }
   0xc   : > { %25397 = vmatpush.bf16.msra.mxu1 %v24444_v0  ;;  %5323 = vmatpush.bf16.msra.mxu0 %v24444_v0  ;;  %v24460_v2 = vld [vmem:[%s34262_s1 + $0xcb8] sm:$0xff]  ;;  %v24459_v4 = vld [vmem:[%s34262_s1 + $0xcb0] sm:$0xff]  ;;  %v24458_v8 = vld [vmem:[%s34262_s1 + $0xca8] sm:$0xff]  ;;  %vm16610_vm1 = vcmask 130048   ;;  %vm16684_vm2 = vcmask 523264   ;;  %s25495_s30 = smov 96  }
   0xd   : > { %v24468_v3 = vld [vmem:[%s34262_s1 + $0xcf8] sm:$0xff]  ;;  %s35522_s28 = smov (!%p296_p3, %s17082_s28), 1  ;;  %5381 = vmatpush.bf16.msra.mxu2 %v24460_v2  ;;  %v24467_v5 = vld [vmem:[%s34262_s1 + $0xcf0] sm:$0xff]  ;;  %v24466_v9 = vld [vmem:[%s34262_s1 + $0xce8] sm:$0xff]  ;;  %vm17018_vm3 = vcmask 64512  }
   0xe   : > { %5410 = vmatpush.bf16.msra.mxu3 %v24468_v3  ;;  %s25417_s19 = smul.u32 1920, %s35522_s28  ;;  %v24441_v13 = vld [vmem:[%s34262_s1 + $0xc20] sm:$0xff]  ;;  %v24440_v17 = vld [vmem:[%s34262_s1 + $0xc18] sm:$0xff]  ;;  %v24439_v20 = vld [vmem:[%s34262_s1 + $0xc10] sm:$0xff]  ;;  %s24052_s22 = sshll.u32 %s35522_s28, 6 }
   0xf   : > { %v24457_v15 = vld [vmem:[%s34262_s1 + $0xca0] sm:$0xff]  ;;  %v24456_v18 = vld [vmem:[%s34262_s1 + $0xc98] sm:$0xff]  ;;  %v24455_v21 = vld [vmem:[%s34262_s1 + $0xc90] sm:$0xff]  ;;  %s305_s26 = scalar_lea.vmem %s34269_s8, %s24052_s22 }
  0x10   : > { %25398 = vmatpush.bf16.msra.mxu1 %v24443_v1  ;;  %5324 = vmatpush.bf16.msra.mxu0 %v24443_v1  ;;  %s25576_s24 = scalar_lea.vmem %s34261_s0, %s25417_s19  ;;  %v24465_v16 = vld [vmem:[%s34262_s1 + $0xce0] sm:$0xff]  ;;  %v24464_v19 = vld [vmem:[%s34262_s1 + $0xcd8] sm:$0xff]  ;;  %v24463_v22 = vld [vmem:[%s34262_s1 + $0xcd0] sm:$0xff] }
  0x11   : > { %v306_v7 = vld [vmem:[%s25576_s24] sm:$0xff]  ;;  %5382 = vmatpush.bf16.msra.mxu2 %v24459_v4  ;;  %v24438_v23 = vld [vmem:[%s34262_s1 + $0xc08] sm:$0xff]  ;;  %v24452_v36 = vld [vmem:[%s34262_s1 + $0xc78] sm:$0xff] }
  0x12   : > { %5411 = vmatpush.bf16.msra.mxu3 %v24467_v5  ;;  %v25586_v10 = vld [vmem:[%s25576_s24 + $0xc0] sm:$0xff]  ;;  %v6740_v11 = vunpack.c.h.b16 %v306_v7  ;;  %v24454_v27 = vld [vmem:[%s34262_s1 + $0xc88] sm:$0xff]  ;;  %v24476_v37 = vld [vmem:[%s34262_s1 + $0xd38] sm:$0xff] }
  0x13   : > { %v2252_v12 = vunpack.c.h.b16 %v25586_v10  ;;  %v25624_v24 = vld [vmem:[%s25576_s24 + $0x3c0] sm:$0xff]  ;;  %v24462_v28 = vld [vmem:[%s34262_s1 + $0xcc8] sm:$0xff]  ;;  %v34332_v31 = vunpack.c.l.b16 %v25586_v10  ;;  %v24451_v46 = vld [vmem:[%s34262_s1 + $0xc70] sm:$0xff] }
  0x14   : > { %25399 = vmatpush.bf16.msra.mxu1 %v24442_v6  ;;  %5325 = vmatpush.bf16.msra.mxu0 %v24442_v6  ;;  %v25627_v25 = vld [vmem:[%s25576_s24 + $0x480] sm:$0xff]  ;;  %v34328_v29 = vunpack.c.l.b16 %v25624_v24  ;;  %v25643_v33 = vld [vmem:[%s25576_s24 + $0xc8] sm:$0xff]  ;;  %v24475_v47 = vld [vmem:[%s34262_s1 + $0xd30] sm:$0xff] }
  0x15   : > { %v25594_v14 = vpack.c.b16 %v2252_v12, %v6740_v11  ;;  %5383 = vmatpush.bf16.msra.mxu2 %v24458_v8  ;;  %v25630_v26 = vld [vmem:[%s25576_s24 + $0x180] sm:$0xff]  ;;  %v34325_v30 = vunpack.c.l.b16 %v25627_v25  ;;  %v25646_v34 = vld [vmem:[%s25576_s24 + $0x188] sm:$0xff]  ;;  %v34327_v40 = vunpack.c.l.b16 %v25643_v33  ;;  %v34326_v42 = vunpack.c.h.b16 %v25643_v33  ;;  %v308_v50 = vld [vmem:[%s25576_s24 + $0x10] sm:$0xff] }
  0x16   : > { %5412 = vmatpush.bf16.msra.mxu3 %v24466_v9  ;;  %v34331_v32 = vunpack.c.l.b16 %v25630_v26  ;;  %v24437_v35 = vld [vmem:[%s34262_s1 + $0xc00] sm:$0xff]  ;;  %v34323_v41 = vunpack.c.l.b16 %v25646_v34  ;;  %v34313_v43 = vunpack.c.h.b16 %v25646_v34  ;;  %v25691_v51 = vld [vmem:[%s25576_s24 + $0xd0] sm:$0xff]  ;;  %v6744_v53 = vunpack.c.h.b16 %v308_v50  ;;  %v24450_v54 = vld [vmem:[%s34262_s1 + $0xc68] sm:$0xff] }
  0x17   : > { %v24453_v38 = vld [vmem:[%s34262_s1 + $0xc80] sm:$0xff]  ;;  %v2731_v44 = vpack.c.b16 %v34325_v30, %v34328_v29  ;;  %v2256_v52 = vunpack.c.h.b16 %v25691_v51  ;;  %v24474_v55 = vld [vmem:[%s34262_s1 + $0xd28] sm:$0xff]  ;;  %v24448_v5 = vld [vmem:[%s34262_s1 + $0xc58] sm:$0xff] }
  0x18   : > { %25400 = vmatpush.bf16.msra.mxu1 %v24441_v13  ;;  %5326 = vmatpush.bf16.msra.mxu0 %v24441_v13  ;;  %v24461_v39 = vld [vmem:[%s34262_s1 + $0xcc0] sm:$0xff]  ;;  %v2635_v45 = vpack.c.b16 %v34331_v32, %v34332_v31  ;;  %v2637_v48 = vpack.c.b16 %v34323_v41, %v34327_v40  ;;  %v2638_v49 = vpack.c.b16 %v34313_v43, %v34326_v42  ;;  %v25727_v3 = vld [vmem:[%s25576_s24 + $0x248] sm:$0xff]  ;;  %v24472_v6 = vld [vmem:[%s34262_s1 + $0xd18] sm:$0xff] }
  0x19   : > { %5384 = vmatpush.bf16.msra.mxu2 %v24457_v15  ;;  %v25702_v56 = vpack.c.b16 %v2256_v52, %v6744_v53  ;;  %v25705_v57 = vld [vmem:[%s25576_s24 + $0x540] sm:$0xff]  ;;  %v25730_v4 = vld [vmem:[%s25576_s24 + $0x308] sm:$0xff]  ;;  %v34314_v7 = vunpack.c.l.b16 %v25727_v3  ;;  %v34312_v9 = vunpack.c.h.b16 %v25727_v3 }
  0x1a   : > { %5413 = vmatpush.bf16.msra.mxu3 %v24465_v16  ;;  %v25708_v58 = vld [vmem:[%s25576_s24 + $0x600] sm:$0xff]  ;;  %v34324_v63 = vunpack.c.l.b16 %v25705_v57  ;;  %v34304_v8 = vunpack.c.l.b16 %v25730_v4  ;;  %v34302_v11 = vunpack.c.h.b16 %v25730_v4  ;;  %v24447_v16 = vld [vmem:[%s34262_s1 + $0xc50] sm:$0xff] }
  0x1b   : > { %34691 = vst [vmem:[#allocation2_spill] sm:$0xff] %v25702_v56  ;;  %v25711_v59 = vld [vmem:[%s25576_s24 + $0x240] sm:$0xff]  ;;  %v2587_v0 = vunpack.c.l.b16 %v25708_v58 }
  0x1c   : > { %25401 = vmatpush.bf16.msra.mxu1 %v24440_v17  ;;  %5327 = vmatpush.bf16.msra.mxu0 %v24440_v17  ;;  %v25714_v60 = vld [vmem:[%s25576_s24 + $0x300] sm:$0xff]  ;;  %v34330_v1 = vunpack.c.l.b16 %v25711_v59  ;;  %v24471_v17 = vld [vmem:[%s34262_s1 + $0xd10] sm:$0xff] }
  0x1d   : > { %5385 = vmatpush.bf16.msra.mxu2 %v24456_v18  ;;  %v24449_v61 = vld [vmem:[%s34262_s1 + $0xc60] sm:$0xff]  ;;  %v34329_v2 = vunpack.c.l.b16 %v25714_v60  ;;  %v2779_v13 = vpack.c.b16 %v2587_v0, %v34324_v63  ;;  %v2685_v18 = vpack.c.b16 %v34304_v8, %v34314_v7  ;;  %v24534_v7 = vld [vmem:[%s34262_s1 + $0xf08] sm:$0xff] }
  0x1e   : > { %5414 = vmatpush.bf16.msra.mxu3 %v24464_v19  ;;  %v24473_v62 = vld [vmem:[%s34262_s1 + $0xd20] sm:$0xff]  ;;  %v2686_v19 = vpack.c.b16 %v34302_v11, %v34312_v9  ;;  %v26221_v63 = vld [vmem:[%s25576_s24 + $0x328] sm:$0xff] }
  0x1f   : > { %v2683_v15 = vpack.c.b16 %v34329_v2, %v34330_v1  ;;  %v24513_v8 = vld [vmem:[%s34262_s1 + $0xe60] sm:$0xff]  ;;  %34709 = vst [vmem:[#allocation20_spill] sm:$0xff] %v26221_v63  ;;  %v34335_v42 = vunpack.c.l.b16 %v26221_v63 }
  0x20   : > { %25402 = vmatpush.bf16.msra.mxu1 %v24439_v20  ;;  %5328 = vmatpush.bf16.msra.mxu0 %v24439_v20  ;;  %v24492_v20 = vld [vmem:[%s34262_s1 + $0xdb8] sm:$0xff] }
  0x21   : > { %5386 = vmatpush.bf16.msra.mxu2 %v24455_v21  ;;  %v24500_v21 = vld [vmem:[%s34262_s1 + $0xdf8] sm:$0xff] }
  0x22   : > { %5415 = vmatpush.bf16.msra.mxu3 %v24463_v22  ;;  %v24446_v22 = vld [vmem:[%s34262_s1 + $0xc48] sm:$0xff] }
  0x24   : > { %25403 = vmatpush.bf16.msra.mxu1 %v24438_v23  ;;  %5329 = vmatpush.bf16.msra.mxu0 %v24438_v23  ;;  %v24470_v23 = vld [vmem:[%s34262_s1 + $0xd08] sm:$0xff] }
  0x25   : > { %5387 = vmatpush.bf16.msra.mxu2 %v24454_v27  ;;  %v24491_v27 = vld [vmem:[%s34262_s1 + $0xdb0] sm:$0xff] }
  0x26   : > { %5416 = vmatpush.bf16.msra.mxu3 %v24462_v28  ;;  %v24499_v28 = vld [vmem:[%s34262_s1 + $0xdf0] sm:$0xff] }
  0x28   : > { %25404 = vmatpush.bf16.msra.mxu1 %v24437_v35  ;;  %5330 = vmatpush.bf16.msra.mxu0 %v24437_v35  ;;  %v25781_v35 = vld [vmem:[%s25576_s24 + $0x190] sm:$0xff] }
  0x29   : > { %5388 = vmatpush.bf16.msra.mxu2 %v24453_v38  ;;  %v25790_v38 = vld [vmem:[%s25576_s24 + $0x3c8] sm:$0xff] }
  0x2a   : > { %5417 = vmatpush.bf16.msra.mxu3 %v24461_v39  ;;  %v24484_v39 = vld [vmem:[%s34262_s1 + $0xd78] sm:$0xff]  ;;  %v34303_v50 = vunpack.c.l.b16 %v25790_v38 }
  0x2b   : > { %5341 = vmatmul.bf16.vlgmr.msra.gmra.mxu1 %v2731_v44  ;;  %5331 = vmatmul.bf16.vlgmr.msra.gmra.mxu0 %v2635_v45  ;;  %v34300_v44 = vunpack.c.h.b16 %v25630_v26  ;;  %v34311_v45 = vunpack.c.l.b16 %v25691_v51 }
  0x2c   : > { %5352 = vmatpush.bf16.msrb.mxu1 %v24452_v36  ;;  %5439 = vmatpush.bf16.msrb.mxu0 %v24476_v37  ;;  %v24445_v36 = vld [vmem:[%s34262_s1 + $0xc40] sm:$0xff] }
  0x2d   : > { %5389 = vmatmul.bf16.vlgmr.msra.gmra.mxu2 %v2637_v48  ;;  %5418 = vmatmul.bf16.vlgmr.msra.gmra.mxu3 %v2638_v49  ;;  %v24469_v37 = vld [vmem:[%s34262_s1 + $0xd00] sm:$0xff]  ;;  %v24490_v48 = vld [vmem:[%s34262_s1 + $0xda8] sm:$0xff] }
  0x2e   : > { %5497 = vmatpush.bf16.msrb.mxu2 %v24492_v20  ;;  %5526 = vmatpush.bf16.msrb.mxu3 %v24500_v21  ;;  %v24498_v49 = vld [vmem:[%s34262_s1 + $0xde8] sm:$0xff]  ;;  %v25852_v20 = vld [vmem:[%s25576_s24 + $0x250] sm:$0xff] }
  0x2f   : > { %v25855_v21 = vld [vmem:[%s25576_s24 + $0x310] sm:$0xff] }
  0x30   : > { %5353 = vmatpush.bf16.msrb.mxu1 %v24451_v46  ;;  %5440 = vmatpush.bf16.msrb.mxu0 %v24475_v47  ;;  %v34291_v46 = vunpack.c.l.b16 %v25781_v35  ;;  %v25799_v47 = vld [vmem:[%s25576_s24 + $0x488] sm:$0xff] }
  0x31   : > { %v34289_v53 = vunpack.c.l.b16 %v25799_v47 }
  0x32   : > { %5498 = vmatpush.bf16.msrb.mxu2 %v24491_v27  ;;  %5527 = vmatpush.bf16.msrb.mxu3 %v24499_v28  ;;  %v24481_v27 = vld [vmem:[%s34262_s1 + $0xd60] sm:$0xff]  ;;  %v34292_v28 = vunpack.c.h.b16 %v25711_v59 }
  0x33   : > { %v2733_v0 = vpack.c.b16 %v34289_v53, %v34303_v50 }
  0x34   : > { %5354 = vmatpush.bf16.msrb.mxu1 %v24450_v54  ;;  %5441 = vmatpush.bf16.msrb.mxu0 %v24474_v55  ;;  %v34301_v54 = vunpack.c.h.b16 %v25790_v38  ;;  %v34273_v55 = vunpack.c.h.b16 %v25799_v47 }
  0x36   : > { %5499 = vmatpush.bf16.msrb.mxu2 %v24490_v48  ;;  %5528 = vmatpush.bf16.msrb.mxu3 %v24498_v49  ;;  %v25871_v48 = vld [vmem:[%s25576_s24 + $0x548] sm:$0xff] }
  0x37   : > { %v1267_v49 = vld [vmem:[%s25576_s24 + $0x608] sm:$0xff] }
  0x38   : > { %5355 = vmatpush.bf16.msrb.mxu1 %v24449_v61  ;;  %5442 = vmatpush.bf16.msrb.mxu0 %v24473_v62  ;;  %v2636_v61 = vpack.c.b16 %v34300_v44, %v2252_v12  ;;  %v2639_v62 = vpack.c.b16 %v34291_v46, %v34311_v45  ;;  %v24489_v12 = vld [vmem:[%s34262_s1 + $0xda0] sm:$0xff]  ;;  %v24516_v46 = vld [vmem:[%s34262_s1 + $0xe78] sm:$0xff] }
  0x39   : > { %v24509_v45 = vld [vmem:[%s34262_s1 + $0xe40] sm:$0xff] }
  0x3a   : > { %5500 = vmatpush.bf16.msrb.mxu2 %v24489_v12  ;;  %v2589_v12 = vunpack.c.l.b16 %v1267_v49 }
  0x3b   : > { %5346 = vmatmul.bf16.gmra.mxu1 %v2779_v13  ;;  %5336 = vmatmul.bf16.gmra.mxu0 %v2683_v15  ;;  %v24483_v13 = vld [vmem:[%s34262_s1 + $0xd70] sm:$0xff]  ;;  %v24488_v15 = vld [vmem:[%s34262_s1 + $0xd98] sm:$0xff] }
  0x3c   : > { %5356 = vmatpush.bf16.msrb.mxu1 %v24448_v5  ;;  %5443 = vmatpush.bf16.msrb.mxu0 %v24472_v6  ;;  %v2734_v5 = vpack.c.b16 %v34273_v55, %v34301_v54  ;;  %v24497_v6 = vld [vmem:[%s34262_s1 + $0xde0] sm:$0xff] }
  0x3d   : > { %5394 = vmatmul.bf16.gmra.mxu2 %v2685_v18  ;;  %5423 = vmatmul.bf16.gmra.mxu3 %v2686_v19  ;;  %v24482_v18 = vld [vmem:[%s34262_s1 + $0xd68] sm:$0xff]  ;;  %v24507_v19 = vld [vmem:[%s34262_s1 + $0xe30] sm:$0xff] }
  0x3e   : > { %5529 = vmatpush.bf16.msrb.mxu3 %v24497_v6  ;;  %5501 = vmatpush.bf16.msrb.mxu2 %v24488_v15  ;;  %v34272_v6 = vunpack.c.h.b16 %v25871_v48 }
  0x40   : > { %5357 = vmatpush.bf16.msrb.mxu1 %v24447_v16  ;;  %5444 = vmatpush.bf16.msrb.mxu0 %v24471_v17  ;;  %v24496_v16 = vld [vmem:[%s34262_s1 + $0xdd8] sm:$0xff] }
  0x41   : > { %v24508_v17 = vld [vmem:[%s34262_s1 + $0xe38] sm:$0xff] }
  0x42   : > { %5530 = vmatpush.bf16.msrb.mxu3 %v24496_v16 }
  0x44   : > { %5358 = vmatpush.bf16.msrb.mxu1 %v24446_v22  ;;  %5445 = vmatpush.bf16.msrb.mxu0 %v24470_v23  ;;  %v24487_v22 = vld [vmem:[%s34262_s1 + $0xd90] sm:$0xff] }
  0x45   : > { %v24495_v23 = vld [vmem:[%s34262_s1 + $0xdd0] sm:$0xff]  ;;  %5502 = vmatpush.bf16.msrb.mxu2 %v24487_v22  ;;  %v24485_v22 = vld [vmem:[%s34262_s1 + $0xd80] sm:$0xff] }
  0x46   : > { %5531 = vmatpush.bf16.msrb.mxu3 %v24495_v23  ;;  %v24493_v23 = vld [vmem:[%s34262_s1 + $0xdc0] sm:$0xff] }
  0x48   : > { %5359 = vmatpush.bf16.msrb.mxu1 %v24445_v36  ;;  %5446 = vmatpush.bf16.msrb.mxu0 %v24469_v37  ;;  %v34271_v36 = vunpack.c.h.b16 %v25714_v60  ;;  %v34290_v37 = vunpack.c.l.b16 %v25852_v20 }
  0x4a   : > { %v2684_v15 = vpack.c.b16 %v34271_v36, %v34292_v28  ;;  %v24530_v28 = vld [vmem:[%s34262_s1 + $0xee8] sm:$0xff] }
  0x4b   : > { %5360 = vmatmul.bf16.vlgmr.msrb.gmra.mxu1 %v2636_v61  ;;  %5447 = vmatmul.bf16.vlgmr.msrb.gmra.mxu0 %v2639_v62  ;;  %v24506_v61 = vld [vmem:[%s34262_s1 + $0xe28] sm:$0xff] }
  0x4c   : > { %5468 = vmatpush.bf16.msra.mxu1 %v24484_v39  ;;  %5555 = vmatpush.bf16.msra.mxu0 %v24508_v17  ;;  %v34270_v39 = vunpack.c.l.b16 %v25855_v21  ;;  %v24486_v62 = vld [vmem:[%s34262_s1 + $0xd88] sm:$0xff] }
  0x4d   : > { %5399 = vmatmul.bf16.gmra.mxu2 %v2733_v0  ;;  %5428 = vmatmul.bf16.gmra.mxu3 %v2734_v5  ;;  %v24494_v0 = vld [vmem:[%s34262_s1 + $0xdc8] sm:$0xff]  ;;  %v34282_v5 = vunpack.c.l.b16 %v25871_v48 }
  0x4e   : > { %v2687_v16 = vpack.c.b16 %v34270_v39, %v34290_v37  ;;  %5503 = vmatpush.bf16.msrb.mxu2 %v24486_v62  ;;  %5532 = vmatpush.bf16.msrb.mxu3 %v24494_v0  ;;  %v25916_v62 = vld [vmem:[%s25576_s24 + $0x3d0] sm:$0xff] }
  0x4f   : > { %v2781_v17 = vpack.c.b16 %v2589_v12, %v34282_v5  ;;  %v25919_v0 = vld [vmem:[%s25576_s24 + $0x490] sm:$0xff]  ;;  %v24478_v12 = vld [vmem:[%s34262_s1 + $0xd48] sm:$0xff] }
  0x50   : > { %5469 = vmatpush.bf16.msra.mxu1 %v24483_v13  ;;  %5556 = vmatpush.bf16.msra.mxu0 %v24507_v19  ;;  %v2590_v13 = vunpack.c.h.b16 %v1267_v49  ;;  %v24480_v19 = vld [vmem:[%s34262_s1 + $0xd58] sm:$0xff]  ;;  %v24479_v49 = vld [vmem:[%s34262_s1 + $0xd50] sm:$0xff] }
  0x52   : > { %5504 = vmatpush.bf16.msrb.mxu2 %v24485_v22  ;;  %5533 = vmatpush.bf16.msrb.mxu3 %v24493_v23  ;;  %v25935_v22 = vld [vmem:[%s25576_s24 + $0x198] sm:$0xff]  ;;  %v24477_v23 = vld [vmem:[%s34262_s1 + $0xd40] sm:$0xff] }
  0x53   : > { %34692 = vst [vmem:[#allocation3_spill] sm:$0xff] %v25935_v22  ;;  %v34278_v36 = vunpack.c.h.b16 %v25935_v22 }
  0x54   : > { %5470 = vmatpush.bf16.msra.mxu1 %v24482_v18  ;;  %5557 = vmatpush.bf16.msra.mxu0 %v24506_v61  ;;  %v2782_v18 = vpack.c.b16 %v2590_v13, %v34272_v6  ;;  %v24504_v61 = vld [vmem:[%s34262_s1 + $0xe18] sm:$0xff]  ;;  %v24503_v13 = vld [vmem:[%s34262_s1 + $0xe10] sm:$0xff] }
  0x58   : > { %5471 = vmatpush.bf16.msra.mxu1 %v24481_v27  ;;  %v24505_v27 = vld [vmem:[%s34262_s1 + $0xe20] sm:$0xff] }
  0x59   : > { %5558 = vmatpush.bf16.msra.mxu0 %v24505_v27  ;;  %v24502_v27 = vld [vmem:[%s34262_s1 + $0xe08] sm:$0xff] }
  0x5b   : > { %5365 = vmatmul.bf16.gmra.mxu1 %v2684_v15  ;;  %5452 = vmatmul.bf16.gmra.mxu0 %v2687_v16  ;;  %v34281_v15 = vunpack.c.h.b16 %v25624_v24  ;;  %v34276_v16 = vunpack.c.h.b16 %v25627_v25 }
  0x5c   : > { %5472 = vmatpush.bf16.msra.mxu1 %v24480_v19  ;;  %v25932_v19 = vld [vmem:[%s25576_s24 + $0xd8] sm:$0xff] }
  0x5d   : > { %5404 = vmatmul.bf16.gmra.mxu2 %v2781_v17  ;;  %5433 = vmatmul.bf16.gmra.mxu3 %v2782_v18  ;;  %v34280_v17 = vunpack.c.l.b16 %v25916_v62  ;;  %v34274_v18 = vunpack.c.l.b16 %v25919_v0  ;;  %v34279_v39 = vunpack.c.h.b16 %v25932_v19 }
  0x5e   : > { %5559 = vmatpush.bf16.msra.mxu0 %v24504_v61  ;;  %v34275_v61 = vunpack.c.l.b16 %v25935_v22 }
  0x5f   : > { %v2642_v55 = vpack.c.b16 %v34278_v36, %v34279_v39  ;;  %v25980_v36 = vld [vmem:[%s25576_s24 + $0x318] sm:$0xff] }
  0x60   : > { %5473 = vmatpush.bf16.msra.mxu1 %v24479_v49  ;;  %v34277_v49 = vunpack.c.l.b16 %v25932_v19  ;;  %34694 = vst [vmem:[#allocation5_spill] sm:$0xff] %v25980_v36  ;;  %v34284_v39 = vunpack.c.h.b16 %v25980_v36 }
  0x62   : > { %5560 = vmatpush.bf16.msra.mxu0 %v24503_v13  ;;  %v2735_v13 = vpack.c.b16 %v34274_v18, %v34280_v17  ;;  %v2641_v6 = vpack.c.b16 %v34275_v61, %v34277_v49  ;;  %v24501_v18 = vld [vmem:[%s34262_s1 + $0xe00] sm:$0xff]  ;;  %v34288_v61 = vunpack.c.h.b16 %v25705_v57 }
  0x64   : > { %5474 = vmatpush.bf16.msra.mxu1 %v24478_v12  ;;  %v2732_v12 = vpack.c.b16 %v34276_v16, %v34281_v15  ;;  %v2588_v16 = vunpack.c.h.b16 %v25708_v58 }
  0x66   : > { %5561 = vmatpush.bf16.msra.mxu0 %v24502_v27  ;;  %v25970_v27 = vld [vmem:[%s25576_s24 + $0x610] sm:$0xff]  ;;  %v2780_v58 = vpack.c.b16 %v2588_v16, %v34288_v61  ;;  %v24524_v16 = vld [vmem:[%s34262_s1 + $0xeb8] sm:$0xff] }
  0x67   : > { %5613 = vmatpush.bf16.msra.mxu2 %v24524_v16 }
  0x68   : > { %5475 = vmatpush.bf16.msra.mxu1 %v24477_v23  ;;  %v25967_v23 = vld [vmem:[%s25576_s24 + $0x550] sm:$0xff] }
  0x69   : > { %v34287_v49 = vunpack.c.l.b16 %v25967_v23  ;;  %v34333_v41 = vunpack.c.h.b16 %v25967_v23 }
  0x6a   : > { %5562 = vmatpush.bf16.msra.mxu0 %v24501_v18 }
  0x6b   : > { %5370 = vmatmul.bf16.gmra.mxu1 %v2732_v12  ;;  %5457 = vmatmul.bf16.gmra.mxu0 %v2735_v13  ;;  %v2591_v12 = vunpack.c.l.b16 %v25970_v27  ;;  %v25977_v13 = vld [vmem:[%s25576_s24 + $0x258] sm:$0xff] }
  0x6c   : > { %34693 = vst [vmem:[#allocation4_spill] sm:$0xff] %v25977_v13  ;;  %v34286_v18 = vunpack.c.l.b16 %v25977_v13  ;;  %5584 = vmatpush.bf16.msrb.mxu1 %v24516_v46  ;;  %v24520_v46 = vld [vmem:[%s34262_s1 + $0xe98] sm:$0xff] }
  0x6d   : > { %5505 = vmatmul.bf16.vlgmr.msrb.gmra.mxu2 %v2641_v6  ;;  %5534 = vmatmul.bf16.vlgmr.msrb.gmra.mxu3 %v2642_v55  ;;  %v34283_v55 = vunpack.c.l.b16 %v25980_v36  ;;  %v34285_v6 = vunpack.c.h.b16 %v25977_v13  ;;  %v2783_v17 = vpack.c.b16 %v2591_v12, %v34287_v49  ;;  %v24532_v12 = vld [vmem:[%s34262_s1 + $0xef8] sm:$0xff] }
  0x6e   : > { %5642 = vmatpush.bf16.msra.mxu3 %v24532_v12  ;;  %v26020_v49 = vld [vmem:[%s25576_s24 + $0x3d8] sm:$0xff] }
  0x6f   : > { %v2689_v15 = vpack.c.b16 %v34283_v55, %v34286_v18  ;;  %v2690_v5 = vpack.c.b16 %v34284_v39, %v34285_v6  ;;  %v24523_v55 = vld [vmem:[%s34262_s1 + $0xeb0] sm:$0xff]  ;;  %v26014_v39 = vld [vmem:[%s25576_s24 + $0x1a0] sm:$0xff]  ;;  %v34294_v6 = vunpack.c.h.b16 %v25781_v35  ;;  %34697 = vst [vmem:[#allocation8_spill] sm:$0xff] %v26020_v49  ;;  %v34297_v61 = vunpack.c.h.b16 %v26020_v49 }
  0x70   : > { %34696 = vst [vmem:[#allocation7_spill] sm:$0xff] %v26014_v39  ;;  %5614 = vmatpush.bf16.msra.mxu2 %v24523_v55  ;;  %v34293_v18 = vunpack.c.l.b16 %v26014_v39  ;;  %v24522_v55 = vld [vmem:[%s34262_s1 + $0xea8] sm:$0xff] }
  0x71   : > { %v2640_v37 = vpack.c.b16 %v34294_v6, %v2256_v52  ;;  %v24529_v6 = vld [vmem:[%s34262_s1 + $0xee0] sm:$0xff] }
  0x74   : > { %5615 = vmatpush.bf16.msra.mxu2 %v24522_v55  ;;  %v24521_v55 = vld [vmem:[%s34262_s1 + $0xea0] sm:$0xff] }
  0x78   : > { %5616 = vmatpush.bf16.msra.mxu2 %v24521_v55  ;;  %v24519_v55 = vld [vmem:[%s34262_s1 + $0xe90] sm:$0xff] }
  0x7b   : > { %5375 = vmatmul.bf16.gmra.mxu1 %v2780_v58  ;;  %5462 = vmatmul.bf16.gmra.mxu0 %v2783_v17  ;;  %v24531_v17 = vld [vmem:[%s34262_s1 + $0xef0] sm:$0xff]  ;;  %v26011_v58 = vld [vmem:[%s25576_s24 + $0xe0] sm:$0xff] }
  0x7c   : > { %34695 = vst [vmem:[#allocation6_spill] sm:$0xff] %v26011_v58  ;;  %v34299_v16 = vunpack.c.l.b16 %v26011_v58  ;;  %5643 = vmatpush.bf16.msra.mxu3 %v24531_v17  ;;  %5617 = vmatpush.bf16.msra.mxu2 %v24520_v46  ;;  %v34305_v46 = vunpack.c.h.b16 %v25855_v21 }
  0x7d   : > { %5510 = vmatmul.bf16.gmra.mxu2 %v2689_v15  ;;  %5539 = vmatmul.bf16.gmra.mxu3 %v2690_v5  ;;  %v26023_v15 = vld [vmem:[%s25576_s24 + $0x498] sm:$0xff]  ;;  %v34298_v5 = vunpack.c.l.b16 %v26020_v49 }
  0x7e   : > { %34698 = vst [vmem:[#allocation9_spill] sm:$0xff] %v26023_v15  ;;  %v34295_v12 = vunpack.c.l.b16 %v26023_v15  ;;  %v34296_v53 = vunpack.c.h.b16 %v26023_v15  ;;  %v2643_v17 = vpack.c.b16 %v34293_v18, %v34299_v16  ;;  %v1269_v16 = vld [vmem:[%s25576_s24 + $0x618] sm:$0xff] }
  0x7f   : > { %v2593_v54 = vunpack.c.l.b16 %v1269_v16  ;;  %v2594_v50 = vunpack.c.h.b16 %v1269_v16  ;;  %v24526_v16 = vld [vmem:[%s34262_s1 + $0xec8] sm:$0xff] }
  0x80   : > { %v2737_v52 = vpack.c.b16 %v34295_v12, %v34298_v5  ;;  %v2738_v18 = vpack.c.b16 %v34296_v53, %v34297_v61  ;;  %5644 = vmatpush.bf16.msra.mxu3 %v24530_v28  ;;  %v24515_v12 = vld [vmem:[%s34262_s1 + $0xe70] sm:$0xff]  ;;  %v26067_v28 = vld [vmem:[%s25576_s24 + $0x260] sm:$0xff]  ;;  %v26092_v5 = vld [vmem:[%s25576_s24 + $0x558] sm:$0xff]  ;;  %5618 = vmatpush.bf16.msra.mxu2 %v24519_v55 }
  0x81   : > { %34699 = vst [vmem:[#allocation10_spill] sm:$0xff] %v26067_v28  ;;  %5585 = vmatpush.bf16.msrb.mxu1 %v24515_v12  ;;  %v34306_v12 = vunpack.c.h.b16 %v25852_v20  ;;  %v34310_v53 = vunpack.c.l.b16 %v26067_v28  ;;  %v34309_v44 = vunpack.c.l.b16 %v26092_v5  ;;  %v34308_v11 = vunpack.c.h.b16 %v26092_v5 }
  0x82   : > { %34701 = vst [vmem:[#allocation12_spill] sm:$0xff] %v26092_v5 }
  0x84   : > { %5645 = vmatpush.bf16.msra.mxu3 %v24529_v6  ;;  %v24539_v6 = vld [vmem:[%s34262_s1 + $0xf30] sm:$0xff] }
  0x8b   : > { %5476 = vmatmul.bf16.vlgmr.msra.gmra.mxu1 %v2640_v37  ;;  %5563 = vmatmul.bf16.vlgmr.msra.gmra.mxu0 %v2643_v17  ;;  %v26070_v37 = vld [vmem:[%s25576_s24 + $0x320] sm:$0xff]  ;;  %v24540_v17 = vld [vmem:[%s34262_s1 + $0xf38] sm:$0xff] }
  0x8c   : > { %34700 = vst [vmem:[#allocation11_spill] sm:$0xff] %v26070_v37  ;;  %5671 = vmatpush.bf16.msrb.mxu0 %v24540_v17  ;;  %v34307_v61 = vunpack.c.l.b16 %v26070_v37  ;;  %v24527_v17 = vld [vmem:[%s34262_s1 + $0xed0] sm:$0xff] }
  0x8d   : > { %5515 = vmatmul.bf16.gmra.mxu2 %v2737_v52  ;;  %5544 = vmatmul.bf16.gmra.mxu3 %v2738_v18  ;;  %v24528_v18 = vld [vmem:[%s34262_s1 + $0xed8] sm:$0xff]  ;;  %v24514_v52 = vld [vmem:[%s34262_s1 + $0xe68] sm:$0xff] }
  0x8e   : > { %5646 = vmatpush.bf16.msra.mxu3 %v24528_v18  ;;  %5586 = vmatpush.bf16.msrb.mxu1 %v24514_v52  ;;  %v24518_v18 = vld [vmem:[%s34262_s1 + $0xe88] sm:$0xff]  ;;  %v2688_v52 = vpack.c.b16 %v34305_v46, %v34306_v12  ;;  %v2691_v55 = vpack.c.b16 %v34307_v61, %v34310_v53  ;;  %v2785_v46 = vpack.c.b16 %v2593_v54, %v34309_v44  ;;  %v24511_v54 = vld [vmem:[%s34262_s1 + $0xe50] sm:$0xff] }
  0x8f   : > { %5619 = vmatpush.bf16.msra.mxu2 %v24518_v18  ;;  %v2786_v12 = vpack.c.b16 %v2594_v50, %v34308_v11  ;;  %v24537_v18 = vld [vmem:[%s34262_s1 + $0xf20] sm:$0xff] }
  0x90   : > { %5672 = vmatpush.bf16.msrb.mxu0 %v24539_v6  ;;  %v24538_v6 = vld [vmem:[%s34262_s1 + $0xf28] sm:$0xff]  ;;  %v24525_v50 = vld [vmem:[%s34262_s1 + $0xec0] sm:$0xff] }
  0x92   : > { %5647 = vmatpush.bf16.msra.mxu3 %v24527_v17  ;;  %5587 = vmatpush.bf16.msrb.mxu1 %v24513_v8  ;;  %v24512_v8 = vld [vmem:[%s34262_s1 + $0xe58] sm:$0xff]  ;;  %v24517_v17 = vld [vmem:[%s34262_s1 + $0xe80] sm:$0xff] }
  0x93   : > { %5620 = vmatpush.bf16.msra.mxu2 %v24517_v17 }
  0x94   : > { %5673 = vmatpush.bf16.msrb.mxu0 %v24538_v6  ;;  %v34315_v6 = vunpack.c.h.b16 %v25919_v0 }
  0x96   : > { %5648 = vmatpush.bf16.msra.mxu3 %v24526_v16  ;;  %5588 = vmatpush.bf16.msrb.mxu1 %v24512_v8  ;;  %v24536_v16 = vld [vmem:[%s34262_s1 + $0xf18] sm:$0xff] }
  0x98   : > { %5674 = vmatpush.bf16.msrb.mxu0 %v24537_v18  ;;  %v26156_v18 = vld [vmem:[%s25576_s24 + $0xe8] sm:$0xff] }
  0x99   : > { %34704 = vst [vmem:[#allocation15_spill] sm:$0xff] %v26156_v18  ;;  %v34320_v61 = vunpack.c.l.b16 %v26156_v18  ;;  %v34322_v44 = vunpack.c.h.b16 %v26156_v18 }
  0x9a   : > { %5649 = vmatpush.bf16.msra.mxu3 %v24525_v50  ;;  %5589 = vmatpush.bf16.msrb.mxu1 %v24511_v54  ;;  %v26159_v50 = vld [vmem:[%s25576_s24 + $0x1a8] sm:$0xff]  ;;  %v24535_v54 = vld [vmem:[%s34262_s1 + $0xf10] sm:$0xff] }
  0x9b   : > { %5481 = vmatmul.bf16.gmra.mxu1 %v2688_v52  ;;  %5568 = vmatmul.bf16.gmra.mxu0 %v2691_v55  ;;  %v26140_v52 = vld [vmem:[%s25576_s24 + $0x3e0] sm:$0xff]  ;;  %34705 = vst [vmem:[#allocation16_spill] sm:$0xff] %v26159_v50  ;;  %v34319_v11 = vunpack.c.l.b16 %v26159_v50  ;;  %v34321_v53 = vunpack.c.h.b16 %v26159_v50  ;;  %v24563_v50 = vld [vmem:[%s34262_s1 + $0xff0] sm:$0xff] }
  0x9c   : > { %34702 = vst [vmem:[#allocation13_spill] sm:$0xff] %v26140_v52  ;;  %v26143_v55 = vld [vmem:[%s25576_s24 + $0x4a0] sm:$0xff]  ;;  %v34317_v8 = vunpack.c.l.b16 %v26140_v52  ;;  %5675 = vmatpush.bf16.msrb.mxu0 %v24536_v16 }
  0x9d   : > { %5520 = vmatmul.bf16.gmra.mxu2 %v2785_v46  ;;  %5549 = vmatmul.bf16.gmra.mxu3 %v2786_v12  ;;  %34703 = vst [vmem:[#allocation14_spill] sm:$0xff] %v26143_v55  ;;  %v24510_v46 = vld [vmem:[%s34262_s1 + $0xe48] sm:$0xff]  ;;  %v34318_v12 = vunpack.c.h.b16 %v25916_v62  ;;  %v34316_v17 = vunpack.c.l.b16 %v26143_v55 }
  0x9e   : > { %5590 = vmatpush.bf16.msrb.mxu1 %v24510_v46 }
  0x9f   : > { %v2736_v16 = vpack.c.b16 %v34315_v6, %v34318_v12  ;;  %v2739_v46 = vpack.c.b16 %v34316_v17, %v34317_v8  ;;  %v2645_v6 = vpack.c.b16 %v34319_v11, %v34320_v61  ;;  %v310_v17 = vld [vmem:[%s25576_s24 + $0x20] sm:$0xff]  ;;  %v2260_v8 = vunpack.c.h.b16 %v26011_v58  ;;  %v24548_v58 = vld [vmem:[%s34262_s1 + $0xf78] sm:$0xff] }
  0xa0   : > { %5676 = vmatpush.bf16.msrb.mxu0 %v24535_v54  ;;  %v2646_v54 = vpack.c.b16 %v34321_v53, %v34322_v44  ;;  %v6748_v12 = vunpack.c.h.b16 %v310_v17  ;;  %v2592_v17 = vunpack.c.h.b16 %v25970_v27 }
  0xa2   : > { %5591 = vmatpush.bf16.msrb.mxu1 %v24509_v45  ;;  %v24533_v45 = vld [vmem:[%s34262_s1 + $0xf00] sm:$0xff]  ;;  %v26199_v11 = vpack.c.b16 %v2260_v8, %v6748_v12  ;;  %v2784_v27 = vpack.c.b16 %v2592_v17, %v34333_v41  ;;  %v34710_v17 = vunpack.c.h.b16 %v26221_v63  ;;  %v24554_v63 = vld [vmem:[%s34262_s1 + $0xfa8] sm:$0xff] }
  0xa4   : > { %5677 = vmatpush.bf16.msrb.mxu0 %v24534_v7  ;;  %34706 = vst [vmem:[#allocation17_spill] sm:$0xff] %v26199_v11  ;;  %v26209_v7 = vld [vmem:[%s25576_s24 + $0x620] sm:$0xff] }
  0xa5   : > { %v2595_v12 = vunpack.c.l.b16 %v26209_v7 }
  0xa6   : > { %5700 = vmatpush.bf16.msra.mxu1 %v24548_v58 }
  0xa8   : > { %v26179_v9 = vpop.f32.mrf.mxu1  ;;  %v26181_v43 = vpop.f32.mrf.mxu0  ;;  %5678 = vmatpush.bf16.msrb.mxu0 %v24533_v45 }
  0xab   : > { %5486 = vmatmul.bf16.gmra.mxu1 %v2736_v16  ;;  %5573 = vmatmul.bf16.gmra.mxu0 %v2739_v46  ;;  %v26206_v16 = vld [vmem:[%s25576_s24 + $0x560] sm:$0xff] }
  0xac   : > { %34707 = vst [vmem:[#allocation18_spill] sm:$0xff] %v26206_v16 }
  0xad   : > { %5621 = vmatmul.bf16.vlgmr.msra.gmra.mxu2 %v2645_v6  ;;  %5650 = vmatmul.bf16.vlgmr.msra.gmra.mxu3 %v2646_v54  ;;  %v34334_v6 = vunpack.c.l.b16 %v26206_v16  ;;  %v26218_v54 = vld [vmem:[%s25576_s24 + $0x268] sm:$0xff] }
  0xae   : > { %34708 = vst [vmem:[#allocation19_spill] sm:$0xff] %v26218_v54  ;;  %v34336_v30 = vunpack.c.l.b16 %v26218_v54  ;;  %v34337_v45 = vunpack.c.h.b16 %v26218_v54  ;;  %v26277_v54 = vld [vmem:[%s25576_s24 + $0x4a8] sm:$0xff] }
  0xaf   : > { %v2787_v29 = vpack.c.b16 %v2595_v12, %v34334_v6  ;;  %v24556_v12 = vld [vmem:[%s34262_s1 + $0xfb8] sm:$0xff]  ;;  %34714 = vst [vmem:[#allocation24_spill] sm:$0xff] %v26277_v54 }
  0xb0   : > { %v26201_v61 = vpop.f32.mrf.mxu1  ;;  %v26203_v53 = vpop.f32.mrf.mxu0  ;;  %v2693_v40 = vpack.c.b16 %v34335_v42, %v34336_v30  ;;  %v2694_v41 = vpack.c.b16 %v34710_v17, %v34337_v45  ;;  %v26255_v42 = vld [vmem:[%s25576_s24 + $0xf0] sm:$0xff]  ;;  %5729 = vmatpush.bf16.msrb.mxu2 %v24556_v12  ;;  %v26274_v12 = vld [vmem:[%s25576_s24 + $0x3e8] sm:$0xff]  ;;  %v34715_v45 = vunpack.c.h.b16 %v26014_v39 }
  0xb1   : > { %v5390_v46 = vpop.f32.mrf.mxu2  ;;  %v26211_v44 = vpop.f32.mrf.mxu3  ;;  %34711 = vst [vmem:[#allocation21_spill] sm:$0xff] %v26255_v42  ;;  %v26258_v30 = vld [vmem:[%s25576_s24 + $0x1b0] sm:$0xff]  ;;  %v34716_v15 = vunpack.c.l.b16 %v26255_v42  ;;  %v24562_v17 = vld [vmem:[%s34262_s1 + $0xfe8] sm:$0xff] }
  0xb2   : > { %34712 = vst [vmem:[#allocation22_spill] sm:$0xff] %v26258_v30  ;;  %v34717_v56 = vunpack.c.l.b16 %v26258_v30 }
  0xb3   : > { %34713 = vst [vmem:[#allocation23_spill] sm:$0xff] %v26274_v12 }
  0xb4   : > { %v2647_v49 = vpack.c.b16 %v34717_v56, %v34716_v15  ;;  %v34720_v56 = vunpack.c.h.b16 %v26274_v12  ;;  %v34721_v15 = vunpack.c.h.b16 %v26277_v54 }
  0xb8   : > { %v26231_v2 = vpop.f32.mrf.mxu1  ;;  %v26233_v1 = vpop.f32.mrf.mxu0 }
  0xb9   : > { %v26235_v32 = vpop.f32.mrf.mxu2  ;;  %v26237_v31 = vpop.f32.mrf.mxu3 }
  0xbb   : > { %5491 = vmatmul.bf16.gmra.mxu1 %v2784_v27  ;;  %5578 = vmatmul.bf16.gmra.mxu0 %v2787_v29  ;;  %v24564_v29 = vld [vmem:[%s34262_s1 + $0xff8] sm:$0xff]  ;;  %v24555_v27 = vld [vmem:[%s34262_s1 + $0xfb0] sm:$0xff] }
  0xbc   : > { %5758 = vmatpush.bf16.msrb.mxu3 %v24564_v29  ;;  %5730 = vmatpush.bf16.msrb.mxu2 %v24555_v27  ;;  %v2644_v27 = vpack.c.b16 %v34715_v45, %v2260_v8  ;;  %v34718_v8 = vunpack.c.l.b16 %v26274_v12  ;;  %v34719_v45 = vunpack.c.l.b16 %v26277_v54  ;;  %v34725_v12 = vunpack.c.h.b16 %v26067_v28  ;;  %v24549_v28 = vld [vmem:[%s34262_s1 + $0xf80] sm:$0xff] }
  0xbd   : > { %5626 = vmatmul.bf16.gmra.mxu2 %v2693_v40  ;;  %5655 = vmatmul.bf16.gmra.mxu3 %v2694_v41 }
  0xbe   : > { %v2741_v39 = vpack.c.b16 %v34719_v45, %v34718_v8  ;;  %v24561_v8 = vld [vmem:[%s34262_s1 + $0xfe0] sm:$0xff] }
  0xc0   : > { %v26250_v6 = vpop.f32.mrf.mxu1  ;;  %v26252_v11 = vpop.f32.mrf.mxu0  ;;  %5759 = vmatpush.bf16.msrb.mxu3 %v24563_v50  ;;  %5731 = vmatpush.bf16.msrb.mxu2 %v24554_v63  ;;  %v2742_v63 = vpack.c.b16 %v34721_v15, %v34720_v56  ;;  %v26333_v56 = vld [vmem:[%s25576_s24 + $0x330] sm:$0xff] }
  0xc1   : > { %v26263_v40 = vpop.f32.mrf.mxu2  ;;  %v26265_v41 = vpop.f32.mrf.mxu3  ;;  %34723 = vst [vmem:[#allocation26_spill] sm:$0xff] %v26333_v56 }
  0xc4   : > { %5760 = vmatpush.bf16.msrb.mxu3 %v24562_v17  ;;  %v24547_v17 = vld [vmem:[%s34262_s1 + $0xf70] sm:$0xff] }
  0xc5   : > { %5701 = vmatpush.bf16.msra.mxu1 %v24547_v17 }
  0xc8   : > { %v5361_v29 = vpop.f32.mrf.mxu1  ;;  %v5448_v36 = vpop.f32.mrf.mxu0  ;;  %5761 = vmatpush.bf16.msrb.mxu3 %v24561_v8  ;;  %v24551_v8 = vld [vmem:[%s34262_s1 + $0xf90] sm:$0xff] }
  0xc9   : > { %v5362_v50 = vadd.f32 %v5361_v29, %v26181_v43  ;;  %v26299_v5 = vpop.f32.mrf.mxu2  ;;  %v26301_v18 = vpop.f32.mrf.mxu3  ;;  %v24553_v43 = vld [vmem:[%s34262_s1 + $0xfa0] sm:$0xff] }
  0xca   : > { %5732 = vmatpush.bf16.msrb.mxu2 %v24553_v43  ;;  %v1271_v43 = vld [vmem:[%s25576_s24 + $0x628] sm:$0xff] }
  0xcb   : > { %v5391_v29 = vadd.f32 %v5390_v46, %v5362_v50  ;;  %5592 = vmatmul.bf16.vlgmr.msrb.gmra.mxu1 %v2644_v27  ;;  %5679 = vmatmul.bf16.vlgmr.msrb.gmra.mxu0 %v2647_v49  ;;  %v24552_v46 = vld [vmem:[%s34262_s1 + $0xf98] sm:$0xff]  ;;  %v26330_v49 = vld [vmem:[%s25576_s24 + $0x270] sm:$0xff]  ;;  %v2597_v17 = vunpack.c.l.b16 %v1271_v43  ;;  %v2598_v54 = vunpack.c.h.b16 %v1271_v43  ;;  %v34728_v43 = vunpack.c.l.b16 %v26333_v56 }
  0xcc   : > { %34722 = vst [vmem:[#allocation25_spill] sm:$0xff] %v26330_v49 }
  0xcd   : > { %v5420_v45 = vadd.f32 %v26211_v44, %v5391_v29  ;;  %5631 = vmatmul.bf16.gmra.mxu2 %v2741_v39  ;;  %5660 = vmatmul.bf16.gmra.mxu3 %v2742_v63  ;;  %v24560_v44 = vld [vmem:[%s34262_s1 + $0xfd8] sm:$0xff]  ;;  %v24546_v29 = vld [vmem:[%s34262_s1 + $0xf68] sm:$0xff] }
  0xce   : > { %5733 = vmatpush.bf16.msrb.mxu2 %v24552_v46  ;;  %5762 = vmatpush.bf16.msrb.mxu3 %v24560_v44  ;;  %v24545_v44 = vld [vmem:[%s34262_s1 + $0xf60] sm:$0xff] }
  0xcf   : > { %v26327_v27 = vadd.f32 %v5448_v36, %v5420_v45  ;;  %v24572_v36 = vld [vmem:[%s34262_s1 + $0x1038] sm:$0xff]  ;;  %5702 = vmatpush.bf16.msra.mxu1 %v24546_v29  ;;  %v24550_v29 = vld [vmem:[%s34262_s1 + $0xf88] sm:$0xff] }
  0xd0   : > { %v5363_v58 = vpop.f32.mrf.mxu1  ;;  %v5450_v50 = vpop.f32.mrf.mxu0  ;;  %5787 = vmatpush.bf16.msra.mxu0 %v24572_v36  ;;  %v24559_v36 = vld [vmem:[%s34262_s1 + $0xfd0] sm:$0xff] }
  0xd1   : > { %v5364_v39 = vadd.f32 %v5363_v58, %v26203_v53  ;;  %v26342_v15 = vpop.f32.mrf.mxu2  ;;  %v26344_v63 = vpop.f32.mrf.mxu3  ;;  %v26358_v58 = vld [vmem:[%s25576_s24 + $0x568] sm:$0xff]  ;;  %v34727_v53 = vunpack.c.l.b16 %v26330_v49 }
  0xd2   : > { %34724 = vst [vmem:[#allocation27_spill] sm:$0xff] %v26358_v58  ;;  %5734 = vmatpush.bf16.msrb.mxu2 %v24551_v8  ;;  %5763 = vmatpush.bf16.msrb.mxu3 %v24559_v36 }
  0xd3   : > { %v5393_v45 = vadd.f32 %v26235_v32, %v5364_v39  ;;  %v24571_v32 = vld [vmem:[%s34262_s1 + $0x1030] sm:$0xff]  ;;  %5703 = vmatpush.bf16.msra.mxu1 %v24545_v44  ;;  %v34730_v44 = vunpack.c.h.b16 %v26358_v58 }
  0xd4   : > { %5788 = vmatpush.bf16.msra.mxu0 %v24571_v32  ;;  %v2695_v32 = vpack.c.b16 %v34728_v43, %v34727_v53  ;;  %v34729_v53 = vunpack.c.l.b16 %v26358_v58  ;;  %v24544_v43 = vld [vmem:[%s34262_s1 + $0xf58] sm:$0xff] }
  0xd5   : > { %v5422_v39 = vadd.f32 %v26237_v31, %v5393_v45  ;;  %v34726_v31 = vunpack.c.h.b16 %v26070_v37 }
  0xd6   : > { %5735 = vmatpush.bf16.msrb.mxu2 %v24550_v29  ;;  %v2789_v36 = vpack.c.b16 %v2597_v17, %v34729_v53  ;;  %v2790_v29 = vpack.c.b16 %v2598_v54, %v34730_v44  ;;  %v24557_v54 = vld [vmem:[%s34262_s1 + $0xfc0] sm:$0xff]  ;;  %v24542_v44 = vld [vmem:[%s34262_s1 + $0xf48] sm:$0xff] }
  0xd7   : > { %v26376_v8 = vadd.f32 %v5450_v50, %v5422_v39  ;;  %v2692_v45 = vpack.c.b16 %v34726_v31, %v34725_v12  ;;  %v24558_v50 = vld [vmem:[%s34262_s1 + $0xfc8] sm:$0xff]  ;;  %5704 = vmatpush.bf16.msra.mxu1 %v24544_v43  ;;  %v24569_v17 = vld [vmem:[%s34262_s1 + $0x1020] sm:$0xff] }
  0xd8   : > { %v5366_v46 = vpop.f32.mrf.mxu1  ;;  %v5453_v13 = vpop.f32.mrf.mxu0  ;;  %v24570_v39 = vld [vmem:[%s34262_s1 + $0x1028] sm:$0xff]  ;;  %5764 = vmatpush.bf16.msrb.mxu3 %v24558_v50 }
  0xd9   : > { %v5367_v12 = vadd.f32 %v5366_v46, %v26233_v1  ;;  %v26393_v31 = vpop.f32.mrf.mxu2  ;;  %v26395_v37 = vpop.f32.mrf.mxu3  ;;  %5789 = vmatpush.bf16.msra.mxu0 %v24570_v39  ;;  %v26421_v39 = vld [vmem:[%s25576_s24 + $0x3f0] sm:$0xff] }
  0xda   : > { %5736 = vmatpush.bf16.msrb.mxu2 %v24549_v28  ;;  %34731 = vst [vmem:[#allocation28_spill] sm:$0xff] %v26421_v39  ;;  %v24568_v28 = vld [vmem:[%s34262_s1 + $0x1018] sm:$0xff] }
  0xdb   : > { %v5396_v1 = vadd.f32 %v26263_v40, %v5367_v12  ;;  %5597 = vmatmul.bf16.gmra.mxu1 %v2692_v45  ;;  %5684 = vmatmul.bf16.gmra.mxu0 %v2695_v32  ;;  %v24543_v40 = vld [vmem:[%s34262_s1 + $0xf50] sm:$0xff] }
  0xdc   : > { %v26424_v12 = vld [vmem:[%s25576_s24 + $0x4b0] sm:$0xff]  ;;  %5765 = vmatpush.bf16.msrb.mxu3 %v24557_v54  ;;  %5705 = vmatpush.bf16.msra.mxu1 %v24543_v40  ;;  %v24566_v54 = vld [vmem:[%s34262_s1 + $0x1008] sm:$0xff] }
  0xdd   : > { %v5425_v46 = vadd.f32 %v26265_v41, %v5396_v1  ;;  %5636 = vmatmul.bf16.gmra.mxu2 %v2789_v36  ;;  %5665 = vmatmul.bf16.gmra.mxu3 %v2790_v29  ;;  %34732 = vst [vmem:[#allocation29_spill] sm:$0xff] %v26424_v12  ;;  %v34368_v36 = vunpack.c.h.b16 %v26140_v52  ;;  %v34367_v29 = vunpack.c.h.b16 %v26143_v55  ;;  %v24541_v1 = vld [vmem:[%s34262_s1 + $0xf40] sm:$0xff] }
  0xde   : > { %5790 = vmatpush.bf16.msra.mxu0 %v24569_v17  ;;  %v26443_v17 = vld [vmem:[%s25576_s24 + $0xf8] sm:$0xff] }
  0xdf   : > { %v26418_v45 = vadd.f32 %v5453_v13, %v5425_v46  ;;  %34733 = vst [vmem:[#allocation30_spill] sm:$0xff] %v26443_v17  ;;  %v24567_v46 = vld [vmem:[%s34262_s1 + $0x1010] sm:$0xff] }
  0xe0   : > { %v5368_v32 = vpop.f32.mrf.mxu1  ;;  %v5455_v50 = vpop.f32.mrf.mxu0  ;;  %5706 = vmatpush.bf16.msra.mxu1 %v24542_v44  ;;  %v2740_v44 = vpack.c.b16 %v34367_v29, %v34368_v36  ;;  %v34737_v36 = vunpack.c.l.b16 %v26443_v17 }
  0xe1   : > { %v5369_v41 = vadd.f32 %v5368_v32, %v26252_v11  ;;  %v26430_v53 = vpop.f32.mrf.mxu2  ;;  %v26432_v13 = vpop.f32.mrf.mxu3  ;;  %v26446_v11 = vld [vmem:[%s25576_s24 + $0x1b8] sm:$0xff] }
  0xe2   : > { %34734 = vst [vmem:[#allocation31_spill] sm:$0xff] %v26446_v11  ;;  %5791 = vmatpush.bf16.msra.mxu0 %v24568_v28 }
  0xe3   : > { %v5398_v43 = vadd.f32 %v26299_v5, %v5369_v41 }
  0xe4   : > { %5707 = vmatpush.bf16.msra.mxu1 %v24541_v1  ;;  %v34740_v1 = vunpack.c.h.b16 %v26446_v11 }
  0xe5   : > { %v5427_v40 = vadd.f32 %v26301_v18, %v5398_v43  ;;  %v34735_v18 = vunpack.c.l.b16 %v26421_v39  ;;  %v34736_v43 = vunpack.c.l.b16 %v26424_v12 }
  0xe6   : > { %5792 = vmatpush.bf16.msra.mxu0 %v24567_v46 }
  0xe7   : > { %v26459_v28 = vadd.f32 %v5455_v50, %v5427_v40  ;;  %v2743_v5 = vpack.c.b16 %v34736_v43, %v34735_v18  ;;  %v34738_v18 = vunpack.c.l.b16 %v26446_v11  ;;  %v34739_v43 = vunpack.c.h.b16 %v26443_v17 }
  0xe8   : > { %v5371_v41 = vpop.f32.mrf.mxu1  ;;  %v5458_v32 = vpop.f32.mrf.mxu0 }
  0xe9   : > { %v5372_v50 = vadd.f32 %v5371_v41, %v26179_v9  ;;  %v26473_v40 = vpop.f32.mrf.mxu2  ;;  %v26475_v29 = vpop.f32.mrf.mxu3  ;;  %v2649_v46 = vpack.c.b16 %v34738_v18, %v34737_v36  ;;  %v2650_v58 = vpack.c.b16 %v34740_v1, %v34739_v43  ;;  %v24565_v9 = vld [vmem:[%s34262_s1 + $0x1000] sm:$0xff]  ;;  %v26493_v43 = vld [vmem:[%s25576_s24 + $0x570] sm:$0xff]  ;;  %v26512_v1 = vld [vmem:[%s25576_s24 + $0x338] sm:$0xff] }
  0xea   : > { %5793 = vmatpush.bf16.msra.mxu0 %v24566_v54  ;;  %34741 = vst [vmem:[#allocation32_spill] sm:$0xff] %v26493_v43 }
  0xeb   : > { %v5401_v55 = vadd.f32 %v26342_v15, %v5372_v50  ;;  %5602 = vmatmul.bf16.gmra.mxu1 %v2740_v44  ;;  %5689 = vmatmul.bf16.gmra.mxu0 %v2743_v5  ;;  %v26496_v15 = vld [vmem:[%s25576_s24 + $0x630] sm:$0xff]  ;;  %34743 = vst [vmem:[#allocation34_spill] sm:$0xff] %v26512_v1 }
  0xec   : > { %v2599_v50 = vunpack.c.l.b16 %v26496_v15 }
  0xed   : > { %v5430_v41 = vadd.f32 %v26344_v63, %v5401_v55  ;;  %5737 = vmatmul.bf16.vlgmr.msrb.gmra.mxu2 %v2649_v46  ;;  %5766 = vmatmul.bf16.vlgmr.msrb.gmra.mxu3 %v2650_v58  ;;  %v2596_v63 = vunpack.c.h.b16 %v26209_v7  ;;  %v26509_v46 = vld [vmem:[%s25576_s24 + $0x278] sm:$0xff]  ;;  %v34383_v7 = vunpack.c.h.b16 %v26512_v1 }
  0xee   : > { %5794 = vmatpush.bf16.msra.mxu0 %v24565_v9  ;;  %34742 = vst [vmem:[#allocation33_spill] sm:$0xff] %v26509_v46  ;;  %v34381_v9 = vunpack.c.l.b16 %v26509_v46 }
  0xef   : > { %v26490_v36 = vadd.f32 %v5458_v32, %v5430_v41  ;;  %v34382_v32 = vunpack.c.l.b16 %v26493_v43 }
  0xf0   : > { %v5373_v18 = vpop.f32.mrf.mxu1  ;;  %v5460_v11 = vpop.f32.mrf.mxu0 }
  0xf1   : > { %v5374_v54 = vadd.f32 %v5373_v18, %v26201_v61  ;;  %v26499_v5 = vpop.f32.mrf.mxu2  ;;  %v26501_v44 = vpop.f32.mrf.mxu3  ;;  %v34384_v18 = vunpack.c.h.b16 %v26509_v46  ;;  %v2791_v17 = vpack.c.b16 %v2599_v50, %v34382_v32  ;;  %v26546_v32 = vld [vmem:[%s25576_s24 + $0x100] sm:$0xff] }
  0xf2   : > { %34746 = vst [vmem:[#allocation35_spill] sm:$0xff] %v26546_v32 }
  0xf3   : > { %v5403_v58 = vadd.f32 %v26393_v31, %v5374_v54  ;;  %v34744_v31 = vunpack.c.h.b16 %v26206_v16 }
  0xf5   : > { %v5432_v61 = vadd.f32 %v26395_v37, %v5403_v58  ;;  %v2788_v54 = vpack.c.b16 %v2596_v63, %v34744_v31  ;;  %v2698_v63 = vpack.c.b16 %v34383_v7, %v34384_v18  ;;  %v26549_v7 = vld [vmem:[%s25576_s24 + $0x1c0] sm:$0xff] }
  0xf6   : > { %34747 = vst [vmem:[#allocation36_spill] sm:$0xff] %v26549_v7 }
  0xf7   : > { %v26519_v55 = vadd.f32 %v5460_v11, %v5432_v61  ;;  %v34745_v11 = vunpack.c.l.b16 %v26512_v1 }
  0xf8   : > { %v5376_v52 = vpop.f32.mrf.mxu1  ;;  %v5463_v22 = vpop.f32.mrf.mxu0 }
  0xf9   : > { %v5377_v37 = vadd.f32 %v5376_v52, %v26231_v2  ;;  %v26526_v58 = vpop.f32.mrf.mxu2  ;;  %v26528_v41 = vpop.f32.mrf.mxu3  ;;  %v2697_v61 = vpack.c.b16 %v34745_v11, %v34381_v9  ;;  %v24588_v52 = vld [vmem:[%s34262_s1 + $0x10b8] sm:$0xff] }
  0xfa   : > { %5845 = vmatpush.bf16.msra.mxu2 %v24588_v52  ;;  %v26571_v52 = vld [vmem:[%s25576_s24 + $0x4b8] sm:$0xff] }
  0xfb   : > { %v5406_v50 = vadd.f32 %v26430_v53, %v5377_v37  ;;  %5607 = vmatmul.bf16.gmra.mxu1 %v2788_v54  ;;  %5694 = vmatmul.bf16.gmra.mxu0 %v2791_v17  ;;  %v24596_v53 = vld [vmem:[%s34262_s1 + $0x10f8] sm:$0xff]  ;;  %v24587_v37 = vld [vmem:[%s34262_s1 + $0x10b0] sm:$0xff]  ;;  %34749 = vst [vmem:[#allocation38_spill] sm:$0xff] %v26571_v52 }
  0xfc   : > { %5874 = vmatpush.bf16.msra.mxu3 %v24596_v53 }
  0xfd   : > { %v5435_v2 = vadd.f32 %v26432_v13, %v5406_v50  ;;  %5742 = vmatmul.bf16.gmra.mxu2 %v2697_v61  ;;  %5771 = vmatmul.bf16.gmra.mxu3 %v2698_v63  ;;  %v34750_v50 = vunpack.c.h.b16 %v26258_v30  ;;  %v34752_v61 = vunpack.c.l.b16 %v26549_v7  ;;  %v24580_v30 = vld [vmem:[%s34262_s1 + $0x1078] sm:$0xff] }
  0xfe   : > { %5846 = vmatpush.bf16.msra.mxu2 %v24587_v37  ;;  %5816 = vmatpush.bf16.msrb.mxu1 %v24580_v30  ;;  %v26630_v30 = vld [vmem:[%s25576_s24 + $0x280] sm:$0xff] }
  0xff   : > { %v26543_v31 = vadd.f32 %v5463_v22, %v5435_v2  ;;  %v34387_v22 = vunpack.c.h.b16 %v26255_v42  ;;  %v24586_v2 = vld [vmem:[%s34262_s1 + $0x10a8] sm:$0xff]  ;;  %34757 = vst [vmem:[#allocation39_spill] sm:$0xff] %v26630_v30 }
 0x100   : > { %v5378_v11 = vpop.f32.mrf.mxu1  ;;  %v5465_v9 = vpop.f32.mrf.mxu0 }
 0x101   : > { %v5379_v13 = vadd.f32 %v5378_v11, %v26250_v6  ;;  %v26555_v17 = vpop.f32.mrf.mxu2  ;;  %v26557_v54 = vpop.f32.mrf.mxu3  ;;  %v26568_v6 = vld [vmem:[%s25576_s24 + $0x3f8] sm:$0xff]  ;;  %v24595_v11 = vld [vmem:[%s34262_s1 + $0x10f0] sm:$0xff] }
 0x102   : > { %34748 = vst [vmem:[#allocation37_spill] sm:$0xff] %v26568_v6  ;;  %5875 = vmatpush.bf16.msra.mxu3 %v24595_v11  ;;  %5847 = vmatpush.bf16.msra.mxu2 %v24586_v2  ;;  %v24594_v11 = vld [vmem:[%s34262_s1 + $0x10e8] sm:$0xff] }
 0x103   : > { %v5408_v63 = vadd.f32 %v26473_v40, %v5379_v13 }
 0x105   : > { %v5437_v53 = vadd.f32 %v26475_v29, %v5408_v63  ;;  %v2648_v29 = vpack.c.b16 %v34750_v50, %v34387_v22  ;;  %v34751_v63 = vunpack.c.l.b16 %v26546_v32  ;;  %v34753_v50 = vunpack.c.l.b16 %v26568_v6 }
 0x106   : > { %v34754_v22 = vunpack.c.l.b16 %v26571_v52  ;;  %5876 = vmatpush.bf16.msra.mxu3 %v24594_v11  ;;  %v24579_v11 = vld [vmem:[%s34262_s1 + $0x1070] sm:$0xff] }
 0x107   : > { %v26584_v37 = vadd.f32 %v5465_v9, %v5437_v53  ;;  %v2651_v18 = vpack.c.b16 %v34752_v61, %v34751_v63  ;;  %v34755_v61 = vunpack.c.h.b16 %v26568_v6  ;;  %v34756_v63 = vunpack.c.h.b16 %v26571_v52  ;;  %5817 = vmatpush.bf16.msrb.mxu1 %v24579_v11 }
 0x108   : > { %v5477_v40 = vpop.f32.mrf.mxu1  ;;  %v5564_v1 = vpop.f32.mrf.mxu0  ;;  %v2745_v46 = vpack.c.b16 %v34754_v22, %v34753_v50  ;;  %v24593_v22 = vld [vmem:[%s34262_s1 + $0x10e0] sm:$0xff]  ;;  %v34760_v6 = vunpack.c.h.b16 %v26330_v49 }
 0x109   : > { %v5478_v9 = vadd.f32 %v5477_v40, %v26327_v27  ;;  %v26598_v53 = vpop.f32.mrf.mxu2  ;;  %v26600_v13 = vpop.f32.mrf.mxu3  ;;  %v2746_v2 = vpack.c.b16 %v34756_v63, %v34755_v61  ;;  %v24585_v27 = vld [vmem:[%s34262_s1 + $0x10a0] sm:$0xff] }
 0x10a   : > { %5848 = vmatpush.bf16.msra.mxu2 %v24585_v27  ;;  %5877 = vmatpush.bf16.msra.mxu3 %v24593_v22  ;;  %v26633_v61 = vld [vmem:[%s25576_s24 + $0x340] sm:$0xff]  ;;  %v24583_v22 = vld [vmem:[%s34262_s1 + $0x1090] sm:$0xff]  ;;  %v1273_v27 = vld [vmem:[%s25576_s24 + $0x638] sm:$0xff] }
 0x10b   : > { %v5507_v40 = vadd.f32 %v26499_v5, %v5478_v9  ;;  %5708 = vmatmul.bf16.vlgmr.msra.gmra.mxu1 %v2648_v29  ;;  %5795 = vmatmul.bf16.vlgmr.msra.gmra.mxu0 %v2651_v18  ;;  %v24584_v5 = vld [vmem:[%s34262_s1 + $0x1098] sm:$0xff]  ;;  %34758 = vst [vmem:[#allocation40_spill] sm:$0xff] %v26633_v61  ;;  %v2602_v52 = vunpack.c.h.b16 %v1273_v27  ;;  %v24581_v49 = vld [vmem:[%s34262_s1 + $0x1080] sm:$0xff] }
 0x10d   : > { %v5536_v50 = vadd.f32 %v26501_v44, %v5507_v40  ;;  %5747 = vmatmul.bf16.gmra.mxu2 %v2745_v46  ;;  %5776 = vmatmul.bf16.gmra.mxu3 %v2746_v2  ;;  %v24592_v44 = vld [vmem:[%s34262_s1 + $0x10d8] sm:$0xff]  ;;  %v24578_v40 = vld [vmem:[%s34262_s1 + $0x1068] sm:$0xff] }
 0x10e   : > { %5849 = vmatpush.bf16.msra.mxu2 %v24584_v5  ;;  %v24604_v46 = vld [vmem:[%s34262_s1 + $0x1138] sm:$0xff]  ;;  %5878 = vmatpush.bf16.msra.mxu3 %v24592_v44  ;;  %v24577_v44 = vld [vmem:[%s34262_s1 + $0x1060] sm:$0xff] }
 0x10f   : > { %v26627_v29 = vadd.f32 %v5564_v1, %v5536_v50  ;;  %5903 = vmatpush.bf16.msrb.mxu0 %v24604_v46  ;;  %5818 = vmatpush.bf16.msrb.mxu1 %v24578_v40  ;;  %v24591_v46 = vld [vmem:[%s34262_s1 + $0x10d0] sm:$0xff]  ;;  %v24582_v40 = vld [vmem:[%s34262_s1 + $0x1088] sm:$0xff] }
 0x110   : > { %v5479_v18 = vpop.f32.mrf.mxu1  ;;  %v5566_v9 = vpop.f32.mrf.mxu0  ;;  %v24603_v50 = vld [vmem:[%s34262_s1 + $0x1130] sm:$0xff] }
 0x111   : > { %v5480_v1 = vadd.f32 %v5479_v18, %v26376_v8  ;;  %v26642_v63 = vpop.f32.mrf.mxu2  ;;  %v26644_v2 = vpop.f32.mrf.mxu3  ;;  %v26658_v18 = vld [vmem:[%s25576_s24 + $0x578] sm:$0xff]  ;;  %v2601_v8 = vunpack.c.l.b16 %v1273_v27  ;;  %v34763_v27 = vunpack.c.l.b16 %v26633_v61 }
 0x112   : > { %34759 = vst [vmem:[#allocation41_spill] sm:$0xff] %v26658_v18  ;;  %5850 = vmatpush.bf16.msra.mxu2 %v24583_v22  ;;  %5879 = vmatpush.bf16.msra.mxu3 %v24591_v46  ;;  %v34764_v46 = vunpack.c.l.b16 %v26658_v18 }
 0x113   : > { %v5509_v11 = vadd.f32 %v26526_v58, %v5480_v1  ;;  %5904 = vmatpush.bf16.msrb.mxu0 %v24603_v50  ;;  %v34762_v1 = vunpack.c.l.b16 %v26630_v30  ;;  %5819 = vmatpush.bf16.msrb.mxu1 %v24577_v44  ;;  %v34765_v44 = vunpack.c.h.b16 %v26658_v18 }
 0x115   : > { %v5538_v58 = vadd.f32 %v26528_v41, %v5509_v11  ;;  %v34761_v41 = vunpack.c.h.b16 %v26333_v56  ;;  %v2699_v50 = vpack.c.b16 %v34763_v27, %v34762_v1  ;;  %v2793_v1 = vpack.c.b16 %v2601_v8, %v34764_v46  ;;  %v24576_v27 = vld [vmem:[%s34262_s1 + $0x1058] sm:$0xff]  ;;  %v24601_v8 = vld [vmem:[%s34262_s1 + $0x1120] sm:$0xff] }
 0x116   : > { %5851 = vmatpush.bf16.msra.mxu2 %v24582_v40  ;;  %v2794_v40 = vpack.c.b16 %v2602_v52, %v34765_v44  ;;  %v24589_v52 = vld [vmem:[%s34262_s1 + $0x10c0] sm:$0xff]  ;;  %v24574_v44 = vld [vmem:[%s34262_s1 + $0x1048] sm:$0xff] }
 0x117   : > { %v26676_v22 = vadd.f32 %v5566_v9, %v5538_v58  ;;  %v2696_v11 = vpack.c.b16 %v34761_v41, %v34760_v6  ;;  %v24590_v9 = vld [vmem:[%s34262_s1 + $0x10c8] sm:$0xff]  ;;  %5820 = vmatpush.bf16.msrb.mxu1 %v24576_v27  ;;  %v34402_v27 = vunpack.c.h.b16 %v26424_v12 }
 0x118   : > { %v5482_v5 = vpop.f32.mrf.mxu1  ;;  %v5569_v42 = vpop.f32.mrf.mxu0  ;;  %v24602_v58 = vld [vmem:[%s34262_s1 + $0x1128] sm:$0xff]  ;;  %5880 = vmatpush.bf16.msra.mxu3 %v24590_v9 }
 0x119   : > { %v5483_v6 = vadd.f32 %v5482_v5, %v26418_v45  ;;  %v26693_v41 = vpop.f32.mrf.mxu2  ;;  %v26695_v56 = vpop.f32.mrf.mxu3  ;;  %5905 = vmatpush.bf16.msrb.mxu0 %v24602_v58  ;;  %v26721_v58 = vld [vmem:[%s25576_s24 + $0x400] sm:$0xff] }
 0x11a   : > { %5852 = vmatpush.bf16.msra.mxu2 %v24581_v49  ;;  %34766 = vst [vmem:[#allocation42_spill] sm:$0xff] %v26721_v58  ;;  %v24600_v49 = vld [vmem:[%s34262_s1 + $0x1118] sm:$0xff] }
 0x11b   : > { %v5512_v45 = vadd.f32 %v26555_v17, %v5483_v6  ;;  %5713 = vmatmul.bf16.gmra.mxu1 %v2696_v11  ;;  %5800 = vmatmul.bf16.gmra.mxu0 %v2699_v50  ;;  %v24575_v17 = vld [vmem:[%s34262_s1 + $0x1050] sm:$0xff]  ;;  %v26724_v6 = vld [vmem:[%s25576_s24 + $0x4c0] sm:$0xff] }
 0x11c   : > { %34767 = vst [vmem:[#allocation43_spill] sm:$0xff] %v26724_v6  ;;  %5881 = vmatpush.bf16.msra.mxu3 %v24589_v52  ;;  %5821 = vmatpush.bf16.msrb.mxu1 %v24575_v17  ;;  %v24598_v52 = vld [vmem:[%s34262_s1 + $0x1108] sm:$0xff] }
 0x11d   : > { %v5541_v5 = vadd.f32 %v26557_v54, %v5512_v45  ;;  %5752 = vmatmul.bf16.gmra.mxu2 %v2793_v1  ;;  %5781 = vmatmul.bf16.gmra.mxu3 %v2794_v40  ;;  %v34403_v1 = vunpack.c.h.b16 %v26421_v39  ;;  %v24573_v45 = vld [vmem:[%s34262_s1 + $0x1040] sm:$0xff] }
 0x11e   : > { %5906 = vmatpush.bf16.msrb.mxu0 %v24601_v8  ;;  %v26743_v8 = vld [vmem:[%s25576_s24 + $0x108] sm:$0xff] }
 0x11f   : > { %v26718_v11 = vadd.f32 %v5569_v42, %v5541_v5  ;;  %34768 = vst [vmem:[#allocation44_spill] sm:$0xff] %v26743_v8  ;;  %v24599_v5 = vld [vmem:[%s34262_s1 + $0x1110] sm:$0xff] }
 0x120   : > { %v5484_v50 = vpop.f32.mrf.mxu1  ;;  %v5571_v9 = vpop.f32.mrf.mxu0  ;;  %5822 = vmatpush.bf16.msrb.mxu1 %v24574_v44  ;;  %v2744_v44 = vpack.c.b16 %v34402_v27, %v34403_v1  ;;  %v34772_v1 = vunpack.c.l.b16 %v26743_v8 }
 0x121   : > { %v5485_v54 = vadd.f32 %v5484_v50, %v26459_v28  ;;  %v26730_v46 = vpop.f32.mrf.mxu2  ;;  %v26732_v42 = vpop.f32.mrf.mxu3  ;;  %v26746_v28 = vld [vmem:[%s25576_s24 + $0x1c8] sm:$0xff] }
 0x122   : > { %34769 = vst [vmem:[#allocation45_spill] sm:$0xff] %v26746_v28  ;;  %5907 = vmatpush.bf16.msrb.mxu0 %v24600_v49 }
 0x123   : > { %v5514_v40 = vadd.f32 %v26598_v53, %v5485_v54 }
 0x124   : > { %5823 = vmatpush.bf16.msrb.mxu1 %v24573_v45  ;;  %v34775_v45 = vunpack.c.h.b16 %v26746_v28 }
 0x125   : > { %v5543_v17 = vadd.f32 %v26600_v13, %v5514_v40  ;;  %v34770_v13 = vunpack.c.l.b16 %v26721_v58  ;;  %v34771_v40 = vunpack.c.l.b16 %v26724_v6 }
 0x126   : > { %5908 = vmatpush.bf16.msrb.mxu0 %v24599_v5 }
 0x127   : > { %v26759_v49 = vadd.f32 %v5571_v9, %v5543_v17  ;;  %v2747_v50 = vpack.c.b16 %v34771_v40, %v34770_v13  ;;  %v34773_v13 = vunpack.c.l.b16 %v26746_v28  ;;  %v34774_v40 = vunpack.c.h.b16 %v26743_v8 }
 0x128   : > { %v5487_v54 = vpop.f32.mrf.mxu1  ;;  %v5574_v53 = vpop.f32.mrf.mxu0 }
 0x129   : > { %v5488_v9 = vadd.f32 %v5487_v54, %v26490_v36  ;;  %v26773_v17 = vpop.f32.mrf.mxu2  ;;  %v26775_v27 = vpop.f32.mrf.mxu3  ;;  %v2653_v5 = vpack.c.b16 %v34773_v13, %v34772_v1  ;;  %v2654_v18 = vpack.c.b16 %v34775_v45, %v34774_v40  ;;  %v24597_v36 = vld [vmem:[%s34262_s1 + $0x1100] sm:$0xff]  ;;  %v26812_v45 = vld [vmem:[%s25576_s24 + $0x348] sm:$0xff] }
 0x12a   : > { %5909 = vmatpush.bf16.msrb.mxu0 %v24598_v52  ;;  %v26793_v40 = vld [vmem:[%s25576_s24 + $0x580] sm:$0xff]  ;;  %34778 = vst [vmem:[#allocation48_spill] sm:$0xff] %v26812_v45 }
 0x12b   : > { %v5517_v12 = vadd.f32 %v26642_v63, %v5488_v9  ;;  %5718 = vmatmul.bf16.gmra.mxu1 %v2744_v44  ;;  %5805 = vmatmul.bf16.gmra.mxu0 %v2747_v50  ;;  %34776 = vst [vmem:[#allocation46_spill] sm:$0xff] %v26793_v40  ;;  %v26796_v63 = vld [vmem:[%s25576_s24 + $0x640] sm:$0xff] }
 0x12c   : > { %v2603_v9 = vunpack.c.l.b16 %v26796_v63 }
 0x12d   : > { %v5546_v54 = vadd.f32 %v26644_v2, %v5517_v12  ;;  %5853 = vmatmul.bf16.vlgmr.msra.gmra.mxu2 %v2653_v5  ;;  %5882 = vmatmul.bf16.vlgmr.msra.gmra.mxu3 %v2654_v18  ;;  %v34418_v12 = vunpack.c.h.b16 %v26493_v43  ;;  %v2600_v18 = vunpack.c.h.b16 %v26496_v15  ;;  %v26809_v5 = vld [vmem:[%s25576_s24 + $0x288] sm:$0xff] }
 0x12e   : > { %5910 = vmatpush.bf16.msrb.mxu0 %v24597_v36  ;;  %34777 = vst [vmem:[#allocation47_spill] sm:$0xff] %v26809_v5  ;;  %v34417_v36 = vunpack.c.l.b16 %v26809_v5 }
 0x12f   : > { %v26790_v1 = vadd.f32 %v5574_v53, %v5546_v54  ;;  %v34416_v53 = vunpack.c.l.b16 %v26793_v40  ;;  %v2792_v15 = vpack.c.b16 %v2600_v18, %v34418_v12  ;;  %v26846_v12 = vld [vmem:[%s25576_s24 + $0x110] sm:$0xff] }
 0x130   : > { %v5489_v13 = vpop.f32.mrf.mxu1  ;;  %v5576_v28 = vpop.f32.mrf.mxu0  ;;  %34780 = vst [vmem:[#allocation49_spill] sm:$0xff] %v26846_v12 }
 0x131   : > { %v5490_v52 = vadd.f32 %v5489_v13, %v26519_v55  ;;  %v26799_v50 = vpop.f32.mrf.mxu2  ;;  %v26801_v44 = vpop.f32.mrf.mxu3  ;;  %v34420_v13 = vunpack.c.h.b16 %v26809_v5  ;;  %v2795_v8 = vpack.c.b16 %v2603_v9, %v34416_v53 }
 0x133   : > { %v5519_v2 = vadd.f32 %v26693_v41, %v5490_v52  ;;  %v34419_v41 = vunpack.c.h.b16 %v26812_v45 }
 0x135   : > { %v5548_v55 = vadd.f32 %v26695_v56, %v5519_v2  ;;  %v2702_v18 = vpack.c.b16 %v34419_v41, %v34420_v13  ;;  %v26849_v41 = vld [vmem:[%s25576_s24 + $0x1d0] sm:$0xff] }
 0x136   : > { %34781 = vst [vmem:[#allocation50_spill] sm:$0xff] %v26849_v41 }
 0x137   : > { %v26819_v52 = vadd.f32 %v5576_v28, %v5548_v55  ;;  %v34779_v28 = vunpack.c.l.b16 %v26812_v45 }
 0x138   : > { %v5492_v39 = vpop.f32.mrf.mxu1  ;;  %v5579_v16 = vpop.f32.mrf.mxu0 }
 0x139   : > { %v5493_v56 = vadd.f32 %v5492_v39, %v26543_v31  ;;  %v26826_v2 = vpop.f32.mrf.mxu2  ;;  %v26828_v54 = vpop.f32.mrf.mxu3  ;;  %v2701_v55 = vpack.c.b16 %v34779_v28, %v34417_v36  ;;  %v24620_v31 = vld [vmem:[%s34262_s1 + $0x11b8] sm:$0xff] }
 0x13a   : > { %5961 = vmatpush.bf16.msrb.mxu2 %v24620_v31  ;;  %v26871_v31 = vld [vmem:[%s25576_s24 + $0x4c8] sm:$0xff] }
 0x13b   : > { %v5522_v9 = vadd.f32 %v26730_v46, %v5493_v56  ;;  %5723 = vmatmul.bf16.gmra.mxu1 %v2792_v15  ;;  %5810 = vmatmul.bf16.gmra.mxu0 %v2795_v8  ;;  %v24628_v46 = vld [vmem:[%s34262_s1 + $0x11f8] sm:$0xff]  ;;  %v24619_v56 = vld [vmem:[%s34262_s1 + $0x11b0] sm:$0xff]  ;;  %34783 = vst [vmem:[#allocation52_spill] sm:$0xff] %v26871_v31 }
 0x13c   : > { %5990 = vmatpush.bf16.msrb.mxu3 %v24628_v46 }
 0x13d   : > { %v5551_v39 = vadd.f32 %v26732_v42, %v5522_v9  ;;  %5858 = vmatmul.bf16.gmra.mxu2 %v2701_v55  ;;  %5887 = vmatmul.bf16.gmra.mxu3 %v2702_v18  ;;  %v34423_v18 = vunpack.c.h.b16 %v26549_v7  ;;  %v24612_v7 = vld [vmem:[%s34262_s1 + $0x1178] sm:$0xff] }
 0x13e   : > { %5962 = vmatpush.bf16.msrb.mxu2 %v24619_v56  ;;  %5932 = vmatpush.bf16.msra.mxu1 %v24612_v7  ;;  %v26930_v7 = vld [vmem:[%s25576_s24 + $0x290] sm:$0xff] }
 0x13f   : > { %v26843_v53 = vadd.f32 %v5579_v16, %v5551_v39  ;;  %v34424_v16 = vunpack.c.h.b16 %v26546_v32  ;;  %v24618_v39 = vld [vmem:[%s34262_s1 + $0x11a8] sm:$0xff]  ;;  %34790 = vst [vmem:[#allocation53_spill] sm:$0xff] %v26930_v7 }
 0x140   : > { %v5494_v28 = vpop.f32.mrf.mxu1  ;;  %v5581_v36 = vpop.f32.mrf.mxu0 }
 0x141   : > { %v5495_v42 = vadd.f32 %v5494_v28, %v26584_v37  ;;  %v26855_v8 = vpop.f32.mrf.mxu2  ;;  %v26857_v15 = vpop.f32.mrf.mxu3  ;;  %v26868_v37 = vld [vmem:[%s25576_s24 + $0x408] sm:$0xff]  ;;  %v24627_v28 = vld [vmem:[%s34262_s1 + $0x11f0] sm:$0xff] }
 0x142   : > { %34782 = vst [vmem:[#allocation51_spill] sm:$0xff] %v26868_v37  ;;  %5991 = vmatpush.bf16.msrb.mxu3 %v24627_v28  ;;  %5963 = vmatpush.bf16.msrb.mxu2 %v24618_v39  ;;  %v24626_v28 = vld [vmem:[%s34262_s1 + $0x11e8] sm:$0xff] }
 0x143   : > { %v5524_v55 = vadd.f32 %v26773_v17, %v5495_v42  ;;  %v34785_v17 = vunpack.c.l.b16 %v26849_v41 }
 0x145   : > { %v5553_v46 = vadd.f32 %v26775_v27, %v5524_v55  ;;  %v2652_v27 = vpack.c.b16 %v34423_v18, %v34424_v16  ;;  %v34784_v55 = vunpack.c.l.b16 %v26846_v12  ;;  %v34786_v18 = vunpack.c.l.b16 %v26868_v37 }
 0x146   : > { %v34787_v16 = vunpack.c.l.b16 %v26871_v31  ;;  %5992 = vmatpush.bf16.msrb.mxu3 %v24626_v28  ;;  %v24611_v28 = vld [vmem:[%s34262_s1 + $0x1170] sm:$0xff] }
 0x147   : > { %v26884_v56 = vadd.f32 %v5581_v36, %v5553_v46  ;;  %v2655_v13 = vpack.c.b16 %v34785_v17, %v34784_v55  ;;  %v34788_v17 = vunpack.c.h.b16 %v26868_v37  ;;  %v34789_v55 = vunpack.c.h.b16 %v26871_v31  ;;  %5933 = vmatpush.bf16.msra.mxu1 %v24611_v28 }
 0x148   : > { %v5593_v42 = vpop.f32.mrf.mxu1  ;;  %v5680_v45 = vpop.f32.mrf.mxu0  ;;  %v2749_v5 = vpack.c.b16 %v34787_v16, %v34786_v18  ;;  %v24625_v16 = vld [vmem:[%s34262_s1 + $0x11e0] sm:$0xff]  ;;  %v34793_v37 = vunpack.c.h.b16 %v26630_v30 }
 0x149   : > { %v5594_v36 = vadd.f32 %v5593_v42, %v26627_v29  ;;  %v26898_v46 = vpop.f32.mrf.mxu2  ;;  %v26900_v9 = vpop.f32.mrf.mxu3  ;;  %v2750_v39 = vpack.c.b16 %v34789_v55, %v34788_v17  ;;  %v24617_v29 = vld [vmem:[%s34262_s1 + $0x11a0] sm:$0xff]  ;;  %v26933_v17 = vld [vmem:[%s25576_s24 + $0x350] sm:$0xff] }
 0x14a   : > { %5964 = vmatpush.bf16.msrb.mxu2 %v24617_v29  ;;  %5993 = vmatpush.bf16.msrb.mxu3 %v24625_v16  ;;  %34791 = vst [vmem:[#allocation54_spill] sm:$0xff] %v26933_v17  ;;  %v24615_v16 = vld [vmem:[%s34262_s1 + $0x1190] sm:$0xff]  ;;  %v1275_v29 = vld [vmem:[%s25576_s24 + $0x648] sm:$0xff]  ;;  %v24613_v30 = vld [vmem:[%s34262_s1 + $0x1180] sm:$0xff] }
 0x14b   : > { %v5623_v42 = vadd.f32 %v26799_v50, %v5594_v36  ;;  %5824 = vmatmul.bf16.vlgmr.msrb.gmra.mxu1 %v2652_v27  ;;  %5911 = vmatmul.bf16.vlgmr.msrb.gmra.mxu0 %v2655_v13  ;;  %v24616_v50 = vld [vmem:[%s34262_s1 + $0x1198] sm:$0xff]  ;;  %v2605_v28 = vunpack.c.l.b16 %v1275_v29  ;;  %v2606_v31 = vunpack.c.h.b16 %v1275_v29  ;;  %v34796_v29 = vunpack.c.l.b16 %v26933_v17 }
 0x14d   : > { %v5652_v18 = vadd.f32 %v26801_v44, %v5623_v42  ;;  %5863 = vmatmul.bf16.gmra.mxu2 %v2749_v5  ;;  %5892 = vmatmul.bf16.gmra.mxu3 %v2750_v39  ;;  %v24624_v44 = vld [vmem:[%s34262_s1 + $0x11d8] sm:$0xff]  ;;  %v24610_v42 = vld [vmem:[%s34262_s1 + $0x1168] sm:$0xff] }
 0x14e   : > { %5965 = vmatpush.bf16.msrb.mxu2 %v24616_v50  ;;  %v24636_v5 = vld [vmem:[%s34262_s1 + $0x1238] sm:$0xff]  ;;  %5994 = vmatpush.bf16.msrb.mxu3 %v24624_v44  ;;  %v24609_v44 = vld [vmem:[%s34262_s1 + $0x1160] sm:$0xff] }
 0x14f   : > { %v26927_v27 = vadd.f32 %v5680_v45, %v5652_v18  ;;  %6019 = vmatpush.bf16.msra.mxu0 %v24636_v5  ;;  %5934 = vmatpush.bf16.msra.mxu1 %v24610_v42  ;;  %v24623_v5 = vld [vmem:[%s34262_s1 + $0x11d0] sm:$0xff]  ;;  %v24614_v42 = vld [vmem:[%s34262_s1 + $0x1188] sm:$0xff] }
 0x150   : > { %v5595_v13 = vpop.f32.mrf.mxu1  ;;  %v5682_v36 = vpop.f32.mrf.mxu0 }
 0x151   : > { %v5596_v45 = vadd.f32 %v5595_v13, %v26676_v22  ;;  %v26942_v55 = vpop.f32.mrf.mxu2  ;;  %v26944_v39 = vpop.f32.mrf.mxu3  ;;  %v26958_v13 = vld [vmem:[%s25576_s24 + $0x588] sm:$0xff]  ;;  %v34795_v22 = vunpack.c.l.b16 %v26930_v7 }
 0x152   : > { %34792 = vst [vmem:[#allocation55_spill] sm:$0xff] %v26958_v13  ;;  %5966 = vmatpush.bf16.msrb.mxu2 %v24615_v16  ;;  %5995 = vmatpush.bf16.msrb.mxu3 %v24623_v5 }
 0x153   : > { %v5625_v18 = vadd.f32 %v26826_v2, %v5596_v45  ;;  %v24635_v2 = vld [vmem:[%s34262_s1 + $0x1230] sm:$0xff]  ;;  %5935 = vmatpush.bf16.msra.mxu1 %v24609_v44  ;;  %v34798_v44 = vunpack.c.h.b16 %v26958_v13 }
 0x154   : > { %6020 = vmatpush.bf16.msra.mxu0 %v24635_v2  ;;  %v2703_v2 = vpack.c.b16 %v34796_v29, %v34795_v22  ;;  %v34797_v22 = vunpack.c.l.b16 %v26958_v13  ;;  %v24608_v29 = vld [vmem:[%s34262_s1 + $0x1158] sm:$0xff] }
 0x155   : > { %v5654_v45 = vadd.f32 %v26828_v54, %v5625_v18  ;;  %v34794_v54 = vunpack.c.h.b16 %v26633_v61 }
 0x156   : > { %5967 = vmatpush.bf16.msrb.mxu2 %v24614_v42  ;;  %v2797_v5 = vpack.c.b16 %v2605_v28, %v34797_v22  ;;  %v2798_v42 = vpack.c.b16 %v2606_v31, %v34798_v44  ;;  %v24621_v31 = vld [vmem:[%s34262_s1 + $0x11c0] sm:$0xff]  ;;  %v24606_v44 = vld [vmem:[%s34262_s1 + $0x1148] sm:$0xff] }
 0x157   : > { %v26976_v16 = vadd.f32 %v5682_v36, %v5654_v45  ;;  %v2700_v18 = vpack.c.b16 %v34794_v54, %v34793_v37  ;;  %v24622_v36 = vld [vmem:[%s34262_s1 + $0x11c8] sm:$0xff]  ;;  %5936 = vmatpush.bf16.msra.mxu1 %v24608_v29  ;;  %v24633_v28 = vld [vmem:[%s34262_s1 + $0x1220] sm:$0xff]  ;;  %v34439_v29 = vunpack.c.h.b16 %v26724_v6 }
 0x158   : > { %v5598_v50 = vpop.f32.mrf.mxu1  ;;  %v5685_v32 = vpop.f32.mrf.mxu0  ;;  %v24634_v45 = vld [vmem:[%s34262_s1 + $0x1228] sm:$0xff]  ;;  %5996 = vmatpush.bf16.msrb.mxu3 %v24622_v36 }
 0x159   : > { %v5599_v37 = vadd.f32 %v5598_v50, %v26718_v11  ;;  %v26993_v54 = vpop.f32.mrf.mxu2  ;;  %v26995_v61 = vpop.f32.mrf.mxu3  ;;  %6021 = vmatpush.bf16.msra.mxu0 %v24634_v45  ;;  %v27021_v45 = vld [vmem:[%s25576_s24 + $0x410] sm:$0xff] }
 0x15a   : > { %5968 = vmatpush.bf16.msrb.mxu2 %v24613_v30  ;;  %34799 = vst [vmem:[#allocation56_spill] sm:$0xff] %v27021_v45  ;;  %v24632_v30 = vld [vmem:[%s34262_s1 + $0x1218] sm:$0xff] }
 0x15b   : > { %v5628_v11 = vadd.f32 %v26855_v8, %v5599_v37  ;;  %5829 = vmatmul.bf16.gmra.mxu1 %v2700_v18  ;;  %5916 = vmatmul.bf16.gmra.mxu0 %v2703_v2  ;;  %v24607_v8 = vld [vmem:[%s34262_s1 + $0x1150] sm:$0xff] }
 0x15c   : > { %v27024_v37 = vld [vmem:[%s25576_s24 + $0x4d0] sm:$0xff]  ;;  %5997 = vmatpush.bf16.msrb.mxu3 %v24621_v31  ;;  %5937 = vmatpush.bf16.msra.mxu1 %v24607_v8  ;;  %v24630_v31 = vld [vmem:[%s34262_s1 + $0x1208] sm:$0xff] }
 0x15d   : > { %v5657_v50 = vadd.f32 %v26857_v15, %v5628_v11  ;;  %5868 = vmatmul.bf16.gmra.mxu2 %v2797_v5  ;;  %5897 = vmatmul.bf16.gmra.mxu3 %v2798_v42  ;;  %34800 = vst [vmem:[#allocation57_spill] sm:$0xff] %v27024_v37  ;;  %v34440_v5 = vunpack.c.h.b16 %v26721_v58  ;;  %v24605_v11 = vld [vmem:[%s34262_s1 + $0x1140] sm:$0xff] }
 0x15e   : > { %6022 = vmatpush.bf16.msra.mxu0 %v24633_v28  ;;  %v27043_v28 = vld [vmem:[%s25576_s24 + $0x118] sm:$0xff] }
 0x15f   : > { %v27018_v18 = vadd.f32 %v5685_v32, %v5657_v50  ;;  %34801 = vst [vmem:[#allocation58_spill] sm:$0xff] %v27043_v28  ;;  %v24631_v50 = vld [vmem:[%s34262_s1 + $0x1210] sm:$0xff] }
 0x160   : > { %v5600_v2 = vpop.f32.mrf.mxu1  ;;  %v5687_v36 = vpop.f32.mrf.mxu0  ;;  %5938 = vmatpush.bf16.msra.mxu1 %v24606_v44  ;;  %v2748_v44 = vpack.c.b16 %v34439_v29, %v34440_v5  ;;  %v34805_v5 = vunpack.c.l.b16 %v27043_v28 }
 0x161   : > { %v5601_v15 = vadd.f32 %v5600_v2, %v26759_v49  ;;  %v27030_v22 = vpop.f32.mrf.mxu2  ;;  %v27032_v32 = vpop.f32.mrf.mxu3  ;;  %v27046_v49 = vld [vmem:[%s25576_s24 + $0x1d8] sm:$0xff] }
 0x162   : > { %34802 = vst [vmem:[#allocation59_spill] sm:$0xff] %v27046_v49  ;;  %6023 = vmatpush.bf16.msra.mxu0 %v24632_v30 }
 0x163   : > { %v5630_v42 = vadd.f32 %v26898_v46, %v5601_v15 }
 0x164   : > { %5939 = vmatpush.bf16.msra.mxu1 %v24605_v11  ;;  %v34808_v11 = vunpack.c.h.b16 %v27046_v49 }
 0x165   : > { %v5659_v8 = vadd.f32 %v26900_v9, %v5630_v42  ;;  %v34803_v9 = vunpack.c.l.b16 %v27021_v45  ;;  %v34804_v42 = vunpack.c.l.b16 %v27024_v37 }
 0x166   : > { %6024 = vmatpush.bf16.msra.mxu0 %v24631_v50 }
 0x167   : > { %v27059_v30 = vadd.f32 %v5687_v36, %v5659_v8  ;;  %v2751_v2 = vpack.c.b16 %v34804_v42, %v34803_v9  ;;  %v34806_v9 = vunpack.c.l.b16 %v27046_v49  ;;  %v34807_v42 = vunpack.c.h.b16 %v27043_v28 }
 0x168   : > { %v5603_v15 = vpop.f32.mrf.mxu1  ;;  %v5690_v46 = vpop.f32.mrf.mxu0 }
 0x169   : > { %v5604_v36 = vadd.f32 %v5603_v15, %v26790_v1  ;;  %v27073_v8 = vpop.f32.mrf.mxu2  ;;  %v27075_v29 = vpop.f32.mrf.mxu3  ;;  %v2657_v50 = vpack.c.b16 %v34806_v9, %v34805_v5  ;;  %v2658_v13 = vpack.c.b16 %v34808_v11, %v34807_v42  ;;  %v24629_v1 = vld [vmem:[%s34262_s1 + $0x1200] sm:$0xff]  ;;  %v27093_v42 = vld [vmem:[%s25576_s24 + $0x590] sm:$0xff]  ;;  %v27112_v11 = vld [vmem:[%s25576_s24 + $0x358] sm:$0xff] }
 0x16a   : > { %6025 = vmatpush.bf16.msra.mxu0 %v24630_v31  ;;  %34809 = vst [vmem:[#allocation60_spill] sm:$0xff] %v27093_v42 }
 0x16b   : > { %v5633_v6 = vadd.f32 %v26942_v55, %v5604_v36  ;;  %5834 = vmatmul.bf16.gmra.mxu1 %v2748_v44  ;;  %5921 = vmatmul.bf16.gmra.mxu0 %v2751_v2  ;;  %v27096_v55 = vld [vmem:[%s25576_s24 + $0x650] sm:$0xff]  ;;  %34811 = vst [vmem:[#allocation62_spill] sm:$0xff] %v27112_v11 }
 0x16c   : > { %v2607_v36 = vunpack.c.l.b16 %v27096_v55 }
 0x16d   : > { %v5662_v15 = vadd.f32 %v26944_v39, %v5633_v6  ;;  %5969 = vmatmul.bf16.vlgmr.msrb.gmra.mxu2 %v2657_v50  ;;  %5998 = vmatmul.bf16.vlgmr.msrb.gmra.mxu3 %v2658_v13  ;;  %v34455_v6 = vunpack.c.h.b16 %v26793_v40  ;;  %v2604_v13 = vunpack.c.h.b16 %v26796_v63  ;;  %v27109_v50 = vld [vmem:[%s25576_s24 + $0x298] sm:$0xff] }
 0x16e   : > { %6026 = vmatpush.bf16.msra.mxu0 %v24629_v1  ;;  %34810 = vst [vmem:[#allocation61_spill] sm:$0xff] %v27109_v50  ;;  %v34454_v1 = vunpack.c.l.b16 %v27109_v50 }
 0x16f   : > { %v27090_v5 = vadd.f32 %v5690_v46, %v5662_v15  ;;  %v34453_v46 = vunpack.c.l.b16 %v27093_v42  ;;  %v2796_v63 = vpack.c.b16 %v2604_v13, %v34455_v6  ;;  %v27146_v6 = vld [vmem:[%s25576_s24 + $0x120] sm:$0xff] }
 0x170   : > { %v5605_v9 = vpop.f32.mrf.mxu1  ;;  %v5692_v49 = vpop.f32.mrf.mxu0  ;;  %34813 = vst [vmem:[#allocation63_spill] sm:$0xff] %v27146_v6 }
 0x171   : > { %v5606_v31 = vadd.f32 %v5605_v9, %v26819_v52  ;;  %v27099_v2 = vpop.f32.mrf.mxu2  ;;  %v27101_v44 = vpop.f32.mrf.mxu3  ;;  %v34457_v9 = vunpack.c.h.b16 %v27109_v50  ;;  %v2799_v28 = vpack.c.b16 %v2607_v36, %v34453_v46 }
 0x173   : > { %v5635_v39 = vadd.f32 %v26993_v54, %v5606_v31  ;;  %v34456_v54 = vunpack.c.h.b16 %v27112_v11 }
 0x175   : > { %v5664_v52 = vadd.f32 %v26995_v61, %v5635_v39  ;;  %v2706_v13 = vpack.c.b16 %v34456_v54, %v34457_v9  ;;  %v27149_v54 = vld [vmem:[%s25576_s24 + $0x1e0] sm:$0xff] }
 0x176   : > { %34814 = vst [vmem:[#allocation64_spill] sm:$0xff] %v27149_v54 }
 0x177   : > { %v27119_v31 = vadd.f32 %v5692_v49, %v5664_v52  ;;  %v34812_v49 = vunpack.c.l.b16 %v27112_v11 }
 0x178   : > { %v5608_v58 = vpop.f32.mrf.mxu1  ;;  %v5695_v43 = vpop.f32.mrf.mxu0 }
 0x179   : > { %v5609_v61 = vadd.f32 %v5608_v58, %v26843_v53  ;;  %v27126_v39 = vpop.f32.mrf.mxu2  ;;  %v27128_v15 = vpop.f32.mrf.mxu3  ;;  %v2705_v52 = vpack.c.b16 %v34812_v49, %v34454_v1  ;;  %v24652_v53 = vld [vmem:[%s34262_s1 + $0x12b8] sm:$0xff] }
 0x17a   : > { %6077 = vmatpush.bf16.msra.mxu2 %v24652_v53  ;;  %v27171_v53 = vld [vmem:[%s25576_s24 + $0x4d8] sm:$0xff] }
 0x17b   : > { %v5638_v36 = vadd.f32 %v27030_v22, %v5609_v61  ;;  %5839 = vmatmul.bf16.gmra.mxu1 %v2796_v63  ;;  %5926 = vmatmul.bf16.gmra.mxu0 %v2799_v28  ;;  %v24660_v22 = vld [vmem:[%s34262_s1 + $0x12f8] sm:$0xff]  ;;  %v24651_v61 = vld [vmem:[%s34262_s1 + $0x12b0] sm:$0xff]  ;;  %34816 = vst [vmem:[#allocation66_spill] sm:$0xff] %v27171_v53 }
 0x17c   : > { %6106 = vmatpush.bf16.msra.mxu3 %v24660_v22 }
 0x17d   : > { %v5667_v58 = vadd.f32 %v27032_v32, %v5638_v36  ;;  %5974 = vmatmul.bf16.gmra.mxu2 %v2705_v52  ;;  %6003 = vmatmul.bf16.gmra.mxu3 %v2706_v13  ;;  %v34460_v13 = vunpack.c.h.b16 %v26849_v41  ;;  %v24644_v41 = vld [vmem:[%s34262_s1 + $0x1278] sm:$0xff] }
 0x17e   : > { %6078 = vmatpush.bf16.msra.mxu2 %v24651_v61  ;;  %6048 = vmatpush.bf16.msrb.mxu1 %v24644_v41  ;;  %v27230_v41 = vld [vmem:[%s25576_s24 + $0x2a0] sm:$0xff] }
 0x17f   : > { %v27143_v46 = vadd.f32 %v5695_v43, %v5667_v58  ;;  %v34461_v43 = vunpack.c.h.b16 %v26846_v12  ;;  %v24650_v58 = vld [vmem:[%s34262_s1 + $0x12a8] sm:$0xff]  ;;  %34823 = vst [vmem:[#allocation67_spill] sm:$0xff] %v27230_v41 }
 0x180   : > { %v5610_v49 = vpop.f32.mrf.mxu1  ;;  %v5697_v1 = vpop.f32.mrf.mxu0 }
 0x181   : > { %v5611_v32 = vadd.f32 %v5610_v49, %v26884_v56  ;;  %v27155_v28 = vpop.f32.mrf.mxu2  ;;  %v27157_v63 = vpop.f32.mrf.mxu3  ;;  %v27168_v56 = vld [vmem:[%s25576_s24 + $0x418] sm:$0xff]  ;;  %v24659_v49 = vld [vmem:[%s34262_s1 + $0x12f0] sm:$0xff] }
 0x182   : > { %34815 = vst [vmem:[#allocation65_spill] sm:$0xff] %v27168_v56  ;;  %6107 = vmatpush.bf16.msra.mxu3 %v24659_v49  ;;  %6079 = vmatpush.bf16.msra.mxu2 %v24650_v58  ;;  %v24658_v49 = vld [vmem:[%s34262_s1 + $0x12e8] sm:$0xff] }
 0x183   : > { %v5640_v52 = vadd.f32 %v27073_v8, %v5611_v32  ;;  %v34818_v8 = vunpack.c.l.b16 %v27149_v54 }
 0x185   : > { %v5669_v22 = vadd.f32 %v27075_v29, %v5640_v52  ;;  %v2656_v29 = vpack.c.b16 %v34460_v13, %v34461_v43  ;;  %v34817_v52 = vunpack.c.l.b16 %v27146_v6  ;;  %v34819_v13 = vunpack.c.l.b16 %v27168_v56 }
 0x186   : > { %v34820_v43 = vunpack.c.l.b16 %v27171_v53  ;;  %6108 = vmatpush.bf16.msra.mxu3 %v24658_v49  ;;  %v24643_v49 = vld [vmem:[%s34262_s1 + $0x1270] sm:$0xff] }
 0x187   : > { %v27184_v61 = vadd.f32 %v5697_v1, %v5669_v22  ;;  %v2659_v9 = vpack.c.b16 %v34818_v8, %v34817_v52  ;;  %v34821_v8 = vunpack.c.h.b16 %v27168_v56  ;;  %v34822_v52 = vunpack.c.h.b16 %v27171_v53  ;;  %6049 = vmatpush.bf16.msrb.mxu1 %v24643_v49 }
 0x188   : > { %v5709_v32 = vpop.f32.mrf.mxu1  ;;  %v5796_v11 = vpop.f32.mrf.mxu0  ;;  %v2753_v50 = vpack.c.b16 %v34820_v43, %v34819_v13  ;;  %v24657_v43 = vld [vmem:[%s34262_s1 + $0x12e0] sm:$0xff]  ;;  %v34826_v56 = vunpack.c.h.b16 %v26930_v7 }
 0x189   : > { %v5710_v1 = vadd.f32 %v5709_v32, %v26927_v27  ;;  %v27198_v22 = vpop.f32.mrf.mxu2  ;;  %v27200_v36 = vpop.f32.mrf.mxu3  ;;  %v2754_v58 = vpack.c.b16 %v34822_v52, %v34821_v8  ;;  %v24649_v27 = vld [vmem:[%s34262_s1 + $0x12a0] sm:$0xff] }
 0x18a   : > { %6080 = vmatpush.bf16.msra.mxu2 %v24649_v27  ;;  %6109 = vmatpush.bf16.msra.mxu3 %v24657_v43  ;;  %v27233_v8 = vld [vmem:[%s25576_s24 + $0x360] sm:$0xff]  ;;  %v24647_v43 = vld [vmem:[%s34262_s1 + $0x1290] sm:$0xff]  ;;  %v1277_v27 = vld [vmem:[%s25576_s24 + $0x658] sm:$0xff] }
 0x18b   : > { %v5739_v32 = vadd.f32 %v27099_v2, %v5710_v1  ;;  %5940 = vmatmul.bf16.vlgmr.msra.gmra.mxu1 %v2656_v29  ;;  %6027 = vmatmul.bf16.vlgmr.msra.gmra.mxu0 %v2659_v9  ;;  %v24648_v2 = vld [vmem:[%s34262_s1 + $0x1298] sm:$0xff]  ;;  %34824 = vst [vmem:[#allocation68_spill] sm:$0xff] %v27233_v8  ;;  %v2609_v49 = vunpack.c.l.b16 %v1277_v27  ;;  %v2610_v53 = vunpack.c.h.b16 %v1277_v27  ;;  %v34829_v27 = vunpack.c.l.b16 %v27233_v8  ;;  %v24645_v7 = vld [vmem:[%s34262_s1 + $0x1280] sm:$0xff] }
 0x18d   : > { %v5768_v13 = vadd.f32 %v27101_v44, %v5739_v32  ;;  %5979 = vmatmul.bf16.gmra.mxu2 %v2753_v50  ;;  %6008 = vmatmul.bf16.gmra.mxu3 %v2754_v58  ;;  %v24656_v44 = vld [vmem:[%s34262_s1 + $0x12d8] sm:$0xff]  ;;  %v24642_v32 = vld [vmem:[%s34262_s1 + $0x1268] sm:$0xff] }
 0x18e   : > { %6081 = vmatpush.bf16.msra.mxu2 %v24648_v2  ;;  %v24668_v50 = vld [vmem:[%s34262_s1 + $0x1338] sm:$0xff]  ;;  %6110 = vmatpush.bf16.msra.mxu3 %v24656_v44  ;;  %v24641_v44 = vld [vmem:[%s34262_s1 + $0x1260] sm:$0xff] }
 0x18f   : > { %v27227_v29 = vadd.f32 %v5796_v11, %v5768_v13  ;;  %6135 = vmatpush.bf16.msrb.mxu0 %v24668_v50  ;;  %6050 = vmatpush.bf16.msrb.mxu1 %v24642_v32  ;;  %v24655_v50 = vld [vmem:[%s34262_s1 + $0x12d0] sm:$0xff]  ;;  %v24646_v32 = vld [vmem:[%s34262_s1 + $0x1288] sm:$0xff] }
 0x190   : > { %v5711_v9 = vpop.f32.mrf.mxu1  ;;  %v5798_v1 = vpop.f32.mrf.mxu0 }
 0x191   : > { %v5712_v11 = vadd.f32 %v5711_v9, %v26976_v16  ;;  %v27242_v52 = vpop.f32.mrf.mxu2  ;;  %v27244_v58 = vpop.f32.mrf.mxu3  ;;  %v27258_v9 = vld [vmem:[%s25576_s24 + $0x598] sm:$0xff]  ;;  %v34828_v16 = vunpack.c.l.b16 %v27230_v41 }
 0x192   : > { %34825 = vst [vmem:[#allocation69_spill] sm:$0xff] %v27258_v9  ;;  %6082 = vmatpush.bf16.msra.mxu2 %v24647_v43  ;;  %6111 = vmatpush.bf16.msra.mxu3 %v24655_v50 }
 0x193   : > { %v5741_v13 = vadd.f32 %v27126_v39, %v5712_v11  ;;  %v24667_v39 = vld [vmem:[%s34262_s1 + $0x1330] sm:$0xff]  ;;  %6051 = vmatpush.bf16.msrb.mxu1 %v24641_v44  ;;  %v34831_v44 = vunpack.c.h.b16 %v27258_v9 }
 0x194   : > { %6136 = vmatpush.bf16.msrb.mxu0 %v24667_v39  ;;  %v2707_v39 = vpack.c.b16 %v34829_v27, %v34828_v16  ;;  %v34830_v16 = vunpack.c.l.b16 %v27258_v9  ;;  %v24640_v27 = vld [vmem:[%s34262_s1 + $0x1258] sm:$0xff] }
 0x195   : > { %v5770_v11 = vadd.f32 %v27128_v15, %v5741_v13  ;;  %v34827_v15 = vunpack.c.h.b16 %v26933_v17 }
 0x196   : > { %6083 = vmatpush.bf16.msra.mxu2 %v24646_v32  ;;  %v2801_v50 = vpack.c.b16 %v2609_v49, %v34830_v16  ;;  %v2802_v32 = vpack.c.b16 %v2610_v53, %v34831_v44  ;;  %v24653_v53 = vld [vmem:[%s34262_s1 + $0x12c0] sm:$0xff]  ;;  %v24638_v44 = vld [vmem:[%s34262_s1 + $0x1248] sm:$0xff] }
 0x197   : > { %v27276_v43 = vadd.f32 %v5798_v1, %v5770_v11  ;;  %v2704_v13 = vpack.c.b16 %v34827_v15, %v34826_v56  ;;  %v24654_v1 = vld [vmem:[%s34262_s1 + $0x12c8] sm:$0xff]  ;;  %6052 = vmatpush.bf16.msrb.mxu1 %v24640_v27  ;;  %v24665_v49 = vld [vmem:[%s34262_s1 + $0x1320] sm:$0xff]  ;;  %v34476_v27 = vunpack.c.h.b16 %v27024_v37 }
 0x198   : > { %v5714_v2 = vpop.f32.mrf.mxu1  ;;  %v5801_v12 = vpop.f32.mrf.mxu0  ;;  %v24666_v11 = vld [vmem:[%s34262_s1 + $0x1328] sm:$0xff]  ;;  %6112 = vmatpush.bf16.msra.mxu3 %v24654_v1 }
 0x199   : > { %v5715_v56 = vadd.f32 %v5714_v2, %v27018_v18  ;;  %v27293_v15 = vpop.f32.mrf.mxu2  ;;  %v27295_v17 = vpop.f32.mrf.mxu3  ;;  %6137 = vmatpush.bf16.msrb.mxu0 %v24666_v11  ;;  %v27321_v11 = vld [vmem:[%s25576_s24 + $0x420] sm:$0xff] }
 0x19a   : > { %6084 = vmatpush.bf16.msra.mxu2 %v24645_v7  ;;  %34832 = vst [vmem:[#allocation70_spill] sm:$0xff] %v27321_v11  ;;  %v24664_v7 = vld [vmem:[%s34262_s1 + $0x1318] sm:$0xff] }
 0x19b   : > { %v5744_v18 = vadd.f32 %v27155_v28, %v5715_v56  ;;  %5945 = vmatmul.bf16.gmra.mxu1 %v2704_v13  ;;  %6032 = vmatmul.bf16.gmra.mxu0 %v2707_v39  ;;  %v24639_v28 = vld [vmem:[%s34262_s1 + $0x1250] sm:$0xff]  ;;  %v27324_v56 = vld [vmem:[%s25576_s24 + $0x4e0] sm:$0xff] }
 0x19c   : > { %34833 = vst [vmem:[#allocation71_spill] sm:$0xff] %v27324_v56  ;;  %6113 = vmatpush.bf16.msra.mxu3 %v24653_v53  ;;  %6053 = vmatpush.bf16.msrb.mxu1 %v24639_v28  ;;  %v24662_v53 = vld [vmem:[%s34262_s1 + $0x1308] sm:$0xff] }
 0x19d   : > { %v5773_v2 = vadd.f32 %v27157_v63, %v5744_v18  ;;  %5984 = vmatmul.bf16.gmra.mxu2 %v2801_v50  ;;  %6013 = vmatmul.bf16.gmra.mxu3 %v2802_v32  ;;  %v34477_v50 = vunpack.c.h.b16 %v27021_v45  ;;  %v24637_v18 = vld [vmem:[%s34262_s1 + $0x1240] sm:$0xff] }
 0x19e   : > { %6138 = vmatpush.bf16.msrb.mxu0 %v24665_v49  ;;  %v27343_v49 = vld [vmem:[%s25576_s24 + $0x128] sm:$0xff] }
 0x19f   : > { %v27318_v13 = vadd.f32 %v5801_v12, %v5773_v2  ;;  %34834 = vst [vmem:[#allocation72_spill] sm:$0xff] %v27343_v49  ;;  %v24663_v2 = vld [vmem:[%s34262_s1 + $0x1310] sm:$0xff] }
 0x1a0   : > { %v5716_v39 = vpop.f32.mrf.mxu1  ;;  %v5803_v1 = vpop.f32.mrf.mxu0  ;;  %6054 = vmatpush.bf16.msrb.mxu1 %v24638_v44  ;;  %v2752_v44 = vpack.c.b16 %v34476_v27, %v34477_v50  ;;  %v34838_v50 = vunpack.c.l.b16 %v27343_v49 }
 0x1a1   : > { %v5717_v63 = vadd.f32 %v5716_v39, %v27059_v30  ;;  %v27330_v16 = vpop.f32.mrf.mxu2  ;;  %v27332_v12 = vpop.f32.mrf.mxu3  ;;  %v27346_v30 = vld [vmem:[%s25576_s24 + $0x1e8] sm:$0xff] }
 0x1a2   : > { %34835 = vst [vmem:[#allocation73_spill] sm:$0xff] %v27346_v30  ;;  %6139 = vmatpush.bf16.msrb.mxu0 %v24664_v7 }
 0x1a3   : > { %v5746_v32 = vadd.f32 %v27198_v22, %v5717_v63 }
 0x1a4   : > { %6055 = vmatpush.bf16.msrb.mxu1 %v24637_v18  ;;  %v34841_v18 = vunpack.c.h.b16 %v27346_v30 }
 0x1a5   : > { %v5775_v28 = vadd.f32 %v27200_v36, %v5746_v32  ;;  %v34836_v36 = vunpack.c.l.b16 %v27321_v11  ;;  %v34837_v32 = vunpack.c.l.b16 %v27324_v56 }
 0x1a6   : > { %6140 = vmatpush.bf16.msrb.mxu0 %v24663_v2 }
 0x1a7   : > { %v27359_v7 = vadd.f32 %v5803_v1, %v5775_v28  ;;  %v2755_v39 = vpack.c.b16 %v34837_v32, %v34836_v36  ;;  %v34839_v36 = vunpack.c.l.b16 %v27346_v30  ;;  %v34840_v32 = vunpack.c.h.b16 %v27343_v49 }
 0x1a8   : > { %v5719_v63 = vpop.f32.mrf.mxu1  ;;  %v5806_v22 = vpop.f32.mrf.mxu0 }
 0x1a9   : > { %v5720_v1 = vadd.f32 %v5719_v63, %v27090_v5  ;;  %v27373_v28 = vpop.f32.mrf.mxu2  ;;  %v27375_v27 = vpop.f32.mrf.mxu3  ;;  %v2661_v2 = vpack.c.b16 %v34839_v36, %v34838_v50  ;;  %v2662_v9 = vpack.c.b16 %v34841_v18, %v34840_v32  ;;  %v24661_v5 = vld [vmem:[%s34262_s1 + $0x1300] sm:$0xff]  ;;  %v27412_v18 = vld [vmem:[%s25576_s24 + $0x368] sm:$0xff] }
 0x1aa   : > { %6141 = vmatpush.bf16.msrb.mxu0 %v24662_v53  ;;  %v27393_v32 = vld [vmem:[%s25576_s24 + $0x5a0] sm:$0xff]  ;;  %34844 = vst [vmem:[#allocation76_spill] sm:$0xff] %v27412_v18 }
 0x1ab   : > { %v5749_v37 = vadd.f32 %v27242_v52, %v5720_v1  ;;  %5950 = vmatmul.bf16.gmra.mxu1 %v2752_v44  ;;  %6037 = vmatmul.bf16.gmra.mxu0 %v2755_v39  ;;  %34842 = vst [vmem:[#allocation74_spill] sm:$0xff] %v27393_v32  ;;  %v27396_v52 = vld [vmem:[%s25576_s24 + $0x660] sm:$0xff] }
 0x1ac   : > { %v2611_v1 = vunpack.c.l.b16 %v27396_v52 }
 0x1ad   : > { %v5778_v63 = vadd.f32 %v27244_v58, %v5749_v37  ;;  %6085 = vmatmul.bf16.vlgmr.msra.gmra.mxu2 %v2661_v2  ;;  %6114 = vmatmul.bf16.vlgmr.msra.gmra.mxu3 %v2662_v9  ;;  %v34492_v37 = vunpack.c.h.b16 %v27093_v42  ;;  %v2608_v9 = vunpack.c.h.b16 %v27096_v55  ;;  %v27409_v2 = vld [vmem:[%s25576_s24 + $0x2a8] sm:$0xff] }
 0x1ae   : > { %6142 = vmatpush.bf16.msrb.mxu0 %v24661_v5  ;;  %34843 = vst [vmem:[#allocation75_spill] sm:$0xff] %v27409_v2  ;;  %v34491_v5 = vunpack.c.l.b16 %v27409_v2 }
 0x1af   : > { %v27390_v50 = vadd.f32 %v5806_v22, %v5778_v63  ;;  %v34490_v22 = vunpack.c.l.b16 %v27393_v32  ;;  %v2800_v55 = vpack.c.b16 %v2608_v9, %v34492_v37  ;;  %v27446_v37 = vld [vmem:[%s25576_s24 + $0x130] sm:$0xff] }
 0x1b0   : > { %v5721_v36 = vpop.f32.mrf.mxu1  ;;  %v5808_v30 = vpop.f32.mrf.mxu0  ;;  %34846 = vst [vmem:[#allocation77_spill] sm:$0xff] %v27446_v37 }
 0x1b1   : > { %v5722_v53 = vadd.f32 %v5721_v36, %v27119_v31  ;;  %v27399_v39 = vpop.f32.mrf.mxu2  ;;  %v27401_v44 = vpop.f32.mrf.mxu3  ;;  %v34494_v36 = vunpack.c.h.b16 %v27409_v2  ;;  %v2803_v49 = vpack.c.b16 %v2611_v1, %v34490_v22 }
 0x1b3   : > { %v5751_v58 = vadd.f32 %v27293_v15, %v5722_v53  ;;  %v34493_v15 = vunpack.c.h.b16 %v27412_v18 }
 0x1b5   : > { %v5780_v31 = vadd.f32 %v27295_v17, %v5751_v58  ;;  %v2710_v9 = vpack.c.b16 %v34493_v15, %v34494_v36  ;;  %v27449_v15 = vld [vmem:[%s25576_s24 + $0x1f0] sm:$0xff] }
 0x1b6   : > { %34847 = vst [vmem:[#allocation78_spill] sm:$0xff] %v27449_v15 }
 0x1b7   : > { %v27419_v53 = vadd.f32 %v5808_v30, %v5780_v31  ;;  %v34845_v30 = vunpack.c.l.b16 %v27412_v18 }
 0x1b8   : > { %v5724_v45 = vpop.f32.mrf.mxu1  ;;  %v5811_v40 = vpop.f32.mrf.mxu0 }
 0x1b9   : > { %v5725_v17 = vadd.f32 %v5724_v45, %v27143_v46  ;;  %v27426_v58 = vpop.f32.mrf.mxu2  ;;  %v27428_v63 = vpop.f32.mrf.mxu3  ;;  %v2709_v31 = vpack.c.b16 %v34845_v30, %v34491_v5  ;;  %v24684_v46 = vld [vmem:[%s34262_s1 + $0x13b8] sm:$0xff] }
 0x1ba   : > { %6193 = vmatpush.bf16.msrb.mxu2 %v24684_v46  ;;  %v27471_v46 = vld [vmem:[%s25576_s24 + $0x4e8] sm:$0xff] }
 0x1bb   : > { %v5754_v1 = vadd.f32 %v27330_v16, %v5725_v17  ;;  %5955 = vmatmul.bf16.gmra.mxu1 %v2800_v55  ;;  %6042 = vmatmul.bf16.gmra.mxu0 %v2803_v49  ;;  %v24692_v16 = vld [vmem:[%s34262_s1 + $0x13f8] sm:$0xff]  ;;  %v24683_v17 = vld [vmem:[%s34262_s1 + $0x13b0] sm:$0xff]  ;;  %34849 = vst [vmem:[#allocation80_spill] sm:$0xff] %v27471_v46 }
 0x1bc   : > { %6222 = vmatpush.bf16.msrb.mxu3 %v24692_v16 }
 0x1bd   : > { %v5783_v45 = vadd.f32 %v27332_v12, %v5754_v1  ;;  %6090 = vmatmul.bf16.gmra.mxu2 %v2709_v31  ;;  %6119 = vmatmul.bf16.gmra.mxu3 %v2710_v9  ;;  %v34497_v9 = vunpack.c.h.b16 %v27149_v54  ;;  %v24676_v54 = vld [vmem:[%s34262_s1 + $0x1378] sm:$0xff] }
 0x1be   : > { %6194 = vmatpush.bf16.msrb.mxu2 %v24683_v17  ;;  %6164 = vmatpush.bf16.msra.mxu1 %v24676_v54  ;;  %v27530_v54 = vld [vmem:[%s25576_s24 + $0x2b0] sm:$0xff] }
 0x1bf   : > { %v27443_v22 = vadd.f32 %v5811_v40, %v5783_v45  ;;  %v34498_v40 = vunpack.c.h.b16 %v27146_v6  ;;  %v24682_v45 = vld [vmem:[%s34262_s1 + $0x13a8] sm:$0xff]  ;;  %34856 = vst [vmem:[#allocation81_spill] sm:$0xff] %v27530_v54 }
 0x1c0   : > { %v5726_v30 = vpop.f32.mrf.mxu1  ;;  %v5813_v5 = vpop.f32.mrf.mxu0 }
 0x1c1   : > { %v5727_v12 = vadd.f32 %v5726_v30, %v27184_v61  ;;  %v27455_v49 = vpop.f32.mrf.mxu2  ;;  %v27457_v55 = vpop.f32.mrf.mxu3  ;;  %v27468_v61 = vld [vmem:[%s25576_s24 + $0x428] sm:$0xff]  ;;  %v24691_v30 = vld [vmem:[%s34262_s1 + $0x13f0] sm:$0xff] }
 0x1c2   : > { %34848 = vst [vmem:[#allocation79_spill] sm:$0xff] %v27468_v61  ;;  %6223 = vmatpush.bf16.msrb.mxu3 %v24691_v30  ;;  %6195 = vmatpush.bf16.msrb.mxu2 %v24682_v45  ;;  %v24690_v30 = vld [vmem:[%s34262_s1 + $0x13e8] sm:$0xff] }
 0x1c3   : > { %v5756_v31 = vadd.f32 %v27373_v28, %v5727_v12  ;;  %v34851_v28 = vunpack.c.l.b16 %v27449_v15 }
 0x1c5   : > { %v5785_v16 = vadd.f32 %v27375_v27, %v5756_v31  ;;  %v2660_v27 = vpack.c.b16 %v34497_v9, %v34498_v40  ;;  %v34850_v31 = vunpack.c.l.b16 %v27446_v37  ;;  %v34852_v9 = vunpack.c.l.b16 %v27468_v61 }
 0x1c6   : > { %v34853_v40 = vunpack.c.l.b16 %v27471_v46  ;;  %6224 = vmatpush.bf16.msrb.mxu3 %v24690_v30  ;;  %v24675_v30 = vld [vmem:[%s34262_s1 + $0x1370] sm:$0xff] }
 0x1c7   : > { %v27484_v17 = vadd.f32 %v5813_v5, %v5785_v16  ;;  %v2663_v36 = vpack.c.b16 %v34851_v28, %v34850_v31  ;;  %v34854_v28 = vunpack.c.h.b16 %v27468_v61  ;;  %v34855_v31 = vunpack.c.h.b16 %v27471_v46  ;;  %6165 = vmatpush.bf16.msra.mxu1 %v24675_v30 }
 0x1c8   : > { %v5825_v12 = vpop.f32.mrf.mxu1  ;;  %v5912_v18 = vpop.f32.mrf.mxu0  ;;  %v2757_v2 = vpack.c.b16 %v34853_v40, %v34852_v9  ;;  %v24689_v40 = vld [vmem:[%s34262_s1 + $0x13e0] sm:$0xff]  ;;  %v34859_v61 = vunpack.c.h.b16 %v27230_v41 }
 0x1c9   : > { %v5826_v5 = vadd.f32 %v5825_v12, %v27227_v29  ;;  %v27498_v16 = vpop.f32.mrf.mxu2  ;;  %v27500_v1 = vpop.f32.mrf.mxu3  ;;  %v2758_v45 = vpack.c.b16 %v34855_v31, %v34854_v28  ;;  %v24681_v29 = vld [vmem:[%s34262_s1 + $0x13a0] sm:$0xff]  ;;  %v27533_v28 = vld [vmem:[%s25576_s24 + $0x370] sm:$0xff] }
 0x1ca   : > { %6196 = vmatpush.bf16.msrb.mxu2 %v24681_v29  ;;  %6225 = vmatpush.bf16.msrb.mxu3 %v24689_v40  ;;  %34857 = vst [vmem:[#allocation82_spill] sm:$0xff] %v27533_v28  ;;  %v24679_v40 = vld [vmem:[%s34262_s1 + $0x1390] sm:$0xff]  ;;  %v1279_v29 = vld [vmem:[%s25576_s24 + $0x668] sm:$0xff]  ;;  %v24677_v41 = vld [vmem:[%s34262_s1 + $0x1380] sm:$0xff] }
 0x1cb   : > { %v5855_v12 = vadd.f32 %v27399_v39, %v5826_v5  ;;  %6056 = vmatmul.bf16.vlgmr.msrb.gmra.mxu1 %v2660_v27  ;;  %6143 = vmatmul.bf16.vlgmr.msrb.gmra.mxu0 %v2663_v36  ;;  %v24680_v39 = vld [vmem:[%s34262_s1 + $0x1398] sm:$0xff]  ;;  %v2613_v30 = vunpack.c.l.b16 %v1279_v29  ;;  %v2614_v46 = vunpack.c.h.b16 %v1279_v29  ;;  %v34862_v29 = vunpack.c.l.b16 %v27533_v28 }
 0x1cd   : > { %v5884_v9 = vadd.f32 %v27401_v44, %v5855_v12  ;;  %6095 = vmatmul.bf16.gmra.mxu2 %v2757_v2  ;;  %6124 = vmatmul.bf16.gmra.mxu3 %v2758_v45  ;;  %v24688_v44 = vld [vmem:[%s34262_s1 + $0x13d8] sm:$0xff]  ;;  %v24674_v12 = vld [vmem:[%s34262_s1 + $0x1368] sm:$0xff] }
 0x1ce   : > { %6197 = vmatpush.bf16.msrb.mxu2 %v24680_v39  ;;  %v24700_v2 = vld [vmem:[%s34262_s1 + $0x1438] sm:$0xff]  ;;  %6226 = vmatpush.bf16.msrb.mxu3 %v24688_v44  ;;  %v24673_v44 = vld [vmem:[%s34262_s1 + $0x1360] sm:$0xff] }
 0x1cf   : > { %v27527_v27 = vadd.f32 %v5912_v18, %v5884_v9  ;;  %6251 = vmatpush.bf16.msra.mxu0 %v24700_v2  ;;  %6166 = vmatpush.bf16.msra.mxu1 %v24674_v12  ;;  %v24687_v2 = vld [vmem:[%s34262_s1 + $0x13d0] sm:$0xff]  ;;  %v24678_v12 = vld [vmem:[%s34262_s1 + $0x1388] sm:$0xff] }
 0x1d0   : > { %v5827_v36 = vpop.f32.mrf.mxu1  ;;  %v5914_v5 = vpop.f32.mrf.mxu0 }
 0x1d1   : > { %v5828_v18 = vadd.f32 %v5827_v36, %v27276_v43  ;;  %v27542_v31 = vpop.f32.mrf.mxu2  ;;  %v27544_v45 = vpop.f32.mrf.mxu3  ;;  %v27558_v36 = vld [vmem:[%s25576_s24 + $0x5a8] sm:$0xff]  ;;  %v34861_v43 = vunpack.c.l.b16 %v27530_v54 }
 0x1d2   : > { %34858 = vst [vmem:[#allocation83_spill] sm:$0xff] %v27558_v36  ;;  %6198 = vmatpush.bf16.msrb.mxu2 %v24679_v40  ;;  %6227 = vmatpush.bf16.msrb.mxu3 %v24687_v2 }
 0x1d3   : > { %v5857_v9 = vadd.f32 %v27426_v58, %v5828_v18  ;;  %v24699_v58 = vld [vmem:[%s34262_s1 + $0x1430] sm:$0xff]  ;;  %6167 = vmatpush.bf16.msra.mxu1 %v24673_v44  ;;  %v34864_v44 = vunpack.c.h.b16 %v27558_v36 }
 0x1d4   : > { %6252 = vmatpush.bf16.msra.mxu0 %v24699_v58  ;;  %v2711_v58 = vpack.c.b16 %v34862_v29, %v34861_v43  ;;  %v34863_v43 = vunpack.c.l.b16 %v27558_v36  ;;  %v24672_v29 = vld [vmem:[%s34262_s1 + $0x1358] sm:$0xff] }
 0x1d5   : > { %v5886_v18 = vadd.f32 %v27428_v63, %v5857_v9  ;;  %v34860_v63 = vunpack.c.h.b16 %v27233_v8 }
 0x1d6   : > { %6199 = vmatpush.bf16.msrb.mxu2 %v24678_v12  ;;  %v2805_v2 = vpack.c.b16 %v2613_v30, %v34863_v43  ;;  %v2806_v12 = vpack.c.b16 %v2614_v46, %v34864_v44  ;;  %v24685_v46 = vld [vmem:[%s34262_s1 + $0x13c0] sm:$0xff]  ;;  %v24670_v44 = vld [vmem:[%s34262_s1 + $0x1348] sm:$0xff] }
 0x1d7   : > { %v27576_v40 = vadd.f32 %v5914_v5, %v5886_v18  ;;  %v2708_v9 = vpack.c.b16 %v34860_v63, %v34859_v61  ;;  %v24686_v5 = vld [vmem:[%s34262_s1 + $0x13c8] sm:$0xff]  ;;  %6168 = vmatpush.bf16.msra.mxu1 %v24672_v29  ;;  %v24697_v30 = vld [vmem:[%s34262_s1 + $0x1420] sm:$0xff]  ;;  %v34513_v29 = vunpack.c.h.b16 %v27324_v56 }
 0x1d8   : > { %v5830_v39 = vpop.f32.mrf.mxu1  ;;  %v5917_v6 = vpop.f32.mrf.mxu0  ;;  %v24698_v18 = vld [vmem:[%s34262_s1 + $0x1428] sm:$0xff]  ;;  %6228 = vmatpush.bf16.msrb.mxu3 %v24686_v5 }
 0x1d9   : > { %v5831_v61 = vadd.f32 %v5830_v39, %v27318_v13  ;;  %v27593_v63 = vpop.f32.mrf.mxu2  ;;  %v27595_v8 = vpop.f32.mrf.mxu3  ;;  %6253 = vmatpush.bf16.msra.mxu0 %v24698_v18  ;;  %v27621_v18 = vld [vmem:[%s25576_s24 + $0x430] sm:$0xff] }
 0x1da   : > { %6200 = vmatpush.bf16.msrb.mxu2 %v24677_v41  ;;  %34865 = vst [vmem:[#allocation84_spill] sm:$0xff] %v27621_v18  ;;  %v24696_v41 = vld [vmem:[%s34262_s1 + $0x1418] sm:$0xff] }
 0x1db   : > { %v5860_v13 = vadd.f32 %v27455_v49, %v5831_v61  ;;  %6061 = vmatmul.bf16.gmra.mxu1 %v2708_v9  ;;  %6148 = vmatmul.bf16.gmra.mxu0 %v2711_v58  ;;  %v24671_v49 = vld [vmem:[%s34262_s1 + $0x1350] sm:$0xff] }
 0x1dc   : > { %v27624_v61 = vld [vmem:[%s25576_s24 + $0x4f0] sm:$0xff]  ;;  %6229 = vmatpush.bf16.msrb.mxu3 %v24685_v46  ;;  %6169 = vmatpush.bf16.msra.mxu1 %v24671_v49  ;;  %v24694_v46 = vld [vmem:[%s34262_s1 + $0x1408] sm:$0xff] }
 0x1dd   : > { %v5889_v39 = vadd.f32 %v27457_v55, %v5860_v13  ;;  %6100 = vmatmul.bf16.gmra.mxu2 %v2805_v2  ;;  %6129 = vmatmul.bf16.gmra.mxu3 %v2806_v12  ;;  %34866 = vst [vmem:[#allocation85_spill] sm:$0xff] %v27624_v61  ;;  %v34514_v2 = vunpack.c.h.b16 %v27321_v11  ;;  %v24669_v13 = vld [vmem:[%s34262_s1 + $0x1340] sm:$0xff] }
 0x1de   : > { %6254 = vmatpush.bf16.msra.mxu0 %v24697_v30  ;;  %v27643_v30 = vld [vmem:[%s25576_s24 + $0x138] sm:$0xff] }
 0x1df   : > { %v27618_v9 = vadd.f32 %v5917_v6, %v5889_v39  ;;  %34867 = vst [vmem:[#allocation86_spill] sm:$0xff] %v27643_v30  ;;  %v24695_v39 = vld [vmem:[%s34262_s1 + $0x1410] sm:$0xff] }
 0x1e0   : > { %v5832_v58 = vpop.f32.mrf.mxu1  ;;  %v5919_v5 = vpop.f32.mrf.mxu0  ;;  %6170 = vmatpush.bf16.msra.mxu1 %v24670_v44  ;;  %v2756_v44 = vpack.c.b16 %v34513_v29, %v34514_v2  ;;  %v34871_v2 = vunpack.c.l.b16 %v27643_v30 }
 0x1e1   : > { %v5833_v55 = vadd.f32 %v5832_v58, %v27359_v7  ;;  %v27630_v43 = vpop.f32.mrf.mxu2  ;;  %v27632_v6 = vpop.f32.mrf.mxu3  ;;  %v27646_v7 = vld [vmem:[%s25576_s24 + $0x1f8] sm:$0xff] }
 0x1e2   : > { %34868 = vst [vmem:[#allocation87_spill] sm:$0xff] %v27646_v7  ;;  %6255 = vmatpush.bf16.msra.mxu0 %v24696_v41 }
 0x1e3   : > { %v5862_v12 = vadd.f32 %v27498_v16, %v5833_v55 }
 0x1e4   : > { %6171 = vmatpush.bf16.msra.mxu1 %v24669_v13  ;;  %v34874_v13 = vunpack.c.h.b16 %v27646_v7 }
 0x1e5   : > { %v5891_v49 = vadd.f32 %v27500_v1, %v5862_v12  ;;  %v34869_v1 = vunpack.c.l.b16 %v27621_v18  ;;  %v34870_v12 = vunpack.c.l.b16 %v27624_v61 }
 0x1e6   : > { %6256 = vmatpush.bf16.msra.mxu0 %v24695_v39 }
 0x1e7   : > { %v27659_v41 = vadd.f32 %v5919_v5, %v5891_v49  ;;  %v2759_v58 = vpack.c.b16 %v34870_v12, %v34869_v1  ;;  %v34872_v1 = vunpack.c.l.b16 %v27646_v7  ;;  %v34873_v12 = vunpack.c.h.b16 %v27643_v30 }
 0x1e8   : > { %v5835_v55 = vpop.f32.mrf.mxu1  ;;  %v5922_v16 = vpop.f32.mrf.mxu0 }
 0x1e9   : > { %v5836_v5 = vadd.f32 %v5835_v55, %v27390_v50  ;;  %v27673_v49 = vpop.f32.mrf.mxu2  ;;  %v27675_v29 = vpop.f32.mrf.mxu3  ;;  %v2665_v39 = vpack.c.b16 %v34872_v1, %v34871_v2  ;;  %v2666_v36 = vpack.c.b16 %v34874_v13, %v34873_v12  ;;  %v24693_v50 = vld [vmem:[%s34262_s1 + $0x1400] sm:$0xff]  ;;  %v27693_v12 = vld [vmem:[%s25576_s24 + $0x5b0] sm:$0xff]  ;;  %v27712_v13 = vld [vmem:[%s25576_s24 + $0x378] sm:$0xff] }
 0x1ea   : > { %6257 = vmatpush.bf16.msra.mxu0 %v24694_v46  ;;  %34875 = vst [vmem:[#allocation88_spill] sm:$0xff] %v27693_v12 }
 0x1eb   : > { %v5865_v56 = vadd.f32 %v27542_v31, %v5836_v5  ;;  %6066 = vmatmul.bf16.gmra.mxu1 %v2756_v44  ;;  %6153 = vmatmul.bf16.gmra.mxu0 %v2759_v58  ;;  %v27696_v31 = vld [vmem:[%s25576_s24 + $0x670] sm:$0xff]  ;;  %34877 = vst [vmem:[#allocation90_spill] sm:$0xff] %v27712_v13 }
 0x1ec   : > { %v2615_v5 = vunpack.c.l.b16 %v27696_v31 }
 0x1ed   : > { %v5894_v55 = vadd.f32 %v27544_v45, %v5865_v56  ;;  %6201 = vmatmul.bf16.vlgmr.msrb.gmra.mxu2 %v2665_v39  ;;  %6230 = vmatmul.bf16.vlgmr.msrb.gmra.mxu3 %v2666_v36  ;;  %v34529_v56 = vunpack.c.h.b16 %v27393_v32  ;;  %v2612_v36 = vunpack.c.h.b16 %v27396_v52  ;;  %v27709_v39 = vld [vmem:[%s25576_s24 + $0x2b8] sm:$0xff] }
 0x1ee   : > { %6258 = vmatpush.bf16.msra.mxu0 %v24693_v50  ;;  %34876 = vst [vmem:[#allocation89_spill] sm:$0xff] %v27709_v39  ;;  %v34528_v50 = vunpack.c.l.b16 %v27709_v39 }
 0x1ef   : > { %v27690_v2 = vadd.f32 %v5922_v16, %v5894_v55  ;;  %v34527_v16 = vunpack.c.l.b16 %v27693_v12  ;;  %v2804_v52 = vpack.c.b16 %v2612_v36, %v34529_v56  ;;  %v27746_v56 = vld [vmem:[%s25576_s24 + $0x140] sm:$0xff] }
 0x1f0   : > { %v5837_v1 = vpop.f32.mrf.mxu1  ;;  %v5924_v7 = vpop.f32.mrf.mxu0  ;;  %34879 = vst [vmem:[#allocation91_spill] sm:$0xff] %v27746_v56 }
 0x1f1   : > { %v5838_v46 = vadd.f32 %v5837_v1, %v27419_v53  ;;  %v27699_v58 = vpop.f32.mrf.mxu2  ;;  %v27701_v44 = vpop.f32.mrf.mxu3  ;;  %v34531_v1 = vunpack.c.h.b16 %v27709_v39  ;;  %v2807_v30 = vpack.c.b16 %v2615_v5, %v34527_v16 }
 0x1f3   : > { %v5867_v45 = vadd.f32 %v27593_v63, %v5838_v46  ;;  %v34530_v63 = vunpack.c.h.b16 %v27712_v13 }
 0x1f5   : > { %v5896_v53 = vadd.f32 %v27595_v8, %v5867_v45  ;;  %v2714_v36 = vpack.c.b16 %v34530_v63, %v34531_v1  ;;  %v27749_v63 = vld [vmem:[%s25576_s24 + $0x200] sm:$0xff] }
 0x1f6   : > { %34880 = vst [vmem:[#allocation92_spill] sm:$0xff] %v27749_v63 }
 0x1f7   : > { %v27719_v46 = vadd.f32 %v5924_v7, %v5896_v53  ;;  %v34878_v7 = vunpack.c.l.b16 %v27712_v13 }
 0x1f8   : > { %v5840_v11 = vpop.f32.mrf.mxu1  ;;  %v5927_v42 = vpop.f32.mrf.mxu0 }
 0x1f9   : > { %v5841_v8 = vadd.f32 %v5840_v11, %v27443_v22  ;;  %v27726_v45 = vpop.f32.mrf.mxu2  ;;  %v27728_v55 = vpop.f32.mrf.mxu3  ;;  %v2713_v53 = vpack.c.b16 %v34878_v7, %v34528_v50  ;;  %v24716_v22 = vld [vmem:[%s34262_s1 + $0x14b8] sm:$0xff] }
 0x1fa   : > { %6309 = vmatpush.bf16.msra.mxu2 %v24716_v22  ;;  %v27771_v22 = vld [vmem:[%s25576_s24 + $0x4f8] sm:$0xff] }
 0x1fb   : > { %v5870_v5 = vadd.f32 %v27630_v43, %v5841_v8  ;;  %6071 = vmatmul.bf16.gmra.mxu1 %v2804_v52  ;;  %6158 = vmatmul.bf16.gmra.mxu0 %v2807_v30  ;;  %v24724_v43 = vld [vmem:[%s34262_s1 + $0x14f8] sm:$0xff]  ;;  %v24715_v8 = vld [vmem:[%s34262_s1 + $0x14b0] sm:$0xff]  ;;  %34882 = vst [vmem:[#allocation94_spill] sm:$0xff] %v27771_v22 }
 0x1fc   : > { %6338 = vmatpush.bf16.msra.mxu3 %v24724_v43 }
 0x1fd   : > { %v5899_v11 = vadd.f32 %v27632_v6, %v5870_v5  ;;  %6206 = vmatmul.bf16.gmra.mxu2 %v2713_v53  ;;  %6235 = vmatmul.bf16.gmra.mxu3 %v2714_v36  ;;  %v34534_v36 = vunpack.c.h.b16 %v27449_v15  ;;  %v24708_v15 = vld [vmem:[%s34262_s1 + $0x1478] sm:$0xff] }
 0x1fe   : > { %6310 = vmatpush.bf16.msra.mxu2 %v24715_v8  ;;  %6280 = vmatpush.bf16.msrb.mxu1 %v24708_v15  ;;  %v27830_v15 = vld [vmem:[%s25576_s24 + $0x2c0] sm:$0xff] }
 0x1ff   : > { %v27743_v16 = vadd.f32 %v5927_v42, %v5899_v11  ;;  %v34535_v42 = vunpack.c.h.b16 %v27446_v37  ;;  %v24714_v11 = vld [vmem:[%s34262_s1 + $0x14a8] sm:$0xff]  ;;  %34889 = vst [vmem:[#allocation95_spill] sm:$0xff] %v27830_v15 }
 0x200   : > { %v5842_v7 = vpop.f32.mrf.mxu1  ;;  %v5929_v50 = vpop.f32.mrf.mxu0 }
 0x201   : > { %v5843_v6 = vadd.f32 %v5842_v7, %v27484_v17  ;;  %v27755_v30 = vpop.f32.mrf.mxu2  ;;  %v27757_v52 = vpop.f32.mrf.mxu3  ;;  %v27768_v17 = vld [vmem:[%s25576_s24 + $0x438] sm:$0xff]  ;;  %v24723_v7 = vld [vmem:[%s34262_s1 + $0x14f0] sm:$0xff] }
 0x202   : > { %34881 = vst [vmem:[#allocation93_spill] sm:$0xff] %v27768_v17  ;;  %6339 = vmatpush.bf16.msra.mxu3 %v24723_v7  ;;  %6311 = vmatpush.bf16.msra.mxu2 %v24714_v11  ;;  %v24722_v7 = vld [vmem:[%s34262_s1 + $0x14e8] sm:$0xff] }
 0x203   : > { %v5872_v53 = vadd.f32 %v27673_v49, %v5843_v6  ;;  %v34884_v49 = vunpack.c.l.b16 %v27749_v63 }
 0x205   : > { %v5901_v43 = vadd.f32 %v27675_v29, %v5872_v53  ;;  %v2664_v29 = vpack.c.b16 %v34534_v36, %v34535_v42  ;;  %v34883_v53 = vunpack.c.l.b16 %v27746_v56  ;;  %v34885_v36 = vunpack.c.l.b16 %v27768_v17 }
 0x206   : > { %v34886_v42 = vunpack.c.l.b16 %v27771_v22  ;;  %6340 = vmatpush.bf16.msra.mxu3 %v24722_v7  ;;  %v24707_v7 = vld [vmem:[%s34262_s1 + $0x1470] sm:$0xff] }
 0x207   : > { %v27784_v8 = vadd.f32 %v5929_v50, %v5901_v43  ;;  %v2667_v1 = vpack.c.b16 %v34884_v49, %v34883_v53  ;;  %v34887_v49 = vunpack.c.h.b16 %v27768_v17  ;;  %v34888_v53 = vunpack.c.h.b16 %v27771_v22  ;;  %6281 = vmatpush.bf16.msrb.mxu1 %v24707_v7 }
 0x208   : > { %v5941_v6 = vpop.f32.mrf.mxu1  ;;  %v6028_v13 = vpop.f32.mrf.mxu0  ;;  %v2761_v39 = vpack.c.b16 %v34886_v42, %v34885_v36  ;;  %v24721_v42 = vld [vmem:[%s34262_s1 + $0x14e0] sm:$0xff]  ;;  %v34892_v17 = vunpack.c.h.b16 %v27530_v54 }
 0x209   : > { %v5942_v50 = vadd.f32 %v5941_v6, %v27527_v27  ;;  %v27798_v43 = vpop.f32.mrf.mxu2  ;;  %v27800_v5 = vpop.f32.mrf.mxu3  ;;  %v2762_v11 = vpack.c.b16 %v34888_v53, %v34887_v49  ;;  %v24713_v27 = vld [vmem:[%s34262_s1 + $0x14a0] sm:$0xff] }
 0x20a   : > { %6312 = vmatpush.bf16.msra.mxu2 %v24713_v27  ;;  %6341 = vmatpush.bf16.msra.mxu3 %v24721_v42  ;;  %v27833_v49 = vld [vmem:[%s25576_s24 + $0x380] sm:$0xff]  ;;  %v24711_v42 = vld [vmem:[%s34262_s1 + $0x1490] sm:$0xff]  ;;  %v1281_v27 = vld [vmem:[%s25576_s24 + $0x678] sm:$0xff] }
 0x20b   : > { %v5971_v6 = vadd.f32 %v27699_v58, %v5942_v50  ;;  %6172 = vmatmul.bf16.vlgmr.msra.gmra.mxu1 %v2664_v29  ;;  %6259 = vmatmul.bf16.vlgmr.msra.gmra.mxu0 %v2667_v1  ;;  %v24712_v58 = vld [vmem:[%s34262_s1 + $0x1498] sm:$0xff]  ;;  %34890 = vst [vmem:[#allocation96_spill] sm:$0xff] %v27833_v49  ;;  %v2617_v7 = vunpack.c.l.b16 %v1281_v27  ;;  %v2618_v22 = vunpack.c.h.b16 %v1281_v27  ;;  %v34895_v27 = vunpack.c.l.b16 %v27833_v49  ;;  %v24709_v54 = vld [vmem:[%s34262_s1 + $0x1480] sm:$0xff] }
 0x20d   : > { %v6000_v36 = vadd.f32 %v27701_v44, %v5971_v6  ;;  %6211 = vmatmul.bf16.gmra.mxu2 %v2761_v39  ;;  %6240 = vmatmul.bf16.gmra.mxu3 %v2762_v11  ;;  %v24720_v44 = vld [vmem:[%s34262_s1 + $0x14d8] sm:$0xff]  ;;  %v24706_v6 = vld [vmem:[%s34262_s1 + $0x1468] sm:$0xff] }
 0x20e   : > { %6313 = vmatpush.bf16.msra.mxu2 %v24712_v58  ;;  %v24732_v39 = vld [vmem:[%s34262_s1 + $0x1538] sm:$0xff]  ;;  %6342 = vmatpush.bf16.msra.mxu3 %v24720_v44  ;;  %v24705_v44 = vld [vmem:[%s34262_s1 + $0x1460] sm:$0xff] }
 0x20f   : > { %v27827_v29 = vadd.f32 %v6028_v13, %v6000_v36  ;;  %6367 = vmatpush.bf16.msrb.mxu0 %v24732_v39  ;;  %6282 = vmatpush.bf16.msrb.mxu1 %v24706_v6  ;;  %v24719_v39 = vld [vmem:[%s34262_s1 + $0x14d0] sm:$0xff]  ;;  %v24710_v6 = vld [vmem:[%s34262_s1 + $0x1488] sm:$0xff] }
 0x210   : > { %v5943_v1 = vpop.f32.mrf.mxu1  ;;  %v6030_v50 = vpop.f32.mrf.mxu0 }
 0x211   : > { %v5944_v13 = vadd.f32 %v5943_v1, %v27576_v40  ;;  %v27842_v53 = vpop.f32.mrf.mxu2  ;;  %v27844_v11 = vpop.f32.mrf.mxu3  ;;  %v27858_v1 = vld [vmem:[%s25576_s24 + $0x5b8] sm:$0xff]  ;;  %v34894_v40 = vunpack.c.l.b16 %v27830_v15 }
 0x212   : > { %34891 = vst [vmem:[#allocation97_spill] sm:$0xff] %v27858_v1  ;;  %6314 = vmatpush.bf16.msra.mxu2 %v24711_v42  ;;  %6343 = vmatpush.bf16.msra.mxu3 %v24719_v39 }
 0x213   : > { %v5973_v36 = vadd.f32 %v27726_v45, %v5944_v13  ;;  %v24731_v45 = vld [vmem:[%s34262_s1 + $0x1530] sm:$0xff]  ;;  %6283 = vmatpush.bf16.msrb.mxu1 %v24705_v44  ;;  %v34897_v44 = vunpack.c.h.b16 %v27858_v1 }
 0x214   : > { %6368 = vmatpush.bf16.msrb.mxu0 %v24731_v45  ;;  %v2715_v45 = vpack.c.b16 %v34895_v27, %v34894_v40  ;;  %v34896_v40 = vunpack.c.l.b16 %v27858_v1  ;;  %v24704_v27 = vld [vmem:[%s34262_s1 + $0x1458] sm:$0xff] }
 0x215   : > { %v6002_v13 = vadd.f32 %v27728_v55, %v5973_v36  ;;  %v34893_v55 = vunpack.c.h.b16 %v27533_v28 }
 0x216   : > { %6315 = vmatpush.bf16.msra.mxu2 %v24710_v6  ;;  %v2809_v39 = vpack.c.b16 %v2617_v7, %v34896_v40  ;;  %v2810_v6 = vpack.c.b16 %v2618_v22, %v34897_v44  ;;  %v24717_v22 = vld [vmem:[%s34262_s1 + $0x14c0] sm:$0xff]  ;;  %v24702_v44 = vld [vmem:[%s34262_s1 + $0x1448] sm:$0xff] }
 0x217   : > { %v27876_v42 = vadd.f32 %v6030_v50, %v6002_v13  ;;  %v2712_v36 = vpack.c.b16 %v34893_v55, %v34892_v17  ;;  %v24718_v50 = vld [vmem:[%s34262_s1 + $0x14c8] sm:$0xff]  ;;  %6284 = vmatpush.bf16.msrb.mxu1 %v24704_v27  ;;  %v24729_v7 = vld [vmem:[%s34262_s1 + $0x1520] sm:$0xff]  ;;  %v34550_v27 = vunpack.c.h.b16 %v27624_v61 }
 0x218   : > { %v5946_v58 = vpop.f32.mrf.mxu1  ;;  %v6033_v37 = vpop.f32.mrf.mxu0  ;;  %v24730_v13 = vld [vmem:[%s34262_s1 + $0x1528] sm:$0xff]  ;;  %6344 = vmatpush.bf16.msra.mxu3 %v24718_v50 }
 0x219   : > { %v5947_v17 = vadd.f32 %v5946_v58, %v27618_v9  ;;  %v27893_v55 = vpop.f32.mrf.mxu2  ;;  %v27895_v28 = vpop.f32.mrf.mxu3  ;;  %6369 = vmatpush.bf16.msrb.mxu0 %v24730_v13  ;;  %v27921_v13 = vld [vmem:[%s25576_s24 + $0x440] sm:$0xff] }
 0x21a   : > { %6316 = vmatpush.bf16.msra.mxu2 %v24709_v54  ;;  %34898 = vst [vmem:[#allocation98_spill] sm:$0xff] %v27921_v13  ;;  %v24728_v54 = vld [vmem:[%s34262_s1 + $0x1518] sm:$0xff] }
 0x21b   : > { %v5976_v9 = vadd.f32 %v27755_v30, %v5947_v17  ;;  %6177 = vmatmul.bf16.gmra.mxu1 %v2712_v36  ;;  %6264 = vmatmul.bf16.gmra.mxu0 %v2715_v45  ;;  %v24703_v30 = vld [vmem:[%s34262_s1 + $0x1450] sm:$0xff]  ;;  %v27924_v17 = vld [vmem:[%s25576_s24 + $0x500] sm:$0xff] }
 0x21c   : > { %34899 = vst [vmem:[#allocation99_spill] sm:$0xff] %v27924_v17  ;;  %6345 = vmatpush.bf16.msra.mxu3 %v24717_v22  ;;  %6285 = vmatpush.bf16.msrb.mxu1 %v24703_v30  ;;  %v24726_v22 = vld [vmem:[%s34262_s1 + $0x1508] sm:$0xff] }
 0x21d   : > { %v6005_v58 = vadd.f32 %v27757_v52, %v5976_v9  ;;  %6216 = vmatmul.bf16.gmra.mxu2 %v2809_v39  ;;  %6245 = vmatmul.bf16.gmra.mxu3 %v2810_v6  ;;  %v34551_v39 = vunpack.c.h.b16 %v27621_v18  ;;  %v24701_v9 = vld [vmem:[%s34262_s1 + $0x1440] sm:$0xff] }
 0x21e   : > { %6370 = vmatpush.bf16.msrb.mxu0 %v24729_v7  ;;  %v27943_v7 = vld [vmem:[%s25576_s24 + $0x148] sm:$0xff] }
 0x21f   : > { %v27918_v36 = vadd.f32 %v6033_v37, %v6005_v58  ;;  %34900 = vst [vmem:[#allocation100_spill] sm:$0xff] %v27943_v7  ;;  %v24727_v58 = vld [vmem:[%s34262_s1 + $0x1510] sm:$0xff] }
 0x220   : > { %v5948_v45 = vpop.f32.mrf.mxu1  ;;  %v6035_v50 = vpop.f32.mrf.mxu0  ;;  %6286 = vmatpush.bf16.msrb.mxu1 %v24702_v44  ;;  %v2760_v44 = vpack.c.b16 %v34550_v27, %v34551_v39  ;;  %v34904_v39 = vunpack.c.l.b16 %v27943_v7 }
 0x221   : > { %v5949_v52 = vadd.f32 %v5948_v45, %v27659_v41  ;;  %v27930_v40 = vpop.f32.mrf.mxu2  ;;  %v27932_v37 = vpop.f32.mrf.mxu3  ;;  %v27946_v41 = vld [vmem:[%s25576_s24 + $0x208] sm:$0xff] }
 0x222   : > { %34901 = vst [vmem:[#allocation101_spill] sm:$0xff] %v27946_v41  ;;  %6371 = vmatpush.bf16.msrb.mxu0 %v24728_v54 }
 0x223   : > { %v5978_v6 = vadd.f32 %v27798_v43, %v5949_v52 }
 0x224   : > { %6287 = vmatpush.bf16.msrb.mxu1 %v24701_v9  ;;  %v34907_v9 = vunpack.c.h.b16 %v27946_v41 }
 0x225   : > { %v6007_v30 = vadd.f32 %v27800_v5, %v5978_v6  ;;  %v34902_v5 = vunpack.c.l.b16 %v27921_v13  ;;  %v34903_v6 = vunpack.c.l.b16 %v27924_v17 }
 0x226   : > { %6372 = vmatpush.bf16.msrb.mxu0 %v24727_v58 }
 0x227   : > { %v27959_v54 = vadd.f32 %v6035_v50, %v6007_v30  ;;  %v2763_v45 = vpack.c.b16 %v34903_v6, %v34902_v5  ;;  %v34905_v5 = vunpack.c.l.b16 %v27946_v41  ;;  %v34906_v6 = vunpack.c.h.b16 %v27943_v7 }
 0x228   : > { %v5951_v52 = vpop.f32.mrf.mxu1  ;;  %v6038_v43 = vpop.f32.mrf.mxu0 }
 0x229   : > { %v5952_v50 = vadd.f32 %v5951_v52, %v27690_v2  ;;  %v27973_v30 = vpop.f32.mrf.mxu2  ;;  %v27975_v27 = vpop.f32.mrf.mxu3  ;;  %v2669_v58 = vpack.c.b16 %v34905_v5, %v34904_v39  ;;  %v2670_v1 = vpack.c.b16 %v34907_v9, %v34906_v6  ;;  %v24725_v2 = vld [vmem:[%s34262_s1 + $0x1500] sm:$0xff]  ;;  %v28012_v9 = vld [vmem:[%s25576_s24 + $0x388] sm:$0xff] }
 0x22a   : > { %6373 = vmatpush.bf16.msrb.mxu0 %v24726_v22  ;;  %v27993_v6 = vld [vmem:[%s25576_s24 + $0x5c0] sm:$0xff]  ;;  %34910 = vst [vmem:[#allocation104_spill] sm:$0xff] %v28012_v9 }
 0x22b   : > { %v5981_v61 = vadd.f32 %v27842_v53, %v5952_v50  ;;  %6182 = vmatmul.bf16.gmra.mxu1 %v2760_v44  ;;  %6269 = vmatmul.bf16.gmra.mxu0 %v2763_v45  ;;  %34908 = vst [vmem:[#allocation102_spill] sm:$0xff] %v27993_v6  ;;  %v27996_v53 = vld [vmem:[%s25576_s24 + $0x680] sm:$0xff] }
 0x22c   : > { %v2619_v50 = vunpack.c.l.b16 %v27996_v53 }
 0x22d   : > { %v6010_v52 = vadd.f32 %v27844_v11, %v5981_v61  ;;  %6317 = vmatmul.bf16.vlgmr.msra.gmra.mxu2 %v2669_v58  ;;  %6346 = vmatmul.bf16.vlgmr.msra.gmra.mxu3 %v2670_v1  ;;  %v34566_v61 = vunpack.c.h.b16 %v27693_v12  ;;  %v2616_v1 = vunpack.c.h.b16 %v27696_v31  ;;  %v28009_v58 = vld [vmem:[%s25576_s24 + $0x2c8] sm:$0xff] }
 0x22e   : > { %6374 = vmatpush.bf16.msrb.mxu0 %v24725_v2  ;;  %34909 = vst [vmem:[#allocation103_spill] sm:$0xff] %v28009_v58  ;;  %v34565_v2 = vunpack.c.l.b16 %v28009_v58 }
 0x22f   : > { %v27990_v39 = vadd.f32 %v6038_v43, %v6010_v52  ;;  %v34564_v43 = vunpack.c.l.b16 %v27993_v6  ;;  %v2808_v31 = vpack.c.b16 %v2616_v1, %v34566_v61  ;;  %v28046_v61 = vld [vmem:[%s25576_s24 + $0x150] sm:$0xff] }
 0x230   : > { %v5953_v5 = vpop.f32.mrf.mxu1  ;;  %v6040_v41 = vpop.f32.mrf.mxu0  ;;  %34912 = vst [vmem:[#allocation105_spill] sm:$0xff] %v28046_v61 }
 0x231   : > { %v5954_v22 = vadd.f32 %v5953_v5, %v27719_v46  ;;  %v27999_v45 = vpop.f32.mrf.mxu2  ;;  %v28001_v44 = vpop.f32.mrf.mxu3  ;;  %v34568_v5 = vunpack.c.h.b16 %v28009_v58  ;;  %v2811_v7 = vpack.c.b16 %v2619_v50, %v34564_v43 }
 0x233   : > { %v5983_v11 = vadd.f32 %v27893_v55, %v5954_v22  ;;  %v34567_v55 = vunpack.c.h.b16 %v28012_v9 }
 0x235   : > { %v6012_v46 = vadd.f32 %v27895_v28, %v5983_v11  ;;  %v2718_v1 = vpack.c.b16 %v34567_v55, %v34568_v5  ;;  %v28049_v55 = vld [vmem:[%s25576_s24 + $0x210] sm:$0xff] }
 0x236   : > { %34913 = vst [vmem:[#allocation106_spill] sm:$0xff] %v28049_v55 }
 0x237   : > { %v28019_v22 = vadd.f32 %v6040_v41, %v6012_v46  ;;  %v34911_v41 = vunpack.c.l.b16 %v28012_v9 }
 0x238   : > { %v5956_v18 = vpop.f32.mrf.mxu1  ;;  %v6043_v32 = vpop.f32.mrf.mxu0 }
 0x239   : > { %v5957_v28 = vadd.f32 %v5956_v18, %v27743_v16  ;;  %v28026_v11 = vpop.f32.mrf.mxu2  ;;  %v28028_v52 = vpop.f32.mrf.mxu3  ;;  %v2717_v46 = vpack.c.b16 %v34911_v41, %v34565_v2  ;;  %v24748_v16 = vld [vmem:[%s34262_s1 + $0x15b8] sm:$0xff] }
 0x23a   : > { %6425 = vmatpush.bf16.msrb.mxu2 %v24748_v16  ;;  %v28071_v16 = vld [vmem:[%s25576_s24 + $0x508] sm:$0xff] }
 0x23b   : > { %v5986_v50 = vadd.f32 %v27930_v40, %v5957_v28  ;;  %6187 = vmatmul.bf16.gmra.mxu1 %v2808_v31  ;;  %6274 = vmatmul.bf16.gmra.mxu0 %v2811_v7  ;;  %v24756_v40 = vld [vmem:[%s34262_s1 + $0x15f8] sm:$0xff]  ;;  %v24747_v28 = vld [vmem:[%s34262_s1 + $0x15b0] sm:$0xff]  ;;  %34915 = vst [vmem:[#allocation108_spill] sm:$0xff] %v28071_v16 }
 0x23c   : > { %6454 = vmatpush.bf16.msrb.mxu3 %v24756_v40 }
 0x23d   : > { %v6015_v18 = vadd.f32 %v27932_v37, %v5986_v50  ;;  %6322 = vmatmul.bf16.gmra.mxu2 %v2717_v46  ;;  %6351 = vmatmul.bf16.gmra.mxu3 %v2718_v1  ;;  %v34571_v1 = vunpack.c.h.b16 %v27749_v63  ;;  %v24740_v63 = vld [vmem:[%s34262_s1 + $0x1578] sm:$0xff] }
 0x23e   : > { %6426 = vmatpush.bf16.msrb.mxu2 %v24747_v28  ;;  %6396 = vmatpush.bf16.msra.mxu1 %v24740_v63  ;;  %v28130_v63 = vld [vmem:[%s25576_s24 + $0x2d0] sm:$0xff] }
 0x23f   : > { %v28043_v43 = vadd.f32 %v6043_v32, %v6015_v18  ;;  %v34572_v32 = vunpack.c.h.b16 %v27746_v56  ;;  %v24746_v18 = vld [vmem:[%s34262_s1 + $0x15a8] sm:$0xff]  ;;  %34922 = vst [vmem:[#allocation109_spill] sm:$0xff] %v28130_v63 }
 0x240   : > { %v5958_v41 = vpop.f32.mrf.mxu1  ;;  %v6045_v2 = vpop.f32.mrf.mxu0 }
 0x241   : > { %v5959_v37 = vadd.f32 %v5958_v41, %v27784_v8  ;;  %v28055_v7 = vpop.f32.mrf.mxu2  ;;  %v28057_v31 = vpop.f32.mrf.mxu3  ;;  %v28068_v8 = vld [vmem:[%s25576_s24 + $0x448] sm:$0xff]  ;;  %v24755_v41 = vld [vmem:[%s34262_s1 + $0x15f0] sm:$0xff] }
 0x242   : > { %34914 = vst [vmem:[#allocation107_spill] sm:$0xff] %v28068_v8  ;;  %6455 = vmatpush.bf16.msrb.mxu3 %v24755_v41  ;;  %6427 = vmatpush.bf16.msrb.mxu2 %v24746_v18  ;;  %v24754_v41 = vld [vmem:[%s34262_s1 + $0x15e8] sm:$0xff] }
 0x243   : > { %v5988_v46 = vadd.f32 %v27973_v30, %v5959_v37  ;;  %v34917_v30 = vunpack.c.l.b16 %v28049_v55 }
 0x245   : > { %v6017_v40 = vadd.f32 %v27975_v27, %v5988_v46  ;;  %v2668_v27 = vpack.c.b16 %v34571_v1, %v34572_v32  ;;  %v34916_v46 = vunpack.c.l.b16 %v28046_v61  ;;  %v34918_v1 = vunpack.c.l.b16 %v28068_v8 }
 0x246   : > { %v34919_v32 = vunpack.c.l.b16 %v28071_v16  ;;  %6456 = vmatpush.bf16.msrb.mxu3 %v24754_v41  ;;  %v24739_v41 = vld [vmem:[%s34262_s1 + $0x1570] sm:$0xff] }
 0x247   : > { %v28084_v28 = vadd.f32 %v6045_v2, %v6017_v40  ;;  %v2671_v5 = vpack.c.b16 %v34917_v30, %v34916_v46  ;;  %v34920_v30 = vunpack.c.h.b16 %v28068_v8  ;;  %v34921_v46 = vunpack.c.h.b16 %v28071_v16  ;;  %6397 = vmatpush.bf16.msra.mxu1 %v24739_v41 }
 0x248   : > { %v6057_v37 = vpop.f32.mrf.mxu1  ;;  %v6144_v9 = vpop.f32.mrf.mxu0  ;;  %v2765_v58 = vpack.c.b16 %v34919_v32, %v34918_v1  ;;  %v24753_v32 = vld [vmem:[%s34262_s1 + $0x15e0] sm:$0xff]  ;;  %v34925_v8 = vunpack.c.h.b16 %v27830_v15 }
 0x249   : > { %v6058_v2 = vadd.f32 %v6057_v37, %v27827_v29  ;;  %v28098_v40 = vpop.f32.mrf.mxu2  ;;  %v28100_v50 = vpop.f32.mrf.mxu3  ;;  %v2766_v18 = vpack.c.b16 %v34921_v46, %v34920_v30  ;;  %v24745_v29 = vld [vmem:[%s34262_s1 + $0x15a0] sm:$0xff]  ;;  %v28133_v30 = vld [vmem:[%s25576_s24 + $0x390] sm:$0xff] }
 0x24a   : > { %6428 = vmatpush.bf16.msrb.mxu2 %v24745_v29  ;;  %6457 = vmatpush.bf16.msrb.mxu3 %v24753_v32  ;;  %34923 = vst [vmem:[#allocation110_spill] sm:$0xff] %v28133_v30  ;;  %v24743_v32 = vld [vmem:[%s34262_s1 + $0x1590] sm:$0xff]  ;;  %v1283_v29 = vld [vmem:[%s25576_s24 + $0x688] sm:$0xff]  ;;  %v24741_v15 = vld [vmem:[%s34262_s1 + $0x1580] sm:$0xff] }
 0x24b   : > { %v6087_v37 = vadd.f32 %v27999_v45, %v6058_v2  ;;  %6288 = vmatmul.bf16.vlgmr.msrb.gmra.mxu1 %v2668_v27  ;;  %6375 = vmatmul.bf16.vlgmr.msrb.gmra.mxu0 %v2671_v5  ;;  %v24744_v45 = vld [vmem:[%s34262_s1 + $0x1598] sm:$0xff]  ;;  %v2621_v41 = vunpack.c.l.b16 %v1283_v29  ;;  %v2622_v16 = vunpack.c.h.b16 %v1283_v29  ;;  %v34928_v29 = vunpack.c.l.b16 %v28133_v30 }
 0x24d   : > { %v6116_v1 = vadd.f32 %v28001_v44, %v6087_v37  ;;  %6327 = vmatmul.bf16.gmra.mxu2 %v2765_v58  ;;  %6356 = vmatmul.bf16.gmra.mxu3 %v2766_v18  ;;  %v24752_v44 = vld [vmem:[%s34262_s1 + $0x15d8] sm:$0xff]  ;;  %v24738_v37 = vld [vmem:[%s34262_s1 + $0x1568] sm:$0xff] }
 0x24e   : > { %6429 = vmatpush.bf16.msrb.mxu2 %v24744_v45  ;;  %v24764_v58 = vld [vmem:[%s34262_s1 + $0x1638] sm:$0xff]  ;;  %6458 = vmatpush.bf16.msrb.mxu3 %v24752_v44  ;;  %v24737_v44 = vld [vmem:[%s34262_s1 + $0x1560] sm:$0xff] }
 0x24f   : > { %v28127_v27 = vadd.f32 %v6144_v9, %v6116_v1  ;;  %6483 = vmatpush.bf16.msra.mxu0 %v24764_v58  ;;  %6398 = vmatpush.bf16.msra.mxu1 %v24738_v37  ;;  %v24751_v58 = vld [vmem:[%s34262_s1 + $0x15d0] sm:$0xff]  ;;  %v24742_v37 = vld [vmem:[%s34262_s1 + $0x1588] sm:$0xff] }
 0x250   : > { %v6059_v5 = vpop.f32.mrf.mxu1  ;;  %v6146_v2 = vpop.f32.mrf.mxu0 }
 0x251   : > { %v6060_v9 = vadd.f32 %v6059_v5, %v27876_v42  ;;  %v28142_v46 = vpop.f32.mrf.mxu2  ;;  %v28144_v18 = vpop.f32.mrf.mxu3  ;;  %v28158_v5 = vld [vmem:[%s25576_s24 + $0x5c8] sm:$0xff]  ;;  %v34927_v42 = vunpack.c.l.b16 %v28130_v63 }
 0x252   : > { %34924 = vst [vmem:[#allocation111_spill] sm:$0xff] %v28158_v5  ;;  %6430 = vmatpush.bf16.msrb.mxu2 %v24743_v32  ;;  %6459 = vmatpush.bf16.msrb.mxu3 %v24751_v58 }
 0x253   : > { %v6089_v1 = vadd.f32 %v28026_v11, %v6060_v9  ;;  %v24763_v11 = vld [vmem:[%s34262_s1 + $0x1630] sm:$0xff]  ;;  %6399 = vmatpush.bf16.msra.mxu1 %v24737_v44  ;;  %v34930_v44 = vunpack.c.h.b16 %v28158_v5 }
 0x254   : > { %6484 = vmatpush.bf16.msra.mxu0 %v24763_v11  ;;  %v2719_v11 = vpack.c.b16 %v34928_v29, %v34927_v42  ;;  %v34929_v42 = vunpack.c.l.b16 %v28158_v5  ;;  %v24736_v29 = vld [vmem:[%s34262_s1 + $0x1558] sm:$0xff] }
 0x255   : > { %v6118_v9 = vadd.f32 %v28028_v52, %v6089_v1  ;;  %v34926_v52 = vunpack.c.h.b16 %v27833_v49 }
 0x256   : > { %6431 = vmatpush.bf16.msrb.mxu2 %v24742_v37  ;;  %v2813_v58 = vpack.c.b16 %v2621_v41, %v34929_v42  ;;  %v2814_v37 = vpack.c.b16 %v2622_v16, %v34930_v44  ;;  %v24749_v16 = vld [vmem:[%s34262_s1 + $0x15c0] sm:$0xff]  ;;  %v24734_v44 = vld [vmem:[%s34262_s1 + $0x1548] sm:$0xff] }
 0x257   : > { %v28176_v32 = vadd.f32 %v6146_v2, %v6118_v9  ;;  %v2716_v1 = vpack.c.b16 %v34926_v52, %v34925_v8  ;;  %v24750_v2 = vld [vmem:[%s34262_s1 + $0x15c8] sm:$0xff]  ;;  %6400 = vmatpush.bf16.msra.mxu1 %v24736_v29  ;;  %v24761_v41 = vld [vmem:[%s34262_s1 + $0x1620] sm:$0xff]  ;;  %v34587_v29 = vunpack.c.h.b16 %v27924_v17 }
 0x258   : > { %v6062_v45 = vpop.f32.mrf.mxu1  ;;  %v6149_v56 = vpop.f32.mrf.mxu0  ;;  %v24762_v9 = vld [vmem:[%s34262_s1 + $0x1628] sm:$0xff]  ;;  %6460 = vmatpush.bf16.msrb.mxu3 %v24750_v2 }
 0x259   : > { %v6063_v8 = vadd.f32 %v6062_v45, %v27918_v36  ;;  %v28193_v52 = vpop.f32.mrf.mxu2  ;;  %v28195_v49 = vpop.f32.mrf.mxu3  ;;  %6485 = vmatpush.bf16.msra.mxu0 %v24762_v9  ;;  %v28221_v9 = vld [vmem:[%s25576_s24 + $0x450] sm:$0xff] }
 0x25a   : > { %6432 = vmatpush.bf16.msrb.mxu2 %v24741_v15  ;;  %34931 = vst [vmem:[#allocation112_spill] sm:$0xff] %v28221_v9  ;;  %v24760_v15 = vld [vmem:[%s34262_s1 + $0x1618] sm:$0xff] }
 0x25b   : > { %v6092_v36 = vadd.f32 %v28055_v7, %v6063_v8  ;;  %6293 = vmatmul.bf16.gmra.mxu1 %v2716_v1  ;;  %6380 = vmatmul.bf16.gmra.mxu0 %v2719_v11  ;;  %v24735_v7 = vld [vmem:[%s34262_s1 + $0x1550] sm:$0xff] }
 0x25c   : > { %v28224_v8 = vld [vmem:[%s25576_s24 + $0x510] sm:$0xff]  ;;  %6461 = vmatpush.bf16.msrb.mxu3 %v24749_v16  ;;  %6401 = vmatpush.bf16.msra.mxu1 %v24735_v7  ;;  %v24758_v16 = vld [vmem:[%s34262_s1 + $0x1608] sm:$0xff] }
 0x25d   : > { %v6121_v45 = vadd.f32 %v28057_v31, %v6092_v36  ;;  %6332 = vmatmul.bf16.gmra.mxu2 %v2813_v58  ;;  %6361 = vmatmul.bf16.gmra.mxu3 %v2814_v37  ;;  %34932 = vst [vmem:[#allocation113_spill] sm:$0xff] %v28224_v8  ;;  %v34588_v58 = vunpack.c.h.b16 %v27921_v13  ;;  %v24733_v36 = vld [vmem:[%s34262_s1 + $0x1540] sm:$0xff] }
 0x25e   : > { %6486 = vmatpush.bf16.msra.mxu0 %v24761_v41  ;;  %v28243_v41 = vld [vmem:[%s25576_s24 + $0x158] sm:$0xff] }
 0x25f   : > { %v28218_v1 = vadd.f32 %v6149_v56, %v6121_v45  ;;  %34933 = vst [vmem:[#allocation114_spill] sm:$0xff] %v28243_v41  ;;  %v24759_v45 = vld [vmem:[%s34262_s1 + $0x1610] sm:$0xff] }
 0x260   : > { %v6064_v11 = vpop.f32.mrf.mxu1  ;;  %v6151_v2 = vpop.f32.mrf.mxu0  ;;  %6402 = vmatpush.bf16.msra.mxu1 %v24734_v44  ;;  %v2764_v44 = vpack.c.b16 %v34587_v29, %v34588_v58  ;;  %v34937_v58 = vunpack.c.l.b16 %v28243_v41 }
 0x261   : > { %v6065_v31 = vadd.f32 %v6064_v11, %v27959_v54  ;;  %v28230_v42 = vpop.f32.mrf.mxu2  ;;  %v28232_v56 = vpop.f32.mrf.mxu3  ;;  %v28246_v54 = vld [vmem:[%s25576_s24 + $0x218] sm:$0xff] }
 0x262   : > { %34934 = vst [vmem:[#allocation115_spill] sm:$0xff] %v28246_v54  ;;  %6487 = vmatpush.bf16.msra.mxu0 %v24760_v15 }
 0x263   : > { %v6094_v37 = vadd.f32 %v28098_v40, %v6065_v31 }
 0x264   : > { %6403 = vmatpush.bf16.msra.mxu1 %v24733_v36  ;;  %v34940_v36 = vunpack.c.h.b16 %v28246_v54 }
 0x265   : > { %v6123_v7 = vadd.f32 %v28100_v50, %v6094_v37  ;;  %v34935_v50 = vunpack.c.l.b16 %v28221_v9  ;;  %v34936_v37 = vunpack.c.l.b16 %v28224_v8 }
 0x266   : > { %6488 = vmatpush.bf16.msra.mxu0 %v24759_v45 }
 0x267   : > { %v28259_v15 = vadd.f32 %v6151_v2, %v6123_v7  ;;  %v2767_v11 = vpack.c.b16 %v34936_v37, %v34935_v50  ;;  %v34938_v50 = vunpack.c.l.b16 %v28246_v54  ;;  %v34939_v37 = vunpack.c.h.b16 %v28243_v41 }
 0x268   : > { %v6067_v31 = vpop.f32.mrf.mxu1  ;;  %v6154_v40 = vpop.f32.mrf.mxu0 }
 0x269   : > { %v6068_v2 = vadd.f32 %v6067_v31, %v27990_v39  ;;  %v28273_v7 = vpop.f32.mrf.mxu2  ;;  %v28275_v29 = vpop.f32.mrf.mxu3  ;;  %v2673_v45 = vpack.c.b16 %v34938_v50, %v34937_v58  ;;  %v2674_v5 = vpack.c.b16 %v34940_v36, %v34939_v37  ;;  %v24757_v39 = vld [vmem:[%s34262_s1 + $0x1600] sm:$0xff]  ;;  %v28293_v37 = vld [vmem:[%s25576_s24 + $0x5d0] sm:$0xff]  ;;  %v28312_v36 = vld [vmem:[%s25576_s24 + $0x398] sm:$0xff] }
 0x26a   : > { %6489 = vmatpush.bf16.msra.mxu0 %v24758_v16  ;;  %34941 = vst [vmem:[#allocation116_spill] sm:$0xff] %v28293_v37 }
 0x26b   : > { %v6097_v17 = vadd.f32 %v28142_v46, %v6068_v2  ;;  %6298 = vmatmul.bf16.gmra.mxu1 %v2764_v44  ;;  %6385 = vmatmul.bf16.gmra.mxu0 %v2767_v11  ;;  %v28296_v46 = vld [vmem:[%s25576_s24 + $0x690] sm:$0xff]  ;;  %34943 = vst [vmem:[#allocation118_spill] sm:$0xff] %v28312_v36 }
 0x26c   : > { %v2623_v2 = vunpack.c.l.b16 %v28296_v46 }
 0x26d   : > { %v6126_v31 = vadd.f32 %v28144_v18, %v6097_v17  ;;  %6433 = vmatmul.bf16.vlgmr.msrb.gmra.mxu2 %v2673_v45  ;;  %6462 = vmatmul.bf16.vlgmr.msrb.gmra.mxu3 %v2674_v5  ;;  %v34603_v17 = vunpack.c.h.b16 %v27993_v6  ;;  %v2620_v5 = vunpack.c.h.b16 %v27996_v53  ;;  %v28309_v45 = vld [vmem:[%s25576_s24 + $0x2d8] sm:$0xff] }
 0x26e   : > { %6490 = vmatpush.bf16.msra.mxu0 %v24757_v39  ;;  %34942 = vst [vmem:[#allocation117_spill] sm:$0xff] %v28309_v45  ;;  %v34602_v39 = vunpack.c.l.b16 %v28309_v45 }
 0x26f   : > { %v28290_v58 = vadd.f32 %v6154_v40, %v6126_v31  ;;  %v34601_v40 = vunpack.c.l.b16 %v28293_v37  ;;  %v2812_v53 = vpack.c.b16 %v2620_v5, %v34603_v17  ;;  %v28346_v17 = vld [vmem:[%s25576_s24 + $0x160] sm:$0xff] }
 0x270   : > { %v6069_v50 = vpop.f32.mrf.mxu1  ;;  %v6156_v54 = vpop.f32.mrf.mxu0  ;;  %34945 = vst [vmem:[#allocation119_spill] sm:$0xff] %v28346_v17 }
 0x271   : > { %v6070_v16 = vadd.f32 %v6069_v50, %v28019_v22  ;;  %v28299_v11 = vpop.f32.mrf.mxu2  ;;  %v28301_v44 = vpop.f32.mrf.mxu3  ;;  %v34605_v50 = vunpack.c.h.b16 %v28309_v45  ;;  %v2815_v41 = vpack.c.b16 %v2623_v2, %v34601_v40 }
 0x273   : > { %v6099_v18 = vadd.f32 %v28193_v52, %v6070_v16  ;;  %v34604_v52 = vunpack.c.h.b16 %v28312_v36 }
 0x275   : > { %v6128_v22 = vadd.f32 %v28195_v49, %v6099_v18  ;;  %v2722_v5 = vpack.c.b16 %v34604_v52, %v34605_v50  ;;  %v28349_v52 = vld [vmem:[%s25576_s24 + $0x220] sm:$0xff] }
 0x276   : > { %34946 = vst [vmem:[#allocation120_spill] sm:$0xff] %v28349_v52 }
 0x277   : > { %v28319_v16 = vadd.f32 %v6156_v54, %v6128_v22  ;;  %v34944_v54 = vunpack.c.l.b16 %v28312_v36 }
 0x278   : > { %v6072_v13 = vpop.f32.mrf.mxu1  ;;  %v6159_v12 = vpop.f32.mrf.mxu0 }
 0x279   : > { %v6073_v49 = vadd.f32 %v6072_v13, %v28043_v43  ;;  %v28326_v18 = vpop.f32.mrf.mxu2  ;;  %v28328_v31 = vpop.f32.mrf.mxu3  ;;  %v2721_v22 = vpack.c.b16 %v34944_v54, %v34602_v39  ;;  %v24780_v43 = vld [vmem:[%s34262_s1 + $0x16b8] sm:$0xff] }
 0x27a   : > { %6541 = vmatpush.bf16.msra.mxu2 %v24780_v43  ;;  %v28371_v43 = vld [vmem:[%s25576_s24 + $0x518] sm:$0xff] }
 0x27b   : > { %v6102_v2 = vadd.f32 %v28230_v42, %v6073_v49  ;;  %6303 = vmatmul.bf16.gmra.mxu1 %v2812_v53  ;;  %6390 = vmatmul.bf16.gmra.mxu0 %v2815_v41  ;;  %v24788_v42 = vld [vmem:[%s34262_s1 + $0x16f8] sm:$0xff]  ;;  %v24779_v49 = vld [vmem:[%s34262_s1 + $0x16b0] sm:$0xff]  ;;  %34948 = vst [vmem:[#allocation122_spill] sm:$0xff] %v28371_v43 }
 0x27c   : > { %6570 = vmatpush.bf16.msra.mxu3 %v24788_v42 }
 0x27d   : > { %v6131_v13 = vadd.f32 %v28232_v56, %v6102_v2  ;;  %6438 = vmatmul.bf16.gmra.mxu2 %v2721_v22  ;;  %6467 = vmatmul.bf16.gmra.mxu3 %v2722_v5  ;;  %v34608_v5 = vunpack.c.h.b16 %v28049_v55  ;;  %v24772_v55 = vld [vmem:[%s34262_s1 + $0x1678] sm:$0xff] }
 0x27e   : > { %6542 = vmatpush.bf16.msra.mxu2 %v24779_v49  ;;  %6512 = vmatpush.bf16.msrb.mxu1 %v24772_v55  ;;  %v28430_v55 = vld [vmem:[%s25576_s24 + $0x2e0] sm:$0xff] }
 0x27f   : > { %v28343_v40 = vadd.f32 %v6159_v12, %v6131_v13  ;;  %v34609_v12 = vunpack.c.h.b16 %v28046_v61  ;;  %v24778_v13 = vld [vmem:[%s34262_s1 + $0x16a8] sm:$0xff]  ;;  %34955 = vst [vmem:[#allocation123_spill] sm:$0xff] %v28430_v55 }
 0x280   : > { %v6074_v54 = vpop.f32.mrf.mxu1  ;;  %v6161_v39 = vpop.f32.mrf.mxu0 }
 0x281   : > { %v6075_v56 = vadd.f32 %v6074_v54, %v28084_v28  ;;  %v28355_v41 = vpop.f32.mrf.mxu2  ;;  %v28357_v53 = vpop.f32.mrf.mxu3  ;;  %v28368_v28 = vld [vmem:[%s25576_s24 + $0x458] sm:$0xff]  ;;  %v24787_v54 = vld [vmem:[%s34262_s1 + $0x16f0] sm:$0xff] }
 0x282   : > { %34947 = vst [vmem:[#allocation121_spill] sm:$0xff] %v28368_v28  ;;  %6571 = vmatpush.bf16.msra.mxu3 %v24787_v54  ;;  %6543 = vmatpush.bf16.msra.mxu2 %v24778_v13  ;;  %v24786_v54 = vld [vmem:[%s34262_s1 + $0x16e8] sm:$0xff] }
 0x283   : > { %v6104_v22 = vadd.f32 %v28273_v7, %v6075_v56  ;;  %v34950_v7 = vunpack.c.l.b16 %v28349_v52 }
 0x285   : > { %v6133_v42 = vadd.f32 %v28275_v29, %v6104_v22  ;;  %v2672_v29 = vpack.c.b16 %v34608_v5, %v34609_v12  ;;  %v34949_v22 = vunpack.c.l.b16 %v28346_v17  ;;  %v34951_v5 = vunpack.c.l.b16 %v28368_v28 }
 0x286   : > { %v34952_v12 = vunpack.c.l.b16 %v28371_v43  ;;  %6572 = vmatpush.bf16.msra.mxu3 %v24786_v54  ;;  %v24771_v54 = vld [vmem:[%s34262_s1 + $0x1670] sm:$0xff] }
 0x287   : > { %v28384_v49 = vadd.f32 %v6161_v39, %v6133_v42  ;;  %v2675_v50 = vpack.c.b16 %v34950_v7, %v34949_v22  ;;  %v34953_v7 = vunpack.c.h.b16 %v28368_v28  ;;  %v34954_v22 = vunpack.c.h.b16 %v28371_v43  ;;  %6513 = vmatpush.bf16.msrb.mxu1 %v24771_v54 }
 0x288   : > { %v6173_v56 = vpop.f32.mrf.mxu1  ;;  %v6260_v36 = vpop.f32.mrf.mxu0  ;;  %v2769_v45 = vpack.c.b16 %v34952_v12, %v34951_v5  ;;  %v24785_v12 = vld [vmem:[%s34262_s1 + $0x16e0] sm:$0xff]  ;;  %v34958_v28 = vunpack.c.h.b16 %v28130_v63 }
 0x289   : > { %v6174_v39 = vadd.f32 %v6173_v56, %v28127_v27  ;;  %v28398_v42 = vpop.f32.mrf.mxu2  ;;  %v28400_v2 = vpop.f32.mrf.mxu3  ;;  %v2770_v13 = vpack.c.b16 %v34954_v22, %v34953_v7  ;;  %v24777_v27 = vld [vmem:[%s34262_s1 + $0x16a0] sm:$0xff] }
 0x28a   : > { %6544 = vmatpush.bf16.msra.mxu2 %v24777_v27  ;;  %6573 = vmatpush.bf16.msra.mxu3 %v24785_v12  ;;  %v28433_v7 = vld [vmem:[%s25576_s24 + $0x3a0] sm:$0xff]  ;;  %v24775_v12 = vld [vmem:[%s34262_s1 + $0x1690] sm:$0xff]  ;;  %v1285_v27 = vld [vmem:[%s25576_s24 + $0x698] sm:$0xff] }
 0x28b   : > { %v6203_v56 = vadd.f32 %v28299_v11, %v6174_v39  ;;  %6404 = vmatmul.bf16.vlgmr.msra.gmra.mxu1 %v2672_v29  ;;  %6491 = vmatmul.bf16.vlgmr.msra.gmra.mxu0 %v2675_v50  ;;  %v24776_v11 = vld [vmem:[%s34262_s1 + $0x1698] sm:$0xff]  ;;  %34956 = vst [vmem:[#allocation124_spill] sm:$0xff] %v28433_v7  ;;  %v2625_v54 = vunpack.c.l.b16 %v1285_v27  ;;  %v2626_v43 = vunpack.c.h.b16 %v1285_v27  ;;  %v34961_v27 = vunpack.c.l.b16 %v28433_v7  ;;  %v24773_v63 = vld [vmem:[%s34262_s1 + $0x1680] sm:$0xff] }
 0x28d   : > { %v6232_v5 = vadd.f32 %v28301_v44, %v6203_v56  ;;  %6443 = vmatmul.bf16.gmra.mxu2 %v2769_v45  ;;  %6472 = vmatmul.bf16.gmra.mxu3 %v2770_v13  ;;  %v24784_v44 = vld [vmem:[%s34262_s1 + $0x16d8] sm:$0xff]  ;;  %v24770_v56 = vld [vmem:[%s34262_s1 + $0x1668] sm:$0xff] }
 0x28e   : > { %6545 = vmatpush.bf16.msra.mxu2 %v24776_v11  ;;  %v24796_v45 = vld [vmem:[%s34262_s1 + $0x1738] sm:$0xff]  ;;  %6574 = vmatpush.bf16.msra.mxu3 %v24784_v44  ;;  %v24769_v44 = vld [vmem:[%s34262_s1 + $0x1660] sm:$0xff] }
 0x28f   : > { %v28427_v29 = vadd.f32 %v6260_v36, %v6232_v5  ;;  %6599 = vmatpush.bf16.msrb.mxu0 %v24796_v45  ;;  %6514 = vmatpush.bf16.msrb.mxu1 %v24770_v56  ;;  %v24783_v45 = vld [vmem:[%s34262_s1 + $0x16d0] sm:$0xff]  ;;  %v24774_v56 = vld [vmem:[%s34262_s1 + $0x1688] sm:$0xff] }
 0x290   : > { %v6175_v50 = vpop.f32.mrf.mxu1  ;;  %v6262_v39 = vpop.f32.mrf.mxu0 }
 0x291   : > { %v6176_v36 = vadd.f32 %v6175_v50, %v28176_v32  ;;  %v28442_v22 = vpop.f32.mrf.mxu2  ;;  %v28444_v13 = vpop.f32.mrf.mxu3  ;;  %v28458_v50 = vld [vmem:[%s25576_s24 + $0x5d8] sm:$0xff]  ;;  %v34960_v32 = vunpack.c.l.b16 %v28430_v55 }
 0x292   : > { %34957 = vst [vmem:[#allocation125_spill] sm:$0xff] %v28458_v50  ;;  %6546 = vmatpush.bf16.msra.mxu2 %v24775_v12  ;;  %6575 = vmatpush.bf16.msra.mxu3 %v24783_v45 }
 0x293   : > { %v6205_v5 = vadd.f32 %v28326_v18, %v6176_v36  ;;  %v24795_v18 = vld [vmem:[%s34262_s1 + $0x1730] sm:$0xff]  ;;  %6515 = vmatpush.bf16.msrb.mxu1 %v24769_v44  ;;  %v34963_v44 = vunpack.c.h.b16 %v28458_v50 }
 0x294   : > { %6600 = vmatpush.bf16.msrb.mxu0 %v24795_v18  ;;  %v2723_v18 = vpack.c.b16 %v34961_v27, %v34960_v32  ;;  %v34962_v32 = vunpack.c.l.b16 %v28458_v50  ;;  %v24768_v27 = vld [vmem:[%s34262_s1 + $0x1658] sm:$0xff] }
 0x295   : > { %v6234_v36 = vadd.f32 %v28328_v31, %v6205_v5  ;;  %v34959_v31 = vunpack.c.h.b16 %v28133_v30 }
 0x296   : > { %6547 = vmatpush.bf16.msra.mxu2 %v24774_v56  ;;  %v2817_v45 = vpack.c.b16 %v2625_v54, %v34962_v32  ;;  %v2818_v56 = vpack.c.b16 %v2626_v43, %v34963_v44  ;;  %v24781_v43 = vld [vmem:[%s34262_s1 + $0x16c0] sm:$0xff]  ;;  %v24766_v44 = vld [vmem:[%s34262_s1 + $0x1648] sm:$0xff] }
 0x297   : > { %v28476_v12 = vadd.f32 %v6262_v39, %v6234_v36  ;;  %v2720_v5 = vpack.c.b16 %v34959_v31, %v34958_v28  ;;  %v24782_v39 = vld [vmem:[%s34262_s1 + $0x16c8] sm:$0xff]  ;;  %6516 = vmatpush.bf16.msrb.mxu1 %v24768_v27  ;;  %v24793_v54 = vld [vmem:[%s34262_s1 + $0x1720] sm:$0xff]  ;;  %v34624_v27 = vunpack.c.h.b16 %v28224_v8 }
 0x298   : > { %v6178_v11 = vpop.f32.mrf.mxu1  ;;  %v6265_v61 = vpop.f32.mrf.mxu0  ;;  %v24794_v36 = vld [vmem:[%s34262_s1 + $0x1728] sm:$0xff]  ;;  %6576 = vmatpush.bf16.msra.mxu3 %v24782_v39 }
 0x299   : > { %v6179_v28 = vadd.f32 %v6178_v11, %v28218_v1  ;;  %v28493_v31 = vpop.f32.mrf.mxu2  ;;  %v28495_v30 = vpop.f32.mrf.mxu3  ;;  %6601 = vmatpush.bf16.msrb.mxu0 %v24794_v36  ;;  %v28521_v36 = vld [vmem:[%s25576_s24 + $0x460] sm:$0xff] }
 0x29a   : > { %6548 = vmatpush.bf16.msra.mxu2 %v24773_v63  ;;  %34964 = vst [vmem:[#allocation126_spill] sm:$0xff] %v28521_v36  ;;  %v24792_v63 = vld [vmem:[%s34262_s1 + $0x1718] sm:$0xff] }
 0x29b   : > { %v6208_v1 = vadd.f32 %v28355_v41, %v6179_v28  ;;  %6409 = vmatmul.bf16.gmra.mxu1 %v2720_v5  ;;  %6496 = vmatmul.bf16.gmra.mxu0 %v2723_v18  ;;  %v24767_v41 = vld [vmem:[%s34262_s1 + $0x1650] sm:$0xff]  ;;  %v28524_v28 = vld [vmem:[%s25576_s24 + $0x520] sm:$0xff] }
 0x29c   : > { %34965 = vst [vmem:[#allocation127_spill] sm:$0xff] %v28524_v28  ;;  %6577 = vmatpush.bf16.msra.mxu3 %v24781_v43  ;;  %6517 = vmatpush.bf16.msrb.mxu1 %v24767_v41  ;;  %v24790_v43 = vld [vmem:[%s34262_s1 + $0x1708] sm:$0xff] }
 0x29d   : > { %v6237_v11 = vadd.f32 %v28357_v53, %v6208_v1  ;;  %6448 = vmatmul.bf16.gmra.mxu2 %v2817_v45  ;;  %6477 = vmatmul.bf16.gmra.mxu3 %v2818_v56  ;;  %v34625_v45 = vunpack.c.h.b16 %v28221_v9  ;;  %v24765_v1 = vld [vmem:[%s34262_s1 + $0x1640] sm:$0xff] }
 0x29e   : > { %6602 = vmatpush.bf16.msrb.mxu0 %v24793_v54  ;;  %v28543_v54 = vld [vmem:[%s25576_s24 + $0x168] sm:$0xff] }
 0x29f   : > { %v28518_v5 = vadd.f32 %v6265_v61, %v6237_v11  ;;  %34966 = vst [vmem:[#allocation128_spill] sm:$0xff] %v28543_v54  ;;  %v24791_v11 = vld [vmem:[%s34262_s1 + $0x1710] sm:$0xff] }
 0x2a0   : > { %v6180_v18 = vpop.f32.mrf.mxu1  ;;  %v6267_v39 = vpop.f32.mrf.mxu0  ;;  %6518 = vmatpush.bf16.msrb.mxu1 %v24766_v44  ;;  %v2768_v44 = vpack.c.b16 %v34624_v27, %v34625_v45  ;;  %v34970_v45 = vunpack.c.l.b16 %v28543_v54 }
 0x2a1   : > { %v6181_v53 = vadd.f32 %v6180_v18, %v28259_v15  ;;  %v28530_v32 = vpop.f32.mrf.mxu2  ;;  %v28532_v61 = vpop.f32.mrf.mxu3  ;;  %v28546_v15 = vld [vmem:[%s25576_s24 + $0x228] sm:$0xff] }
 0x2a2   : > { %34967 = vst [vmem:[#allocation129_spill] sm:$0xff] %v28546_v15  ;;  %6603 = vmatpush.bf16.msrb.mxu0 %v24792_v63 }
 0x2a3   : > { %v6210_v56 = vadd.f32 %v28398_v42, %v6181_v53 }
 0x2a4   : > { %6519 = vmatpush.bf16.msrb.mxu1 %v24765_v1  ;;  %v34973_v1 = vunpack.c.h.b16 %v28546_v15 }
 0x2a5   : > { %v6239_v41 = vadd.f32 %v28400_v2, %v6210_v56  ;;  %v34968_v2 = vunpack.c.l.b16 %v28521_v36  ;;  %v34969_v56 = vunpack.c.l.b16 %v28524_v28 }
 0x2a6   : > { %6604 = vmatpush.bf16.msrb.mxu0 %v24791_v11 }
 0x2a7   : > { %v28559_v63 = vadd.f32 %v6267_v39, %v6239_v41  ;;  %v2771_v18 = vpack.c.b16 %v34969_v56, %v34968_v2  ;;  %v34971_v2 = vunpack.c.l.b16 %v28546_v15  ;;  %v34972_v56 = vunpack.c.h.b16 %v28543_v54 }
 0x2a8   : > { %v6183_v53 = vpop.f32.mrf.mxu1  ;;  %v6270_v42 = vpop.f32.mrf.mxu0 }
 0x2a9   : > { %v6184_v39 = vadd.f32 %v6183_v53, %v28290_v58  ;;  %v28573_v41 = vpop.f32.mrf.mxu2  ;;  %v28575_v27 = vpop.f32.mrf.mxu3  ;;  %v2677_v11 = vpack.c.b16 %v34971_v2, %v34970_v45  ;;  %v2678_v50 = vpack.c.b16 %v34973_v1, %v34972_v56  ;;  %v24789_v58 = vld [vmem:[%s34262_s1 + $0x1700] sm:$0xff]  ;;  %v28612_v1 = vld [vmem:[%s25576_s24 + $0x3a8] sm:$0xff] }
 0x2aa   : > { %6605 = vmatpush.bf16.msrb.mxu0 %v24790_v43  ;;  %v28593_v56 = vld [vmem:[%s25576_s24 + $0x5e0] sm:$0xff]  ;;  %34975 = vst [vmem:[#allocation131_spill] sm:$0xff] %v28612_v1 }
 0x2ab   : > { %v6213_v8 = vadd.f32 %v28442_v22, %v6184_v39  ;;  %6414 = vmatmul.bf16.gmra.mxu1 %v2768_v44  ;;  %6501 = vmatmul.bf16.gmra.mxu0 %v2771_v18  ;;  %v28596_v22 = vld [vmem:[%s25576_s24 + $0x6a0] sm:$0xff] }
 0x2ac   : > { %v2627_v39 = vunpack.c.l.b16 %v28596_v22 }
 0x2ad   : > { %v6242_v53 = vadd.f32 %v28444_v13, %v6213_v8  ;;  %6549 = vmatmul.bf16.vlgmr.msra.gmra.mxu2 %v2677_v11  ;;  %6578 = vmatmul.bf16.vlgmr.msra.gmra.mxu3 %v2678_v50  ;;  %v34640_v8 = vunpack.c.h.b16 %v28293_v37  ;;  %v2624_v50 = vunpack.c.h.b16 %v28296_v46  ;;  %v28609_v11 = vld [vmem:[%s25576_s24 + $0x2e8] sm:$0xff] }
 0x2ae   : > { %6606 = vmatpush.bf16.msrb.mxu0 %v24789_v58  ;;  %34974 = vst [vmem:[#allocation130_spill] sm:$0xff] %v28609_v11  ;;  %v34639_v58 = vunpack.c.l.b16 %v28609_v11 }
 0x2af   : > { %v28590_v45 = vadd.f32 %v6270_v42, %v6242_v53  ;;  %v34638_v42 = vunpack.c.l.b16 %v28593_v56  ;;  %v2816_v46 = vpack.c.b16 %v2624_v50, %v34640_v8  ;;  %v28646_v8 = vld [vmem:[%s25576_s24 + $0x170] sm:$0xff] }
 0x2b0   : > { %v6185_v2 = vpop.f32.mrf.mxu1  ;;  %v6272_v15 = vpop.f32.mrf.mxu0 }
 0x2b1   : > { %v6186_v43 = vadd.f32 %v6185_v2, %v28319_v16  ;;  %v28599_v18 = vpop.f32.mrf.mxu2  ;;  %v28601_v44 = vpop.f32.mrf.mxu3  ;;  %v34642_v2 = vunpack.c.h.b16 %v28609_v11  ;;  %v2819_v54 = vpack.c.b16 %v2627_v39, %v34638_v42 }
 0x2b3   : > { %v6215_v13 = vadd.f32 %v28493_v31, %v6186_v43  ;;  %v34641_v31 = vunpack.c.h.b16 %v28612_v1 }
 0x2b5   : > { %v6244_v16 = vadd.f32 %v28495_v30, %v6215_v13  ;;  %v2726_v50 = vpack.c.b16 %v34641_v31, %v34642_v2  ;;  %v28649_v31 = vld [vmem:[%s25576_s24 + $0x230] sm:$0xff] }
 0x2b7   : > { %v28619_v43 = vadd.f32 %v6272_v15, %v6244_v16  ;;  %v34976_v15 = vunpack.c.l.b16 %v28612_v1 }
 0x2b8   : > { %v6188_v9 = vpop.f32.mrf.mxu1  ;;  %v6275_v6 = vpop.f32.mrf.mxu0 }
 0x2b9   : > { %v6189_v30 = vadd.f32 %v6188_v9, %v28343_v40  ;;  %v28626_v13 = vpop.f32.mrf.mxu2  ;;  %v28628_v53 = vpop.f32.mrf.mxu3  ;;  %v2725_v16 = vpack.c.b16 %v34976_v15, %v34639_v58  ;;  %v24812_v40 = vld [vmem:[%s34262_s1 + $0x17b8] sm:$0xff] }
 0x2ba   : > { %6657 = vmatpush.bf16.msrb.mxu2 %v24812_v40  ;;  %v28671_v40 = vld [vmem:[%s25576_s24 + $0x528] sm:$0xff] }
 0x2bb   : > { %v6218_v39 = vadd.f32 %v28530_v32, %v6189_v30  ;;  %6419 = vmatmul.bf16.gmra.mxu1 %v2816_v46  ;;  %6506 = vmatmul.bf16.gmra.mxu0 %v2819_v54  ;;  %v24820_v32 = vld [vmem:[%s34262_s1 + $0x17f8] sm:$0xff]  ;;  %v24811_v30 = vld [vmem:[%s34262_s1 + $0x17b0] sm:$0xff]  ;;  %34978 = vst [vmem:[#allocation133_spill] sm:$0xff] %v28671_v40 }
 0x2bc   : > { %6686 = vmatpush.bf16.msrb.mxu3 %v24820_v32 }
 0x2bd   : > { %v6247_v9 = vadd.f32 %v28532_v61, %v6218_v39  ;;  %6554 = vmatmul.bf16.gmra.mxu2 %v2725_v16  ;;  %6583 = vmatmul.bf16.gmra.mxu3 %v2726_v50  ;;  %v34645_v50 = vunpack.c.h.b16 %v28349_v52  ;;  %v24804_v52 = vld [vmem:[%s34262_s1 + $0x1778] sm:$0xff] }
 0x2be   : > { %6658 = vmatpush.bf16.msrb.mxu2 %v24811_v30  ;;  %6628 = vmatpush.bf16.msra.mxu1 %v24804_v52  ;;  %v28730_v52 = vld [vmem:[%s25576_s24 + $0x2f0] sm:$0xff] }
 0x2bf   : > { %v28643_v42 = vadd.f32 %v6275_v6, %v6247_v9  ;;  %v34646_v6 = vunpack.c.h.b16 %v28346_v17  ;;  %v24810_v9 = vld [vmem:[%s34262_s1 + $0x17a8] sm:$0xff] }
 0x2c0   : > { %v6190_v15 = vpop.f32.mrf.mxu1  ;;  %v6277_v58 = vpop.f32.mrf.mxu0 }
 0x2c1   : > { %v6191_v61 = vadd.f32 %v6190_v15, %v28384_v49  ;;  %v28655_v54 = vpop.f32.mrf.mxu2  ;;  %v28657_v46 = vpop.f32.mrf.mxu3  ;;  %v28668_v49 = vld [vmem:[%s25576_s24 + $0x468] sm:$0xff]  ;;  %v24819_v15 = vld [vmem:[%s34262_s1 + $0x17f0] sm:$0xff] }
 0x2c2   : > { %34977 = vst [vmem:[#allocation132_spill] sm:$0xff] %v28668_v49  ;;  %6687 = vmatpush.bf16.msrb.mxu3 %v24819_v15  ;;  %6659 = vmatpush.bf16.msrb.mxu2 %v24810_v9  ;;  %v24818_v15 = vld [vmem:[%s34262_s1 + $0x17e8] sm:$0xff] }
 0x2c3   : > { %v6220_v16 = vadd.f32 %v28573_v41, %v6191_v61  ;;  %v34980_v41 = vunpack.c.l.b16 %v28649_v31 }
 0x2c5   : > { %v6249_v32 = vadd.f32 %v28575_v27, %v6220_v16  ;;  %v2676_v27 = vpack.c.b16 %v34645_v50, %v34646_v6  ;;  %v34979_v16 = vunpack.c.l.b16 %v28646_v8  ;;  %v34981_v50 = vunpack.c.l.b16 %v28668_v49 }
 0x2c6   : > { %v34982_v6 = vunpack.c.l.b16 %v28671_v40  ;;  %6688 = vmatpush.bf16.msrb.mxu3 %v24818_v15  ;;  %v24803_v15 = vld [vmem:[%s34262_s1 + $0x1770] sm:$0xff] }
 0x2c7   : > { %v28684_v30 = vadd.f32 %v6277_v58, %v6249_v32  ;;  %v2679_v2 = vpack.c.b16 %v34980_v41, %v34979_v16  ;;  %v34983_v41 = vunpack.c.h.b16 %v28668_v49  ;;  %v34984_v16 = vunpack.c.h.b16 %v28671_v40  ;;  %6629 = vmatpush.bf16.msra.mxu1 %v24803_v15 }
 0x2c8   : > { %v6289_v61 = vpop.f32.mrf.mxu1  ;;  %v6376_v1 = vpop.f32.mrf.mxu0  ;;  %v2773_v11 = vpack.c.b16 %v34982_v6, %v34981_v50  ;;  %v24817_v6 = vld [vmem:[%s34262_s1 + $0x17e0] sm:$0xff]  ;;  %v34986_v49 = vunpack.c.h.b16 %v28430_v55 }
 0x2c9   : > { %v6290_v58 = vadd.f32 %v6289_v61, %v28427_v29  ;;  %v28698_v32 = vpop.f32.mrf.mxu2  ;;  %v28700_v39 = vpop.f32.mrf.mxu3  ;;  %v2774_v9 = vpack.c.b16 %v34984_v16, %v34983_v41  ;;  %v24809_v29 = vld [vmem:[%s34262_s1 + $0x17a0] sm:$0xff]  ;;  %v28733_v41 = vld [vmem:[%s25576_s24 + $0x3b0] sm:$0xff] }
 0x2ca   : > { %6660 = vmatpush.bf16.msrb.mxu2 %v24809_v29  ;;  %6689 = vmatpush.bf16.msrb.mxu3 %v24817_v6  ;;  %v24807_v6 = vld [vmem:[%s34262_s1 + $0x1790] sm:$0xff]  ;;  %v1287_v29 = vld [vmem:[%s25576_s24 + $0x6a8] sm:$0xff]  ;;  %v24805_v55 = vld [vmem:[%s34262_s1 + $0x1780] sm:$0xff] }
 0x2cb   : > { %v6319_v61 = vadd.f32 %v28599_v18, %v6290_v58  ;;  %6520 = vmatmul.bf16.vlgmr.msrb.gmra.mxu1 %v2676_v27  ;;  %6607 = vmatmul.bf16.vlgmr.msrb.gmra.mxu0 %v2679_v2  ;;  %v24808_v18 = vld [vmem:[%s34262_s1 + $0x1798] sm:$0xff]  ;;  %v2629_v15 = vunpack.c.l.b16 %v1287_v29  ;;  %v2630_v40 = vunpack.c.h.b16 %v1287_v29  ;;  %v34989_v29 = vunpack.c.l.b16 %v28733_v41 }
 0x2cd   : > { %v6348_v50 = vadd.f32 %v28601_v44, %v6319_v61  ;;  %6559 = vmatmul.bf16.gmra.mxu2 %v2773_v11  ;;  %6588 = vmatmul.bf16.gmra.mxu3 %v2774_v9  ;;  %v24816_v44 = vld [vmem:[%s34262_s1 + $0x17d8] sm:$0xff]  ;;  %v24802_v61 = vld [vmem:[%s34262_s1 + $0x1768] sm:$0xff] }
 0x2ce   : > { %6661 = vmatpush.bf16.msrb.mxu2 %v24808_v18  ;;  %v24060_v11 = vld [vmem:[%s34262_s1 + $0x38] sm:$0xff]  ;;  %6690 = vmatpush.bf16.msrb.mxu3 %v24816_v44  ;;  %v24801_v44 = vld [vmem:[%s34262_s1 + $0x1760] sm:$0xff] }
 0x2cf   : > { %v28727_v27 = vadd.f32 %v6376_v1, %v6348_v50  ;;  %9475 = vmatpush.bf16.msra.mxu0 %v24060_v11  ;;  %6630 = vmatpush.bf16.msra.mxu1 %v24802_v61  ;;  %v24815_v11 = vld [vmem:[%s34262_s1 + $0x17d0] sm:$0xff]  ;;  %v24806_v61 = vld [vmem:[%s34262_s1 + $0x1788] sm:$0xff] }
 0x2d0   : > { %v6291_v2 = vpop.f32.mrf.mxu1  ;;  %v6378_v58 = vpop.f32.mrf.mxu0 }
 0x2d1   : > { %v6292_v1 = vadd.f32 %v6291_v2, %v28476_v12  ;;  %v28742_v16 = vpop.f32.mrf.mxu2  ;;  %v28744_v9 = vpop.f32.mrf.mxu3  ;;  %v28758_v2 = vld [vmem:[%s25576_s24 + $0x5e8] sm:$0xff]  ;;  %v34988_v12 = vunpack.c.l.b16 %v28730_v52 }
 0x2d2   : > { %34985 = vst [vmem:[#allocation134_spill] sm:$0xff] %v28758_v2  ;;  %6662 = vmatpush.bf16.msrb.mxu2 %v24807_v6  ;;  %6691 = vmatpush.bf16.msrb.mxu3 %v24815_v11 }
 0x2d3   : > { %v6321_v50 = vadd.f32 %v28626_v13, %v6292_v1  ;;  %v24059_v13 = vld [vmem:[%s34262_s1 + $0x30] sm:$0xff]  ;;  %6631 = vmatpush.bf16.msra.mxu1 %v24801_v44  ;;  %v34991_v44 = vunpack.c.h.b16 %v28758_v2 }
 0x2d4   : > { %9476 = vmatpush.bf16.msra.mxu0 %v24059_v13  ;;  %v2727_v13 = vpack.c.b16 %v34989_v29, %v34988_v12  ;;  %v34990_v12 = vunpack.c.l.b16 %v28758_v2  ;;  %v24800_v29 = vld [vmem:[%s34262_s1 + $0x1758] sm:$0xff] }
 0x2d5   : > { %v6350_v1 = vadd.f32 %v28628_v53, %v6321_v50  ;;  %v34987_v53 = vunpack.c.h.b16 %v28433_v7 }
 0x2d6   : > { %6663 = vmatpush.bf16.msrb.mxu2 %v24806_v61  ;;  %v2821_v11 = vpack.c.b16 %v2629_v15, %v34990_v12  ;;  %v2822_v61 = vpack.c.b16 %v2630_v40, %v34991_v44  ;;  %v24813_v40 = vld [vmem:[%s34262_s1 + $0x17c0] sm:$0xff]  ;;  %v24798_v44 = vld [vmem:[%s34262_s1 + $0x1748] sm:$0xff] }
 0x2d7   : > { %v28776_v6 = vadd.f32 %v6378_v58, %v6350_v1  ;;  %v2724_v50 = vpack.c.b16 %v34987_v53, %v34986_v49  ;;  %v24814_v58 = vld [vmem:[%s34262_s1 + $0x17c8] sm:$0xff]  ;;  %6632 = vmatpush.bf16.msra.mxu1 %v24800_v29  ;;  %v24057_v15 = vld [vmem:[%s34262_s1 + $0x20] sm:$0xff]  ;;  %v34663_v29 = vunpack.c.h.b16 %v28524_v28 }
 0x2d8   : > { %v6294_v18 = vpop.f32.mrf.mxu1  ;;  %v6381_v17 = vpop.f32.mrf.mxu0  ;;  %v24058_v1 = vld [vmem:[%s34262_s1 + $0x28] sm:$0xff]  ;;  %6692 = vmatpush.bf16.msrb.mxu3 %v24814_v58 }
 0x2d9   : > { %v6295_v49 = vadd.f32 %v6294_v18, %v28518_v5  ;;  %v28793_v53 = vpop.f32.mrf.mxu2  ;;  %v28795_v7 = vpop.f32.mrf.mxu3  ;;  %9477 = vmatpush.bf16.msra.mxu0 %v24058_v1  ;;  %v28821_v1 = vld [vmem:[%s25576_s24 + $0x470] sm:$0xff] }
 0x2da   : > { %6664 = vmatpush.bf16.msrb.mxu2 %v24805_v55  ;;  %v24056_v55 = vld [vmem:[%s34262_s1 + $0x18] sm:$0xff] }
 0x2db   : > { %v6324_v5 = vadd.f32 %v28655_v54, %v6295_v49  ;;  %6525 = vmatmul.bf16.gmra.mxu1 %v2724_v50  ;;  %6612 = vmatmul.bf16.gmra.mxu0 %v2727_v13  ;;  %v24799_v54 = vld [vmem:[%s34262_s1 + $0x1750] sm:$0xff] }
 0x2dc   : > { %v28824_v49 = vld [vmem:[%s25576_s24 + $0x530] sm:$0xff]  ;;  %6693 = vmatpush.bf16.msrb.mxu3 %v24813_v40  ;;  %6633 = vmatpush.bf16.msra.mxu1 %v24799_v54  ;;  %v24054_v40 = vld [vmem:[%s34262_s1 + $0x8] sm:$0xff] }
 0x2dd   : > { %v6353_v18 = vadd.f32 %v28657_v46, %v6324_v5  ;;  %6564 = vmatmul.bf16.gmra.mxu2 %v2821_v11  ;;  %6593 = vmatmul.bf16.gmra.mxu3 %v2822_v61  ;;  %v34664_v11 = vunpack.c.h.b16 %v28521_v36  ;;  %v24797_v5 = vld [vmem:[%s34262_s1 + $0x1740] sm:$0xff] }
 0x2de   : > { %9478 = vmatpush.bf16.msra.mxu0 %v24057_v15  ;;  %v28843_v15 = vld [vmem:[%s25576_s24 + $0x178] sm:$0xff] }
 0x2df   : > { %v28818_v50 = vadd.f32 %v6381_v17, %v6353_v18  ;;  %34992 = vst [vmem:[#allocation135_spill] sm:$0xff] %v28843_v15  ;;  %v24055_v18 = vld [vmem:[%s34262_s1 + $0x10] sm:$0xff] }
 0x2e0   : > { %v6296_v13 = vpop.f32.mrf.mxu1  ;;  %v6383_v58 = vpop.f32.mrf.mxu0  ;;  %6634 = vmatpush.bf16.msra.mxu1 %v24798_v44  ;;  %v2772_v44 = vpack.c.b16 %v34663_v29, %v34664_v11  ;;  %v34996_v29 = vunpack.c.l.b16 %v28843_v15 }
 0x2e1   : > { %v6297_v46 = vadd.f32 %v6296_v13, %v28559_v63  ;;  %v28830_v12 = vpop.f32.mrf.mxu2  ;;  %v28832_v17 = vpop.f32.mrf.mxu3  ;;  %v28846_v63 = vld [vmem:[%s25576_s24 + $0x238] sm:$0xff] }
 0x2e2   : > { %34993 = vst [vmem:[#allocation136_spill] sm:$0xff] %v28846_v63  ;;  %9479 = vmatpush.bf16.msra.mxu0 %v24056_v55  ;;  %v34997_v11 = vunpack.c.l.b16 %v28846_v63 }
 0x2e3   : > { %v6326_v61 = vadd.f32 %v28698_v32, %v6297_v46 }
 0x2e4   : > { %6635 = vmatpush.bf16.msra.mxu1 %v24797_v5  ;;  %v34999_v5 = vunpack.c.h.b16 %v28846_v63 }
 0x2e5   : > { %v6355_v54 = vadd.f32 %v28700_v39, %v6326_v61  ;;  %v34994_v39 = vunpack.c.l.b16 %v28821_v1  ;;  %v34995_v61 = vunpack.c.l.b16 %v28824_v49 }
 0x2e6   : > { %9480 = vmatpush.bf16.msra.mxu0 %v24055_v18  ;;  %v34998_v18 = vunpack.c.h.b16 %v28843_v15 }
 0x2e7   : > { %v28859_v55 = vadd.f32 %v6383_v58, %v6355_v54  ;;  %v2775_v13 = vpack.c.b16 %v34995_v61, %v34994_v39  ;;  %v2681_v39 = vpack.c.b16 %v34997_v11, %v34996_v29 }
 0x2e8   : > { %v6299_v46 = vpop.f32.mrf.mxu1  ;;  %v6386_v32 = vpop.f32.mrf.mxu0  ;;  %v2682_v61 = vpack.c.b16 %v34999_v5, %v34998_v18  ;;  %v28891_v18 = vld [vmem:[%s25576_s24 + $0x5f0] sm:$0xff]  ;;  %v28907_v5 = vld [vmem:[%s25576_s24 + $0x2f8] sm:$0xff] }
 0x2e9   : > { %v6300_v58 = vadd.f32 %v6299_v46, %v28590_v45  ;;  %v6335_v54 = vpop.f32.mrf.mxu2  ;;  %v28873_v2 = vpop.f32.mrf.mxu3  ;;  %v24053_v45 = vld [vmem:[%s34262_s1] sm:$0xff] }
 0x2ea   : > { %9481 = vmatpush.bf16.msra.mxu0 %v24054_v40 }
 0x2eb   : > { %v6329_v28 = vadd.f32 %v28742_v16, %v6300_v58  ;;  %6530 = vmatmul.bf16.gmra.mxu1 %v2772_v44  ;;  %6617 = vmatmul.bf16.gmra.mxu0 %v2775_v13  ;;  %v28894_v16 = vld [vmem:[%s25576_s24 + $0x6b0] sm:$0xff]  ;;  %v34676_v58 = vunpack.c.l.b16 %v28891_v18 }
 0x2ed   : > { %v6358_v46 = vadd.f32 %v28744_v9, %v6329_v28  ;;  %6665 = vmatmul.bf16.vlgmr.msrb.gmra.mxu2 %v2681_v39  ;;  %6694 = vmatmul.bf16.vlgmr.msrb.gmra.mxu3 %v2682_v61  ;;  %v34678_v28 = vunpack.c.h.b16 %v28593_v56  ;;  %v2631_v39 = vunpack.c.l.b16 %v28894_v16  ;;  %v28910_v61 = vld [vmem:[%s25576_s24 + $0x3b8] sm:$0xff] }
 0x2ee   : > { %9482 = vmatpush.bf16.msra.mxu0 %v24053_v45  ;;  %35000 = vst [vmem:[#allocation137_spill] sm:$0xff] %v28910_v61 }
 0x2ef   : > { %v28888_v11 = vadd.f32 %v6386_v32, %v6358_v46  ;;  %v2628_v32 = vunpack.c.h.b16 %v28596_v22  ;;  %v34675_v46 = vunpack.c.l.b16 %v28910_v61  ;;  %v2823_v15 = vpack.c.b16 %v2631_v39, %v34676_v58 }
 0x2f0   : > { %v6301_v29 = vpop.f32.mrf.mxu1  ;;  %v6388_v63 = vpop.f32.mrf.mxu0 }
 0x2f1   : > { %v6302_v40 = vadd.f32 %v6301_v29, %v28619_v43  ;;  %v28897_v13 = vpop.f32.mrf.mxu2  ;;  %v28899_v44 = vpop.f32.mrf.mxu3  ;;  %v2820_v22 = vpack.c.b16 %v2628_v32, %v34678_v28  ;;  %v35001_v29 = vunpack.c.l.b16 %v28907_v5 }
 0x2f3   : > { %v6331_v9 = vadd.f32 %v28793_v53, %v6302_v40  ;;  %v34677_v53 = vunpack.c.h.b16 %v28910_v61  ;;  %v24069_v61 = vld [vmem:[%s34262_s1 + $0x80] sm:$0xff] }
 0x2f5   : > { %v6360_v43 = vadd.f32 %v28795_v7, %v6331_v9 }
 0x2f7   : > { %v28917_v40 = vadd.f32 %v6388_v63, %v6360_v43  ;;  %v2729_v63 = vpack.c.b16 %v34675_v46, %v35001_v29  ;;  %v35002_v43 = vunpack.c.h.b16 %v28907_v5 }
 0x2f8   : > { %v6304_v36 = vpop.f32.mrf.mxu1  ;;  %v6391_v37 = vpop.f32.mrf.mxu0 }
 0x2f9   : > { %v6305_v7 = vadd.f32 %v6304_v36, %v28643_v42  ;;  %v28924_v9 = vpop.f32.mrf.mxu2  ;;  %v28926_v45 = vpop.f32.mrf.mxu3  ;;  %v2730_v32 = vpack.c.b16 %v34677_v53, %v35002_v43  ;;  %v24076_v42 = vld [vmem:[%s34262_s1 + $0xb8] sm:$0xff]  ;;  %v24074_v53 = vld [vmem:[%s34262_s1 + $0xa8] sm:$0xff] }
 0x2fa   : > { %9533 = vmatpush.bf16.msra.mxu2 %v24076_v42  ;;  %v28961_v42 = vld [vmem:[%s25576_s24 + $0x538] sm:$0xff] }
 0x2fb   : > { %v6334_v39 = vadd.f32 %v28830_v12, %v6305_v7  ;;  %6535 = vmatmul.bf16.gmra.mxu1 %v2820_v22  ;;  %6622 = vmatmul.bf16.gmra.mxu0 %v2823_v15  ;;  %v24084_v12 = vld [vmem:[%s34262_s1 + $0xf8] sm:$0xff]  ;;  %v25483_v7 = vld [vmem:[%s25576_s24] sm:$0xff]  ;;  %35004 = vst [vmem:[#allocation139_spill] sm:$0xff] %v28961_v42 }
 0x2fc   : > { %9562 = vmatpush.bf16.msra.mxu3 %v24084_v12 }
 0x2fd   : > { %v6363_v36 = vadd.f32 %v28832_v17, %v6334_v39  ;;  %6670 = vmatmul.bf16.gmra.mxu2 %v2729_v63  ;;  %6699 = vmatmul.bf16.gmra.mxu3 %v2730_v32  ;;  %v6739_v63 = vunpack.c.l.b16 %v25483_v7  ;;  %v34679_v32 = vunpack.c.h.b16 %v28646_v8 }
 0x2ff   : > { %v28941_v29 = vadd.f32 %v6391_v37, %v6363_v36  ;;  %v24075_v37 = vld [vmem:[%s34262_s1 + $0xb0] sm:$0xff]  ;;  %v28958_v36 = vld [vmem:[%s25576_s24 + $0x478] sm:$0xff] }
 0x300   : > { %v6306_v46 = vpop.f32.mrf.mxu1  ;;  %v6393_v58 = vpop.f32.mrf.mxu0  ;;  %35003 = vst [vmem:[#allocation138_spill] sm:$0xff] %v28958_v36  ;;  %9534 = vmatpush.bf16.msra.mxu2 %v24075_v37  ;;  %v35005_v37 = vunpack.c.l.b16 %v25586_v10 }
 0x301   : > { %v6307_v15 = vadd.f32 %v6306_v46, %v28684_v30  ;;  %v28947_v17 = vpop.f32.mrf.mxu2  ;;  %v28949_v22 = vpop.f32.mrf.mxu3  ;;  %v24083_v30 = vld [vmem:[%s34262_s1 + $0xf0] sm:$0xff] }
 0x302   : > { %9563 = vmatpush.bf16.msra.mxu3 %v24083_v30  ;;  %v6787_v28 = vpack.c.b16 %v35005_v37, %v6739_v63  ;;  %v24082_v30 = vld [vmem:[%s34262_s1 + $0xe8] sm:$0xff]  ;;  %v35008_v63 = vunpack.c.l.b16 %v28961_v42  ;;  %v35009_v37 = vunpack.c.h.b16 %v28958_v36 }
 0x303   : > { %v6336_v43 = vadd.f32 %v6335_v54, %v6307_v15 }
 0x304   : > { %9535 = vmatpush.bf16.msra.mxu2 %v24074_v53 }
 0x305   : > { %v6365_v46 = vadd.f32 %v28873_v2, %v6336_v43  ;;  %v35006_v2 = vunpack.c.h.b16 %v28649_v31 }
 0x306   : > { %9564 = vmatpush.bf16.msra.mxu3 %v24082_v30  ;;  %v24067_v30 = vld [vmem:[%s34262_s1 + $0x70] sm:$0xff] }
 0x307   : > { %v28976_v39 = vadd.f32 %v6393_v58, %v6365_v46  ;;  %v2680_v43 = vpack.c.b16 %v35006_v2, %v34679_v32  ;;  %v35007_v58 = vunpack.c.l.b16 %v28958_v36  ;;  %v35010_v2 = vunpack.c.h.b16 %v28961_v42  ;;  %v24068_v32 = vld [vmem:[%s34262_s1 + $0x78] sm:$0xff] }
 0x308   : > { %v6405_v7 = vpop.f32.mrf.mxu1  ;;  %v6492_v12 = vpop.f32.mrf.mxu0  ;;  %9504 = vmatpush.bf16.msrb.mxu1 %v24068_v32 }
 0x309   : > { %v6406_v15 = vadd.f32 %v6405_v7, %v28727_v27  ;;  %v28986_v54 = vpop.f32.mrf.mxu2  ;;  %v28988_v10 = vpop.f32.mrf.mxu3  ;;  %v2777_v46 = vpack.c.b16 %v35008_v63, %v35007_v58  ;;  %v2778_v53 = vpack.c.b16 %v35010_v2, %v35009_v37  ;;  %v24073_v27 = vld [vmem:[%s34262_s1 + $0xa0] sm:$0xff]  ;;  %v24066_v2 = vld [vmem:[%s34262_s1 + $0x68] sm:$0xff] }
 0x30a   : > { %9536 = vmatpush.bf16.msra.mxu2 %v24073_v27  ;;  %v24081_v58 = vld [vmem:[%s34262_s1 + $0xe0] sm:$0xff] }
 0x30b   : > { %v6435_v7 = vadd.f32 %v28897_v13, %v6406_v15  ;;  %6636 = vmatmul.bf16.vlgmr.msra.gmra.mxu1 %v2680_v43  ;;  %9483 = vmatmul.bf16.vlgmr.msra.gmra.mxu0 %v6787_v28  ;;  %v24072_v13 = vld [vmem:[%s34262_s1 + $0x98] sm:$0xff] }
 0x30c   : > { %9565 = vmatpush.bf16.msra.mxu3 %v24081_v58  ;;  %9505 = vmatpush.bf16.msrb.mxu1 %v24067_v30  ;;  %v24092_v43 = vld [vmem:[%s34262_s1 + $0x138] sm:$0xff]  ;;  %v24079_v30 = vld [vmem:[%s34262_s1 + $0xd0] sm:$0xff] }
 0x30d   : > { %v6464_v63 = vadd.f32 %v28899_v44, %v6435_v7  ;;  %6675 = vmatmul.bf16.gmra.mxu2 %v2777_v46  ;;  %6704 = vmatmul.bf16.gmra.mxu3 %v2778_v53  ;;  %v24080_v44 = vld [vmem:[%s34262_s1 + $0xd8] sm:$0xff]  ;;  %v24071_v53 = vld [vmem:[%s34262_s1 + $0x90] sm:$0xff]  ;;  %v34682_v7 = vunpack.c.h.b16 %v28730_v52 }
 0x30e   : > { %9537 = vmatpush.bf16.msra.mxu2 %v24072_v13  ;;  %9591 = vmatpush.bf16.msrb.mxu0 %v24092_v43  ;;  %v24091_v13 = vld [vmem:[%s34262_s1 + $0x130] sm:$0xff] }
 0x30f   : > { %v29015_v15 = vadd.f32 %v6492_v12, %v6464_v63  ;;  %v1289_v63 = vld [vmem:[%s25576_s24 + $0x6b8] sm:$0xff] }
 0x310   : > { %v6407_v28 = vpop.f32.mrf.mxu1  ;;  %v6494_v32 = vpop.f32.mrf.mxu0  ;;  %9566 = vmatpush.bf16.msra.mxu3 %v24080_v44  ;;  %9506 = vmatpush.bf16.msrb.mxu1 %v24066_v2  ;;  %v2633_v43 = vunpack.c.l.b16 %v1289_v63  ;;  %v2634_v58 = vunpack.c.h.b16 %v1289_v63  ;;  %v24065_v44 = vld [vmem:[%s34262_s1 + $0x60] sm:$0xff]  ;;  %v24070_v2 = vld [vmem:[%s34262_s1 + $0x88] sm:$0xff]  ;;  %v35014_v63 = vunpack.c.l.b16 %v25711_v59 }
 0x311   : > { %v6408_v46 = vadd.f32 %v6407_v28, %v28776_v6  ;;  %v29024_v37 = vpop.f32.mrf.mxu2  ;;  %v29026_v12 = vpop.f32.mrf.mxu3  ;;  %v29038_v6 = vld [vmem:[%s25576_s24 + $0x5f8] sm:$0xff]  ;;  %v35013_v28 = vunpack.c.l.b16 %v25630_v26 }
 0x312   : > { %35011 = vst [vmem:[#allocation140_spill] sm:$0xff] %v29038_v6  ;;  %9538 = vmatpush.bf16.msra.mxu2 %v24071_v53  ;;  %9592 = vmatpush.bf16.msrb.mxu0 %v24091_v13 }
 0x313   : > { %v6437_v27 = vadd.f32 %v28924_v9, %v6408_v46  ;;  %v6835_v13 = vpack.c.b16 %v35014_v63, %v35013_v28  ;;  %v24064_v63 = vld [vmem:[%s34262_s1 + $0x58] sm:$0xff] }
 0x314   : > { %9567 = vmatpush.bf16.msra.mxu3 %v24079_v30  ;;  %9507 = vmatpush.bf16.msrb.mxu1 %v24065_v44  ;;  %v35015_v30 = vunpack.c.l.b16 %v29038_v6  ;;  %v35016_v44 = vunpack.c.h.b16 %v29038_v6 }
 0x315   : > { %v6466_v9 = vadd.f32 %v28926_v45, %v6437_v27  ;;  %v35012_v45 = vunpack.c.h.b16 %v28733_v41 }
 0x316   : > { %9539 = vmatpush.bf16.msra.mxu2 %v24070_v2  ;;  %v2825_v28 = vpack.c.b16 %v2633_v43, %v35015_v30  ;;  %v2826_v2 = vpack.c.b16 %v2634_v58, %v35016_v44  ;;  %v24077_v43 = vld [vmem:[%s34262_s1 + $0xc0] sm:$0xff]  ;;  %v24062_v30 = vld [vmem:[%s34262_s1 + $0x48] sm:$0xff]  ;;  %v34688_v44 = vunpack.c.h.b16 %v28821_v1 }
 0x317   : > { %v29056_v53 = vadd.f32 %v6494_v32, %v6466_v9  ;;  %v2728_v27 = vpack.c.b16 %v35012_v45, %v34682_v7  ;;  %v24078_v32 = vld [vmem:[%s34262_s1 + $0xc8] sm:$0xff]  ;;  %v24089_v58 = vld [vmem:[%s34262_s1 + $0x120] sm:$0xff] }
 0x318   : > { %v6410_v46 = vpop.f32.mrf.mxu1  ;;  %v6497_v42 = vpop.f32.mrf.mxu0  ;;  %v24090_v9 = vld [vmem:[%s34262_s1 + $0x128] sm:$0xff]  ;;  %9568 = vmatpush.bf16.msra.mxu3 %v24078_v32  ;;  %9508 = vmatpush.bf16.msrb.mxu1 %v24064_v63  ;;  %v24087_v63 = vld [vmem:[%s34262_s1 + $0x110] sm:$0xff] }
 0x319   : > { %v6411_v45 = vadd.f32 %v6410_v46, %v28818_v50  ;;  %v29073_v7 = vpop.f32.mrf.mxu2  ;;  %v29075_v36 = vpop.f32.mrf.mxu3  ;;  %9593 = vmatpush.bf16.msrb.mxu0 %v24090_v9  ;;  %v24088_v9 = vld [vmem:[%s34262_s1 + $0x118] sm:$0xff] }
 0x31a   : > { %9540 = vmatpush.bf16.msra.mxu2 %v24069_v61 }
 0x31b   : > { %v6440_v50 = vadd.f32 %v28947_v17, %v6411_v45  ;;  %6641 = vmatmul.bf16.gmra.mxu1 %v2728_v27  ;;  %9488 = vmatmul.bf16.gmra.mxu0 %v6835_v13  ;;  %v24063_v17 = vld [vmem:[%s34262_s1 + $0x50] sm:$0xff] }
 0x31c   : > { %9569 = vmatpush.bf16.msra.mxu3 %v24077_v43  ;;  %9509 = vmatpush.bf16.msrb.mxu1 %v24063_v17  ;;  %v35017_v17 = vunpack.c.l.b16 %v25714_v60 }
 0x31d   : > { %v6469_v46 = vadd.f32 %v28949_v22, %v6440_v50  ;;  %6680 = vmatmul.bf16.gmra.mxu2 %v2825_v28  ;;  %6709 = vmatmul.bf16.gmra.mxu3 %v2826_v2  ;;  %v307_v28 = vld [vmem:[%s25576_s24 + $0x8] sm:$0xff]  ;;  %v34687_v2 = vunpack.c.h.b16 %v28824_v49 }
 0x31e   : > { %9594 = vmatpush.bf16.msrb.mxu0 %v24089_v58  ;;  %v6741_v50 = vunpack.c.l.b16 %v307_v28  ;;  %v6742_v43 = vunpack.c.h.b16 %v307_v28  ;;  %v24061_v58 = vld [vmem:[%s34262_s1 + $0x40] sm:$0xff] }
 0x31f   : > { %v29098_v27 = vadd.f32 %v6497_v42, %v6469_v46 }
 0x320   : > { %v6412_v13 = vpop.f32.mrf.mxu1  ;;  %v6499_v32 = vpop.f32.mrf.mxu0  ;;  %9510 = vmatpush.bf16.msrb.mxu1 %v24062_v30  ;;  %v24086_v30 = vld [vmem:[%s34262_s1 + $0x108] sm:$0xff] }
 0x321   : > { %v6413_v22 = vadd.f32 %v6412_v13, %v28859_v55  ;;  %v6449_v61 = vpop.f32.mrf.mxu2  ;;  %v6478_v45 = vpop.f32.mrf.mxu3  ;;  %v35018_v13 = vunpack.c.l.b16 %v25624_v24 }
 0x322   : > { %9595 = vmatpush.bf16.msrb.mxu0 %v24088_v9 }
 0x323   : > { %v6442_v42 = vadd.f32 %v28986_v54, %v6413_v22  ;;  %v2776_v54 = vpack.c.b16 %v34687_v2, %v34688_v44  ;;  %v6883_v9 = vpack.c.b16 %v35018_v13, %v35017_v17  ;;  %v35020_v44 = vunpack.c.h.b16 %v25643_v33 }
 0x324   : > { %9511 = vmatpush.bf16.msrb.mxu1 %v24061_v58 }
 0x325   : > { %v6471_v55 = vadd.f32 %v28988_v10, %v6442_v42  ;;  %v6790_v6 = vpack.c.b16 %v35020_v44, %v6742_v43 }
 0x326   : > { %9596 = vmatpush.bf16.msrb.mxu0 %v24087_v63  ;;  %v24085_v63 = vld [vmem:[%s34262_s1 + $0x100] sm:$0xff] }
 0x327   : > { %v29118_v46 = vadd.f32 %v6499_v32, %v6471_v55  ;;  %v35019_v55 = vunpack.c.l.b16 %v25643_v33 }
 0x328   : > { %v6415_v10 = vpop.f32.mrf.mxu1  ;;  %v6502_v22 = vpop.f32.mrf.mxu0 }
 0x329   : > { %v6416_v32 = vadd.f32 %v6415_v10, %v28888_v11  ;;  %v6451_v28 = vpop.f32.mrf.mxu2  ;;  %v6480_v42 = vpop.f32.mrf.mxu3  ;;  %v6789_v2 = vpack.c.b16 %v35019_v55, %v6741_v50 }
 0x32a   : > { %9597 = vmatpush.bf16.msrb.mxu0 %v24086_v30 }
 0x32b   : > { %v6445_v17 = vadd.f32 %v29024_v37, %v6416_v32  ;;  %6646 = vmatmul.bf16.gmra.mxu1 %v2776_v54  ;;  %9493 = vmatmul.bf16.gmra.mxu0 %v6883_v9  ;;  %v2584_v54 = vunpack.c.h.b16 %v28891_v18  ;;  %v2632_v9 = vunpack.c.h.b16 %v28894_v16  ;;  %v35023_v16 = vunpack.c.l.b16 %v25646_v34 }
 0x32d   : > { %v6474_v58 = vadd.f32 %v29026_v12, %v6445_v17  ;;  %9541 = vmatmul.bf16.vlgmr.msra.gmra.mxu2 %v6789_v2  ;;  %9570 = vmatmul.bf16.vlgmr.msra.gmra.mxu3 %v6790_v6  ;;  %v2824_v6 = vpack.c.b16 %v2632_v9, %v2584_v54  ;;  %v35021_v2 = vunpack.c.l.b16 %v25627_v25 }
 0x32e   : > { %9598 = vmatpush.bf16.msrb.mxu0 %v24085_v63 }
 0x32f   : > { %v29141_v11 = vadd.f32 %v6502_v22, %v6474_v58  ;;  %v35022_v22 = vunpack.c.l.b16 %v25705_v57  ;;  %v35025_v58 = vunpack.c.h.b16 %v25646_v34  ;;  %v24116_v34 = vld [vmem:[%s34262_s1 + $0x1f8] sm:$0xff] }
 0x330   : > { %v6417_v13 = vpop.f32.mrf.mxu1  ;;  %v6504_v50 = vpop.f32.mrf.mxu0  ;;  %9678 = vmatpush.bf16.msrb.mxu3 %v24116_v34 }
 0x331   : > { %v6418_v33 = vadd.f32 %v6417_v13, %v28917_v40  ;;  %v6550_v44 = vpop.f32.mrf.mxu2  ;;  %v6579_v37 = vpop.f32.mrf.mxu3  ;;  %v6931_v40 = vpack.c.b16 %v35022_v22, %v35021_v2  ;;  %v35026_v13 = vunpack.c.h.b16 %v25727_v3  ;;  %v25484_v22 = vld [vmem:[%s25576_s24 + $0x10] sm:$0xff] }
 0x333   : > { %v6447_v43 = vadd.f32 %v29073_v7, %v6418_v33 }
 0x335   : > { %v6476_v10 = vadd.f32 %v29075_v36, %v6447_v43  ;;  %v35024_v36 = vunpack.c.l.b16 %v25727_v3 }
 0x337   : > { %v29148_v12 = vadd.f32 %v6504_v50, %v6476_v10  ;;  %v6837_v63 = vpack.c.b16 %v35024_v36, %v35023_v16  ;;  %v6838_v50 = vpack.c.b16 %v35026_v13, %v35025_v58  ;;  %v35027_v16 = vunpack.c.l.b16 %v25691_v51 }
 0x338   : > { %v6420_v30 = vpop.f32.mrf.mxu1  ;;  %v6507_v32 = vpop.f32.mrf.mxu0  ;;  %v35029_v51 = vunpack.c.l.b16 %v25790_v38 }
 0x339   : > { %v6421_v7 = vadd.f32 %v6420_v30, %v28941_v29  ;;  %v29157_v55 = vpop.f32.mrf.mxu2  ;;  %v29159_v17 = vpop.f32.mrf.mxu3  ;;  %v24108_v29 = vld [vmem:[%s34262_s1 + $0x1b8] sm:$0xff] }
 0x33a   : > { %9649 = vmatpush.bf16.msrb.mxu2 %v24108_v29 }
 0x33b   : > { %v6450_v33 = vadd.f32 %v6449_v61, %v6421_v7  ;;  %6651 = vmatmul.bf16.gmra.mxu1 %v2824_v6  ;;  %9498 = vmatmul.bf16.gmra.mxu0 %v6931_v40  ;;  %v24107_v6 = vld [vmem:[%s34262_s1 + $0x1b0] sm:$0xff]  ;;  %v6743_v40 = vunpack.c.l.b16 %v25484_v22 }
 0x33c   : > { %v24099_v22 = vld [vmem:[%s34262_s1 + $0x170] sm:$0xff] }
 0x33d   : > { %v6479_v43 = vadd.f32 %v6478_v45, %v6450_v33  ;;  %9546 = vmatmul.bf16.gmra.mxu2 %v6837_v63  ;;  %9575 = vmatmul.bf16.gmra.mxu3 %v6838_v50  ;;  %v6791_v36 = vpack.c.b16 %v35027_v16, %v6743_v40 }
 0x33e   : > { %9650 = vmatpush.bf16.msrb.mxu2 %v24107_v6 }
 0x33f   : > { %v29172_v9 = vadd.f32 %v6507_v32, %v6479_v43  ;;  %v24115_v32 = vld [vmem:[%s34262_s1 + $0x1f0] sm:$0xff]  ;;  %v35028_v43 = vunpack.c.l.b16 %v25730_v4 }
 0x340   : > { %v6422_v10 = vpop.f32.mrf.mxu1  ;;  %v6509_v2 = vpop.f32.mrf.mxu0  ;;  %9679 = vmatpush.bf16.msrb.mxu3 %v24115_v32  ;;  %v24124_v32 = vld [vmem:[%s34262_s1 + $0x238] sm:$0xff] }
 0x341   : > { %v6423_v3 = vadd.f32 %v6422_v10, %v28976_v39  ;;  %v29178_v61 = vpop.f32.mrf.mxu2  ;;  %v29180_v45 = vpop.f32.mrf.mxu3  ;;  %v24106_v39 = vld [vmem:[%s34262_s1 + $0x1a8] sm:$0xff]  ;;  %v6885_v29 = vpack.c.b16 %v35029_v51, %v35028_v43  ;;  %v35030_v10 = vunpack.c.h.b16 %v25730_v4  ;;  %v24113_v4 = vld [vmem:[%s34262_s1 + $0x1e0] sm:$0xff]  ;;  %9707 = vmatpush.bf16.msra.mxu0 %v24124_v32  ;;  %v35039_v32 = vunpack.c.h.b16 %v25871_v48 }
 0x342   : > { %9651 = vmatpush.bf16.msrb.mxu2 %v24106_v39  ;;  %v24097_v43 = vld [vmem:[%s34262_s1 + $0x160] sm:$0xff] }
 0x343   : > { %v6452_v30 = vadd.f32 %v6451_v28, %v6423_v3  ;;  %v24114_v28 = vld [vmem:[%s34262_s1 + $0x1e8] sm:$0xff]  ;;  %v24100_v3 = vld [vmem:[%s34262_s1 + $0x178] sm:$0xff] }
 0x344   : > { %9680 = vmatpush.bf16.msrb.mxu3 %v24114_v28  ;;  %9620 = vmatpush.bf16.msra.mxu1 %v24100_v3  ;;  %v24123_v28 = vld [vmem:[%s34262_s1 + $0x230] sm:$0xff] }
 0x345   : > { %v6481_v7 = vadd.f32 %v6480_v42, %v6452_v30  ;;  %9708 = vmatpush.bf16.msra.mxu0 %v24123_v28 }
 0x347   : > { %v29194_v63 = vadd.f32 %v6509_v2, %v6481_v7  ;;  %v35031_v2 = vunpack.c.h.b16 %v25790_v38 }
 0x348   : > { %v6521_v58 = vpop.f32.mrf.mxu1  ;;  %v6608_v13 = vpop.f32.mrf.mxu0  ;;  %9681 = vmatpush.bf16.msrb.mxu3 %v24113_v4  ;;  %9621 = vmatpush.bf16.msra.mxu1 %v24099_v22  ;;  %v24110_v4 = vld [vmem:[%s34262_s1 + $0x1c8] sm:$0xff] }
 0x349   : > { %v6522_v50 = vadd.f32 %v6521_v58, %v29015_v15  ;;  %v29200_v42 = vpop.f32.mrf.mxu2  ;;  %v29202_v33 = vpop.f32.mrf.mxu3  ;;  %v6886_v34 = vpack.c.b16 %v35031_v2, %v35030_v10  ;;  %v24105_v15 = vld [vmem:[%s34262_s1 + $0x1a0] sm:$0xff]  ;;  %v24103_v58 = vld [vmem:[%s34262_s1 + $0x190] sm:$0xff]  ;;  %v35033_v10 = vunpack.c.h.b16 %v25711_v59 }
 0x34a   : > { %9652 = vmatpush.bf16.msrb.mxu2 %v24105_v15 }
 0x34b   : > { %v6551_v6 = vadd.f32 %v6550_v44, %v6522_v50  ;;  %9512 = vmatmul.bf16.vlgmr.msrb.gmra.mxu1 %v25594_v14  ;;  %9599 = vmatmul.bf16.vlgmr.msrb.gmra.mxu0 %v6791_v36  ;;  %v24104_v44 = vld [vmem:[%s34262_s1 + $0x198] sm:$0xff]  ;;  %v24098_v36 = vld [vmem:[%s34262_s1 + $0x168] sm:$0xff] }
 0x34c   : > { %9622 = vmatpush.bf16.msra.mxu1 %v24098_v36  ;;  %v24096_v36 = vld [vmem:[%s34262_s1 + $0x158] sm:$0xff] }
 0x34d   : > { %v6580_v38 = vadd.f32 %v6579_v37, %v6551_v6  ;;  %9551 = vmatmul.bf16.gmra.mxu2 %v6885_v29  ;;  %9580 = vmatmul.bf16.gmra.mxu3 %v6886_v34  ;;  %v24112_v37 = vld [vmem:[%s34262_s1 + $0x1d8] sm:$0xff]  ;;  %v35032_v29 = vunpack.c.h.b16 %v25630_v26  ;;  %v35034_v34 = vunpack.c.l.b16 %v25781_v35  ;;  %v24122_v26 = vld [vmem:[%s34262_s1 + $0x228] sm:$0xff] }
 0x34e   : > { %9653 = vmatpush.bf16.msrb.mxu2 %v24104_v44  ;;  %9682 = vmatpush.bf16.msrb.mxu3 %v24112_v37  ;;  %v35036_v44 = vunpack.c.l.b16 %v25799_v47  ;;  %v35038_v37 = vunpack.c.h.b16 %v25799_v47  ;;  %v24109_v47 = vld [vmem:[%s34262_s1 + $0x1c0] sm:$0xff] }
 0x34f   : > { %v29228_v40 = vadd.f32 %v6608_v13, %v6580_v38  ;;  %v6836_v2 = vpack.c.b16 %v35033_v10, %v35032_v29  ;;  %9709 = vmatpush.bf16.msra.mxu0 %v24122_v26  ;;  %v24094_v10 = vld [vmem:[%s34262_s1 + $0x148] sm:$0xff]  ;;  %v35040_v26 = vunpack.c.h.b16 %v25714_v60 }
 0x350   : > { %v6523_v14 = vpop.f32.mrf.mxu1  ;;  %v6610_v30 = vpop.f32.mrf.mxu0  ;;  %9623 = vmatpush.bf16.msra.mxu1 %v24097_v43  ;;  %v24120_v43 = vld [vmem:[%s34262_s1 + $0x218] sm:$0xff] }
 0x351   : > { %v6524_v7 = vadd.f32 %v6523_v14, %v29056_v53  ;;  %v29237_v39 = vpop.f32.mrf.mxu2  ;;  %v29239_v16 = vpop.f32.mrf.mxu3  ;;  %v24111_v53 = vld [vmem:[%s34262_s1 + $0x1d0] sm:$0xff]  ;;  %v35037_v14 = vunpack.c.l.b16 %v25871_v48  ;;  %v24121_v48 = vld [vmem:[%s34262_s1 + $0x220] sm:$0xff] }
 0x352   : > { %9654 = vmatpush.bf16.msrb.mxu2 %v24103_v58  ;;  %9683 = vmatpush.bf16.msrb.mxu3 %v24111_v53 }
 0x353   : > { %v6553_v13 = vadd.f32 %v29157_v55, %v6524_v7  ;;  %v24102_v55 = vld [vmem:[%s34262_s1 + $0x188] sm:$0xff]  ;;  %v6934_v7 = vpack.c.b16 %v35039_v32, %v35038_v37  ;;  %9710 = vmatpush.bf16.msra.mxu0 %v24121_v48 }
 0x354   : > { %9624 = vmatpush.bf16.msra.mxu1 %v24096_v36  ;;  %v24118_v32 = vld [vmem:[%s34262_s1 + $0x208] sm:$0xff] }
 0x355   : > { %v6582_v50 = vadd.f32 %v29159_v17, %v6553_v13  ;;  %v35035_v17 = vunpack.c.l.b16 %v25852_v20 }
 0x356   : > { %9655 = vmatpush.bf16.msrb.mxu2 %v24102_v55  ;;  %9684 = vmatpush.bf16.msrb.mxu3 %v24110_v4 }
 0x357   : > { %v29261_v51 = vadd.f32 %v6610_v30, %v6582_v50  ;;  %v6839_v3 = vpack.c.b16 %v35035_v17, %v35034_v34  ;;  %v6933_v30 = vpack.c.b16 %v35037_v14, %v35036_v44  ;;  %9711 = vmatpush.bf16.msra.mxu0 %v24120_v43  ;;  %v24119_v17 = vld [vmem:[%s34262_s1 + $0x210] sm:$0xff]  ;;  %v35042_v44 = vunpack.c.l.b16 %v25855_v21 }
 0x358   : > { %v6526_v15 = vpop.f32.mrf.mxu1  ;;  %v6613_v6 = vpop.f32.mrf.mxu0  ;;  %v35043_v14 = vunpack.c.l.b16 %v25916_v62 }
 0x359   : > { %v6527_v59 = vadd.f32 %v6526_v15, %v29098_v27  ;;  %v29278_v38 = vpop.f32.mrf.mxu2  ;;  %v29280_v22 = vpop.f32.mrf.mxu3  ;;  %v24101_v27 = vld [vmem:[%s34262_s1 + $0x180] sm:$0xff] }
 0x35a   : > { %9656 = vmatpush.bf16.msrb.mxu2 %v24101_v27  ;;  %9685 = vmatpush.bf16.msrb.mxu3 %v24109_v47 }
 0x35b   : > { %v6556_v58 = vadd.f32 %v29178_v61, %v6527_v59  ;;  %9517 = vmatmul.bf16.gmra.mxu1 %v6836_v2  ;;  %9604 = vmatmul.bf16.gmra.mxu0 %v6839_v3  ;;  %v24095_v61 = vld [vmem:[%s34262_s1 + $0x150] sm:$0xff]  ;;  %v309_v2 = vld [vmem:[%s25576_s24 + $0x18] sm:$0xff] }
 0x35c   : > { %9625 = vmatpush.bf16.msra.mxu1 %v24095_v61  ;;  %v6745_v15 = vunpack.c.l.b16 %v309_v2  ;;  %9712 = vmatpush.bf16.msra.mxu0 %v24119_v17 }
 0x35d   : > { %v6585_v13 = vadd.f32 %v29180_v45, %v6556_v58  ;;  %9556 = vmatmul.bf16.gmra.mxu2 %v6933_v30  ;;  %9585 = vmatmul.bf16.gmra.mxu3 %v6934_v7  ;;  %v6887_v30 = vpack.c.b16 %v35043_v14, %v35042_v44  ;;  %v35045_v58 = vunpack.c.h.b16 %v25932_v19  ;;  %v35052_v44 = vld [vmem:[#allocation4_spill] sm:$0xff] }
 0x35f   : > { %v29307_v53 = vadd.f32 %v6613_v6, %v6585_v13  ;;  %v6746_v6 = vunpack.c.h.b16 %v309_v2  ;;  %v24117_v13 = vld [vmem:[%s34262_s1 + $0x200] sm:$0xff] }
 0x360   : > { %v6528_v28 = vpop.f32.mrf.mxu1  ;;  %v6615_v50 = vpop.f32.mrf.mxu0  ;;  %9626 = vmatpush.bf16.msra.mxu1 %v24094_v10  ;;  %9713 = vmatpush.bf16.msra.mxu0 %v24118_v32 }
 0x361   : > { %v6529_v45 = vadd.f32 %v6528_v28, %v29118_v46  ;;  %v6565_v55 = vpop.f32.mrf.mxu2  ;;  %v6594_v29 = vpop.f32.mrf.mxu3  ;;  %v24093_v46 = vld [vmem:[%s34262_s1 + $0x140] sm:$0xff]  ;;  %v6794_v47 = vpack.c.b16 %v35045_v58, %v6746_v6  ;;  %v24148_v58 = vld [vmem:[%s34262_s1 + $0x2f8] sm:$0xff] }
 0x362   : > { %9794 = vmatpush.bf16.msra.mxu3 %v24148_v58 }
 0x363   : > { %v6558_v34 = vadd.f32 %v29200_v42, %v6529_v45  ;;  %v35041_v42 = vunpack.c.h.b16 %v25624_v24  ;;  %v35044_v24 = vunpack.c.l.b16 %v25932_v19 }
 0x364   : > { %9627 = vmatpush.bf16.msra.mxu1 %v24093_v46  ;;  %9714 = vmatpush.bf16.msra.mxu0 %v24117_v13  ;;  %v25485_v13 = vld [vmem:[%s25576_s24 + $0x20] sm:$0xff] }
 0x365   : > { %v6587_v3 = vadd.f32 %v29202_v33, %v6558_v34  ;;  %v6884_v59 = vpack.c.b16 %v35041_v42, %v35040_v26  ;;  %v6793_v27 = vpack.c.b16 %v35044_v24, %v6745_v15  ;;  %v35046_v34 = vunpack.c.h.b16 %v25627_v25 }
 0x366   : > { %v35049_v15 = vunpack.c.l.b16 %v25967_v23  ;;  %v35053_v25 = vunpack.c.l.b16 %v35052_v44 }
 0x367   : > { %v29325_v4 = vadd.f32 %v6615_v50, %v6587_v3  ;;  %v35048_v3 = vunpack.c.l.b16 %v25919_v0 }
 0x368   : > { %v6531_v33 = vpop.f32.mrf.mxu1  ;;  %v6618_v37 = vpop.f32.mrf.mxu0 }
 0x369   : > { %v6532_v7 = vadd.f32 %v6531_v33, %v29141_v11  ;;  %v6567_v36 = vpop.f32.mrf.mxu2  ;;  %v6596_v60 = vpop.f32.mrf.mxu3  ;;  %v6935_v6 = vpack.c.b16 %v35049_v15, %v35048_v3 }
 0x36b   : > { %v6561_v48 = vadd.f32 %v29237_v39, %v6532_v7  ;;  %9522 = vmatmul.bf16.gmra.mxu1 %v6884_v59  ;;  %9609 = vmatmul.bf16.gmra.mxu0 %v6887_v30  ;;  %v35055_v30 = vunpack.c.h.b16 %v35052_v44 }
 0x36d   : > { %v6590_v61 = vadd.f32 %v29239_v16, %v6561_v48  ;;  %9657 = vmatmul.bf16.vlgmr.msrb.gmra.mxu2 %v6793_v27  ;;  %9686 = vmatmul.bf16.vlgmr.msrb.gmra.mxu3 %v6794_v47  ;;  %v35047_v16 = vunpack.c.h.b16 %v25705_v57  ;;  %v24139_v48 = vld [vmem:[%s34262_s1 + $0x2b0] sm:$0xff] }
 0x36f   : > { %v29348_v11 = vadd.f32 %v6618_v37, %v6590_v61  ;;  %v6932_v17 = vpack.c.b16 %v35047_v16, %v35046_v34  ;;  %v6747_v61 = vunpack.c.l.b16 %v25485_v13 }
 0x370   : > { %v6533_v28 = vpop.f32.mrf.mxu1  ;;  %v6620_v50 = vpop.f32.mrf.mxu0 }
 0x371   : > { %v6534_v19 = vadd.f32 %v6533_v28, %v29148_v12  ;;  %v6666_v43 = vpop.f32.mrf.mxu2  ;;  %v6695_v39 = vpop.f32.mrf.mxu3 }
 0x373   : > { %v6563_v45 = vadd.f32 %v29278_v38, %v6534_v19 }
 0x375   : > { %v6592_v10 = vadd.f32 %v29280_v22, %v6563_v45  ;;  %v35050_v22 = vld [vmem:[#allocation3_spill] sm:$0xff]  ;;  %v35056_v45 = vld [vmem:[#allocation6_spill] sm:$0xff] }
 0x376   : > { %v35051_v59 = vunpack.c.l.b16 %v35050_v22  ;;  %v35054_v57 = vunpack.c.h.b16 %v35050_v22 }
 0x377   : > { %v29353_v2 = vadd.f32 %v6620_v50, %v6592_v10  ;;  %v24147_v50 = vld [vmem:[%s34262_s1 + $0x2f0] sm:$0xff]  ;;  %v35057_v10 = vunpack.c.l.b16 %v35056_v45 }
 0x378   : > { %v6536_v46 = vpop.f32.mrf.mxu1  ;;  %v6623_v12 = vpop.f32.mrf.mxu0  ;;  %v6841_v14 = vpack.c.b16 %v35053_v25, %v35051_v59  ;;  %v6842_v33 = vpack.c.b16 %v35055_v30, %v35054_v57  ;;  %9795 = vmatpush.bf16.msra.mxu3 %v24147_v50  ;;  %v24132_v57 = vld [vmem:[%s34262_s1 + $0x278] sm:$0xff]  ;;  %v24135_v50 = vld [vmem:[%s34262_s1 + $0x290] sm:$0xff] }
 0x379   : > { %v6537_v26 = vadd.f32 %v6536_v46, %v29172_v9  ;;  %v29364_v42 = vpop.f32.mrf.mxu2  ;;  %v29366_v38 = vpop.f32.mrf.mxu3  ;;  %v24140_v9 = vld [vmem:[%s34262_s1 + $0x2b8] sm:$0xff]  ;;  %v6795_v34 = vpack.c.b16 %v35057_v10, %v6747_v61  ;;  %9736 = vmatpush.bf16.msrb.mxu1 %v24132_v57  ;;  %v24129_v10 = vld [vmem:[%s34262_s1 + $0x260] sm:$0xff] }
 0x37a   : > { %9765 = vmatpush.bf16.msra.mxu2 %v24140_v9  ;;  %v35058_v46 = vld [vmem:[#allocation5_spill] sm:$0xff]  ;;  %v24131_v9 = vld [vmem:[%s34262_s1 + $0x270] sm:$0xff] }
 0x37b   : > { %v6566_v37 = vadd.f32 %v6565_v55, %v6537_v26  ;;  %9527 = vmatmul.bf16.gmra.mxu1 %v6932_v17  ;;  %9614 = vmatmul.bf16.gmra.mxu0 %v6935_v6  ;;  %v35060_v26 = vld [vmem:[#allocation8_spill] sm:$0xff]  ;;  %v35062_v44 = vunpack.c.h.b16 %v35058_v46  ;;  %v35071_v57 = vld [vmem:[#allocation9_spill] sm:$0xff] }
 0x37c   : > { %v35061_v22 = vunpack.c.l.b16 %v35060_v26  ;;  %v35063_v25 = vunpack.c.h.b16 %v35060_v26 }
 0x37d   : > { %v6595_v32 = vadd.f32 %v6594_v29, %v6566_v37  ;;  %9662 = vmatmul.bf16.gmra.mxu2 %v6841_v14  ;;  %9691 = vmatmul.bf16.gmra.mxu3 %v6842_v33  ;;  %v35064_v33 = vld [vmem:[#allocation2_spill] sm:$0xff] }
 0x37e   : > { %9766 = vmatpush.bf16.msra.mxu2 %v24139_v48  ;;  %v6890_v14 = vpack.c.b16 %v35063_v25, %v35062_v44  ;;  %v24145_v37 = vld [vmem:[%s34262_s1 + $0x2e0] sm:$0xff]  ;;  %9737 = vmatpush.bf16.msrb.mxu1 %v24131_v9  ;;  %v24142_v44 = vld [vmem:[%s34262_s1 + $0x2c8] sm:$0xff] }
 0x37f   : > { %v29379_v7 = vadd.f32 %v6623_v12, %v6595_v32  ;;  %v35059_v12 = vunpack.c.l.b16 %v35058_v46 }
 0x380   : > { %v6538_v24 = vpop.f32.mrf.mxu1  ;;  %v6625_v27 = vpop.f32.mrf.mxu0 }
 0x381   : > { %v6539_v55 = vadd.f32 %v6538_v24, %v29194_v63  ;;  %v29385_v47 = vpop.f32.mrf.mxu2  ;;  %v29387_v29 = vpop.f32.mrf.mxu3  ;;  %v24138_v63 = vld [vmem:[%s34262_s1 + $0x2a8] sm:$0xff]  ;;  %v6889_v59 = vpack.c.b16 %v35061_v22, %v35059_v12  ;;  %v35069_v12 = vld [vmem:[#allocation10_spill] sm:$0xff] }
 0x382   : > { %9767 = vmatpush.bf16.msra.mxu2 %v24138_v63  ;;  %v24155_v63 = vld [vmem:[%s34262_s1 + $0x330] sm:$0xff] }
 0x383   : > { %v6568_v28 = vadd.f32 %v6567_v36, %v6539_v55  ;;  %v24146_v36 = vld [vmem:[%s34262_s1 + $0x2e8] sm:$0xff]  ;;  %v24156_v55 = vld [vmem:[%s34262_s1 + $0x338] sm:$0xff] }
 0x384   : > { %9796 = vmatpush.bf16.msra.mxu3 %v24146_v36  ;;  %9823 = vmatpush.bf16.msrb.mxu0 %v24156_v55  ;;  %v24153_v55 = vld [vmem:[%s34262_s1 + $0x320] sm:$0xff] }
 0x385   : > { %v6597_v19 = vadd.f32 %v6596_v60, %v6568_v28  ;;  %v24130_v28 = vld [vmem:[%s34262_s1 + $0x268] sm:$0xff] }
 0x386   : > { %9738 = vmatpush.bf16.msrb.mxu1 %v24130_v28 }
 0x387   : > { %v29401_v16 = vadd.f32 %v6625_v27, %v6597_v19 }
 0x388   : > { %v6637_v17 = vpop.f32.mrf.mxu1  ;;  %v9484_v3 = vpop.f32.mrf.mxu0  ;;  %9797 = vmatpush.bf16.msra.mxu3 %v24145_v37  ;;  %9824 = vmatpush.bf16.msrb.mxu0 %v24155_v63 }
 0x389   : > { %v6638_v15 = vadd.f32 %v6637_v17, %v29228_v40  ;;  %v29407_v60 = vpop.f32.mrf.mxu2  ;;  %v29409_v6 = vpop.f32.mrf.mxu3  ;;  %v24137_v40 = vld [vmem:[%s34262_s1 + $0x2a0] sm:$0xff]  ;;  %v35065_v17 = vunpack.c.h.b16 %v25781_v35  ;;  %v24154_v35 = vld [vmem:[%s34262_s1 + $0x328] sm:$0xff] }
 0x38a   : > { %9768 = vmatpush.bf16.msra.mxu2 %v24137_v40  ;;  %9739 = vmatpush.bf16.msrb.mxu1 %v24129_v10  ;;  %v35072_v40 = vunpack.c.l.b16 %v35071_v57  ;;  %v24126_v10 = vld [vmem:[%s34262_s1 + $0x248] sm:$0xff] }
 0x38b   : > { %v6667_v30 = vadd.f32 %v6666_v43, %v6638_v15  ;;  %9628 = vmatmul.bf16.vlgmr.msra.gmra.mxu1 %v35064_v33  ;;  %9715 = vmatmul.bf16.vlgmr.msra.gmra.mxu0 %v6795_v34  ;;  %v24136_v43 = vld [vmem:[%s34262_s1 + $0x298] sm:$0xff]  ;;  %v35067_v15 = vld [vmem:[#allocation7_spill] sm:$0xff] }
 0x38c   : > { %v35068_v46 = vunpack.c.l.b16 %v35067_v15  ;;  %9825 = vmatpush.bf16.msrb.mxu0 %v24154_v35 }
 0x38d   : > { %v6696_v32 = vadd.f32 %v6695_v39, %v6667_v30  ;;  %9667 = vmatmul.bf16.gmra.mxu2 %v6889_v59  ;;  %9696 = vmatmul.bf16.gmra.mxu3 %v6890_v14  ;;  %v24144_v39 = vld [vmem:[%s34262_s1 + $0x2d8] sm:$0xff]  ;;  %v35073_v30 = vld [vmem:[#allocation12_spill] sm:$0xff] }
 0x38e   : > { %9769 = vmatpush.bf16.msra.mxu2 %v24136_v43  ;;  %9798 = vmatpush.bf16.msra.mxu3 %v24144_v39  ;;  %v35074_v33 = vunpack.c.l.b16 %v35073_v30  ;;  %v35076_v9 = vunpack.c.h.b16 %v35073_v30  ;;  %v24141_v39 = vld [vmem:[%s34262_s1 + $0x2c0] sm:$0xff] }
 0x38f   : > { %v29435_v24 = vadd.f32 %v9484_v3, %v6696_v32  ;;  %v35066_v3 = vunpack.c.h.b16 %v25852_v20  ;;  %v35075_v32 = vunpack.c.h.b16 %v35071_v57 }
 0x390   : > { %v6639_v27 = vpop.f32.mrf.mxu1  ;;  %v9486_v58 = vpop.f32.mrf.mxu0  ;;  %v6937_v37 = vpack.c.b16 %v35074_v33, %v35072_v40  ;;  %9826 = vmatpush.bf16.msrb.mxu0 %v24153_v55  ;;  %v24150_v33 = vld [vmem:[%s34262_s1 + $0x308] sm:$0xff] }
 0x391   : > { %v6640_v48 = vadd.f32 %v6639_v27, %v29261_v51  ;;  %v29444_v13 = vpop.f32.mrf.mxu2  ;;  %v29446_v61 = vpop.f32.mrf.mxu3  ;;  %v24143_v51 = vld [vmem:[%s34262_s1 + $0x2d0] sm:$0xff]  ;;  %v6840_v36 = vpack.c.b16 %v35066_v3, %v35065_v17  ;;  %v6938_v43 = vpack.c.b16 %v35076_v9, %v35075_v32  ;;  %v24128_v27 = vld [vmem:[%s34262_s1 + $0x258] sm:$0xff]  ;;  %v35083_v9 = vld [vmem:[#allocation15_spill] sm:$0xff] }
 0x392   : > { %9770 = vmatpush.bf16.msra.mxu2 %v24135_v50  ;;  %9799 = vmatpush.bf16.msra.mxu3 %v24143_v51  ;;  %v24152_v51 = vld [vmem:[%s34262_s1 + $0x318] sm:$0xff]  ;;  %v24151_v3 = vld [vmem:[%s34262_s1 + $0x310] sm:$0xff] }
 0x393   : > { %v6669_v19 = vadd.f32 %v29364_v42, %v6640_v48  ;;  %v24134_v42 = vld [vmem:[%s34262_s1 + $0x288] sm:$0xff]  ;;  %9740 = vmatpush.bf16.msrb.mxu1 %v24128_v27  ;;  %v35085_v27 = vunpack.c.h.b16 %v35083_v9 }
 0x394   : > { %9827 = vmatpush.bf16.msrb.mxu0 %v24152_v51 }
 0x395   : > { %v6698_v45 = vadd.f32 %v29366_v38, %v6669_v19  ;;  %v35070_v38 = vunpack.c.l.b16 %v35069_v12 }
 0x396   : > { %9771 = vmatpush.bf16.msra.mxu2 %v24134_v42  ;;  %9800 = vmatpush.bf16.msra.mxu3 %v24142_v44  ;;  %v311_v42 = vld [vmem:[%s25576_s24 + $0x28] sm:$0xff] }
 0x397   : > { %v29468_v34 = vadd.f32 %v9486_v58, %v6698_v45  ;;  %v6843_v26 = vpack.c.b16 %v35070_v38, %v35068_v46  ;;  %v6749_v46 = vunpack.c.l.b16 %v311_v42  ;;  %v6750_v38 = vunpack.c.h.b16 %v311_v42  ;;  %v35079_v44 = vld [vmem:[#allocation11_spill] sm:$0xff] }
 0x398   : > { %v6642_v22 = vpop.f32.mrf.mxu1  ;;  %v9489_v59 = vpop.f32.mrf.mxu0  ;;  %v35080_v35 = vunpack.c.l.b16 %v35079_v44  ;;  %9828 = vmatpush.bf16.msrb.mxu0 %v24151_v3  ;;  %v35086_v42 = vunpack.c.h.b16 %v25919_v0  ;;  %v35088_v3 = vld [vmem:[#allocation14_spill] sm:$0xff]  ;;  %v35094_v0 = vld [vmem:[#allocation19_spill] sm:$0xff] }
 0x399   : > { %v6643_v20 = vadd.f32 %v6642_v22, %v29307_v53  ;;  %v29485_v25 = vpop.f32.mrf.mxu2  ;;  %v29487_v14 = vpop.f32.mrf.mxu3  ;;  %v24133_v53 = vld [vmem:[%s34262_s1 + $0x280] sm:$0xff]  ;;  %v35077_v22 = vunpack.c.h.b16 %v25855_v21 }
 0x39a   : > { %9772 = vmatpush.bf16.msra.mxu2 %v24133_v53  ;;  %9801 = vmatpush.bf16.msra.mxu3 %v24141_v39  ;;  %v6798_v53 = vpack.c.b16 %v35085_v27, %v6750_v38  ;;  %v24149_v39 = vld [vmem:[%s34262_s1 + $0x300] sm:$0xff] }
 0x39b   : > { %v6672_v58 = vadd.f32 %v29385_v47, %v6643_v20  ;;  %9633 = vmatmul.bf16.gmra.mxu1 %v6840_v36  ;;  %9720 = vmatmul.bf16.gmra.mxu0 %v6843_v26  ;;  %v24127_v47 = vld [vmem:[%s34262_s1 + $0x250] sm:$0xff]  ;;  %v35081_v20 = vld [vmem:[#allocation13_spill] sm:$0xff] }
 0x39c   : > { %9741 = vmatpush.bf16.msrb.mxu1 %v24127_v47  ;;  %v35082_v57 = vunpack.c.l.b16 %v35081_v20  ;;  %9829 = vmatpush.bf16.msrb.mxu0 %v24150_v33 }
 0x39d   : > { %v6701_v48 = vadd.f32 %v29387_v29, %v6672_v58  ;;  %9672 = vmatmul.bf16.gmra.mxu2 %v6937_v37  ;;  %9701 = vmatmul.bf16.gmra.mxu3 %v6938_v43 }
 0x39e   : > { %v6891_v40 = vpack.c.b16 %v35082_v57, %v35080_v35  ;;  %v35095_v57 = vunpack.c.l.b16 %v35094_v0 }
 0x39f   : > { %v29514_v28 = vadd.f32 %v9489_v59, %v6701_v48 }
 0x3a0   : > { %v6644_v50 = vpop.f32.mrf.mxu1  ;;  %v9491_v19 = vpop.f32.mrf.mxu0  ;;  %9742 = vmatpush.bf16.msrb.mxu1 %v24126_v10  ;;  %9830 = vmatpush.bf16.msrb.mxu0 %v24149_v39  ;;  %v24171_v39 = vld [vmem:[%s34262_s1 + $0x3b0] sm:$0xff] }
 0x3a1   : > { %v6645_v29 = vadd.f32 %v6644_v50, %v29325_v4  ;;  %v6681_v63 = vpop.f32.mrf.mxu2  ;;  %v6710_v45 = vpop.f32.mrf.mxu3  ;;  %v24125_v4 = vld [vmem:[%s34262_s1 + $0x240] sm:$0xff] }
 0x3a3   : > { %v6674_v17 = vadd.f32 %v29407_v60, %v6645_v29  ;;  %v35078_v60 = vunpack.c.h.b16 %v25916_v62  ;;  %v35084_v62 = vunpack.c.l.b16 %v35083_v9 }
 0x3a4   : > { %9743 = vmatpush.bf16.msrb.mxu1 %v24125_v4 }
 0x3a5   : > { %v6703_v36 = vadd.f32 %v29409_v6, %v6674_v17  ;;  %v6888_v59 = vpack.c.b16 %v35078_v60, %v35077_v22  ;;  %v6797_v43 = vpack.c.b16 %v35084_v62, %v6749_v46  ;;  %v35090_v46 = vld [vmem:[#allocation18_spill] sm:$0xff]  ;;  %v29589_v62 = vld [vmem:[%s25576_s24 + $0x30] sm:$0xff] }
 0x3a6   : > { %v35091_v38 = vunpack.c.l.b16 %v35090_v46 }
 0x3a7   : > { %v29532_v26 = vadd.f32 %v9491_v19, %v6703_v36  ;;  %v35089_v36 = vunpack.c.l.b16 %v35088_v3 }
 0x3a8   : > { %v6647_v6 = vpop.f32.mrf.mxu1  ;;  %v9494_v30 = vpop.f32.mrf.mxu0 }
 0x3a9   : > { %v6648_v37 = vadd.f32 %v6647_v6, %v29348_v11  ;;  %v6683_v32 = vpop.f32.mrf.mxu2  ;;  %v6712_v21 = vpop.f32.mrf.mxu3  ;;  %v6939_v4 = vpack.c.b16 %v35091_v38, %v35089_v36  ;;  %v35097_v6 = vunpack.c.h.b16 %v35094_v0 }
 0x3ab   : > { %v6677_v58 = vadd.f32 %v29444_v13, %v6648_v37  ;;  %9638 = vmatmul.bf16.gmra.mxu1 %v6888_v59  ;;  %9725 = vmatmul.bf16.gmra.mxu0 %v6891_v40  ;;  %v35092_v59 = vld [vmem:[#allocation16_spill] sm:$0xff] }
 0x3ac   : > { %v35093_v35 = vunpack.c.l.b16 %v35092_v59  ;;  %v35096_v40 = vunpack.c.h.b16 %v35092_v59 }
 0x3ad   : > { %v6706_v55 = vadd.f32 %v29446_v61, %v6677_v58  ;;  %9773 = vmatmul.bf16.vlgmr.msra.gmra.mxu2 %v6797_v43  ;;  %9802 = vmatmul.bf16.vlgmr.msra.gmra.mxu3 %v6798_v53  ;;  %v35087_v61 = vunpack.c.h.b16 %v25967_v23 }
 0x3ae   : > { %v6845_v23 = vpack.c.b16 %v35095_v57, %v35093_v35 }
 0x3af   : > { %v29555_v11 = vadd.f32 %v9494_v30, %v6706_v55  ;;  %v6936_v17 = vpack.c.b16 %v35087_v61, %v35086_v42  ;;  %v6846_v30 = vpack.c.b16 %v35097_v6, %v35096_v40  ;;  %v6751_v55 = vunpack.c.l.b16 %v29589_v62  ;;  %v24164_v40 = vld [vmem:[%s34262_s1 + $0x378] sm:$0xff] }
 0x3b0   : > { %v6649_v48 = vpop.f32.mrf.mxu1  ;;  %v9496_v47 = vpop.f32.mrf.mxu0  ;;  %9852 = vmatpush.bf16.msra.mxu1 %v24164_v40 }
 0x3b1   : > { %v6650_v50 = vadd.f32 %v6649_v48, %v29353_v2  ;;  %v9542_v19 = vpop.f32.mrf.mxu2  ;;  %v9571_v13 = vpop.f32.mrf.mxu3 }
 0x3b3   : > { %v6679_v51 = vadd.f32 %v29485_v25, %v6650_v50 }
 0x3b5   : > { %v6708_v29 = vadd.f32 %v29487_v14, %v6679_v51  ;;  %v35098_v51 = vld [vmem:[#allocation21_spill] sm:$0xff] }
 0x3b7   : > { %v29560_v10 = vadd.f32 %v9496_v47, %v6708_v29  ;;  %v24179_v47 = vld [vmem:[%s34262_s1 + $0x3f0] sm:$0xff]  ;;  %v35099_v29 = vunpack.c.l.b16 %v35098_v51 }
 0x3b8   : > { %v6652_v2 = vpop.f32.mrf.mxu1  ;;  %v9499_v22 = vpop.f32.mrf.mxu0 }
 0x3b9   : > { %v6653_v60 = vadd.f32 %v6652_v2, %v29379_v7  ;;  %v29571_v25 = vpop.f32.mrf.mxu2  ;;  %v29573_v14 = vpop.f32.mrf.mxu3  ;;  %v24172_v7 = vld [vmem:[%s34262_s1 + $0x3b8] sm:$0xff]  ;;  %v6799_v42 = vpack.c.b16 %v35099_v29, %v6751_v55  ;;  %v35100_v2 = vld [vmem:[#allocation20_spill] sm:$0xff] }
 0x3ba   : > { %9881 = vmatpush.bf16.msrb.mxu2 %v24172_v7  ;;  %v35104_v0 = vunpack.c.h.b16 %v35100_v2  ;;  %v24163_v7 = vld [vmem:[%s34262_s1 + $0x370] sm:$0xff] }
 0x3bb   : > { %v6682_v33 = vadd.f32 %v6681_v63, %v6653_v60  ;;  %9643 = vmatmul.bf16.gmra.mxu1 %v6936_v17  ;;  %9730 = vmatmul.bf16.gmra.mxu0 %v6939_v4  ;;  %v24180_v63 = vld [vmem:[%s34262_s1 + $0x3f8] sm:$0xff]  ;;  %v35102_v60 = vld [vmem:[#allocation23_spill] sm:$0xff]  ;;  %v24187_v29 = vld [vmem:[%s34262_s1 + $0x430] sm:$0xff] }
 0x3bc   : > { %9910 = vmatpush.bf16.msrb.mxu3 %v24180_v63  ;;  %v35103_v59 = vunpack.c.l.b16 %v35102_v60  ;;  %v35105_v57 = vunpack.c.h.b16 %v35102_v60  ;;  %9853 = vmatpush.bf16.msra.mxu1 %v24163_v7 }
 0x3bd   : > { %v6711_v37 = vadd.f32 %v6710_v45, %v6682_v33  ;;  %9778 = vmatmul.bf16.gmra.mxu2 %v6845_v23  ;;  %9807 = vmatmul.bf16.gmra.mxu3 %v6846_v30  ;;  %v35106_v30 = vld [vmem:[#allocation17_spill] sm:$0xff]  ;;  %v24177_v33 = vld [vmem:[%s34262_s1 + $0x3e0] sm:$0xff] }
 0x3be   : > { %9882 = vmatpush.bf16.msrb.mxu2 %v24171_v39  ;;  %v6894_v23 = vpack.c.b16 %v35105_v57, %v35104_v0 }
 0x3bf   : > { %v29586_v9 = vadd.f32 %v9499_v22, %v6711_v37  ;;  %v35101_v22 = vunpack.c.l.b16 %v35100_v2 }
 0x3c0   : > { %v6654_v43 = vpop.f32.mrf.mxu1  ;;  %v9501_v27 = vpop.f32.mrf.mxu0  ;;  %9911 = vmatpush.bf16.msrb.mxu3 %v24179_v47  ;;  %v24162_v47 = vld [vmem:[%s34262_s1 + $0x368] sm:$0xff] }
 0x3c1   : > { %v6655_v53 = vadd.f32 %v6654_v43, %v29401_v16  ;;  %v29595_v45 = vpop.f32.mrf.mxu2  ;;  %v29597_v58 = vpop.f32.mrf.mxu3  ;;  %v24170_v16 = vld [vmem:[%s34262_s1 + $0x3a8] sm:$0xff]  ;;  %v6893_v35 = vpack.c.b16 %v35103_v59, %v35101_v22  ;;  %9854 = vmatpush.bf16.msra.mxu1 %v24162_v47  ;;  %v35109_v22 = vld [vmem:[#allocation22_spill] sm:$0xff]  ;;  %v35111_v59 = vld [vmem:[#allocation25_spill] sm:$0xff] }
 0x3c2   : > { %9883 = vmatpush.bf16.msrb.mxu2 %v24170_v16  ;;  %v35110_v60 = vunpack.c.l.b16 %v35109_v22  ;;  %v24185_v47 = vld [vmem:[%s34262_s1 + $0x420] sm:$0xff] }
 0x3c3   : > { %v6684_v48 = vadd.f32 %v6683_v32, %v6655_v53  ;;  %v24178_v32 = vld [vmem:[%s34262_s1 + $0x3e8] sm:$0xff]  ;;  %v24188_v53 = vld [vmem:[%s34262_s1 + $0x438] sm:$0xff] }
 0x3c4   : > { %9912 = vmatpush.bf16.msrb.mxu3 %v24178_v32  ;;  %9939 = vmatpush.bf16.msra.mxu0 %v24188_v53  ;;  %v35107_v32 = vunpack.c.h.b16 %v35067_v15  ;;  %v24186_v15 = vld [vmem:[%s34262_s1 + $0x428] sm:$0xff] }
 0x3c5   : > { %v6713_v50 = vadd.f32 %v6712_v21, %v6684_v48 }
 0x3c7   : > { %v29611_v61 = vadd.f32 %v9501_v27, %v6713_v50  ;;  %v24167_v50 = vld [vmem:[%s34262_s1 + $0x390] sm:$0xff] }
 0x3c8   : > { %v9513_v17 = vpop.f32.mrf.mxu1  ;;  %v9600_v36 = vpop.f32.mrf.mxu0  ;;  %9913 = vmatpush.bf16.msrb.mxu3 %v24177_v33  ;;  %9940 = vmatpush.bf16.msra.mxu0 %v24187_v29  ;;  %v35115_v33 = vld [vmem:[#allocation27_spill] sm:$0xff] }
 0x3c9   : > { %v9514_v38 = vadd.f32 %v9513_v17, %v29435_v24  ;;  %v29617_v21 = vpop.f32.mrf.mxu2  ;;  %v29619_v4 = vpop.f32.mrf.mxu3  ;;  %v24169_v24 = vld [vmem:[%s34262_s1 + $0x3a0] sm:$0xff] }
 0x3ca   : > { %9884 = vmatpush.bf16.msrb.mxu2 %v24169_v24  ;;  %v24161_v17 = vld [vmem:[%s34262_s1 + $0x360] sm:$0xff] }
 0x3cb   : > { %v9543_v6 = vadd.f32 %v9542_v19, %v9514_v38  ;;  %9744 = vmatmul.bf16.vlgmr.msrb.gmra.mxu1 %v35106_v30  ;;  %9831 = vmatmul.bf16.vlgmr.msrb.gmra.mxu0 %v6799_v42  ;;  %v24168_v19 = vld [vmem:[%s34262_s1 + $0x398] sm:$0xff]  ;;  %v35108_v38 = vunpack.c.h.b16 %v35069_v12 }
 0x3cc   : > { %9855 = vmatpush.bf16.msra.mxu1 %v24161_v17  ;;  %9941 = vmatpush.bf16.msra.mxu0 %v24186_v15 }
 0x3cd   : > { %v9572_v37 = vadd.f32 %v9571_v13, %v9543_v6  ;;  %9783 = vmatmul.bf16.gmra.mxu2 %v6893_v35  ;;  %9812 = vmatmul.bf16.gmra.mxu3 %v6894_v23  ;;  %v24176_v13 = vld [vmem:[%s34262_s1 + $0x3d8] sm:$0xff]  ;;  %v6844_v2 = vpack.c.b16 %v35108_v38, %v35107_v32  ;;  %v24174_v23 = vld [vmem:[%s34262_s1 + $0x3c8] sm:$0xff]  ;;  %v35113_v6 = vld [vmem:[#allocation24_spill] sm:$0xff] }
 0x3ce   : > { %9885 = vmatpush.bf16.msrb.mxu2 %v24168_v19  ;;  %9914 = vmatpush.bf16.msrb.mxu3 %v24176_v13  ;;  %v35114_v30 = vunpack.c.l.b16 %v35113_v6  ;;  %v35117_v19 = vunpack.c.h.b16 %v35113_v6  ;;  %v24160_v13 = vld [vmem:[%s34262_s1 + $0x358] sm:$0xff]  ;;  %v24158_v32 = vld [vmem:[%s34262_s1 + $0x348] sm:$0xff] }
 0x3cf   : > { %v29645_v43 = vadd.f32 %v9600_v36, %v9572_v37  ;;  %v35116_v37 = vunpack.c.l.b16 %v35115_v33 }
 0x3d0   : > { %v9515_v27 = vpop.f32.mrf.mxu1  ;;  %v9602_v63 = vpop.f32.mrf.mxu0  ;;  %9856 = vmatpush.bf16.msra.mxu1 %v24160_v13  ;;  %9942 = vmatpush.bf16.msra.mxu0 %v24185_v47  ;;  %v35125_v13 = vld [vmem:[#allocation30_spill] sm:$0xff] }
 0x3d1   : > { %v9516_v39 = vadd.f32 %v9515_v27, %v29468_v34  ;;  %v29654_v55 = vpop.f32.mrf.mxu2  ;;  %v29656_v48 = vpop.f32.mrf.mxu3  ;;  %v24175_v34 = vld [vmem:[%s34262_s1 + $0x3d0] sm:$0xff]  ;;  %v6941_v7 = vpack.c.b16 %v35116_v37, %v35114_v30  ;;  %v35118_v27 = vunpack.c.h.b16 %v35115_v33 }
 0x3d2   : > { %9886 = vmatpush.bf16.msrb.mxu2 %v24167_v50  ;;  %9915 = vmatpush.bf16.msrb.mxu3 %v24175_v34  ;;  %v35123_v30 = vld [vmem:[#allocation28_spill] sm:$0xff] }
 0x3d3   : > { %v9545_v16 = vadd.f32 %v29571_v25, %v9516_v39  ;;  %v24166_v25 = vld [vmem:[%s34262_s1 + $0x388] sm:$0xff]  ;;  %v24173_v39 = vld [vmem:[%s34262_s1 + $0x3c0] sm:$0xff]  ;;  %v35124_v33 = vunpack.c.l.b16 %v35123_v30 }
 0x3d5   : > { %v9574_v42 = vadd.f32 %v29573_v14, %v9545_v16  ;;  %v35112_v14 = vunpack.c.l.b16 %v35111_v59 }
 0x3d6   : > { %9887 = vmatpush.bf16.msrb.mxu2 %v24166_v25  ;;  %9916 = vmatpush.bf16.msrb.mxu3 %v24174_v23  ;;  %v35119_v23 = vunpack.c.h.b16 %v35079_v44 }
 0x3d7   : > { %v29678_v36 = vadd.f32 %v9602_v63, %v9574_v42  ;;  %v6847_v35 = vpack.c.b16 %v35112_v14, %v35110_v60  ;;  %v6942_v63 = vpack.c.b16 %v35118_v27, %v35117_v19  ;;  %v24184_v42 = vld [vmem:[%s34262_s1 + $0x418] sm:$0xff]  ;;  %v24183_v60 = vld [vmem:[%s34262_s1 + $0x410] sm:$0xff]  ;;  %v24182_v19 = vld [vmem:[%s34262_s1 + $0x408] sm:$0xff] }
 0x3d8   : > { %v9518_v0 = vpop.f32.mrf.mxu1  ;;  %v9605_v57 = vpop.f32.mrf.mxu0  ;;  %9943 = vmatpush.bf16.msra.mxu0 %v24184_v42 }
 0x3d9   : > { %v9519_v12 = vadd.f32 %v9518_v0, %v29514_v28  ;;  %v29695_v40 = vpop.f32.mrf.mxu2  ;;  %v29697_v24 = vpop.f32.mrf.mxu3  ;;  %v24165_v28 = vld [vmem:[%s34262_s1 + $0x380] sm:$0xff] }
 0x3da   : > { %9888 = vmatpush.bf16.msrb.mxu2 %v24165_v28  ;;  %9917 = vmatpush.bf16.msrb.mxu3 %v24173_v39 }
 0x3db   : > { %v9548_v53 = vadd.f32 %v29595_v45, %v9519_v12  ;;  %9749 = vmatmul.bf16.gmra.mxu1 %v6844_v2  ;;  %9836 = vmatmul.bf16.gmra.mxu0 %v6847_v35  ;;  %v24159_v45 = vld [vmem:[%s34262_s1 + $0x350] sm:$0xff]  ;;  %v313_v2 = vld [vmem:[%s25576_s24 + $0x38] sm:$0xff]  ;;  %v35121_v12 = vld [vmem:[#allocation26_spill] sm:$0xff] }
 0x3dc   : > { %9857 = vmatpush.bf16.msra.mxu1 %v24159_v45  ;;  %v6753_v35 = vunpack.c.l.b16 %v313_v2  ;;  %v6754_v0 = vunpack.c.h.b16 %v313_v2  ;;  %v35122_v6 = vunpack.c.l.b16 %v35121_v12  ;;  %9944 = vmatpush.bf16.msra.mxu0 %v24183_v60  ;;  %v35128_v60 = vunpack.c.h.b16 %v35088_v3  ;;  %v35136_v3 = vld [vmem:[#allocation33_spill] sm:$0xff] }
 0x3dd   : > { %v9577_v50 = vadd.f32 %v29597_v58, %v9548_v53  ;;  %9788 = vmatmul.bf16.gmra.mxu2 %v6941_v7  ;;  %9817 = vmatmul.bf16.gmra.mxu3 %v6942_v63  ;;  %v35127_v53 = vunpack.c.h.b16 %v35125_v13 }
 0x3de   : > { %v6895_v37 = vpack.c.b16 %v35124_v33, %v35122_v6  ;;  %v35134_v33 = vld [vmem:[#allocation31_spill] sm:$0xff] }
 0x3df   : > { %v29724_v16 = vadd.f32 %v9605_v57, %v9577_v50  ;;  %v6802_v39 = vpack.c.b16 %v35127_v53, %v6754_v0  ;;  %v24181_v50 = vld [vmem:[%s34262_s1 + $0x400] sm:$0xff] }
 0x3e0   : > { %v9520_v34 = vpop.f32.mrf.mxu1  ;;  %v9607_v29 = vpop.f32.mrf.mxu0  ;;  %9858 = vmatpush.bf16.msra.mxu1 %v24158_v32  ;;  %9945 = vmatpush.bf16.msra.mxu0 %v24182_v19  ;;  %v35139_v19 = vunpack.c.h.b16 %v35136_v3 }
 0x3e1   : > { %v9521_v58 = vadd.f32 %v9520_v34, %v29532_v26  ;;  %v9557_v17 = vpop.f32.mrf.mxu2  ;;  %v9586_v25 = vpop.f32.mrf.mxu3  ;;  %v24157_v26 = vld [vmem:[%s34262_s1 + $0x340] sm:$0xff] }
 0x3e3   : > { %v9550_v38 = vadd.f32 %v29617_v21, %v9521_v58  ;;  %v35120_v21 = vunpack.c.h.b16 %v35081_v20  ;;  %v35126_v20 = vunpack.c.l.b16 %v35125_v13 }
 0x3e4   : > { %9859 = vmatpush.bf16.msra.mxu1 %v24157_v26  ;;  %9946 = vmatpush.bf16.msra.mxu0 %v24181_v50  ;;  %v35132_v26 = vld [vmem:[#allocation32_spill] sm:$0xff] }
 0x3e5   : > { %v9579_v14 = vadd.f32 %v29619_v4, %v9550_v38  ;;  %v6892_v15 = vpack.c.b16 %v35120_v21, %v35119_v23  ;;  %v6801_v28 = vpack.c.b16 %v35126_v20, %v6753_v35  ;;  %v35130_v35 = vld [vmem:[#allocation29_spill] sm:$0xff]  ;;  %v35133_v23 = vunpack.c.l.b16 %v35132_v26 }
 0x3e6   : > { %v35131_v0 = vunpack.c.l.b16 %v35130_v35 }
 0x3e7   : > { %v29742_v57 = vadd.f32 %v9607_v29, %v9579_v14 }
 0x3e8   : > { %v9523_v4 = vpop.f32.mrf.mxu1  ;;  %v9610_v7 = vpop.f32.mrf.mxu0  ;;  %v6943_v21 = vpack.c.b16 %v35133_v23, %v35131_v0  ;;  %v35141_v0 = vld [vmem:[#allocation35_spill] sm:$0xff] }
 0x3e9   : > { %v9524_v27 = vadd.f32 %v9523_v4, %v29555_v11  ;;  %v9559_v63 = vpop.f32.mrf.mxu2  ;;  %v9588_v44 = vpop.f32.mrf.mxu3  ;;  %v35137_v4 = vunpack.c.l.b16 %v35136_v3 }
 0x3eb   : > { %v9553_v47 = vadd.f32 %v29654_v55, %v9524_v27  ;;  %9754 = vmatmul.bf16.gmra.mxu1 %v6892_v15  ;;  %9841 = vmatmul.bf16.gmra.mxu0 %v6895_v37  ;;  %v35135_v37 = vunpack.c.l.b16 %v35134_v33 }
 0x3ed   : > { %v9582_v45 = vadd.f32 %v29656_v48, %v9553_v47  ;;  %9889 = vmatmul.bf16.vlgmr.msrb.gmra.mxu2 %v6801_v28  ;;  %9918 = vmatmul.bf16.vlgmr.msrb.gmra.mxu3 %v6802_v39  ;;  %v35129_v48 = vunpack.c.h.b16 %v35090_v46  ;;  %v6849_v46 = vpack.c.b16 %v35137_v4, %v35135_v37  ;;  %v29799_v47 = vld [vmem:[%s25576_s24 + $0x40] sm:$0xff] }
 0x3ee   : > { %v35143_v37 = vld [vmem:[#allocation34_spill] sm:$0xff] }
 0x3ef   : > { %v29765_v11 = vadd.f32 %v9610_v7, %v9582_v45  ;;  %v6940_v14 = vpack.c.b16 %v35129_v48, %v35128_v60  ;;  %v35138_v7 = vunpack.c.h.b16 %v35134_v33  ;;  %v24202_v60 = vld [vmem:[%s34262_s1 + $0x4a8] sm:$0xff]  ;;  %v35144_v3 = vunpack.c.l.b16 %v35143_v37 }
 0x3f0   : > { %v9525_v34 = vpop.f32.mrf.mxu1  ;;  %v9612_v29 = vpop.f32.mrf.mxu0 }
 0x3f1   : > { %v9526_v42 = vadd.f32 %v9525_v34, %v29560_v10  ;;  %v9658_v58 = vpop.f32.mrf.mxu2  ;;  %v9687_v55 = vpop.f32.mrf.mxu3  ;;  %v6850_v27 = vpack.c.b16 %v35139_v19, %v35138_v7  ;;  %v24203_v34 = vld [vmem:[%s34262_s1 + $0x4b0] sm:$0xff]  ;;  %v35147_v7 = vunpack.c.h.b16 %v35143_v37 }
 0x3f2   : > { %v35151_v37 = vld [vmem:[#allocation36_spill] sm:$0xff] }
 0x3f3   : > { %v9555_v32 = vadd.f32 %v29695_v40, %v9526_v42  ;;  %v6752_v42 = vunpack.c.h.b16 %v29589_v62  ;;  %v35142_v62 = vunpack.c.l.b16 %v35141_v0 }
 0x3f5   : > { %v9584_v38 = vadd.f32 %v29697_v24, %v9555_v32  ;;  %v6755_v32 = vunpack.c.l.b16 %v29799_v47 }
 0x3f7   : > { %v29770_v2 = vadd.f32 %v9612_v29, %v9584_v38  ;;  %v24211_v38 = vld [vmem:[%s34262_s1 + $0x4f0] sm:$0xff]  ;;  %v6803_v23 = vpack.c.b16 %v35142_v62, %v6755_v32 }
 0x3f8   : > { %v9528_v15 = vpop.f32.mrf.mxu1  ;;  %v9615_v10 = vpop.f32.mrf.mxu0 }
 0x3f9   : > { %v9529_v6 = vadd.f32 %v9528_v15, %v29586_v9  ;;  %v29781_v40 = vpop.f32.mrf.mxu2  ;;  %v29783_v24 = vpop.f32.mrf.mxu3  ;;  %v24204_v9 = vld [vmem:[%s34262_s1 + $0x4b8] sm:$0xff] }
 0x3fa   : > { %9997 = vmatpush.bf16.msra.mxu2 %v24204_v9  ;;  %v24209_v9 = vld [vmem:[%s34262_s1 + $0x4e0] sm:$0xff] }
 0x3fb   : > { %v9558_v13 = vadd.f32 %v9557_v17, %v9529_v6  ;;  %9759 = vmatmul.bf16.gmra.mxu1 %v6940_v14  ;;  %9846 = vmatmul.bf16.gmra.mxu0 %v6943_v21  ;;  %v24212_v17 = vld [vmem:[%s34262_s1 + $0x4f8] sm:$0xff]  ;;  %v35140_v14 = vunpack.c.h.b16 %v35098_v51 }
 0x3fc   : > { %10026 = vmatpush.bf16.msra.mxu3 %v24212_v17  ;;  %v35145_v51 = vld [vmem:[#allocation37_spill] sm:$0xff] }
 0x3fd   : > { %v9587_v20 = vadd.f32 %v9586_v25, %v9558_v13  ;;  %9894 = vmatmul.bf16.gmra.mxu2 %v6849_v46  ;;  %9923 = vmatmul.bf16.gmra.mxu3 %v6850_v27  ;;  %v35146_v4 = vunpack.c.l.b16 %v35145_v51  ;;  %v35148_v19 = vunpack.c.h.b16 %v35145_v51  ;;  %v24196_v13 = vld [vmem:[%s34262_s1 + $0x478] sm:$0xff]  ;;  %v35153_v51 = vld [vmem:[#allocation39_spill] sm:$0xff] }
 0x3fe   : > { %9998 = vmatpush.bf16.msra.mxu2 %v24203_v34  ;;  %9968 = vmatpush.bf16.msrb.mxu1 %v24196_v13  ;;  %v24200_v17 = vld [vmem:[%s34262_s1 + $0x498] sm:$0xff] }
 0x3ff   : > { %v29796_v28 = vadd.f32 %v9615_v10, %v9587_v20  ;;  %v6897_v46 = vpack.c.b16 %v35146_v4, %v35144_v3  ;;  %v6898_v27 = vpack.c.b16 %v35148_v19, %v35147_v7  ;;  %v35152_v3 = vunpack.c.l.b16 %v35151_v37  ;;  %v24206_v19 = vld [vmem:[%s34262_s1 + $0x4c8] sm:$0xff] }
 0x400   : > { %v9530_v53 = vpop.f32.mrf.mxu1  ;;  %v9617_v39 = vpop.f32.mrf.mxu0  ;;  %10027 = vmatpush.bf16.msra.mxu3 %v24211_v38 }
 0x401   : > { %v9531_v50 = vadd.f32 %v9530_v53, %v29611_v61  ;;  %v29805_v25 = vpop.f32.mrf.mxu2  ;;  %v29807_v45 = vpop.f32.mrf.mxu3 }
 0x402   : > { %9999 = vmatpush.bf16.msra.mxu2 %v24202_v60  ;;  %v24199_v60 = vld [vmem:[%s34262_s1 + $0x490] sm:$0xff] }
 0x403   : > { %v9560_v29 = vadd.f32 %v9559_v63, %v9531_v50  ;;  %v6800_v63 = vpack.c.b16 %v35140_v14, %v6752_v42 }
 0x405   : > { %v9589_v61 = vadd.f32 %v9588_v44, %v9560_v29  ;;  %v24210_v44 = vld [vmem:[%s34262_s1 + $0x4e8] sm:$0xff]  ;;  %v24220_v29 = vld [vmem:[%s34262_s1 + $0x538] sm:$0xff] }
 0x406   : > { %10028 = vmatpush.bf16.msra.mxu3 %v24210_v44  ;;  %10055 = vmatpush.bf16.msrb.mxu0 %v24220_v29  ;;  %v35150_v44 = vunpack.c.h.b16 %v35111_v59 }
 0x407   : > { %v29820_v48 = vadd.f32 %v9617_v39, %v9589_v61  ;;  %v24195_v39 = vld [vmem:[%s34262_s1 + $0x470] sm:$0xff]  ;;  %v24194_v61 = vld [vmem:[%s34262_s1 + $0x468] sm:$0xff] }
 0x408   : > { %v9629_v21 = vpop.f32.mrf.mxu1  ;;  %v9716_v15 = vpop.f32.mrf.mxu0  ;;  %9969 = vmatpush.bf16.msrb.mxu1 %v24195_v39 }
 0x409   : > { %v9630_v10 = vadd.f32 %v9629_v21, %v29645_v43  ;;  %v29830_v6 = vpop.f32.mrf.mxu2  ;;  %v29832_v33 = vpop.f32.mrf.mxu3  ;;  %v24201_v43 = vld [vmem:[%s34262_s1 + $0x4a0] sm:$0xff] }
 0x40a   : > { %10000 = vmatpush.bf16.msra.mxu2 %v24201_v43  ;;  %10029 = vmatpush.bf16.msra.mxu3 %v24209_v9  ;;  %v35155_v43 = vld [vmem:[#allocation38_spill] sm:$0xff]  ;;  %v35157_v9 = vld [vmem:[#allocation41_spill] sm:$0xff] }
 0x40b   : > { %v9659_v20 = vadd.f32 %v9658_v58, %v9630_v10  ;;  %9860 = vmatmul.bf16.vlgmr.msra.gmra.mxu1 %v6800_v63  ;;  %9947 = vmatmul.bf16.vlgmr.msra.gmra.mxu0 %v6803_v23  ;;  %v24219_v63 = vld [vmem:[%s34262_s1 + $0x530] sm:$0xff]  ;;  %v24193_v23 = vld [vmem:[%s34262_s1 + $0x460] sm:$0xff] }
 0x40c   : > { %9970 = vmatpush.bf16.msrb.mxu1 %v24194_v61  ;;  %10056 = vmatpush.bf16.msrb.mxu0 %v24219_v63  ;;  %v24217_v61 = vld [vmem:[%s34262_s1 + $0x520] sm:$0xff] }
 0x40d   : > { %v9688_v53 = vadd.f32 %v9687_v55, %v9659_v20  ;;  %9899 = vmatmul.bf16.gmra.mxu2 %v6897_v46  ;;  %9928 = vmatmul.bf16.gmra.mxu3 %v6898_v27  ;;  %v24208_v55 = vld [vmem:[%s34262_s1 + $0x4d8] sm:$0xff]  ;;  %v35156_v20 = vunpack.c.l.b16 %v35155_v43 }
 0x40e   : > { %10001 = vmatpush.bf16.msra.mxu2 %v24200_v17  ;;  %10030 = vmatpush.bf16.msra.mxu3 %v24208_v55  ;;  %v35159_v17 = vunpack.c.h.b16 %v35155_v43  ;;  %v24192_v55 = vld [vmem:[%s34262_s1 + $0x458] sm:$0xff] }
 0x40f   : > { %v29857_v58 = vadd.f32 %v9716_v15, %v9688_v53  ;;  %v35149_v15 = vunpack.c.h.b16 %v35109_v22  ;;  %v24218_v22 = vld [vmem:[%s34262_s1 + $0x528] sm:$0xff]  ;;  %v35158_v53 = vunpack.c.l.b16 %v35157_v9 }
 0x410   : > { %v9631_v50 = vpop.f32.mrf.mxu1  ;;  %v9718_v34 = vpop.f32.mrf.mxu0  ;;  %9971 = vmatpush.bf16.msrb.mxu1 %v24193_v23  ;;  %10057 = vmatpush.bf16.msrb.mxu0 %v24218_v22 }
 0x411   : > { %v9632_v42 = vadd.f32 %v9631_v50, %v29678_v36  ;;  %v29866_v32 = vpop.f32.mrf.mxu2  ;;  %v29868_v38 = vpop.f32.mrf.mxu3  ;;  %v24207_v36 = vld [vmem:[%s34262_s1 + $0x4d0] sm:$0xff]  ;;  %v6848_v10 = vpack.c.b16 %v35150_v44, %v35149_v15  ;;  %v6945_v39 = vpack.c.b16 %v35158_v53, %v35156_v20  ;;  %v35160_v50 = vunpack.c.h.b16 %v35157_v9  ;;  %v24190_v15 = vld [vmem:[%s34262_s1 + $0x448] sm:$0xff]  ;;  %v35165_v20 = vld [vmem:[#allocation42_spill] sm:$0xff] }
 0x412   : > { %10002 = vmatpush.bf16.msra.mxu2 %v24199_v60  ;;  %10031 = vmatpush.bf16.msra.mxu3 %v24207_v36  ;;  %v35166_v9 = vunpack.c.l.b16 %v35165_v20 }
 0x413   : > { %v9661_v14 = vadd.f32 %v29781_v40, %v9632_v42  ;;  %v24198_v40 = vld [vmem:[%s34262_s1 + $0x488] sm:$0xff]  ;;  %v24205_v42 = vld [vmem:[%s34262_s1 + $0x4c0] sm:$0xff] }
 0x414   : > { %9972 = vmatpush.bf16.msrb.mxu1 %v24192_v55  ;;  %10058 = vmatpush.bf16.msrb.mxu0 %v24217_v61  ;;  %v35167_v55 = vld [vmem:[#allocation44_spill] sm:$0xff] }
 0x415   : > { %v9690_v62 = vadd.f32 %v29783_v24, %v9661_v14  ;;  %v35154_v24 = vunpack.c.l.b16 %v35153_v51 }
 0x416   : > { %10003 = vmatpush.bf16.msra.mxu2 %v24198_v40  ;;  %10032 = vmatpush.bf16.msra.mxu3 %v24206_v19  ;;  %v35161_v19 = vunpack.c.h.b16 %v35121_v12 }
 0x417   : > { %v29890_v21 = vadd.f32 %v9718_v34, %v9690_v62  ;;  %v6851_v4 = vpack.c.b16 %v35154_v24, %v35152_v3  ;;  %v6946_v34 = vpack.c.b16 %v35160_v50, %v35159_v17  ;;  %v24216_v62 = vld [vmem:[%s34262_s1 + $0x518] sm:$0xff]  ;;  %v24215_v3 = vld [vmem:[%s34262_s1 + $0x510] sm:$0xff]  ;;  %v24214_v17 = vld [vmem:[%s34262_s1 + $0x508] sm:$0xff] }
 0x418   : > { %v9634_v46 = vpop.f32.mrf.mxu1  ;;  %v9721_v7 = vpop.f32.mrf.mxu0  ;;  %10059 = vmatpush.bf16.msrb.mxu0 %v24216_v62 }
 0x419   : > { %v9635_v59 = vadd.f32 %v9634_v46, %v29724_v16  ;;  %v29907_v27 = vpop.f32.mrf.mxu2  ;;  %v29909_v13 = vpop.f32.mrf.mxu3  ;;  %v24197_v16 = vld [vmem:[%s34262_s1 + $0x480] sm:$0xff] }
 0x41a   : > { %10004 = vmatpush.bf16.msra.mxu2 %v24197_v16  ;;  %10033 = vmatpush.bf16.msra.mxu3 %v24205_v42 }
 0x41b   : > { %v9664_v29 = vadd.f32 %v29805_v25, %v9635_v59  ;;  %9865 = vmatmul.bf16.gmra.mxu1 %v6848_v10  ;;  %9952 = vmatmul.bf16.gmra.mxu0 %v6851_v4  ;;  %v24191_v25 = vld [vmem:[%s34262_s1 + $0x450] sm:$0xff]  ;;  %v315_v10 = vld [vmem:[%s25576_s24 + $0x48] sm:$0xff] }
 0x41c   : > { %9973 = vmatpush.bf16.msrb.mxu1 %v24191_v25  ;;  %v6757_v4 = vunpack.c.l.b16 %v315_v10  ;;  %v6758_v46 = vunpack.c.h.b16 %v315_v10  ;;  %v35163_v59 = vld [vmem:[#allocation40_spill] sm:$0xff]  ;;  %10060 = vmatpush.bf16.msrb.mxu0 %v24215_v3  ;;  %v35170_v3 = vunpack.c.h.b16 %v35130_v35  ;;  %v35178_v35 = vld [vmem:[#allocation47_spill] sm:$0xff] }
 0x41d   : > { %v9693_v60 = vadd.f32 %v29807_v45, %v9664_v29  ;;  %9904 = vmatmul.bf16.gmra.mxu2 %v6945_v39  ;;  %9933 = vmatmul.bf16.gmra.mxu3 %v6946_v34  ;;  %v35164_v43 = vunpack.c.l.b16 %v35163_v59  ;;  %v35169_v29 = vunpack.c.h.b16 %v35167_v55 }
 0x41f   : > { %v29936_v14 = vadd.f32 %v9721_v7, %v9693_v60  ;;  %v6899_v53 = vpack.c.b16 %v35166_v9, %v35164_v43  ;;  %v6806_v42 = vpack.c.b16 %v35169_v29, %v6758_v46  ;;  %v24213_v60 = vld [vmem:[%s34262_s1 + $0x500] sm:$0xff]  ;;  %v35176_v9 = vld [vmem:[#allocation45_spill] sm:$0xff] }
 0x420   : > { %v9636_v36 = vpop.f32.mrf.mxu1  ;;  %v9723_v63 = vpop.f32.mrf.mxu0  ;;  %9974 = vmatpush.bf16.msrb.mxu1 %v24190_v15  ;;  %10061 = vmatpush.bf16.msrb.mxu0 %v24214_v17  ;;  %v35181_v17 = vunpack.c.h.b16 %v35178_v35 }
 0x421   : > { %v9637_v45 = vadd.f32 %v9636_v36, %v29742_v57  ;;  %v9673_v23 = vpop.f32.mrf.mxu2  ;;  %v9702_v40 = vpop.f32.mrf.mxu3  ;;  %v24189_v57 = vld [vmem:[%s34262_s1 + $0x440] sm:$0xff] }
 0x423   : > { %v9666_v44 = vadd.f32 %v29830_v6, %v9637_v45  ;;  %v35162_v6 = vunpack.c.h.b16 %v35123_v30  ;;  %v35168_v30 = vunpack.c.l.b16 %v35167_v55 }
 0x424   : > { %9975 = vmatpush.bf16.msrb.mxu1 %v24189_v57  ;;  %10062 = vmatpush.bf16.msrb.mxu0 %v24213_v60  ;;  %v35174_v57 = vld [vmem:[#allocation46_spill] sm:$0xff] }
 0x425   : > { %v9695_v24 = vadd.f32 %v29832_v33, %v9666_v44  ;;  %v6896_v22 = vpack.c.b16 %v35162_v6, %v35161_v19  ;;  %v6805_v16 = vpack.c.b16 %v35168_v30, %v6757_v4  ;;  %v35172_v4 = vld [vmem:[#allocation43_spill] sm:$0xff]  ;;  %v35175_v19 = vunpack.c.l.b16 %v35174_v57 }
 0x426   : > { %v35173_v46 = vunpack.c.l.b16 %v35172_v4 }
 0x427   : > { %v29954_v7 = vadd.f32 %v9723_v63, %v9695_v24 }
 0x428   : > { %v9639_v33 = vpop.f32.mrf.mxu1  ;;  %v9726_v39 = vpop.f32.mrf.mxu0  ;;  %v6947_v6 = vpack.c.b16 %v35175_v19, %v35173_v46  ;;  %v35183_v46 = vld [vmem:[#allocation49_spill] sm:$0xff] }
 0x429   : > { %v9640_v50 = vadd.f32 %v9639_v33, %v29765_v11  ;;  %v9675_v34 = vpop.f32.mrf.mxu2  ;;  %v9704_v12 = vpop.f32.mrf.mxu3  ;;  %v35179_v33 = vunpack.c.l.b16 %v35178_v35 }
 0x42b   : > { %v9669_v61 = vadd.f32 %v29866_v32, %v9640_v50  ;;  %9870 = vmatmul.bf16.gmra.mxu1 %v6896_v22  ;;  %9957 = vmatmul.bf16.gmra.mxu0 %v6899_v53  ;;  %v35177_v53 = vunpack.c.l.b16 %v35176_v9 }
 0x42d   : > { %v9698_v25 = vadd.f32 %v29868_v38, %v9669_v61  ;;  %10005 = vmatmul.bf16.vlgmr.msra.gmra.mxu2 %v6805_v16  ;;  %10034 = vmatmul.bf16.vlgmr.msra.gmra.mxu3 %v6806_v42  ;;  %v35171_v38 = vunpack.c.h.b16 %v35132_v26  ;;  %v6853_v26 = vpack.c.b16 %v35179_v33, %v35177_v53  ;;  %v30011_v61 = vld [vmem:[%s25576_s24 + $0x50] sm:$0xff] }
 0x42e   : > { %v35185_v53 = vld [vmem:[#allocation48_spill] sm:$0xff] }
 0x42f   : > { %v29977_v11 = vadd.f32 %v9726_v39, %v9698_v25  ;;  %v6944_v24 = vpack.c.b16 %v35171_v38, %v35170_v3  ;;  %v35180_v39 = vunpack.c.h.b16 %v35176_v9  ;;  %v24234_v3 = vld [vmem:[%s34262_s1 + $0x5a8] sm:$0xff]  ;;  %v35186_v35 = vunpack.c.l.b16 %v35185_v53 }
 0x430   : > { %v9641_v36 = vpop.f32.mrf.mxu1  ;;  %v9728_v63 = vpop.f32.mrf.mxu0 }
 0x431   : > { %v9642_v62 = vadd.f32 %v9641_v36, %v29770_v2  ;;  %v9774_v45 = vpop.f32.mrf.mxu2  ;;  %v9803_v32 = vpop.f32.mrf.mxu3  ;;  %v6854_v50 = vpack.c.b16 %v35181_v17, %v35180_v39  ;;  %v24235_v36 = vld [vmem:[%s34262_s1 + $0x5b0] sm:$0xff]  ;;  %v35189_v39 = vunpack.c.h.b16 %v35185_v53  ;;  %v35193_v53 = vld [vmem:[#allocation50_spill] sm:$0xff] }
 0x433   : > { %v9671_v15 = vadd.f32 %v29907_v27, %v9642_v62  ;;  %v6756_v62 = vunpack.c.h.b16 %v29799_v47  ;;  %v35184_v47 = vunpack.c.l.b16 %v35183_v46 }
 0x435   : > { %v9700_v44 = vadd.f32 %v29909_v13, %v9671_v15  ;;  %v6759_v15 = vunpack.c.l.b16 %v30011_v61 }
 0x437   : > { %v29982_v10 = vadd.f32 %v9728_v63, %v9700_v44  ;;  %v24243_v44 = vld [vmem:[%s34262_s1 + $0x5f0] sm:$0xff]  ;;  %v6807_v19 = vpack.c.b16 %v35184_v47, %v6759_v15 }
 0x438   : > { %v9644_v22 = vpop.f32.mrf.mxu1  ;;  %v9731_v2 = vpop.f32.mrf.mxu0 }
 0x439   : > { %v9645_v43 = vadd.f32 %v9644_v22, %v29796_v28  ;;  %v29993_v27 = vpop.f32.mrf.mxu2  ;;  %v29995_v13 = vpop.f32.mrf.mxu3  ;;  %v24236_v28 = vld [vmem:[%s34262_s1 + $0x5b8] sm:$0xff] }
 0x43a   : > { %10113 = vmatpush.bf16.msrb.mxu2 %v24236_v28  ;;  %v24241_v28 = vld [vmem:[%s34262_s1 + $0x5e0] sm:$0xff] }
 0x43b   : > { %v9674_v55 = vadd.f32 %v9673_v23, %v9645_v43  ;;  %9875 = vmatmul.bf16.gmra.mxu1 %v6944_v24  ;;  %9962 = vmatmul.bf16.gmra.mxu0 %v6947_v6  ;;  %v24244_v23 = vld [vmem:[%s34262_s1 + $0x5f8] sm:$0xff]  ;;  %v35182_v24 = vunpack.c.h.b16 %v35141_v0  ;;  %v35187_v0 = vld [vmem:[#allocation51_spill] sm:$0xff] }
 0x43c   : > { %10142 = vmatpush.bf16.msrb.mxu3 %v24244_v23  ;;  %v35188_v33 = vunpack.c.l.b16 %v35187_v0  ;;  %v35190_v17 = vunpack.c.h.b16 %v35187_v0  ;;  %v24232_v23 = vld [vmem:[%s34262_s1 + $0x598] sm:$0xff] }
 0x43d   : > { %v9703_v30 = vadd.f32 %v9702_v40, %v9674_v55  ;;  %10010 = vmatmul.bf16.gmra.mxu2 %v6853_v26  ;;  %10039 = vmatmul.bf16.gmra.mxu3 %v6854_v50  ;;  %v24228_v55 = vld [vmem:[%s34262_s1 + $0x578] sm:$0xff] }
 0x43e   : > { %10114 = vmatpush.bf16.msrb.mxu2 %v24235_v36  ;;  %v6901_v26 = vpack.c.b16 %v35188_v33, %v35186_v35  ;;  %v6902_v50 = vpack.c.b16 %v35190_v17, %v35189_v39  ;;  %10084 = vmatpush.bf16.msra.mxu1 %v24228_v55  ;;  %v35194_v35 = vunpack.c.l.b16 %v35193_v53  ;;  %v35195_v0 = vld [vmem:[#allocation53_spill] sm:$0xff]  ;;  %v24238_v17 = vld [vmem:[%s34262_s1 + $0x5c8] sm:$0xff] }
 0x43f   : > { %v30008_v16 = vadd.f32 %v9731_v2, %v9703_v30 }
 0x440   : > { %v9646_v29 = vpop.f32.mrf.mxu1  ;;  %v9733_v42 = vpop.f32.mrf.mxu0  ;;  %10143 = vmatpush.bf16.msrb.mxu3 %v24243_v44 }
 0x441   : > { %v9647_v60 = vadd.f32 %v9646_v29, %v29820_v48  ;;  %v30017_v40 = vpop.f32.mrf.mxu2  ;;  %v30019_v25 = vpop.f32.mrf.mxu3 }
 0x442   : > { %10115 = vmatpush.bf16.msrb.mxu2 %v24234_v3  ;;  %v24231_v3 = vld [vmem:[%s34262_s1 + $0x590] sm:$0xff] }
 0x443   : > { %v9676_v63 = vadd.f32 %v9675_v34, %v9647_v60  ;;  %v6804_v34 = vpack.c.b16 %v35182_v24, %v6756_v62 }
 0x445   : > { %v9705_v48 = vadd.f32 %v9704_v12, %v9676_v63  ;;  %v24242_v12 = vld [vmem:[%s34262_s1 + $0x5e8] sm:$0xff]  ;;  %v24252_v63 = vld [vmem:[%s34262_s1 + $0x638] sm:$0xff] }
 0x446   : > { %10144 = vmatpush.bf16.msrb.mxu3 %v24242_v12  ;;  %10171 = vmatpush.bf16.msra.mxu0 %v24252_v63  ;;  %v35192_v12 = vunpack.c.h.b16 %v35153_v51 }
 0x447   : > { %v30032_v38 = vadd.f32 %v9733_v42, %v9705_v48  ;;  %v24227_v42 = vld [vmem:[%s34262_s1 + $0x570] sm:$0xff]  ;;  %v24226_v48 = vld [vmem:[%s34262_s1 + $0x568] sm:$0xff] }
 0x448   : > { %v9745_v6 = vpop.f32.mrf.mxu1  ;;  %v9832_v22 = vpop.f32.mrf.mxu0  ;;  %10085 = vmatpush.bf16.msra.mxu1 %v24227_v42 }
 0x449   : > { %v9746_v2 = vadd.f32 %v9745_v6, %v29857_v58  ;;  %v30042_v43 = vpop.f32.mrf.mxu2  ;;  %v30044_v9 = vpop.f32.mrf.mxu3  ;;  %v24233_v58 = vld [vmem:[%s34262_s1 + $0x5a0] sm:$0xff] }
 0x44a   : > { %10116 = vmatpush.bf16.msrb.mxu2 %v24233_v58  ;;  %10145 = vmatpush.bf16.msrb.mxu3 %v24241_v28  ;;  %v35197_v58 = vld [vmem:[#allocation52_spill] sm:$0xff]  ;;  %v35199_v28 = vld [vmem:[#allocation55_spill] sm:$0xff] }
 0x44b   : > { %v9775_v30 = vadd.f32 %v9774_v45, %v9746_v2  ;;  %9976 = vmatmul.bf16.vlgmr.msrb.gmra.mxu1 %v6804_v34  ;;  %10063 = vmatmul.bf16.vlgmr.msrb.gmra.mxu0 %v6807_v19  ;;  %v24251_v34 = vld [vmem:[%s34262_s1 + $0x630] sm:$0xff]  ;;  %v24225_v19 = vld [vmem:[%s34262_s1 + $0x560] sm:$0xff] }
 0x44c   : > { %10086 = vmatpush.bf16.msra.mxu1 %v24226_v48  ;;  %10172 = vmatpush.bf16.msra.mxu0 %v24251_v34  ;;  %v24249_v48 = vld [vmem:[%s34262_s1 + $0x620] sm:$0xff] }
 0x44d   : > { %v9804_v29 = vadd.f32 %v9803_v32, %v9775_v30  ;;  %10015 = vmatmul.bf16.gmra.mxu2 %v6901_v26  ;;  %10044 = vmatmul.bf16.gmra.mxu3 %v6902_v50  ;;  %v24240_v32 = vld [vmem:[%s34262_s1 + $0x5d8] sm:$0xff]  ;;  %v35198_v30 = vunpack.c.l.b16 %v35197_v58 }
 0x44e   : > { %10117 = vmatpush.bf16.msrb.mxu2 %v24232_v23  ;;  %10146 = vmatpush.bf16.msrb.mxu3 %v24240_v32  ;;  %v35201_v23 = vunpack.c.h.b16 %v35197_v58  ;;  %v24224_v32 = vld [vmem:[%s34262_s1 + $0x558] sm:$0xff] }
 0x44f   : > { %v30069_v45 = vadd.f32 %v9832_v22, %v9804_v29  ;;  %v35191_v22 = vunpack.c.h.b16 %v35151_v37  ;;  %v24250_v37 = vld [vmem:[%s34262_s1 + $0x628] sm:$0xff]  ;;  %v35200_v29 = vunpack.c.l.b16 %v35199_v28 }
 0x450   : > { %v9747_v60 = vpop.f32.mrf.mxu1  ;;  %v9834_v36 = vpop.f32.mrf.mxu0  ;;  %10087 = vmatpush.bf16.msra.mxu1 %v24225_v19  ;;  %10173 = vmatpush.bf16.msra.mxu0 %v24250_v37 }
 0x451   : > { %v9748_v62 = vadd.f32 %v9747_v60, %v29890_v21  ;;  %v30078_v15 = vpop.f32.mrf.mxu2  ;;  %v30080_v44 = vpop.f32.mrf.mxu3  ;;  %v24239_v21 = vld [vmem:[%s34262_s1 + $0x5d0] sm:$0xff]  ;;  %v6852_v2 = vpack.c.b16 %v35192_v12, %v35191_v22  ;;  %v6949_v42 = vpack.c.b16 %v35200_v29, %v35198_v30  ;;  %v35202_v60 = vunpack.c.h.b16 %v35199_v28  ;;  %v24222_v22 = vld [vmem:[%s34262_s1 + $0x548] sm:$0xff] }
 0x452   : > { %10118 = vmatpush.bf16.msrb.mxu2 %v24231_v3  ;;  %10147 = vmatpush.bf16.msrb.mxu3 %v24239_v21  ;;  %v35207_v30 = vld [vmem:[#allocation56_spill] sm:$0xff] }
 0x453   : > { %v9777_v24 = vadd.f32 %v29993_v27, %v9748_v62  ;;  %v24230_v27 = vld [vmem:[%s34262_s1 + $0x588] sm:$0xff]  ;;  %v24237_v62 = vld [vmem:[%s34262_s1 + $0x5c0] sm:$0xff]  ;;  %v35208_v28 = vunpack.c.l.b16 %v35207_v30 }
 0x454   : > { %10088 = vmatpush.bf16.msra.mxu1 %v24224_v32  ;;  %10174 = vmatpush.bf16.msra.mxu0 %v24249_v48  ;;  %v35209_v32 = vld [vmem:[#allocation58_spill] sm:$0xff] }
 0x455   : > { %v9806_v47 = vadd.f32 %v29995_v13, %v9777_v24  ;;  %v35196_v13 = vunpack.c.l.b16 %v35195_v0 }
 0x456   : > { %10119 = vmatpush.bf16.msrb.mxu2 %v24230_v27  ;;  %10148 = vmatpush.bf16.msrb.mxu3 %v24238_v17  ;;  %v35203_v17 = vunpack.c.h.b16 %v35163_v59 }
 0x457   : > { %v30102_v6 = vadd.f32 %v9834_v36, %v9806_v47  ;;  %v6855_v33 = vpack.c.b16 %v35196_v13, %v35194_v35  ;;  %v6950_v36 = vpack.c.b16 %v35202_v60, %v35201_v23  ;;  %v24248_v47 = vld [vmem:[%s34262_s1 + $0x618] sm:$0xff]  ;;  %v24247_v35 = vld [vmem:[%s34262_s1 + $0x610] sm:$0xff]  ;;  %v24246_v23 = vld [vmem:[%s34262_s1 + $0x608] sm:$0xff] }
 0x458   : > { %v9750_v26 = vpop.f32.mrf.mxu1  ;;  %v9837_v39 = vpop.f32.mrf.mxu0  ;;  %10175 = vmatpush.bf16.msra.mxu0 %v24248_v47 }
 0x459   : > { %v9751_v51 = vadd.f32 %v9750_v26, %v29936_v14  ;;  %v30119_v50 = vpop.f32.mrf.mxu2  ;;  %v30121_v55 = vpop.f32.mrf.mxu3  ;;  %v24229_v14 = vld [vmem:[%s34262_s1 + $0x580] sm:$0xff] }
 0x45a   : > { %10120 = vmatpush.bf16.msrb.mxu2 %v24229_v14  ;;  %10149 = vmatpush.bf16.msrb.mxu3 %v24237_v62 }
 0x45b   : > { %v9780_v63 = vadd.f32 %v30017_v40, %v9751_v51  ;;  %9981 = vmatmul.bf16.gmra.mxu1 %v6852_v2  ;;  %10068 = vmatmul.bf16.gmra.mxu0 %v6855_v33  ;;  %v24223_v40 = vld [vmem:[%s34262_s1 + $0x550] sm:$0xff]  ;;  %v317_v2 = vld [vmem:[%s25576_s24 + $0x58] sm:$0xff]  ;;  %v35205_v51 = vld [vmem:[#allocation54_spill] sm:$0xff] }
 0x45c   : > { %10089 = vmatpush.bf16.msra.mxu1 %v24223_v40  ;;  %v6761_v33 = vunpack.c.l.b16 %v317_v2  ;;  %v6762_v26 = vunpack.c.h.b16 %v317_v2  ;;  %v35206_v58 = vunpack.c.l.b16 %v35205_v51  ;;  %10176 = vmatpush.bf16.msra.mxu0 %v24247_v35  ;;  %v35212_v35 = vunpack.c.h.b16 %v35172_v4  ;;  %v35220_v4 = vld [vmem:[#allocation61_spill] sm:$0xff] }
 0x45d   : > { %v9809_v3 = vadd.f32 %v30019_v25, %v9780_v63  ;;  %10020 = vmatmul.bf16.gmra.mxu2 %v6949_v42  ;;  %10049 = vmatmul.bf16.gmra.mxu3 %v6950_v36  ;;  %v35211_v63 = vunpack.c.h.b16 %v35209_v32 }
 0x45e   : > { %v6903_v29 = vpack.c.b16 %v35208_v28, %v35206_v58  ;;  %v35218_v28 = vld [vmem:[#allocation59_spill] sm:$0xff] }
 0x45f   : > { %v30148_v24 = vadd.f32 %v9837_v39, %v9809_v3  ;;  %v6810_v62 = vpack.c.b16 %v35211_v63, %v6762_v26  ;;  %v24245_v3 = vld [vmem:[%s34262_s1 + $0x600] sm:$0xff] }
 0x460   : > { %v9752_v21 = vpop.f32.mrf.mxu1  ;;  %v9839_v34 = vpop.f32.mrf.mxu0  ;;  %10090 = vmatpush.bf16.msra.mxu1 %v24222_v22  ;;  %10177 = vmatpush.bf16.msra.mxu0 %v24246_v23  ;;  %v35223_v23 = vunpack.c.h.b16 %v35220_v4 }
 0x461   : > { %v9753_v25 = vadd.f32 %v9752_v21, %v29954_v7  ;;  %v9789_v19 = vpop.f32.mrf.mxu2  ;;  %v9818_v27 = vpop.f32.mrf.mxu3  ;;  %v24221_v7 = vld [vmem:[%s34262_s1 + $0x540] sm:$0xff] }
 0x463   : > { %v9782_v12 = vadd.f32 %v30042_v43, %v9753_v25  ;;  %v35204_v43 = vunpack.c.h.b16 %v35165_v20  ;;  %v35210_v20 = vunpack.c.l.b16 %v35209_v32 }
 0x464   : > { %10091 = vmatpush.bf16.msra.mxu1 %v24221_v7  ;;  %10178 = vmatpush.bf16.msra.mxu0 %v24245_v3  ;;  %v35216_v7 = vld [vmem:[#allocation60_spill] sm:$0xff] }
 0x465   : > { %v9811_v13 = vadd.f32 %v30044_v9, %v9782_v12  ;;  %v6900_v37 = vpack.c.b16 %v35204_v43, %v35203_v17  ;;  %v6809_v14 = vpack.c.b16 %v35210_v20, %v6761_v33  ;;  %v35214_v33 = vld [vmem:[#allocation57_spill] sm:$0xff]  ;;  %v35217_v17 = vunpack.c.l.b16 %v35216_v7 }
 0x466   : > { %v35215_v26 = vunpack.c.l.b16 %v35214_v33 }
 0x467   : > { %v30166_v39 = vadd.f32 %v9839_v34, %v9811_v13 }
 0x468   : > { %v9755_v9 = vpop.f32.mrf.mxu1  ;;  %v9842_v42 = vpop.f32.mrf.mxu0  ;;  %v6951_v43 = vpack.c.b16 %v35217_v17, %v35215_v26  ;;  %v35225_v26 = vld [vmem:[#allocation63_spill] sm:$0xff] }
 0x469   : > { %v9756_v60 = vadd.f32 %v9755_v9, %v29977_v11  ;;  %v9791_v36 = vpop.f32.mrf.mxu2  ;;  %v9820_v59 = vpop.f32.mrf.mxu3  ;;  %v35221_v9 = vunpack.c.l.b16 %v35220_v4 }
 0x46b   : > { %v9785_v48 = vadd.f32 %v30078_v15, %v9756_v60  ;;  %9986 = vmatmul.bf16.gmra.mxu1 %v6900_v37  ;;  %10073 = vmatmul.bf16.gmra.mxu0 %v6903_v29  ;;  %v35219_v29 = vunpack.c.l.b16 %v35218_v28 }
 0x46d   : > { %v9814_v40 = vadd.f32 %v30080_v44, %v9785_v48  ;;  %10121 = vmatmul.bf16.vlgmr.msrb.gmra.mxu2 %v6809_v14  ;;  %10150 = vmatmul.bf16.vlgmr.msrb.gmra.mxu3 %v6810_v62  ;;  %v35213_v44 = vunpack.c.h.b16 %v35174_v57  ;;  %v6857_v57 = vpack.c.b16 %v35221_v9, %v35219_v29  ;;  %v30223_v48 = vld [vmem:[%s25576_s24 + $0x60] sm:$0xff] }
 0x46e   : > { %v35227_v29 = vld [vmem:[#allocation62_spill] sm:$0xff] }
 0x46f   : > { %v30189_v11 = vadd.f32 %v9842_v42, %v9814_v40  ;;  %v6948_v13 = vpack.c.b16 %v35213_v44, %v35212_v35  ;;  %v35222_v42 = vunpack.c.h.b16 %v35218_v28  ;;  %v24266_v35 = vld [vmem:[%s34262_s1 + $0x6a8] sm:$0xff]  ;;  %v35228_v4 = vunpack.c.l.b16 %v35227_v29 }
 0x470   : > { %v9757_v21 = vpop.f32.mrf.mxu1  ;;  %v9844_v34 = vpop.f32.mrf.mxu0 }
 0x471   : > { %v9758_v47 = vadd.f32 %v9757_v21, %v29982_v10  ;;  %v9890_v25 = vpop.f32.mrf.mxu2  ;;  %v9919_v15 = vpop.f32.mrf.mxu3  ;;  %v6858_v60 = vpack.c.b16 %v35223_v23, %v35222_v42  ;;  %v24267_v21 = vld [vmem:[%s34262_s1 + $0x6b0] sm:$0xff]  ;;  %v35231_v42 = vunpack.c.h.b16 %v35227_v29 }
 0x472   : > { %v35235_v29 = vld [vmem:[#allocation64_spill] sm:$0xff] }
 0x473   : > { %v9787_v22 = vadd.f32 %v30119_v50, %v9758_v47  ;;  %v6760_v47 = vunpack.c.h.b16 %v30011_v61  ;;  %v35226_v61 = vunpack.c.l.b16 %v35225_v26 }
 0x475   : > { %v9816_v12 = vadd.f32 %v30121_v55, %v9787_v22  ;;  %v6763_v22 = vunpack.c.l.b16 %v30223_v48 }
 0x477   : > { %v30194_v2 = vadd.f32 %v9844_v34, %v9816_v12  ;;  %v24275_v12 = vld [vmem:[%s34262_s1 + $0x6f0] sm:$0xff]  ;;  %v6811_v17 = vpack.c.b16 %v35226_v61, %v6763_v22 }
 0x478   : > { %v9760_v37 = vpop.f32.mrf.mxu1  ;;  %v9847_v10 = vpop.f32.mrf.mxu0 }
 0x479   : > { %v9761_v58 = vadd.f32 %v9760_v37, %v30008_v16  ;;  %v30205_v50 = vpop.f32.mrf.mxu2  ;;  %v30207_v55 = vpop.f32.mrf.mxu3  ;;  %v24268_v16 = vld [vmem:[%s34262_s1 + $0x6b8] sm:$0xff] }
 0x47a   : > { %10229 = vmatpush.bf16.msra.mxu2 %v24268_v16  ;;  %v24273_v16 = vld [vmem:[%s34262_s1 + $0x6e0] sm:$0xff] }
 0x47b   : > { %v9790_v32 = vadd.f32 %v9789_v19, %v9761_v58  ;;  %9991 = vmatmul.bf16.gmra.mxu1 %v6948_v13  ;;  %10078 = vmatmul.bf16.gmra.mxu0 %v6951_v43  ;;  %v24276_v19 = vld [vmem:[%s34262_s1 + $0x6f8] sm:$0xff]  ;;  %v35224_v13 = vunpack.c.h.b16 %v35183_v46 }
 0x47c   : > { %10258 = vmatpush.bf16.msra.mxu3 %v24276_v19  ;;  %v35229_v46 = vld [vmem:[#allocation65_spill] sm:$0xff] }
 0x47d   : > { %v9819_v20 = vadd.f32 %v9818_v27, %v9790_v32  ;;  %10126 = vmatmul.bf16.gmra.mxu2 %v6857_v57  ;;  %10155 = vmatmul.bf16.gmra.mxu3 %v6858_v60  ;;  %v35230_v9 = vunpack.c.l.b16 %v35229_v46  ;;  %v35232_v23 = vunpack.c.h.b16 %v35229_v46  ;;  %v24260_v32 = vld [vmem:[%s34262_s1 + $0x678] sm:$0xff]  ;;  %v35237_v46 = vld [vmem:[#allocation67_spill] sm:$0xff] }
 0x47e   : > { %10230 = vmatpush.bf16.msra.mxu2 %v24267_v21  ;;  %10200 = vmatpush.bf16.msrb.mxu1 %v24260_v32  ;;  %v24264_v19 = vld [vmem:[%s34262_s1 + $0x698] sm:$0xff] }
 0x47f   : > { %v30220_v14 = vadd.f32 %v9847_v10, %v9819_v20  ;;  %v6905_v57 = vpack.c.b16 %v35230_v9, %v35228_v4  ;;  %v6906_v60 = vpack.c.b16 %v35232_v23, %v35231_v42  ;;  %v35236_v4 = vunpack.c.l.b16 %v35235_v29  ;;  %v24270_v23 = vld [vmem:[%s34262_s1 + $0x6c8] sm:$0xff] }
 0x480   : > { %v9762_v63 = vpop.f32.mrf.mxu1  ;;  %v9849_v62 = vpop.f32.mrf.mxu0  ;;  %10259 = vmatpush.bf16.msra.mxu3 %v24275_v12 }
 0x481   : > { %v9763_v3 = vadd.f32 %v9762_v63, %v30032_v38  ;;  %v30229_v27 = vpop.f32.mrf.mxu2  ;;  %v30231_v40 = vpop.f32.mrf.mxu3 }
 0x482   : > { %10231 = vmatpush.bf16.msra.mxu2 %v24266_v35  ;;  %v24263_v35 = vld [vmem:[%s34262_s1 + $0x690] sm:$0xff] }
 0x483   : > { %v9792_v34 = vadd.f32 %v9791_v36, %v9763_v3  ;;  %v6808_v36 = vpack.c.b16 %v35224_v13, %v6760_v47 }
 0x485   : > { %v9821_v38 = vadd.f32 %v9820_v59, %v9792_v34  ;;  %v24274_v59 = vld [vmem:[%s34262_s1 + $0x6e8] sm:$0xff]  ;;  %v24284_v34 = vld [vmem:[%s34262_s1 + $0x738] sm:$0xff] }
 0x486   : > { %10260 = vmatpush.bf16.msra.mxu3 %v24274_v59  ;;  %10287 = vmatpush.bf16.msrb.mxu0 %v24284_v34  ;;  %v35234_v59 = vunpack.c.h.b16 %v35195_v0 }
 0x487   : > { %v30244_v44 = vadd.f32 %v9849_v62, %v9821_v38  ;;  %v24259_v62 = vld [vmem:[%s34262_s1 + $0x670] sm:$0xff]  ;;  %v24258_v38 = vld [vmem:[%s34262_s1 + $0x668] sm:$0xff] }
 0x488   : > { %v9861_v43 = vpop.f32.mrf.mxu1  ;;  %v9948_v37 = vpop.f32.mrf.mxu0  ;;  %10201 = vmatpush.bf16.msrb.mxu1 %v24259_v62 }
 0x489   : > { %v9862_v10 = vadd.f32 %v9861_v43, %v30069_v45  ;;  %v30254_v58 = vpop.f32.mrf.mxu2  ;;  %v30256_v28 = vpop.f32.mrf.mxu3  ;;  %v24265_v45 = vld [vmem:[%s34262_s1 + $0x6a0] sm:$0xff] }
 0x48a   : > { %10232 = vmatpush.bf16.msra.mxu2 %v24265_v45  ;;  %10261 = vmatpush.bf16.msra.mxu3 %v24273_v16  ;;  %v35239_v45 = vld [vmem:[#allocation66_spill] sm:$0xff]  ;;  %v35241_v16 = vld [vmem:[#allocation69_spill] sm:$0xff] }
 0x48b   : > { %v9891_v20 = vadd.f32 %v9890_v25, %v9862_v10  ;;  %10092 = vmatmul.bf16.vlgmr.msra.gmra.mxu1 %v6808_v36  ;;  %10179 = vmatmul.bf16.vlgmr.msra.gmra.mxu0 %v6811_v17  ;;  %v24283_v36 = vld [vmem:[%s34262_s1 + $0x730] sm:$0xff]  ;;  %v24257_v17 = vld [vmem:[%s34262_s1 + $0x660] sm:$0xff] }
 0x48c   : > { %10202 = vmatpush.bf16.msrb.mxu1 %v24258_v38  ;;  %10288 = vmatpush.bf16.msrb.mxu0 %v24283_v36  ;;  %v24281_v38 = vld [vmem:[%s34262_s1 + $0x720] sm:$0xff] }
 0x48d   : > { %v9920_v63 = vadd.f32 %v9919_v15, %v9891_v20  ;;  %10131 = vmatmul.bf16.gmra.mxu2 %v6905_v57  ;;  %10160 = vmatmul.bf16.gmra.mxu3 %v6906_v60  ;;  %v24272_v15 = vld [vmem:[%s34262_s1 + $0x6d8] sm:$0xff]  ;;  %v35240_v20 = vunpack.c.l.b16 %v35239_v45 }
 0x48e   : > { %10233 = vmatpush.bf16.msra.mxu2 %v24264_v19  ;;  %10262 = vmatpush.bf16.msra.mxu3 %v24272_v15  ;;  %v35243_v19 = vunpack.c.h.b16 %v35239_v45  ;;  %v24256_v15 = vld [vmem:[%s34262_s1 + $0x658] sm:$0xff] }
 0x48f   : > { %v30281_v25 = vadd.f32 %v9948_v37, %v9920_v63  ;;  %v35233_v37 = vunpack.c.h.b16 %v35193_v53  ;;  %v24282_v53 = vld [vmem:[%s34262_s1 + $0x728] sm:$0xff]  ;;  %v35242_v63 = vunpack.c.l.b16 %v35241_v16 }
 0x490   : > { %v9863_v3 = vpop.f32.mrf.mxu1  ;;  %v9950_v21 = vpop.f32.mrf.mxu0  ;;  %10203 = vmatpush.bf16.msrb.mxu1 %v24257_v17  ;;  %10289 = vmatpush.bf16.msrb.mxu0 %v24282_v53 }
 0x491   : > { %v9864_v47 = vadd.f32 %v9863_v3, %v30102_v6  ;;  %v30290_v22 = vpop.f32.mrf.mxu2  ;;  %v30292_v12 = vpop.f32.mrf.mxu3  ;;  %v24271_v6 = vld [vmem:[%s34262_s1 + $0x6d0] sm:$0xff]  ;;  %v6856_v10 = vpack.c.b16 %v35234_v59, %v35233_v37  ;;  %v6953_v62 = vpack.c.b16 %v35242_v63, %v35240_v20  ;;  %v35244_v3 = vunpack.c.h.b16 %v35241_v16  ;;  %v24254_v37 = vld [vmem:[%s34262_s1 + $0x648] sm:$0xff]  ;;  %v35249_v20 = vld [vmem:[#allocation70_spill] sm:$0xff] }
 0x492   : > { %10234 = vmatpush.bf16.msra.mxu2 %v24263_v35  ;;  %10263 = vmatpush.bf16.msra.mxu3 %v24271_v6  ;;  %v35250_v16 = vunpack.c.l.b16 %v35249_v20 }
 0x493   : > { %v9893_v13 = vadd.f32 %v30205_v50, %v9864_v47  ;;  %v24262_v50 = vld [vmem:[%s34262_s1 + $0x688] sm:$0xff]  ;;  %v24269_v47 = vld [vmem:[%s34262_s1 + $0x6c0] sm:$0xff] }
 0x494   : > { %10204 = vmatpush.bf16.msrb.mxu1 %v24256_v15  ;;  %10290 = vmatpush.bf16.msrb.mxu0 %v24281_v38  ;;  %v35251_v15 = vld [vmem:[#allocation72_spill] sm:$0xff] }
 0x495   : > { %v9922_v61 = vadd.f32 %v30207_v55, %v9893_v13  ;;  %v35238_v55 = vunpack.c.l.b16 %v35237_v46 }
 0x496   : > { %10235 = vmatpush.bf16.msra.mxu2 %v24262_v50  ;;  %10264 = vmatpush.bf16.msra.mxu3 %v24270_v23  ;;  %v35245_v23 = vunpack.c.h.b16 %v35205_v51 }
 0x497   : > { %v30314_v43 = vadd.f32 %v9950_v21, %v9922_v61  ;;  %v6859_v9 = vpack.c.b16 %v35238_v55, %v35236_v4  ;;  %v6954_v21 = vpack.c.b16 %v35244_v3, %v35243_v19  ;;  %v24280_v61 = vld [vmem:[%s34262_s1 + $0x718] sm:$0xff]  ;;  %v24279_v4 = vld [vmem:[%s34262_s1 + $0x710] sm:$0xff]  ;;  %v24278_v19 = vld [vmem:[%s34262_s1 + $0x708] sm:$0xff] }
 0x498   : > { %v9866_v57 = vpop.f32.mrf.mxu1  ;;  %v9953_v42 = vpop.f32.mrf.mxu0  ;;  %10291 = vmatpush.bf16.msrb.mxu0 %v24280_v61 }
 0x499   : > { %v9867_v0 = vadd.f32 %v9866_v57, %v30148_v24  ;;  %v30331_v60 = vpop.f32.mrf.mxu2  ;;  %v30333_v32 = vpop.f32.mrf.mxu3  ;;  %v24261_v24 = vld [vmem:[%s34262_s1 + $0x680] sm:$0xff] }
 0x49a   : > { %10236 = vmatpush.bf16.msra.mxu2 %v24261_v24  ;;  %10265 = vmatpush.bf16.msra.mxu3 %v24269_v47 }
 0x49b   : > { %v9896_v34 = vadd.f32 %v30229_v27, %v9867_v0  ;;  %10097 = vmatmul.bf16.gmra.mxu1 %v6856_v10  ;;  %10184 = vmatmul.bf16.gmra.mxu0 %v6859_v9  ;;  %v24255_v27 = vld [vmem:[%s34262_s1 + $0x650] sm:$0xff]  ;;  %v319_v10 = vld [vmem:[%s25576_s24 + $0x68] sm:$0xff] }
 0x49c   : > { %10205 = vmatpush.bf16.msrb.mxu1 %v24255_v27  ;;  %v6765_v9 = vunpack.c.l.b16 %v319_v10  ;;  %v6766_v57 = vunpack.c.h.b16 %v319_v10  ;;  %v35247_v0 = vld [vmem:[#allocation68_spill] sm:$0xff]  ;;  %10292 = vmatpush.bf16.msrb.mxu0 %v24279_v4  ;;  %v35254_v4 = vunpack.c.h.b16 %v35214_v33  ;;  %v35262_v33 = vld [vmem:[#allocation75_spill] sm:$0xff] }
 0x49d   : > { %v9925_v35 = vadd.f32 %v30231_v40, %v9896_v34  ;;  %10136 = vmatmul.bf16.gmra.mxu2 %v6953_v62  ;;  %10165 = vmatmul.bf16.gmra.mxu3 %v6954_v21  ;;  %v35248_v45 = vunpack.c.l.b16 %v35247_v0  ;;  %v35253_v34 = vunpack.c.h.b16 %v35251_v15 }
 0x49f   : > { %v30360_v13 = vadd.f32 %v9953_v42, %v9925_v35  ;;  %v6907_v63 = vpack.c.b16 %v35250_v16, %v35248_v45  ;;  %v6814_v47 = vpack.c.b16 %v35253_v34, %v6766_v57  ;;  %v24277_v35 = vld [vmem:[%s34262_s1 + $0x700] sm:$0xff]  ;;  %v35260_v16 = vld [vmem:[#allocation73_spill] sm:$0xff] }
 0x4a0   : > { %v9868_v6 = vpop.f32.mrf.mxu1  ;;  %v9955_v36 = vpop.f32.mrf.mxu0  ;;  %10206 = vmatpush.bf16.msrb.mxu1 %v24254_v37  ;;  %10293 = vmatpush.bf16.msrb.mxu0 %v24278_v19  ;;  %v35265_v19 = vunpack.c.h.b16 %v35262_v33 }
 0x4a1   : > { %v9869_v40 = vadd.f32 %v9868_v6, %v30166_v39  ;;  %v9905_v17 = vpop.f32.mrf.mxu2  ;;  %v9934_v50 = vpop.f32.mrf.mxu3  ;;  %v24253_v39 = vld [vmem:[%s34262_s1 + $0x640] sm:$0xff] }
 0x4a3   : > { %v9898_v59 = vadd.f32 %v30254_v58, %v9869_v40  ;;  %v35246_v58 = vunpack.c.h.b16 %v35207_v30  ;;  %v35252_v30 = vunpack.c.l.b16 %v35251_v15 }
 0x4a4   : > { %10207 = vmatpush.bf16.msrb.mxu1 %v24253_v39  ;;  %10294 = vmatpush.bf16.msrb.mxu0 %v24277_v35  ;;  %v35258_v39 = vld [vmem:[#allocation74_spill] sm:$0xff] }
 0x4a5   : > { %v9927_v55 = vadd.f32 %v30256_v28, %v9898_v59  ;;  %v6904_v53 = vpack.c.b16 %v35246_v58, %v35245_v23  ;;  %v6813_v24 = vpack.c.b16 %v35252_v30, %v6765_v9  ;;  %v35256_v9 = vld [vmem:[#allocation71_spill] sm:$0xff]  ;;  %v35259_v23 = vunpack.c.l.b16 %v35258_v39 }
 0x4a6   : > { %v35257_v57 = vunpack.c.l.b16 %v35256_v9 }
 0x4a7   : > { %v30378_v42 = vadd.f32 %v9955_v36, %v9927_v55 }
 0x4a8   : > { %v9871_v28 = vpop.f32.mrf.mxu1  ;;  %v9958_v62 = vpop.f32.mrf.mxu0  ;;  %v6955_v58 = vpack.c.b16 %v35259_v23, %v35257_v57  ;;  %v35267_v57 = vld [vmem:[#allocation77_spill] sm:$0xff] }
 0x4a9   : > { %v9872_v3 = vadd.f32 %v9871_v28, %v30189_v11  ;;  %v9907_v21 = vpop.f32.mrf.mxu2  ;;  %v9936_v51 = vpop.f32.mrf.mxu3  ;;  %v35263_v28 = vunpack.c.l.b16 %v35262_v33 }
 0x4ab   : > { %v9901_v38 = vadd.f32 %v30290_v22, %v9872_v3  ;;  %10102 = vmatmul.bf16.gmra.mxu1 %v6904_v53  ;;  %10189 = vmatmul.bf16.gmra.mxu0 %v6907_v63  ;;  %v35261_v63 = vunpack.c.l.b16 %v35260_v16 }
 0x4ad   : > { %v9930_v27 = vadd.f32 %v30292_v12, %v9901_v38  ;;  %10237 = vmatmul.bf16.vlgmr.msra.gmra.mxu2 %v6813_v24  ;;  %10266 = vmatmul.bf16.vlgmr.msra.gmra.mxu3 %v6814_v47  ;;  %v35255_v12 = vunpack.c.h.b16 %v35216_v7  ;;  %v6861_v7 = vpack.c.b16 %v35263_v28, %v35261_v63  ;;  %v30435_v38 = vld [vmem:[%s25576_s24 + $0x70] sm:$0xff] }
 0x4ae   : > { %v35269_v63 = vld [vmem:[#allocation76_spill] sm:$0xff] }
 0x4af   : > { %v30401_v11 = vadd.f32 %v9958_v62, %v9930_v27  ;;  %v6952_v55 = vpack.c.b16 %v35255_v12, %v35254_v4  ;;  %v35264_v62 = vunpack.c.h.b16 %v35260_v16  ;;  %v24298_v4 = vld [vmem:[%s34262_s1 + $0x7a8] sm:$0xff]  ;;  %v35270_v33 = vunpack.c.l.b16 %v35269_v63 }
 0x4b0   : > { %v9873_v6 = vpop.f32.mrf.mxu1  ;;  %v9960_v36 = vpop.f32.mrf.mxu0 }
 0x4b1   : > { %v9874_v61 = vadd.f32 %v9873_v6, %v30194_v2  ;;  %v10006_v40 = vpop.f32.mrf.mxu2  ;;  %v10035_v22 = vpop.f32.mrf.mxu3  ;;  %v6862_v3 = vpack.c.b16 %v35265_v19, %v35264_v62  ;;  %v24299_v6 = vld [vmem:[%s34262_s1 + $0x7b0] sm:$0xff]  ;;  %v35273_v62 = vunpack.c.h.b16 %v35269_v63  ;;  %v35277_v63 = vld [vmem:[#allocation78_spill] sm:$0xff] }
 0x4b3   : > { %v9903_v37 = vadd.f32 %v30331_v60, %v9874_v61  ;;  %v6764_v61 = vunpack.c.h.b16 %v30223_v48  ;;  %v35268_v48 = vunpack.c.l.b16 %v35267_v57 }
 0x4b5   : > { %v9932_v59 = vadd.f32 %v30333_v32, %v9903_v37  ;;  %v6767_v37 = vunpack.c.l.b16 %v30435_v38 }
 0x4b7   : > { %v30406_v10 = vadd.f32 %v9960_v36, %v9932_v59  ;;  %v24307_v59 = vld [vmem:[%s34262_s1 + $0x7f0] sm:$0xff]  ;;  %v6815_v23 = vpack.c.b16 %v35268_v48, %v6767_v37 }
 0x4b8   : > { %v9876_v53 = vpop.f32.mrf.mxu1  ;;  %v9963_v2 = vpop.f32.mrf.mxu0 }
 0x4b9   : > { %v9877_v45 = vadd.f32 %v9876_v53, %v30220_v14  ;;  %v30417_v60 = vpop.f32.mrf.mxu2  ;;  %v30419_v32 = vpop.f32.mrf.mxu3  ;;  %v24300_v14 = vld [vmem:[%s34262_s1 + $0x7b8] sm:$0xff] }
 0x4ba   : > { %10345 = vmatpush.bf16.msrb.mxu2 %v24300_v14  ;;  %v24305_v14 = vld [vmem:[%s34262_s1 + $0x7e0] sm:$0xff] }
 0x4bb   : > { %v9906_v15 = vadd.f32 %v9905_v17, %v9877_v45  ;;  %10107 = vmatmul.bf16.gmra.mxu1 %v6952_v55  ;;  %10194 = vmatmul.bf16.gmra.mxu0 %v6955_v58  ;;  %v24308_v17 = vld [vmem:[%s34262_s1 + $0x7f8] sm:$0xff]  ;;  %v35266_v55 = vunpack.c.h.b16 %v35225_v26  ;;  %v35271_v26 = vld [vmem:[#allocation79_spill] sm:$0xff] }
 0x4bc   : > { %10374 = vmatpush.bf16.msrb.mxu3 %v24308_v17  ;;  %v35272_v28 = vunpack.c.l.b16 %v35271_v26  ;;  %v35274_v19 = vunpack.c.h.b16 %v35271_v26  ;;  %v24296_v17 = vld [vmem:[%s34262_s1 + $0x798] sm:$0xff] }
 0x4bd   : > { %v9935_v30 = vadd.f32 %v9934_v50, %v9906_v15  ;;  %10242 = vmatmul.bf16.gmra.mxu2 %v6861_v7  ;;  %10271 = vmatmul.bf16.gmra.mxu3 %v6862_v3  ;;  %v24292_v15 = vld [vmem:[%s34262_s1 + $0x778] sm:$0xff] }
 0x4be   : > { %10346 = vmatpush.bf16.msrb.mxu2 %v24299_v6  ;;  %v6909_v7 = vpack.c.b16 %v35272_v28, %v35270_v33  ;;  %v6910_v3 = vpack.c.b16 %v35274_v19, %v35273_v62  ;;  %10316 = vmatpush.bf16.msra.mxu1 %v24292_v15  ;;  %v35278_v33 = vunpack.c.l.b16 %v35277_v63  ;;  %v35279_v26 = vld [vmem:[#allocation81_spill] sm:$0xff]  ;;  %v24302_v19 = vld [vmem:[%s34262_s1 + $0x7c8] sm:$0xff] }
 0x4bf   : > { %v30432_v24 = vadd.f32 %v9963_v2, %v9935_v30 }
 0x4c0   : > { %v9878_v34 = vpop.f32.mrf.mxu1  ;;  %v9965_v47 = vpop.f32.mrf.mxu0  ;;  %10375 = vmatpush.bf16.msrb.mxu3 %v24307_v59 }
 0x4c1   : > { %v9879_v35 = vadd.f32 %v9878_v34, %v30244_v44  ;;  %v30441_v50 = vpop.f32.mrf.mxu2  ;;  %v30443_v27 = vpop.f32.mrf.mxu3 }
 0x4c2   : > { %10347 = vmatpush.bf16.msrb.mxu2 %v24298_v4  ;;  %v24295_v4 = vld [vmem:[%s34262_s1 + $0x790] sm:$0xff] }
 0x4c3   : > { %v9908_v36 = vadd.f32 %v9907_v21, %v9879_v35  ;;  %v6812_v21 = vpack.c.b16 %v35266_v55, %v6764_v61 }
 0x4c5   : > { %v9937_v44 = vadd.f32 %v9936_v51, %v9908_v36  ;;  %v24306_v51 = vld [vmem:[%s34262_s1 + $0x7e8] sm:$0xff]  ;;  %v24316_v36 = vld [vmem:[%s34262_s1 + $0x838] sm:$0xff] }
 0x4c6   : > { %10376 = vmatpush.bf16.msrb.mxu3 %v24306_v51  ;;  %10403 = vmatpush.bf16.msra.mxu0 %v24316_v36  ;;  %v35276_v51 = vunpack.c.h.b16 %v35237_v46 }
 0x4c7   : > { %v30456_v12 = vadd.f32 %v9965_v47, %v9937_v44  ;;  %v24291_v47 = vld [vmem:[%s34262_s1 + $0x770] sm:$0xff]  ;;  %v24290_v44 = vld [vmem:[%s34262_s1 + $0x768] sm:$0xff] }
 0x4c8   : > { %v9977_v58 = vpop.f32.mrf.mxu1  ;;  %v10064_v53 = vpop.f32.mrf.mxu0  ;;  %10317 = vmatpush.bf16.msra.mxu1 %v24291_v47 }
 0x4c9   : > { %v9978_v2 = vadd.f32 %v9977_v58, %v30281_v25  ;;  %v30466_v45 = vpop.f32.mrf.mxu2  ;;  %v30468_v16 = vpop.f32.mrf.mxu3  ;;  %v24297_v25 = vld [vmem:[%s34262_s1 + $0x7a0] sm:$0xff] }
 0x4ca   : > { %10348 = vmatpush.bf16.msrb.mxu2 %v24297_v25  ;;  %10377 = vmatpush.bf16.msrb.mxu3 %v24305_v14  ;;  %v35281_v25 = vld [vmem:[#allocation80_spill] sm:$0xff]  ;;  %v35283_v14 = vld [vmem:[#allocation83_spill] sm:$0xff] }
 0x4cb   : > { %v10007_v30 = vadd.f32 %v10006_v40, %v9978_v2  ;;  %10208 = vmatmul.bf16.vlgmr.msrb.gmra.mxu1 %v6812_v21  ;;  %10295 = vmatmul.bf16.vlgmr.msrb.gmra.mxu0 %v6815_v23  ;;  %v24315_v21 = vld [vmem:[%s34262_s1 + $0x830] sm:$0xff]  ;;  %v24289_v23 = vld [vmem:[%s34262_s1 + $0x760] sm:$0xff] }
 0x4cc   : > { %10318 = vmatpush.bf16.msra.mxu1 %v24290_v44  ;;  %10404 = vmatpush.bf16.msra.mxu0 %v24315_v21  ;;  %v24313_v44 = vld [vmem:[%s34262_s1 + $0x820] sm:$0xff] }
 0x4cd   : > { %v10036_v34 = vadd.f32 %v10035_v22, %v10007_v30  ;;  %10247 = vmatmul.bf16.gmra.mxu2 %v6909_v7  ;;  %10276 = vmatmul.bf16.gmra.mxu3 %v6910_v3  ;;  %v24304_v22 = vld [vmem:[%s34262_s1 + $0x7d8] sm:$0xff]  ;;  %v35282_v30 = vunpack.c.l.b16 %v35281_v25 }
 0x4ce   : > { %10349 = vmatpush.bf16.msrb.mxu2 %v24296_v17  ;;  %10378 = vmatpush.bf16.msrb.mxu3 %v24304_v22  ;;  %v35285_v17 = vunpack.c.h.b16 %v35281_v25  ;;  %v24288_v22 = vld [vmem:[%s34262_s1 + $0x758] sm:$0xff] }
 0x4cf   : > { %v30493_v40 = vadd.f32 %v10064_v53, %v10036_v34  ;;  %v35275_v53 = vunpack.c.h.b16 %v35235_v29  ;;  %v24314_v29 = vld [vmem:[%s34262_s1 + $0x828] sm:$0xff]  ;;  %v35284_v34 = vunpack.c.l.b16 %v35283_v14 }
 0x4d0   : > { %v9979_v35 = vpop.f32.mrf.mxu1  ;;  %v10066_v6 = vpop.f32.mrf.mxu0  ;;  %10319 = vmatpush.bf16.msra.mxu1 %v24289_v23  ;;  %10405 = vmatpush.bf16.msra.mxu0 %v24314_v29 }
 0x4d1   : > { %v9980_v61 = vadd.f32 %v9979_v35, %v30314_v43  ;;  %v30502_v37 = vpop.f32.mrf.mxu2  ;;  %v30504_v59 = vpop.f32.mrf.mxu3  ;;  %v24303_v43 = vld [vmem:[%s34262_s1 + $0x7d0] sm:$0xff]  ;;  %v6860_v2 = vpack.c.b16 %v35276_v51, %v35275_v53  ;;  %v6957_v47 = vpack.c.b16 %v35284_v34, %v35282_v30  ;;  %v35286_v35 = vunpack.c.h.b16 %v35283_v14  ;;  %v24286_v53 = vld [vmem:[%s34262_s1 + $0x748] sm:$0xff] }
 0x4d2   : > { %10350 = vmatpush.bf16.msrb.mxu2 %v24295_v4  ;;  %10379 = vmatpush.bf16.msrb.mxu3 %v24303_v43  ;;  %v35291_v30 = vld [vmem:[#allocation84_spill] sm:$0xff] }
 0x4d3   : > { %v10009_v55 = vadd.f32 %v30417_v60, %v9980_v61  ;;  %v24294_v60 = vld [vmem:[%s34262_s1 + $0x788] sm:$0xff]  ;;  %v24301_v61 = vld [vmem:[%s34262_s1 + $0x7c0] sm:$0xff]  ;;  %v35292_v14 = vunpack.c.l.b16 %v35291_v30 }
 0x4d4   : > { %10320 = vmatpush.bf16.msra.mxu1 %v24288_v22  ;;  %10406 = vmatpush.bf16.msra.mxu0 %v24313_v44  ;;  %v35293_v22 = vld [vmem:[#allocation86_spill] sm:$0xff] }
 0x4d5   : > { %v10038_v48 = vadd.f32 %v30419_v32, %v10009_v55  ;;  %v35280_v32 = vunpack.c.l.b16 %v35279_v26 }
 0x4d6   : > { %10351 = vmatpush.bf16.msrb.mxu2 %v24294_v60  ;;  %10380 = vmatpush.bf16.msrb.mxu3 %v24302_v19  ;;  %v35287_v19 = vunpack.c.h.b16 %v35247_v0 }
 0x4d7   : > { %v30526_v58 = vadd.f32 %v10066_v6, %v10038_v48  ;;  %v6863_v28 = vpack.c.b16 %v35280_v32, %v35278_v33  ;;  %v6958_v6 = vpack.c.b16 %v35286_v35, %v35285_v17  ;;  %v24312_v48 = vld [vmem:[%s34262_s1 + $0x818] sm:$0xff]  ;;  %v24311_v33 = vld [vmem:[%s34262_s1 + $0x810] sm:$0xff]  ;;  %v24310_v17 = vld [vmem:[%s34262_s1 + $0x808] sm:$0xff] }
 0x4d8   : > { %v9982_v7 = vpop.f32.mrf.mxu1  ;;  %v10069_v62 = vpop.f32.mrf.mxu0  ;;  %10407 = vmatpush.bf16.msra.mxu0 %v24312_v48 }
 0x4d9   : > { %v9983_v46 = vadd.f32 %v9982_v7, %v30360_v13  ;;  %v30543_v3 = vpop.f32.mrf.mxu2  ;;  %v30545_v15 = vpop.f32.mrf.mxu3  ;;  %v24293_v13 = vld [vmem:[%s34262_s1 + $0x780] sm:$0xff] }
 0x4da   : > { %10352 = vmatpush.bf16.msrb.mxu2 %v24293_v13  ;;  %10381 = vmatpush.bf16.msrb.mxu3 %v24301_v61 }
 0x4db   : > { %v10012_v36 = vadd.f32 %v30441_v50, %v9983_v46  ;;  %10213 = vmatmul.bf16.gmra.mxu1 %v6860_v2  ;;  %10300 = vmatmul.bf16.gmra.mxu0 %v6863_v28  ;;  %v24287_v50 = vld [vmem:[%s34262_s1 + $0x750] sm:$0xff]  ;;  %v321_v2 = vld [vmem:[%s25576_s24 + $0x78] sm:$0xff]  ;;  %v35289_v46 = vld [vmem:[#allocation82_spill] sm:$0xff] }
 0x4dc   : > { %10321 = vmatpush.bf16.msra.mxu1 %v24287_v50  ;;  %v6769_v28 = vunpack.c.l.b16 %v321_v2  ;;  %v6770_v7 = vunpack.c.h.b16 %v321_v2  ;;  %v35290_v25 = vunpack.c.l.b16 %v35289_v46  ;;  %10408 = vmatpush.bf16.msra.mxu0 %v24311_v33  ;;  %v35296_v33 = vunpack.c.h.b16 %v35256_v9  ;;  %v35304_v9 = vld [vmem:[#allocation89_spill] sm:$0xff] }
 0x4dd   : > { %v10041_v4 = vadd.f32 %v30443_v27, %v10012_v36  ;;  %10252 = vmatmul.bf16.gmra.mxu2 %v6957_v47  ;;  %10281 = vmatmul.bf16.gmra.mxu3 %v6958_v6  ;;  %v35295_v36 = vunpack.c.h.b16 %v35293_v22 }
 0x4de   : > { %v6911_v34 = vpack.c.b16 %v35292_v14, %v35290_v25  ;;  %v35302_v14 = vld [vmem:[#allocation87_spill] sm:$0xff] }
 0x4df   : > { %v30572_v55 = vadd.f32 %v10069_v62, %v10041_v4  ;;  %v6818_v61 = vpack.c.b16 %v35295_v36, %v6770_v7  ;;  %v24309_v4 = vld [vmem:[%s34262_s1 + $0x800] sm:$0xff] }
 0x4e0   : > { %v9984_v43 = vpop.f32.mrf.mxu1  ;;  %v10071_v21 = vpop.f32.mrf.mxu0  ;;  %10322 = vmatpush.bf16.msra.mxu1 %v24286_v53  ;;  %10409 = vmatpush.bf16.msra.mxu0 %v24310_v17  ;;  %v35307_v17 = vunpack.c.h.b16 %v35304_v9 }
 0x4e1   : > { %v9985_v27 = vadd.f32 %v9984_v43, %v30378_v42  ;;  %v10021_v23 = vpop.f32.mrf.mxu2  ;;  %v10050_v60 = vpop.f32.mrf.mxu3  ;;  %v24285_v42 = vld [vmem:[%s34262_s1 + $0x740] sm:$0xff] }
 0x4e3   : > { %v10014_v51 = vadd.f32 %v30466_v45, %v9985_v27  ;;  %v35288_v45 = vunpack.c.h.b16 %v35249_v20  ;;  %v35294_v20 = vunpack.c.l.b16 %v35293_v22 }
 0x4e4   : > { %10323 = vmatpush.bf16.msra.mxu1 %v24285_v42  ;;  %10410 = vmatpush.bf16.msra.mxu0 %v24309_v4  ;;  %v35300_v42 = vld [vmem:[#allocation88_spill] sm:$0xff] }
 0x4e5   : > { %v10043_v32 = vadd.f32 %v30468_v16, %v10014_v51  ;;  %v6908_v29 = vpack.c.b16 %v35288_v45, %v35287_v19  ;;  %v6817_v13 = vpack.c.b16 %v35294_v20, %v6769_v28  ;;  %v35298_v28 = vld [vmem:[#allocation85_spill] sm:$0xff]  ;;  %v35301_v19 = vunpack.c.l.b16 %v35300_v42 }
 0x4e6   : > { %v35299_v7 = vunpack.c.l.b16 %v35298_v28 }
 0x4e7   : > { %v30590_v62 = vadd.f32 %v10071_v21, %v10043_v32 }
 0x4e8   : > { %v9987_v16 = vpop.f32.mrf.mxu1  ;;  %v10074_v47 = vpop.f32.mrf.mxu0  ;;  %v6959_v45 = vpack.c.b16 %v35301_v19, %v35299_v7  ;;  %v35309_v7 = vld [vmem:[#allocation91_spill] sm:$0xff] }
 0x4e9   : > { %v9988_v35 = vadd.f32 %v9987_v16, %v30401_v11  ;;  %v10023_v6 = vpop.f32.mrf.mxu2  ;;  %v10052_v0 = vpop.f32.mrf.mxu3  ;;  %v35305_v16 = vunpack.c.l.b16 %v35304_v9 }
 0x4eb   : > { %v10017_v44 = vadd.f32 %v30502_v37, %v9988_v35  ;;  %10218 = vmatmul.bf16.gmra.mxu1 %v6908_v29  ;;  %10305 = vmatmul.bf16.gmra.mxu0 %v6911_v34  ;;  %v35303_v34 = vunpack.c.l.b16 %v35302_v14 }
 0x4ed   : > { %v10046_v50 = vadd.f32 %v30504_v59, %v10017_v44  ;;  %10353 = vmatmul.bf16.vlgmr.msrb.gmra.mxu2 %v6817_v13  ;;  %10382 = vmatmul.bf16.vlgmr.msrb.gmra.mxu3 %v6818_v61  ;;  %v35297_v59 = vunpack.c.h.b16 %v35258_v39  ;;  %v6865_v39 = vpack.c.b16 %v35305_v16, %v35303_v34  ;;  %v30647_v44 = vld [vmem:[%s25576_s24 + $0x80] sm:$0xff] }
 0x4ee   : > { %v35311_v34 = vld [vmem:[#allocation90_spill] sm:$0xff] }
 0x4ef   : > { %v30613_v11 = vadd.f32 %v10074_v47, %v10046_v50  ;;  %v6956_v32 = vpack.c.b16 %v35297_v59, %v35296_v33  ;;  %v35306_v47 = vunpack.c.h.b16 %v35302_v14  ;;  %v24330_v33 = vld [vmem:[%s34262_s1 + $0x8a8] sm:$0xff]  ;;  %v35312_v9 = vunpack.c.l.b16 %v35311_v34 }
 0x4f0   : > { %v9989_v43 = vpop.f32.mrf.mxu1  ;;  %v10076_v21 = vpop.f32.mrf.mxu0 }
 0x4f1   : > { %v9990_v48 = vadd.f32 %v9989_v43, %v30406_v10  ;;  %v10122_v27 = vpop.f32.mrf.mxu2  ;;  %v10151_v37 = vpop.f32.mrf.mxu3  ;;  %v6866_v35 = vpack.c.b16 %v35307_v17, %v35306_v47  ;;  %v24331_v43 = vld [vmem:[%s34262_s1 + $0x8b0] sm:$0xff]  ;;  %v35315_v47 = vunpack.c.h.b16 %v35311_v34 }
 0x4f2   : > { %v35319_v34 = vld [vmem:[#allocation92_spill] sm:$0xff] }
 0x4f3   : > { %v10019_v53 = vadd.f32 %v30543_v3, %v9990_v48  ;;  %v6768_v48 = vunpack.c.h.b16 %v30435_v38  ;;  %v35310_v38 = vunpack.c.l.b16 %v35309_v7 }
 0x4f5   : > { %v10048_v51 = vadd.f32 %v30545_v15, %v10019_v53  ;;  %v6771_v53 = vunpack.c.l.b16 %v30647_v44 }
 0x4f7   : > { %v30618_v2 = vadd.f32 %v10076_v21, %v10048_v51  ;;  %v24339_v51 = vld [vmem:[%s34262_s1 + $0x8f0] sm:$0xff]  ;;  %v6819_v19 = vpack.c.b16 %v35310_v38, %v6771_v53 }
 0x4f8   : > { %v9992_v29 = vpop.f32.mrf.mxu1  ;;  %v10079_v10 = vpop.f32.mrf.mxu0 }
 0x4f9   : > { %v9993_v25 = vadd.f32 %v9992_v29, %v30432_v24  ;;  %v30629_v3 = vpop.f32.mrf.mxu2  ;;  %v30631_v15 = vpop.f32.mrf.mxu3  ;;  %v24332_v24 = vld [vmem:[%s34262_s1 + $0x8b8] sm:$0xff] }
 0x4fa   : > { %10461 = vmatpush.bf16.msra.mxu2 %v24332_v24  ;;  %v24337_v24 = vld [vmem:[%s34262_s1 + $0x8e0] sm:$0xff] }
 0x4fb   : > { %v10022_v22 = vadd.f32 %v10021_v23, %v9993_v25  ;;  %10223 = vmatmul.bf16.gmra.mxu1 %v6956_v32  ;;  %10310 = vmatmul.bf16.gmra.mxu0 %v6959_v45  ;;  %v24340_v23 = vld [vmem:[%s34262_s1 + $0x8f8] sm:$0xff]  ;;  %v35308_v32 = vunpack.c.h.b16 %v35267_v57 }
 0x4fc   : > { %10490 = vmatpush.bf16.msra.mxu3 %v24340_v23  ;;  %v35313_v57 = vld [vmem:[#allocation93_spill] sm:$0xff] }
 0x4fd   : > { %v10051_v20 = vadd.f32 %v10050_v60, %v10022_v22  ;;  %10358 = vmatmul.bf16.gmra.mxu2 %v6865_v39  ;;  %10387 = vmatmul.bf16.gmra.mxu3 %v6866_v35  ;;  %v35314_v16 = vunpack.c.l.b16 %v35313_v57  ;;  %v35316_v17 = vunpack.c.h.b16 %v35313_v57  ;;  %v24324_v22 = vld [vmem:[%s34262_s1 + $0x878] sm:$0xff]  ;;  %v35321_v57 = vld [vmem:[#allocation95_spill] sm:$0xff] }
 0x4fe   : > { %10462 = vmatpush.bf16.msra.mxu2 %v24331_v43  ;;  %10432 = vmatpush.bf16.msrb.mxu1 %v24324_v22  ;;  %v24328_v23 = vld [vmem:[%s34262_s1 + $0x898] sm:$0xff] }
 0x4ff   : > { %v30644_v13 = vadd.f32 %v10079_v10, %v10051_v20  ;;  %v6913_v39 = vpack.c.b16 %v35314_v16, %v35312_v9  ;;  %v6914_v35 = vpack.c.b16 %v35316_v17, %v35315_v47  ;;  %v35320_v9 = vunpack.c.l.b16 %v35319_v34  ;;  %v24334_v17 = vld [vmem:[%s34262_s1 + $0x8c8] sm:$0xff] }
 0x500   : > { %v9994_v36 = vpop.f32.mrf.mxu1  ;;  %v10081_v61 = vpop.f32.mrf.mxu0  ;;  %10491 = vmatpush.bf16.msra.mxu3 %v24339_v51 }
 0x501   : > { %v9995_v4 = vadd.f32 %v9994_v36, %v30456_v12  ;;  %v30653_v60 = vpop.f32.mrf.mxu2  ;;  %v30655_v50 = vpop.f32.mrf.mxu3 }
 0x502   : > { %10463 = vmatpush.bf16.msra.mxu2 %v24330_v33  ;;  %v24327_v33 = vld [vmem:[%s34262_s1 + $0x890] sm:$0xff] }
 0x503   : > { %v10024_v21 = vadd.f32 %v10023_v6, %v9995_v4  ;;  %v6816_v6 = vpack.c.b16 %v35308_v32, %v6768_v48 }
 0x505   : > { %v10053_v12 = vadd.f32 %v10052_v0, %v10024_v21  ;;  %v24338_v0 = vld [vmem:[%s34262_s1 + $0x8e8] sm:$0xff]  ;;  %v24348_v21 = vld [vmem:[%s34262_s1 + $0x938] sm:$0xff] }
 0x506   : > { %10492 = vmatpush.bf16.msra.mxu3 %v24338_v0  ;;  %10519 = vmatpush.bf16.msrb.mxu0 %v24348_v21  ;;  %v35318_v0 = vunpack.c.h.b16 %v35279_v26 }
 0x507   : > { %v30668_v59 = vadd.f32 %v10081_v61, %v10053_v12  ;;  %v24323_v61 = vld [vmem:[%s34262_s1 + $0x870] sm:$0xff]  ;;  %v24322_v12 = vld [vmem:[%s34262_s1 + $0x868] sm:$0xff] }
 0x508   : > { %v10093_v45 = vpop.f32.mrf.mxu1  ;;  %v10180_v29 = vpop.f32.mrf.mxu0  ;;  %10433 = vmatpush.bf16.msrb.mxu1 %v24323_v61 }
 0x509   : > { %v10094_v10 = vadd.f32 %v10093_v45, %v30493_v40  ;;  %v30678_v25 = vpop.f32.mrf.mxu2  ;;  %v30680_v14 = vpop.f32.mrf.mxu3  ;;  %v24329_v40 = vld [vmem:[%s34262_s1 + $0x8a0] sm:$0xff] }
 0x50a   : > { %10464 = vmatpush.bf16.msra.mxu2 %v24329_v40  ;;  %10493 = vmatpush.bf16.msra.mxu3 %v24337_v24  ;;  %v35323_v40 = vld [vmem:[#allocation94_spill] sm:$0xff]  ;;  %v35325_v24 = vld [vmem:[#allocation97_spill] sm:$0xff] }
 0x50b   : > { %v10123_v20 = vadd.f32 %v10122_v27, %v10094_v10  ;;  %10324 = vmatmul.bf16.vlgmr.msra.gmra.mxu1 %v6816_v6  ;;  %10411 = vmatmul.bf16.vlgmr.msra.gmra.mxu0 %v6819_v19  ;;  %v24347_v6 = vld [vmem:[%s34262_s1 + $0x930] sm:$0xff]  ;;  %v24321_v19 = vld [vmem:[%s34262_s1 + $0x860] sm:$0xff] }
 0x50c   : > { %10434 = vmatpush.bf16.msrb.mxu1 %v24322_v12  ;;  %10520 = vmatpush.bf16.msrb.mxu0 %v24347_v6  ;;  %v24345_v12 = vld [vmem:[%s34262_s1 + $0x920] sm:$0xff] }
 0x50d   : > { %v10152_v36 = vadd.f32 %v10151_v37, %v10123_v20  ;;  %10363 = vmatmul.bf16.gmra.mxu2 %v6913_v39  ;;  %10392 = vmatmul.bf16.gmra.mxu3 %v6914_v35  ;;  %v24336_v37 = vld [vmem:[%s34262_s1 + $0x8d8] sm:$0xff]  ;;  %v35324_v20 = vunpack.c.l.b16 %v35323_v40 }
 0x50e   : > { %10465 = vmatpush.bf16.msra.mxu2 %v24328_v23  ;;  %10494 = vmatpush.bf16.msra.mxu3 %v24336_v37  ;;  %v35327_v23 = vunpack.c.h.b16 %v35323_v40  ;;  %v24320_v37 = vld [vmem:[%s34262_s1 + $0x858] sm:$0xff] }
 0x50f   : > { %v30705_v27 = vadd.f32 %v10180_v29, %v10152_v36  ;;  %v35317_v29 = vunpack.c.h.b16 %v35277_v63  ;;  %v24346_v63 = vld [vmem:[%s34262_s1 + $0x928] sm:$0xff]  ;;  %v35326_v36 = vunpack.c.l.b16 %v35325_v24 }
 0x510   : > { %v10095_v4 = vpop.f32.mrf.mxu1  ;;  %v10182_v43 = vpop.f32.mrf.mxu0  ;;  %10435 = vmatpush.bf16.msrb.mxu1 %v24321_v19  ;;  %10521 = vmatpush.bf16.msrb.mxu0 %v24346_v63 }
 0x511   : > { %v10096_v48 = vadd.f32 %v10095_v4, %v30526_v58  ;;  %v30714_v53 = vpop.f32.mrf.mxu2  ;;  %v30716_v51 = vpop.f32.mrf.mxu3  ;;  %v24335_v58 = vld [vmem:[%s34262_s1 + $0x8d0] sm:$0xff]  ;;  %v6864_v10 = vpack.c.b16 %v35318_v0, %v35317_v29  ;;  %v6961_v61 = vpack.c.b16 %v35326_v36, %v35324_v20  ;;  %v35328_v4 = vunpack.c.h.b16 %v35325_v24  ;;  %v24318_v29 = vld [vmem:[%s34262_s1 + $0x848] sm:$0xff]  ;;  %v35333_v20 = vld [vmem:[#allocation98_spill] sm:$0xff] }
 0x512   : > { %10466 = vmatpush.bf16.msra.mxu2 %v24327_v33  ;;  %10495 = vmatpush.bf16.msra.mxu3 %v24335_v58  ;;  %v35334_v24 = vunpack.c.l.b16 %v35333_v20 }
 0x513   : > { %v10125_v32 = vadd.f32 %v30629_v3, %v10096_v48  ;;  %v24326_v3 = vld [vmem:[%s34262_s1 + $0x888] sm:$0xff]  ;;  %v24333_v48 = vld [vmem:[%s34262_s1 + $0x8c0] sm:$0xff] }
 0x514   : > { %10436 = vmatpush.bf16.msrb.mxu1 %v24320_v37  ;;  %10522 = vmatpush.bf16.msrb.mxu0 %v24345_v12  ;;  %v35335_v37 = vld [vmem:[#allocation100_spill] sm:$0xff] }
 0x515   : > { %v10154_v38 = vadd.f32 %v30631_v15, %v10125_v32  ;;  %v35322_v15 = vunpack.c.l.b16 %v35321_v57 }
 0x516   : > { %10467 = vmatpush.bf16.msra.mxu2 %v24326_v3  ;;  %10496 = vmatpush.bf16.msra.mxu3 %v24334_v17  ;;  %v35329_v17 = vunpack.c.h.b16 %v35289_v46 }
 0x517   : > { %v30738_v45 = vadd.f32 %v10182_v43, %v10154_v38  ;;  %v6867_v16 = vpack.c.b16 %v35322_v15, %v35320_v9  ;;  %v6962_v43 = vpack.c.b16 %v35328_v4, %v35327_v23  ;;  %v24344_v38 = vld [vmem:[%s34262_s1 + $0x918] sm:$0xff]  ;;  %v24343_v9 = vld [vmem:[%s34262_s1 + $0x910] sm:$0xff]  ;;  %v24342_v23 = vld [vmem:[%s34262_s1 + $0x908] sm:$0xff] }
 0x518   : > { %v10098_v39 = vpop.f32.mrf.mxu1  ;;  %v10185_v47 = vpop.f32.mrf.mxu0  ;;  %10523 = vmatpush.bf16.msrb.mxu0 %v24344_v38 }
 0x519   : > { %v10099_v26 = vadd.f32 %v10098_v39, %v30572_v55  ;;  %v30755_v35 = vpop.f32.mrf.mxu2  ;;  %v30757_v22 = vpop.f32.mrf.mxu3  ;;  %v24325_v55 = vld [vmem:[%s34262_s1 + $0x880] sm:$0xff] }
 0x51a   : > { %10468 = vmatpush.bf16.msra.mxu2 %v24325_v55  ;;  %10497 = vmatpush.bf16.msra.mxu3 %v24333_v48 }
 0x51b   : > { %v10128_v21 = vadd.f32 %v30653_v60, %v10099_v26  ;;  %10329 = vmatmul.bf16.gmra.mxu1 %v6864_v10  ;;  %10416 = vmatmul.bf16.gmra.mxu0 %v6867_v16  ;;  %v24319_v60 = vld [vmem:[%s34262_s1 + $0x850] sm:$0xff]  ;;  %v323_v10 = vld [vmem:[%s25576_s24 + $0x88] sm:$0xff] }
 0x51c   : > { %10437 = vmatpush.bf16.msrb.mxu1 %v24319_v60  ;;  %v6773_v16 = vunpack.c.l.b16 %v323_v10  ;;  %v6774_v39 = vunpack.c.h.b16 %v323_v10  ;;  %v35331_v26 = vld [vmem:[#allocation96_spill] sm:$0xff]  ;;  %10524 = vmatpush.bf16.msrb.mxu0 %v24343_v9  ;;  %v35338_v9 = vunpack.c.h.b16 %v35298_v28  ;;  %v35346_v28 = vld [vmem:[#allocation103_spill] sm:$0xff] }
 0x51d   : > { %v10157_v33 = vadd.f32 %v30655_v50, %v10128_v21  ;;  %10368 = vmatmul.bf16.gmra.mxu2 %v6961_v61  ;;  %10397 = vmatmul.bf16.gmra.mxu3 %v6962_v43  ;;  %v35332_v40 = vunpack.c.l.b16 %v35331_v26  ;;  %v35337_v21 = vunpack.c.h.b16 %v35335_v37 }
 0x51f   : > { %v30784_v32 = vadd.f32 %v10185_v47, %v10157_v33  ;;  %v6915_v36 = vpack.c.b16 %v35334_v24, %v35332_v40  ;;  %v6822_v48 = vpack.c.b16 %v35337_v21, %v6774_v39  ;;  %v24341_v33 = vld [vmem:[%s34262_s1 + $0x900] sm:$0xff]  ;;  %v35344_v24 = vld [vmem:[#allocation101_spill] sm:$0xff] }
 0x520   : > { %v10100_v58 = vpop.f32.mrf.mxu1  ;;  %v10187_v6 = vpop.f32.mrf.mxu0  ;;  %10438 = vmatpush.bf16.msrb.mxu1 %v24318_v29  ;;  %10525 = vmatpush.bf16.msrb.mxu0 %v24342_v23  ;;  %v35349_v23 = vunpack.c.h.b16 %v35346_v28 }
 0x521   : > { %v10101_v50 = vadd.f32 %v10100_v58, %v30590_v62  ;;  %v10137_v19 = vpop.f32.mrf.mxu2  ;;  %v10166_v3 = vpop.f32.mrf.mxu3  ;;  %v24317_v62 = vld [vmem:[%s34262_s1 + $0x840] sm:$0xff] }
 0x523   : > { %v10130_v0 = vadd.f32 %v30678_v25, %v10101_v50  ;;  %v35330_v25 = vunpack.c.h.b16 %v35291_v30  ;;  %v35336_v30 = vunpack.c.l.b16 %v35335_v37 }
 0x524   : > { %10439 = vmatpush.bf16.msrb.mxu1 %v24317_v62  ;;  %10526 = vmatpush.bf16.msrb.mxu0 %v24341_v33  ;;  %v35342_v62 = vld [vmem:[#allocation102_spill] sm:$0xff] }
 0x525   : > { %v10159_v15 = vadd.f32 %v30680_v14, %v10130_v0  ;;  %v6912_v63 = vpack.c.b16 %v35330_v25, %v35329_v17  ;;  %v6821_v55 = vpack.c.b16 %v35336_v30, %v6773_v16  ;;  %v35340_v16 = vld [vmem:[#allocation99_spill] sm:$0xff]  ;;  %v35343_v17 = vunpack.c.l.b16 %v35342_v62 }
 0x526   : > { %v35341_v39 = vunpack.c.l.b16 %v35340_v16 }
 0x527   : > { %v30802_v47 = vadd.f32 %v10187_v6, %v10159_v15 }
 0x528   : > { %v10103_v14 = vpop.f32.mrf.mxu1  ;;  %v10190_v61 = vpop.f32.mrf.mxu0  ;;  %v6963_v25 = vpack.c.b16 %v35343_v17, %v35341_v39  ;;  %v35351_v39 = vld [vmem:[#allocation105_spill] sm:$0xff] }
 0x529   : > { %v10104_v4 = vadd.f32 %v10103_v14, %v30613_v11  ;;  %v10139_v43 = vpop.f32.mrf.mxu2  ;;  %v10168_v46 = vpop.f32.mrf.mxu3  ;;  %v35347_v14 = vunpack.c.l.b16 %v35346_v28 }
 0x52b   : > { %v10133_v12 = vadd.f32 %v30714_v53, %v10104_v4  ;;  %10334 = vmatmul.bf16.gmra.mxu1 %v6912_v63  ;;  %10421 = vmatmul.bf16.gmra.mxu0 %v6915_v36  ;;  %v35345_v36 = vunpack.c.l.b16 %v35344_v24 }
 0x52d   : > { %v10162_v60 = vadd.f32 %v30716_v51, %v10133_v12  ;;  %10469 = vmatmul.bf16.vlgmr.msra.gmra.mxu2 %v6821_v55  ;;  %10498 = vmatmul.bf16.vlgmr.msra.gmra.mxu3 %v6822_v48  ;;  %v35339_v51 = vunpack.c.h.b16 %v35300_v42  ;;  %v6869_v42 = vpack.c.b16 %v35347_v14, %v35345_v36  ;;  %v30859_v12 = vld [vmem:[%s25576_s24 + $0x90] sm:$0xff] }
 0x52e   : > { %v35353_v36 = vld [vmem:[#allocation104_spill] sm:$0xff] }
 0x52f   : > { %v30825_v11 = vadd.f32 %v10190_v61, %v10162_v60  ;;  %v6960_v15 = vpack.c.b16 %v35339_v51, %v35338_v9  ;;  %v35348_v61 = vunpack.c.h.b16 %v35344_v24  ;;  %v24362_v9 = vld [vmem:[%s34262_s1 + $0x9a8] sm:$0xff]  ;;  %v35354_v28 = vunpack.c.l.b16 %v35353_v36 }
 0x530   : > { %v10105_v58 = vpop.f32.mrf.mxu1  ;;  %v10192_v6 = vpop.f32.mrf.mxu0 }
 0x531   : > { %v10106_v38 = vadd.f32 %v10105_v58, %v30618_v2  ;;  %v10238_v50 = vpop.f32.mrf.mxu2  ;;  %v10267_v53 = vpop.f32.mrf.mxu3  ;;  %v6870_v4 = vpack.c.b16 %v35349_v23, %v35348_v61  ;;  %v24363_v58 = vld [vmem:[%s34262_s1 + $0x9b0] sm:$0xff]  ;;  %v35357_v61 = vunpack.c.h.b16 %v35353_v36  ;;  %v35361_v36 = vld [vmem:[#allocation106_spill] sm:$0xff] }
 0x533   : > { %v10135_v29 = vadd.f32 %v30755_v35, %v10106_v38  ;;  %v6772_v38 = vunpack.c.h.b16 %v30647_v44  ;;  %v35352_v44 = vunpack.c.l.b16 %v35351_v39 }
 0x535   : > { %v10164_v0 = vadd.f32 %v30757_v22, %v10135_v29  ;;  %v6775_v29 = vunpack.c.l.b16 %v30859_v12 }
 0x537   : > { %v30830_v10 = vadd.f32 %v10192_v6, %v10164_v0  ;;  %v24371_v0 = vld [vmem:[%s34262_s1 + $0x9f0] sm:$0xff]  ;;  %v6823_v17 = vpack.c.b16 %v35352_v44, %v6775_v29 }
 0x538   : > { %v10108_v63 = vpop.f32.mrf.mxu1  ;;  %v10195_v2 = vpop.f32.mrf.mxu0 }
 0x539   : > { %v10109_v40 = vadd.f32 %v10108_v63, %v30644_v13  ;;  %v30841_v35 = vpop.f32.mrf.mxu2  ;;  %v30843_v22 = vpop.f32.mrf.mxu3  ;;  %v24364_v13 = vld [vmem:[%s34262_s1 + $0x9b8] sm:$0xff] }
 0x53a   : > { %10577 = vmatpush.bf16.msrb.mxu2 %v24364_v13  ;;  %v24369_v13 = vld [vmem:[%s34262_s1 + $0x9e0] sm:$0xff] }
 0x53b   : > { %v10138_v37 = vadd.f32 %v10137_v19, %v10109_v40  ;;  %10339 = vmatmul.bf16.gmra.mxu1 %v6960_v15  ;;  %10426 = vmatmul.bf16.gmra.mxu0 %v6963_v25  ;;  %v24372_v19 = vld [vmem:[%s34262_s1 + $0x9f8] sm:$0xff]  ;;  %v35350_v15 = vunpack.c.h.b16 %v35309_v7  ;;  %v35355_v7 = vld [vmem:[#allocation107_spill] sm:$0xff] }
 0x53c   : > { %10606 = vmatpush.bf16.msrb.mxu3 %v24372_v19  ;;  %v35356_v14 = vunpack.c.l.b16 %v35355_v7  ;;  %v35358_v23 = vunpack.c.h.b16 %v35355_v7  ;;  %v24360_v19 = vld [vmem:[%s34262_s1 + $0x998] sm:$0xff] }
 0x53d   : > { %v10167_v30 = vadd.f32 %v10166_v3, %v10138_v37  ;;  %10474 = vmatmul.bf16.gmra.mxu2 %v6869_v42  ;;  %10503 = vmatmul.bf16.gmra.mxu3 %v6870_v4  ;;  %v24356_v37 = vld [vmem:[%s34262_s1 + $0x978] sm:$0xff] }
 0x53e   : > { %10578 = vmatpush.bf16.msrb.mxu2 %v24363_v58  ;;  %v6917_v42 = vpack.c.b16 %v35356_v14, %v35354_v28  ;;  %v6918_v4 = vpack.c.b16 %v35358_v23, %v35357_v61  ;;  %10548 = vmatpush.bf16.msra.mxu1 %v24356_v37  ;;  %v35362_v28 = vunpack.c.l.b16 %v35361_v36  ;;  %v35363_v7 = vld [vmem:[#allocation109_spill] sm:$0xff]  ;;  %v24366_v23 = vld [vmem:[%s34262_s1 + $0x9c8] sm:$0xff] }
 0x53f   : > { %v30856_v55 = vadd.f32 %v10195_v2, %v10167_v30 }
 0x540   : > { %v10110_v21 = vpop.f32.mrf.mxu1  ;;  %v10197_v48 = vpop.f32.mrf.mxu0  ;;  %10607 = vmatpush.bf16.msrb.mxu3 %v24371_v0 }
 0x541   : > { %v10111_v33 = vadd.f32 %v10110_v21, %v30668_v59  ;;  %v30865_v3 = vpop.f32.mrf.mxu2  ;;  %v30867_v60 = vpop.f32.mrf.mxu3 }
 0x542   : > { %10579 = vmatpush.bf16.msrb.mxu2 %v24362_v9  ;;  %v24359_v9 = vld [vmem:[%s34262_s1 + $0x990] sm:$0xff] }
 0x543   : > { %v10140_v6 = vadd.f32 %v10139_v43, %v10111_v33  ;;  %v6820_v43 = vpack.c.b16 %v35350_v15, %v6772_v38 }
 0x545   : > { %v10169_v59 = vadd.f32 %v10168_v46, %v10140_v6  ;;  %v24370_v46 = vld [vmem:[%s34262_s1 + $0x9e8] sm:$0xff]  ;;  %v24380_v6 = vld [vmem:[%s34262_s1 + $0xa38] sm:$0xff] }
 0x546   : > { %10608 = vmatpush.bf16.msrb.mxu3 %v24370_v46  ;;  %10635 = vmatpush.bf16.msra.mxu0 %v24380_v6  ;;  %v35360_v46 = vunpack.c.h.b16 %v35321_v57 }
 0x547   : > { %v30880_v51 = vadd.f32 %v10197_v48, %v10169_v59  ;;  %v24355_v48 = vld [vmem:[%s34262_s1 + $0x970] sm:$0xff]  ;;  %v24354_v59 = vld [vmem:[%s34262_s1 + $0x968] sm:$0xff] }
 0x548   : > { %v10209_v25 = vpop.f32.mrf.mxu1  ;;  %v10296_v63 = vpop.f32.mrf.mxu0  ;;  %10549 = vmatpush.bf16.msra.mxu1 %v24355_v48 }
 0x549   : > { %v10210_v2 = vadd.f32 %v10209_v25, %v30705_v27  ;;  %v30890_v40 = vpop.f32.mrf.mxu2  ;;  %v30892_v24 = vpop.f32.mrf.mxu3  ;;  %v24361_v27 = vld [vmem:[%s34262_s1 + $0x9a0] sm:$0xff] }
 0x54a   : > { %10580 = vmatpush.bf16.msrb.mxu2 %v24361_v27  ;;  %10609 = vmatpush.bf16.msrb.mxu3 %v24369_v13  ;;  %v35365_v27 = vld [vmem:[#allocation108_spill] sm:$0xff]  ;;  %v35367_v13 = vld [vmem:[#allocation111_spill] sm:$0xff] }
 0x54b   : > { %v10239_v30 = vadd.f32 %v10238_v50, %v10210_v2  ;;  %10440 = vmatmul.bf16.vlgmr.msrb.gmra.mxu1 %v6820_v43  ;;  %10527 = vmatmul.bf16.vlgmr.msrb.gmra.mxu0 %v6823_v17  ;;  %v24379_v43 = vld [vmem:[%s34262_s1 + $0xa30] sm:$0xff]  ;;  %v24353_v17 = vld [vmem:[%s34262_s1 + $0x960] sm:$0xff] }
 0x54c   : > { %10550 = vmatpush.bf16.msra.mxu1 %v24354_v59  ;;  %10636 = vmatpush.bf16.msra.mxu0 %v24379_v43  ;;  %v24377_v59 = vld [vmem:[%s34262_s1 + $0xa20] sm:$0xff] }
 0x54d   : > { %v10268_v21 = vadd.f32 %v10267_v53, %v10239_v30  ;;  %10479 = vmatmul.bf16.gmra.mxu2 %v6917_v42  ;;  %10508 = vmatmul.bf16.gmra.mxu3 %v6918_v4  ;;  %v24368_v53 = vld [vmem:[%s34262_s1 + $0x9d8] sm:$0xff]  ;;  %v35366_v30 = vunpack.c.l.b16 %v35365_v27 }
 0x54e   : > { %10581 = vmatpush.bf16.msrb.mxu2 %v24360_v19  ;;  %10610 = vmatpush.bf16.msrb.mxu3 %v24368_v53  ;;  %v35369_v19 = vunpack.c.h.b16 %v35365_v27  ;;  %v24352_v53 = vld [vmem:[%s34262_s1 + $0x958] sm:$0xff] }
 0x54f   : > { %v30917_v50 = vadd.f32 %v10296_v63, %v10268_v21  ;;  %v35359_v63 = vunpack.c.h.b16 %v35319_v34  ;;  %v24378_v34 = vld [vmem:[%s34262_s1 + $0xa28] sm:$0xff]  ;;  %v35368_v21 = vunpack.c.l.b16 %v35367_v13 }
 0x550   : > { %v10211_v33 = vpop.f32.mrf.mxu1  ;;  %v10298_v58 = vpop.f32.mrf.mxu0  ;;  %10551 = vmatpush.bf16.msra.mxu1 %v24353_v17  ;;  %10637 = vmatpush.bf16.msra.mxu0 %v24378_v34 }
 0x551   : > { %v10212_v38 = vadd.f32 %v10211_v33, %v30738_v45  ;;  %v30926_v29 = vpop.f32.mrf.mxu2  ;;  %v30928_v0 = vpop.f32.mrf.mxu3  ;;  %v24367_v45 = vld [vmem:[%s34262_s1 + $0x9d0] sm:$0xff]  ;;  %v6868_v2 = vpack.c.b16 %v35360_v46, %v35359_v63  ;;  %v6965_v48 = vpack.c.b16 %v35368_v21, %v35366_v30  ;;  %v35370_v33 = vunpack.c.h.b16 %v35367_v13  ;;  %v24350_v63 = vld [vmem:[%s34262_s1 + $0x948] sm:$0xff] }
 0x552   : > { %10582 = vmatpush.bf16.msrb.mxu2 %v24359_v9  ;;  %10611 = vmatpush.bf16.msrb.mxu3 %v24367_v45  ;;  %v35375_v30 = vld [vmem:[#allocation112_spill] sm:$0xff] }
 0x553   : > { %v10241_v15 = vadd.f32 %v30841_v35, %v10212_v38  ;;  %v24358_v35 = vld [vmem:[%s34262_s1 + $0x988] sm:$0xff]  ;;  %v24365_v38 = vld [vmem:[%s34262_s1 + $0x9c0] sm:$0xff]  ;;  %v35376_v13 = vunpack.c.l.b16 %v35375_v30 }
 0x554   : > { %10552 = vmatpush.bf16.msra.mxu1 %v24352_v53  ;;  %10638 = vmatpush.bf16.msra.mxu0 %v24377_v59  ;;  %v35377_v53 = vld [vmem:[#allocation114_spill] sm:$0xff] }
 0x555   : > { %v10270_v44 = vadd.f32 %v30843_v22, %v10241_v15  ;;  %v35364_v22 = vunpack.c.l.b16 %v35363_v7 }
 0x556   : > { %10583 = vmatpush.bf16.msrb.mxu2 %v24358_v35  ;;  %10612 = vmatpush.bf16.msrb.mxu3 %v24366_v23  ;;  %v35371_v23 = vunpack.c.h.b16 %v35331_v26 }
 0x557   : > { %v30950_v25 = vadd.f32 %v10298_v58, %v10270_v44  ;;  %v6871_v14 = vpack.c.b16 %v35364_v22, %v35362_v28  ;;  %v6966_v58 = vpack.c.b16 %v35370_v33, %v35369_v19  ;;  %v24376_v44 = vld [vmem:[%s34262_s1 + $0xa18] sm:$0xff]  ;;  %v24375_v28 = vld [vmem:[%s34262_s1 + $0xa10] sm:$0xff]  ;;  %v24374_v19 = vld [vmem:[%s34262_s1 + $0xa08] sm:$0xff] }
 0x558   : > { %v10214_v42 = vpop.f32.mrf.mxu1  ;;  %v10301_v61 = vpop.f32.mrf.mxu0  ;;  %10639 = vmatpush.bf16.msra.mxu0 %v24376_v44 }
 0x559   : > { %v10215_v57 = vadd.f32 %v10214_v42, %v30784_v32  ;;  %v30967_v4 = vpop.f32.mrf.mxu2  ;;  %v30969_v37 = vpop.f32.mrf.mxu3  ;;  %v24357_v32 = vld [vmem:[%s34262_s1 + $0x980] sm:$0xff] }
 0x55a   : > { %10584 = vmatpush.bf16.msrb.mxu2 %v24357_v32  ;;  %10613 = vmatpush.bf16.msrb.mxu3 %v24365_v38 }
 0x55b   : > { %v10244_v6 = vadd.f32 %v30865_v3, %v10215_v57  ;;  %10445 = vmatmul.bf16.gmra.mxu1 %v6868_v2  ;;  %10532 = vmatmul.bf16.gmra.mxu0 %v6871_v14  ;;  %v24351_v3 = vld [vmem:[%s34262_s1 + $0x950] sm:$0xff]  ;;  %v325_v2 = vld [vmem:[%s25576_s24 + $0x98] sm:$0xff]  ;;  %v35373_v57 = vld [vmem:[#allocation110_spill] sm:$0xff] }
 0x55c   : > { %10553 = vmatpush.bf16.msra.mxu1 %v24351_v3  ;;  %v6777_v14 = vunpack.c.l.b16 %v325_v2  ;;  %v6778_v42 = vunpack.c.h.b16 %v325_v2  ;;  %v35374_v27 = vunpack.c.l.b16 %v35373_v57  ;;  %10640 = vmatpush.bf16.msra.mxu0 %v24375_v28  ;;  %v35380_v28 = vunpack.c.h.b16 %v35340_v16  ;;  %v35388_v16 = vld [vmem:[#allocation117_spill] sm:$0xff] }
 0x55d   : > { %v10273_v9 = vadd.f32 %v30867_v60, %v10244_v6  ;;  %10484 = vmatmul.bf16.gmra.mxu2 %v6965_v48  ;;  %10513 = vmatmul.bf16.gmra.mxu3 %v6966_v58  ;;  %v35379_v6 = vunpack.c.h.b16 %v35377_v53 }
 0x55e   : > { %v6919_v21 = vpack.c.b16 %v35376_v13, %v35374_v27  ;;  %v35386_v13 = vld [vmem:[#allocation115_spill] sm:$0xff] }
 0x55f   : > { %v30996_v15 = vadd.f32 %v10301_v61, %v10273_v9  ;;  %v6826_v38 = vpack.c.b16 %v35379_v6, %v6778_v42  ;;  %v24373_v9 = vld [vmem:[%s34262_s1 + $0xa00] sm:$0xff] }
 0x560   : > { %v10216_v45 = vpop.f32.mrf.mxu1  ;;  %v10303_v43 = vpop.f32.mrf.mxu0  ;;  %10554 = vmatpush.bf16.msra.mxu1 %v24350_v63  ;;  %10641 = vmatpush.bf16.msra.mxu0 %v24374_v19  ;;  %v35391_v19 = vunpack.c.h.b16 %v35388_v16 }
 0x561   : > { %v10217_v60 = vadd.f32 %v10216_v45, %v30802_v47  ;;  %v10253_v17 = vpop.f32.mrf.mxu2  ;;  %v10282_v35 = vpop.f32.mrf.mxu3  ;;  %v24349_v47 = vld [vmem:[%s34262_s1 + $0x940] sm:$0xff] }
 0x563   : > { %v10246_v46 = vadd.f32 %v30890_v40, %v10217_v60  ;;  %v35372_v40 = vunpack.c.h.b16 %v35333_v20  ;;  %v35378_v20 = vunpack.c.l.b16 %v35377_v53 }
 0x564   : > { %10555 = vmatpush.bf16.msra.mxu1 %v24349_v47  ;;  %10642 = vmatpush.bf16.msra.mxu0 %v24373_v9  ;;  %v35384_v47 = vld [vmem:[#allocation116_spill] sm:$0xff] }
 0x565   : > { %v10275_v22 = vadd.f32 %v30892_v24, %v10246_v46  ;;  %v6916_v34 = vpack.c.b16 %v35372_v40, %v35371_v23  ;;  %v6825_v32 = vpack.c.b16 %v35378_v20, %v6777_v14  ;;  %v35382_v14 = vld [vmem:[#allocation113_spill] sm:$0xff]  ;;  %v35385_v23 = vunpack.c.l.b16 %v35384_v47 }
 0x566   : > { %v35383_v42 = vunpack.c.l.b16 %v35382_v14 }
 0x567   : > { %v31014_v61 = vadd.f32 %v10303_v43, %v10275_v22 }
 0x568   : > { %v10219_v24 = vpop.f32.mrf.mxu1  ;;  %v10306_v48 = vpop.f32.mrf.mxu0  ;;  %v6967_v40 = vpack.c.b16 %v35385_v23, %v35383_v42  ;;  %v35393_v42 = vld [vmem:[#allocation119_spill] sm:$0xff] }
 0x569   : > { %v10220_v33 = vadd.f32 %v10219_v24, %v30825_v11  ;;  %v10255_v58 = vpop.f32.mrf.mxu2  ;;  %v10284_v26 = vpop.f32.mrf.mxu3  ;;  %v35389_v24 = vunpack.c.l.b16 %v35388_v16 }
 0x56b   : > { %v10249_v59 = vadd.f32 %v30926_v29, %v10220_v33  ;;  %10450 = vmatmul.bf16.gmra.mxu1 %v6916_v34  ;;  %10537 = vmatmul.bf16.gmra.mxu0 %v6919_v21  ;;  %v35387_v21 = vunpack.c.l.b16 %v35386_v13 }
 0x56d   : > { %v10278_v3 = vadd.f32 %v30928_v0, %v10249_v59  ;;  %10585 = vmatmul.bf16.vlgmr.msrb.gmra.mxu2 %v6825_v32  ;;  %10614 = vmatmul.bf16.vlgmr.msrb.gmra.mxu3 %v6826_v38  ;;  %v35381_v0 = vunpack.c.h.b16 %v35342_v62  ;;  %v6873_v62 = vpack.c.b16 %v35389_v24, %v35387_v21  ;;  %v31071_v59 = vld [vmem:[%s25576_s24 + $0xa0] sm:$0xff] }
 0x56e   : > { %v35395_v21 = vld [vmem:[#allocation118_spill] sm:$0xff] }
 0x56f   : > { %v31037_v11 = vadd.f32 %v10306_v48, %v10278_v3  ;;  %v6964_v22 = vpack.c.b16 %v35381_v0, %v35380_v28  ;;  %v35390_v48 = vunpack.c.h.b16 %v35386_v13  ;;  %v24394_v28 = vld [vmem:[%s34262_s1 + $0xaa8] sm:$0xff]  ;;  %v35396_v16 = vunpack.c.l.b16 %v35395_v21 }
 0x570   : > { %v10221_v45 = vpop.f32.mrf.mxu1  ;;  %v10308_v43 = vpop.f32.mrf.mxu0 }
 0x571   : > { %v10222_v44 = vadd.f32 %v10221_v45, %v30830_v10  ;;  %v10354_v60 = vpop.f32.mrf.mxu2  ;;  %v10383_v29 = vpop.f32.mrf.mxu3  ;;  %v6874_v33 = vpack.c.b16 %v35391_v19, %v35390_v48  ;;  %v24395_v45 = vld [vmem:[%s34262_s1 + $0xab0] sm:$0xff]  ;;  %v35399_v48 = vunpack.c.h.b16 %v35395_v21 }
 0x572   : > { %v35403_v21 = vld [vmem:[#allocation120_spill] sm:$0xff] }
 0x573   : > { %v10251_v63 = vadd.f32 %v30967_v4, %v10222_v44  ;;  %v6776_v44 = vunpack.c.h.b16 %v30859_v12  ;;  %v35394_v12 = vunpack.c.l.b16 %v35393_v42 }
 0x575   : > { %v10280_v46 = vadd.f32 %v30969_v37, %v10251_v63  ;;  %v6779_v63 = vunpack.c.l.b16 %v31071_v59 }
 0x577   : > { %v31042_v2 = vadd.f32 %v10308_v43, %v10280_v46  ;;  %v24403_v46 = vld [vmem:[%s34262_s1 + $0xaf0] sm:$0xff]  ;;  %v6827_v23 = vpack.c.b16 %v35394_v12, %v6779_v63 }
 0x578   : > { %v10224_v34 = vpop.f32.mrf.mxu1  ;;  %v10311_v10 = vpop.f32.mrf.mxu0 }
 0x579   : > { %v10225_v27 = vadd.f32 %v10224_v34, %v30856_v55  ;;  %v31053_v4 = vpop.f32.mrf.mxu2  ;;  %v31055_v37 = vpop.f32.mrf.mxu3  ;;  %v24396_v55 = vld [vmem:[%s34262_s1 + $0xab8] sm:$0xff] }
 0x57a   : > { %10693 = vmatpush.bf16.msra.mxu2 %v24396_v55  ;;  %v24401_v55 = vld [vmem:[%s34262_s1 + $0xae0] sm:$0xff] }
 0x57b   : > { %v10254_v53 = vadd.f32 %v10253_v17, %v10225_v27  ;;  %10455 = vmatmul.bf16.gmra.mxu1 %v6964_v22  ;;  %10542 = vmatmul.bf16.gmra.mxu0 %v6967_v40  ;;  %v24404_v17 = vld [vmem:[%s34262_s1 + $0xaf8] sm:$0xff]  ;;  %v35392_v22 = vunpack.c.h.b16 %v35351_v39 }
 0x57c   : > { %10722 = vmatpush.bf16.msra.mxu3 %v24404_v17  ;;  %v35397_v39 = vld [vmem:[#allocation121_spill] sm:$0xff] }
 0x57d   : > { %v10283_v20 = vadd.f32 %v10282_v35, %v10254_v53  ;;  %10590 = vmatmul.bf16.gmra.mxu2 %v6873_v62  ;;  %10619 = vmatmul.bf16.gmra.mxu3 %v6874_v33  ;;  %v35398_v24 = vunpack.c.l.b16 %v35397_v39  ;;  %v35400_v19 = vunpack.c.h.b16 %v35397_v39  ;;  %v24388_v53 = vld [vmem:[%s34262_s1 + $0xa78] sm:$0xff]  ;;  %v35405_v39 = vld [vmem:[#allocation123_spill] sm:$0xff] }
 0x57e   : > { %10694 = vmatpush.bf16.msra.mxu2 %v24395_v45  ;;  %10664 = vmatpush.bf16.msrb.mxu1 %v24388_v53  ;;  %v24392_v17 = vld [vmem:[%s34262_s1 + $0xa98] sm:$0xff] }
 0x57f   : > { %v31068_v32 = vadd.f32 %v10311_v10, %v10283_v20  ;;  %v6921_v62 = vpack.c.b16 %v35398_v24, %v35396_v16  ;;  %v6922_v33 = vpack.c.b16 %v35400_v19, %v35399_v48  ;;  %v35404_v16 = vunpack.c.l.b16 %v35403_v21  ;;  %v24398_v19 = vld [vmem:[%s34262_s1 + $0xac8] sm:$0xff] }
 0x580   : > { %v10226_v6 = vpop.f32.mrf.mxu1  ;;  %v10313_v38 = vpop.f32.mrf.mxu0  ;;  %10723 = vmatpush.bf16.msra.mxu3 %v24403_v46 }
 0x581   : > { %v10227_v9 = vadd.f32 %v10226_v6, %v30880_v51  ;;  %v31077_v35 = vpop.f32.mrf.mxu2  ;;  %v31079_v3 = vpop.f32.mrf.mxu3 }
 0x582   : > { %10695 = vmatpush.bf16.msra.mxu2 %v24394_v28  ;;  %v24391_v28 = vld [vmem:[%s34262_s1 + $0xa90] sm:$0xff] }
 0x583   : > { %v10256_v43 = vadd.f32 %v10255_v58, %v10227_v9  ;;  %v6824_v58 = vpack.c.b16 %v35392_v22, %v6776_v44 }
 0x585   : > { %v10285_v51 = vadd.f32 %v10284_v26, %v10256_v43  ;;  %v24402_v26 = vld [vmem:[%s34262_s1 + $0xae8] sm:$0xff]  ;;  %v24412_v43 = vld [vmem:[%s34262_s1 + $0xb38] sm:$0xff] }
 0x586   : > { %10724 = vmatpush.bf16.msra.mxu3 %v24402_v26  ;;  %10751 = vmatpush.bf16.msrb.mxu0 %v24412_v43  ;;  %v35402_v26 = vunpack.c.h.b16 %v35363_v7 }
 0x587   : > { %v31092_v0 = vadd.f32 %v10313_v38, %v10285_v51  ;;  %v24387_v38 = vld [vmem:[%s34262_s1 + $0xa70] sm:$0xff]  ;;  %v24386_v51 = vld [vmem:[%s34262_s1 + $0xa68] sm:$0xff] }
 0x588   : > { %v10325_v40 = vpop.f32.mrf.mxu1  ;;  %v10412_v34 = vpop.f32.mrf.mxu0  ;;  %10665 = vmatpush.bf16.msrb.mxu1 %v24387_v38 }
 0x589   : > { %v10326_v10 = vadd.f32 %v10325_v40, %v30917_v50  ;;  %v31102_v27 = vpop.f32.mrf.mxu2  ;;  %v31104_v13 = vpop.f32.mrf.mxu3  ;;  %v24393_v50 = vld [vmem:[%s34262_s1 + $0xaa0] sm:$0xff] }
 0x58a   : > { %10696 = vmatpush.bf16.msra.mxu2 %v24393_v50  ;;  %10725 = vmatpush.bf16.msra.mxu3 %v24401_v55  ;;  %v35407_v50 = vld [vmem:[#allocation122_spill] sm:$0xff]  ;;  %v35409_v55 = vld [vmem:[#allocation125_spill] sm:$0xff] }
 0x58b   : > { %v10355_v20 = vadd.f32 %v10354_v60, %v10326_v10  ;;  %10556 = vmatmul.bf16.vlgmr.msra.gmra.mxu1 %v6824_v58  ;;  %10643 = vmatmul.bf16.vlgmr.msra.gmra.mxu0 %v6827_v23  ;;  %v24411_v58 = vld [vmem:[%s34262_s1 + $0xb30] sm:$0xff]  ;;  %v24385_v23 = vld [vmem:[%s34262_s1 + $0xa60] sm:$0xff] }
 0x58c   : > { %10666 = vmatpush.bf16.msrb.mxu1 %v24386_v51  ;;  %10752 = vmatpush.bf16.msrb.mxu0 %v24411_v58  ;;  %v24409_v51 = vld [vmem:[%s34262_s1 + $0xb20] sm:$0xff] }
 0x58d   : > { %v10384_v6 = vadd.f32 %v10383_v29, %v10355_v20  ;;  %10595 = vmatmul.bf16.gmra.mxu2 %v6921_v62  ;;  %10624 = vmatmul.bf16.gmra.mxu3 %v6922_v33  ;;  %v24400_v29 = vld [vmem:[%s34262_s1 + $0xad8] sm:$0xff]  ;;  %v35408_v20 = vunpack.c.l.b16 %v35407_v50 }
 0x58e   : > { %10697 = vmatpush.bf16.msra.mxu2 %v24392_v17  ;;  %10726 = vmatpush.bf16.msra.mxu3 %v24400_v29  ;;  %v35411_v17 = vunpack.c.h.b16 %v35407_v50  ;;  %v24384_v29 = vld [vmem:[%s34262_s1 + $0xa58] sm:$0xff] }
 0x58f   : > { %v31129_v60 = vadd.f32 %v10412_v34, %v10384_v6  ;;  %v35401_v34 = vunpack.c.h.b16 %v35361_v36  ;;  %v24410_v36 = vld [vmem:[%s34262_s1 + $0xb28] sm:$0xff]  ;;  %v35410_v6 = vunpack.c.l.b16 %v35409_v55 }
 0x590   : > { %v10327_v9 = vpop.f32.mrf.mxu1  ;;  %v10414_v45 = vpop.f32.mrf.mxu0  ;;  %10667 = vmatpush.bf16.msrb.mxu1 %v24385_v23  ;;  %10753 = vmatpush.bf16.msrb.mxu0 %v24410_v36 }
 0x591   : > { %v10328_v44 = vadd.f32 %v10327_v9, %v30950_v25  ;;  %v31138_v63 = vpop.f32.mrf.mxu2  ;;  %v31140_v46 = vpop.f32.mrf.mxu3  ;;  %v24399_v25 = vld [vmem:[%s34262_s1 + $0xad0] sm:$0xff]  ;;  %v6872_v10 = vpack.c.b16 %v35402_v26, %v35401_v34  ;;  %v6969_v38 = vpack.c.b16 %v35410_v6, %v35408_v20  ;;  %v35412_v9 = vunpack.c.h.b16 %v35409_v55  ;;  %v24382_v34 = vld [vmem:[%s34262_s1 + $0xa48] sm:$0xff]  ;;  %v35417_v20 = vld [vmem:[#allocation126_spill] sm:$0xff] }
 0x592   : > { %10698 = vmatpush.bf16.msra.mxu2 %v24391_v28  ;;  %10727 = vmatpush.bf16.msra.mxu3 %v24399_v25  ;;  %v35418_v55 = vunpack.c.l.b16 %v35417_v20 }
 0x593   : > { %v10357_v22 = vadd.f32 %v31053_v4, %v10328_v44  ;;  %v24390_v4 = vld [vmem:[%s34262_s1 + $0xa88] sm:$0xff]  ;;  %v24397_v44 = vld [vmem:[%s34262_s1 + $0xac0] sm:$0xff] }
 0x594   : > { %10668 = vmatpush.bf16.msrb.mxu1 %v24384_v29  ;;  %10754 = vmatpush.bf16.msrb.mxu0 %v24409_v51  ;;  %v35419_v29 = vld [vmem:[#allocation128_spill] sm:$0xff] }
 0x595   : > { %v10386_v12 = vadd.f32 %v31055_v37, %v10357_v22  ;;  %v35406_v37 = vunpack.c.l.b16 %v35405_v39 }
 0x596   : > { %10699 = vmatpush.bf16.msra.mxu2 %v24390_v4  ;;  %10728 = vmatpush.bf16.msra.mxu3 %v24398_v19  ;;  %v35413_v19 = vunpack.c.h.b16 %v35373_v57 }
 0x597   : > { %v31162_v40 = vadd.f32 %v10414_v45, %v10386_v12  ;;  %v6875_v24 = vpack.c.b16 %v35406_v37, %v35404_v16  ;;  %v6970_v45 = vpack.c.b16 %v35412_v9, %v35411_v17  ;;  %v24408_v12 = vld [vmem:[%s34262_s1 + $0xb18] sm:$0xff]  ;;  %v24407_v16 = vld [vmem:[%s34262_s1 + $0xb10] sm:$0xff]  ;;  %v24406_v17 = vld [vmem:[%s34262_s1 + $0xb08] sm:$0xff] }
 0x598   : > { %v10330_v62 = vpop.f32.mrf.mxu1  ;;  %v10417_v48 = vpop.f32.mrf.mxu0  ;;  %10755 = vmatpush.bf16.msrb.mxu0 %v24408_v12 }
 0x599   : > { %v10331_v7 = vadd.f32 %v10330_v62, %v30996_v15  ;;  %v31179_v33 = vpop.f32.mrf.mxu2  ;;  %v31181_v53 = vpop.f32.mrf.mxu3  ;;  %v24389_v15 = vld [vmem:[%s34262_s1 + $0xa80] sm:$0xff] }
 0x59a   : > { %10700 = vmatpush.bf16.msra.mxu2 %v24389_v15  ;;  %10729 = vmatpush.bf16.msra.mxu3 %v24397_v44 }
 0x59b   : > { %v10360_v43 = vadd.f32 %v31077_v35, %v10331_v7  ;;  %10561 = vmatmul.bf16.gmra.mxu1 %v6872_v10  ;;  %10648 = vmatmul.bf16.gmra.mxu0 %v6875_v24  ;;  %v24383_v35 = vld [vmem:[%s34262_s1 + $0xa50] sm:$0xff]  ;;  %v327_v10 = vld [vmem:[%s25576_s24 + $0xa8] sm:$0xff] }
 0x59c   : > { %10669 = vmatpush.bf16.msrb.mxu1 %v24383_v35  ;;  %v6781_v24 = vunpack.c.l.b16 %v327_v10  ;;  %v6782_v62 = vunpack.c.h.b16 %v327_v10  ;;  %v35415_v7 = vld [vmem:[#allocation124_spill] sm:$0xff]  ;;  %10756 = vmatpush.bf16.msrb.mxu0 %v24407_v16  ;;  %v35422_v16 = vunpack.c.h.b16 %v35382_v14  ;;  %v35429_v14 = vld [vmem:[#allocation130_spill] sm:$0xff] }
 0x59d   : > { %v10389_v28 = vadd.f32 %v31079_v3, %v10360_v43  ;;  %10600 = vmatmul.bf16.gmra.mxu2 %v6969_v38  ;;  %10629 = vmatmul.bf16.gmra.mxu3 %v6970_v45  ;;  %v35416_v50 = vunpack.c.l.b16 %v35415_v7  ;;  %v35421_v43 = vunpack.c.h.b16 %v35419_v29 }
 0x59f   : > { %v31208_v22 = vadd.f32 %v10417_v48, %v10389_v28  ;;  %v6923_v6 = vpack.c.b16 %v35418_v55, %v35416_v50  ;;  %v6830_v44 = vpack.c.b16 %v35421_v43, %v6782_v62  ;;  %v24405_v28 = vld [vmem:[%s34262_s1 + $0xb00] sm:$0xff]  ;;  %v35427_v50 = vld [vmem:[#allocation129_spill] sm:$0xff] }
 0x5a0   : > { %v10332_v25 = vpop.f32.mrf.mxu1  ;;  %v10419_v58 = vpop.f32.mrf.mxu0  ;;  %10670 = vmatpush.bf16.msrb.mxu1 %v24382_v34  ;;  %10757 = vmatpush.bf16.msrb.mxu0 %v24406_v17  ;;  %v35428_v55 = vunpack.c.l.b16 %v35427_v50 }
 0x5a1   : > { %v10333_v3 = vadd.f32 %v10332_v25, %v31014_v61  ;;  %v10369_v23 = vpop.f32.mrf.mxu2  ;;  %v10398_v4 = vpop.f32.mrf.mxu3  ;;  %v24381_v61 = vld [vmem:[%s34262_s1 + $0xa40] sm:$0xff] }
 0x5a3   : > { %v10362_v26 = vadd.f32 %v31102_v27, %v10333_v3  ;;  %v35414_v27 = vunpack.c.h.b16 %v35375_v30  ;;  %v35420_v30 = vunpack.c.l.b16 %v35419_v29 }
 0x5a4   : > { %10671 = vmatpush.bf16.msrb.mxu1 %v24381_v61  ;;  %10758 = vmatpush.bf16.msrb.mxu0 %v24405_v28  ;;  %v35426_v61 = vunpack.c.l.b16 %v28593_v56 }
 0x5a5   : > { %v10391_v37 = vadd.f32 %v31104_v13, %v10362_v26  ;;  %v6920_v36 = vpack.c.b16 %v35414_v27, %v35413_v19  ;;  %v6829_v15 = vpack.c.b16 %v35420_v30, %v6781_v24  ;;  %v35424_v24 = vld [vmem:[#allocation127_spill] sm:$0xff] }
 0x5a6   : > { %v35425_v62 = vunpack.c.l.b16 %v35424_v24 }
 0x5a7   : > { %v31226_v48 = vadd.f32 %v10419_v58, %v10391_v37 }
 0x5a8   : > { %v10335_v13 = vpop.f32.mrf.mxu1  ;;  %v10422_v38 = vpop.f32.mrf.mxu0  ;;  %v6971_v19 = vpack.c.b16 %v35426_v61, %v35425_v62 }
 0x5a9   : > { %v10336_v9 = vadd.f32 %v10335_v13, %v31037_v11  ;;  %v10371_v45 = vpop.f32.mrf.mxu2  ;;  %v10400_v57 = vpop.f32.mrf.mxu3  ;;  %v35431_v13 = vunpack.c.h.b16 %v35427_v50 }
 0x5ab   : > { %v10365_v51 = vadd.f32 %v31138_v63, %v10336_v9  ;;  %10566 = vmatmul.bf16.gmra.mxu1 %v6920_v36  ;;  %10653 = vmatmul.bf16.gmra.mxu0 %v6923_v6  ;;  %v35430_v6 = vunpack.c.l.b16 %v35429_v14 }
 0x5ad   : > { %v10394_v35 = vadd.f32 %v31140_v46, %v10365_v51  ;;  %10701 = vmatmul.bf16.vlgmr.msra.gmra.mxu2 %v6829_v15  ;;  %10730 = vmatmul.bf16.vlgmr.msra.gmra.mxu3 %v6830_v44  ;;  %v35423_v46 = vunpack.c.h.b16 %v35384_v47  ;;  %v6877_v47 = vpack.c.b16 %v35430_v6, %v35428_v55  ;;  %v31283_v44 = vld [vmem:[%s25576_s24 + $0xb0] sm:$0xff] }
 0x5af   : > { %v31249_v11 = vadd.f32 %v10422_v38, %v10394_v35  ;;  %v6968_v37 = vpack.c.b16 %v35423_v46, %v35422_v16  ;;  %v35432_v38 = vunpack.c.h.b16 %v35429_v14  ;;  %v24427_v35 = vld [vmem:[%s34262_s1 + $0xbb0] sm:$0xff]  ;;  %v35433_v46 = vunpack.c.h.b16 %v35393_v42 }
 0x5b0   : > { %v10337_v25 = vpop.f32.mrf.mxu1  ;;  %v10424_v58 = vpop.f32.mrf.mxu0  ;;  %v35437_v42 = vld [vmem:[#allocation132_spill] sm:$0xff] }
 0x5b1   : > { %v10338_v12 = vadd.f32 %v10337_v25, %v31042_v2  ;;  %v10470_v3 = vpop.f32.mrf.mxu2  ;;  %v10499_v63 = vpop.f32.mrf.mxu3  ;;  %v6878_v17 = vpack.c.b16 %v35432_v38, %v35431_v13  ;;  %v35438_v55 = vunpack.c.l.b16 %v35437_v42  ;;  %v24420_v38 = vld [vmem:[%s34262_s1 + $0xb78] sm:$0xff] }
 0x5b2   : > { %10780 = vmatpush.bf16.msra.mxu1 %v24420_v38 }
 0x5b3   : > { %v10367_v34 = vadd.f32 %v31179_v33, %v10338_v12  ;;  %v6783_v12 = vunpack.c.l.b16 %v31283_v44 }
 0x5b5   : > { %v10396_v26 = vadd.f32 %v31181_v53, %v10367_v34  ;;  %v24435_v34 = vld [vmem:[%s34262_s1 + $0xbf0] sm:$0xff] }
 0x5b7   : > { %v31254_v10 = vadd.f32 %v10424_v58, %v10396_v26  ;;  %v6780_v58 = vunpack.c.h.b16 %v31071_v59  ;;  %v24426_v26 = vld [vmem:[%s34262_s1 + $0xba8] sm:$0xff]  ;;  %v35434_v59 = vunpack.c.l.b16 %v28646_v8 }
 0x5b8   : > { %v10340_v27 = vpop.f32.mrf.mxu1  ;;  %v10427_v2 = vpop.f32.mrf.mxu0 }
 0x5b9   : > { %v10341_v36 = vadd.f32 %v10340_v27, %v31068_v32  ;;  %v31265_v33 = vpop.f32.mrf.mxu2  ;;  %v31267_v53 = vpop.f32.mrf.mxu3  ;;  %v24428_v32 = vld [vmem:[%s34262_s1 + $0xbb8] sm:$0xff] }
 0x5ba   : > { %10809 = vmatpush.bf16.msrb.mxu2 %v24428_v32  ;;  %v24419_v32 = vld [vmem:[%s34262_s1 + $0xb70] sm:$0xff] }
 0x5bb   : > { %v10370_v9 = vadd.f32 %v10369_v23, %v10341_v36  ;;  %10571 = vmatmul.bf16.gmra.mxu1 %v6968_v37  ;;  %10658 = vmatmul.bf16.gmra.mxu0 %v6971_v19  ;;  %v24436_v23 = vld [vmem:[%s34262_s1 + $0xbf8] sm:$0xff]  ;;  %v6831_v37 = vpack.c.b16 %v35434_v59, %v6783_v12  ;;  %v35435_v36 = vld [vmem:[#allocation131_spill] sm:$0xff] }
 0x5bc   : > { %10838 = vmatpush.bf16.msrb.mxu3 %v24436_v23  ;;  %v35436_v50 = vunpack.c.l.b16 %v35435_v36  ;;  %v35439_v6 = vunpack.c.h.b16 %v35435_v36  ;;  %10781 = vmatpush.bf16.msra.mxu1 %v24419_v32  ;;  %v24418_v12 = vld [vmem:[%s34262_s1 + $0xb68] sm:$0xff]  ;;  %v24416_v32 = vld [vmem:[%s34262_s1 + $0xb58] sm:$0xff] }
 0x5bd   : > { %v10399_v29 = vadd.f32 %v10398_v4, %v10370_v9  ;;  %10706 = vmatmul.bf16.gmra.mxu2 %v6877_v47  ;;  %10735 = vmatmul.bf16.gmra.mxu3 %v6878_v17  ;;  %v35440_v47 = vunpack.c.h.b16 %v35437_v42  ;;  %v24433_v9 = vld [vmem:[%s34262_s1 + $0xbe0] sm:$0xff]  ;;  %v24430_v42 = vld [vmem:[%s34262_s1 + $0xbc8] sm:$0xff] }
 0x5be   : > { %10810 = vmatpush.bf16.msrb.mxu2 %v24427_v35  ;;  %v6925_v14 = vpack.c.b16 %v35438_v55, %v35436_v50 }
 0x5bf   : > { %v31280_v30 = vadd.f32 %v10427_v2, %v10399_v29  ;;  %v6926_v13 = vpack.c.b16 %v35440_v47, %v35439_v6  ;;  %v35445_v6 = vld [vmem:[#allocation133_spill] sm:$0xff] }
 0x5c0   : > { %v10342_v15 = vpop.f32.mrf.mxu1  ;;  %v10429_v43 = vpop.f32.mrf.mxu0  ;;  %10839 = vmatpush.bf16.msrb.mxu3 %v24435_v34  ;;  %v24423_v34 = vld [vmem:[%s34262_s1 + $0xb90] sm:$0xff]  ;;  %10782 = vmatpush.bf16.msra.mxu1 %v24418_v12  ;;  %v35446_v47 = vunpack.c.l.b16 %v35445_v6 }
 0x5c1   : > { %v10343_v51 = vadd.f32 %v10342_v15, %v31092_v0  ;;  %v31289_v4 = vpop.f32.mrf.mxu2  ;;  %v31291_v28 = vpop.f32.mrf.mxu3  ;;  %v24424_v15 = vld [vmem:[%s34262_s1 + $0xb98] sm:$0xff] }
 0x5c2   : > { %10811 = vmatpush.bf16.msrb.mxu2 %v24426_v26  ;;  %v25019_v26 = vld [vmem:[%s34262_s1 + $0x1830] sm:$0xff] }
 0x5c3   : > { %v10372_v25 = vadd.f32 %v10371_v45, %v10343_v51  ;;  %v6828_v45 = vpack.c.b16 %v35433_v46, %v6780_v58  ;;  %v25020_v51 = vld [vmem:[%s34262_s1 + $0x1838] sm:$0xff] }
 0x5c4   : > { %15092 = vmatpush.bf16.msra.mxu0 %v25020_v51 }
 0x5c5   : > { %v10401_v0 = vadd.f32 %v10400_v57, %v10372_v25  ;;  %v24434_v57 = vld [vmem:[%s34262_s1 + $0xbe8] sm:$0xff] }
 0x5c6   : > { %10840 = vmatpush.bf16.msrb.mxu3 %v24434_v57  ;;  %v35443_v57 = vunpack.c.l.b16 %v28649_v31 }
 0x5c7   : > { %v31304_v16 = vadd.f32 %v10429_v43, %v10401_v0 }
 0x5c8   : > { %v10441_v62 = vpop.f32.mrf.mxu1  ;;  %v10528_v61 = vpop.f32.mrf.mxu0  ;;  %15093 = vmatpush.bf16.msra.mxu0 %v25019_v26  ;;  %v24414_v26 = vld [vmem:[%s34262_s1 + $0xb48] sm:$0xff] }
 0x5c9   : > { %v10442_v19 = vadd.f32 %v10441_v62, %v31129_v60  ;;  %v31314_v27 = vpop.f32.mrf.mxu2  ;;  %v31316_v2 = vpop.f32.mrf.mxu3  ;;  %v24425_v60 = vld [vmem:[%s34262_s1 + $0xba0] sm:$0xff]  ;;  %v35442_v62 = vunpack.c.h.b16 %v35405_v39 }
 0x5ca   : > { %10812 = vmatpush.bf16.msrb.mxu2 %v24425_v60  ;;  %10841 = vmatpush.bf16.msrb.mxu3 %v24433_v9 }
 0x5cb   : > { %v10471_v17 = vadd.f32 %v10470_v3, %v10442_v19  ;;  %10672 = vmatmul.bf16.vlgmr.msrb.gmra.mxu1 %v6828_v45  ;;  %10759 = vmatmul.bf16.vlgmr.msrb.gmra.mxu0 %v6831_v37  ;;  %v24417_v45 = vld [vmem:[%s34262_s1 + $0xb60] sm:$0xff]  ;;  %v35441_v37 = vunpack.c.h.b16 %v35403_v21  ;;  %v25018_v21 = vld [vmem:[%s34262_s1 + $0x1828] sm:$0xff] }
 0x5cc   : > { %10783 = vmatpush.bf16.msra.mxu1 %v24417_v45  ;;  %15094 = vmatpush.bf16.msra.mxu0 %v25018_v21  ;;  %v329_v45 = vld [vmem:[%s25576_s24 + $0xb8] sm:$0xff] }
 0x5cd   : > { %v10500_v29 = vadd.f32 %v10499_v63, %v10471_v17  ;;  %10711 = vmatmul.bf16.gmra.mxu2 %v6925_v14  ;;  %10740 = vmatmul.bf16.gmra.mxu3 %v6926_v13  ;;  %v24432_v63 = vld [vmem:[%s34262_s1 + $0xbd8] sm:$0xff]  ;;  %v35447_v13 = vld [vmem:[#allocation134_spill] sm:$0xff]  ;;  %v35449_v17 = vunpack.c.h.b16 %v35445_v6 }
 0x5ce   : > { %10813 = vmatpush.bf16.msrb.mxu2 %v24424_v15  ;;  %10842 = vmatpush.bf16.msrb.mxu3 %v24432_v63  ;;  %v35448_v38 = vunpack.c.l.b16 %v35447_v13  ;;  %v35450_v9 = vunpack.c.h.b16 %v35447_v13  ;;  %v35455_v13 = vld [vmem:[#allocation135_spill] sm:$0xff] }
 0x5cf   : > { %v31341_v3 = vadd.f32 %v10528_v61, %v10500_v29  ;;  %v6876_v61 = vpack.c.b16 %v35442_v62, %v35441_v37  ;;  %v6785_v62 = vunpack.c.l.b16 %v329_v45 }
 0x5d0   : > { %v10443_v43 = vpop.f32.mrf.mxu1  ;;  %v10530_v23 = vpop.f32.mrf.mxu0  ;;  %v6973_v60 = vpack.c.b16 %v35448_v38, %v35446_v47  ;;  %v6974_v29 = vpack.c.b16 %v35450_v9, %v35449_v17  ;;  %10784 = vmatpush.bf16.msra.mxu1 %v24416_v32 }
 0x5d1   : > { %v10444_v35 = vadd.f32 %v10443_v43, %v31162_v40  ;;  %v31350_v25 = vpop.f32.mrf.mxu2  ;;  %v31352_v58 = vpop.f32.mrf.mxu3  ;;  %v24431_v40 = vld [vmem:[%s34262_s1 + $0xbd0] sm:$0xff]  ;;  %v24429_v43 = vld [vmem:[%s34262_s1 + $0xbc0] sm:$0xff] }
 0x5d2   : > { %10814 = vmatpush.bf16.msrb.mxu2 %v24423_v34  ;;  %10843 = vmatpush.bf16.msrb.mxu3 %v24431_v40  ;;  %v25016_v34 = vld [vmem:[%s34262_s1 + $0x1818] sm:$0xff] }
 0x5d3   : > { %v10473_v0 = vadd.f32 %v31265_v33, %v10444_v35  ;;  %v24422_v33 = vld [vmem:[%s34262_s1 + $0xb88] sm:$0xff] }
 0x5d5   : > { %v10502_v46 = vadd.f32 %v31267_v53, %v10473_v0  ;;  %v35444_v53 = vunpack.c.l.b16 %v28730_v52 }
 0x5d6   : > { %10815 = vmatpush.bf16.msrb.mxu2 %v24422_v33  ;;  %10844 = vmatpush.bf16.msrb.mxu3 %v24430_v42  ;;  %v25015_v33 = vld [vmem:[%s34262_s1 + $0x1810] sm:$0xff] }
 0x5d7   : > { %v31374_v59 = vadd.f32 %v10530_v23, %v10502_v46  ;;  %v6879_v19 = vpack.c.b16 %v35444_v53, %v35443_v57  ;;  %v25017_v23 = vld [vmem:[%s34262_s1 + $0x1820] sm:$0xff]  ;;  %v35451_v53 = vunpack.c.h.b16 %v35415_v7 }
 0x5d8   : > { %v10446_v36 = vpop.f32.mrf.mxu1  ;;  %v10533_v50 = vpop.f32.mrf.mxu0  ;;  %15095 = vmatpush.bf16.msra.mxu0 %v25017_v23 }
 0x5d9   : > { %v10447_v39 = vadd.f32 %v10446_v36, %v31208_v22  ;;  %v31391_v55 = vpop.f32.mrf.mxu2  ;;  %v31393_v14 = vpop.f32.mrf.mxu3  ;;  %v24421_v22 = vld [vmem:[%s34262_s1 + $0xb80] sm:$0xff]  ;;  %v35453_v36 = vunpack.c.l.b16 %v28733_v41 }
 0x5da   : > { %10816 = vmatpush.bf16.msrb.mxu2 %v24421_v22  ;;  %10845 = vmatpush.bf16.msrb.mxu3 %v24429_v43 }
 0x5db   : > { %v10476_v15 = vadd.f32 %v31289_v4, %v10447_v39  ;;  %10677 = vmatmul.bf16.gmra.mxu1 %v6876_v61  ;;  %10764 = vmatmul.bf16.gmra.mxu0 %v6879_v19  ;;  %v24415_v4 = vld [vmem:[%s34262_s1 + $0xb50] sm:$0xff]  ;;  %v6786_v61 = vunpack.c.h.b16 %v329_v45  ;;  %v25014_v39 = vld [vmem:[%s34262_s1 + $0x1808] sm:$0xff] }
 0x5dc   : > { %10785 = vmatpush.bf16.msra.mxu1 %v24415_v4  ;;  %15096 = vmatpush.bf16.msra.mxu0 %v25016_v34 }
 0x5dd   : > { %v10505_v63 = vadd.f32 %v31291_v28, %v10476_v15  ;;  %10716 = vmatmul.bf16.gmra.mxu2 %v6973_v60  ;;  %10745 = vmatmul.bf16.gmra.mxu3 %v6974_v29  ;;  %v35457_v60 = vunpack.c.h.b16 %v35455_v13  ;;  %v25013_v29 = vld [vmem:[%s34262_s1 + $0x1800] sm:$0xff] }
 0x5df   : > { %v31420_v51 = vadd.f32 %v10533_v50, %v10505_v63  ;;  %v35454_v50 = vunpack.c.l.b16 %v28821_v1  ;;  %v6834_v17 = vpack.c.b16 %v35457_v60, %v6786_v61  ;;  %v25034_v60 = vld [vmem:[%s34262_s1 + $0x18a8] sm:$0xff] }
 0x5e0   : > { %v10448_v35 = vpop.f32.mrf.mxu1  ;;  %v10535_v12 = vpop.f32.mrf.mxu0  ;;  %10786 = vmatpush.bf16.msra.mxu1 %v24414_v26  ;;  %15097 = vmatpush.bf16.msra.mxu0 %v25015_v33  ;;  %v35461_v26 = vunpack.c.l.b16 %v28891_v18  ;;  %v25068_v18 = vld [vmem:[%s34262_s1 + $0x19b8] sm:$0xff] }
 0x5e1   : > { %v10449_v28 = vadd.f32 %v10448_v35, %v31226_v48  ;;  %v10485_v0 = vpop.f32.mrf.mxu2  ;;  %v10514_v40 = vpop.f32.mrf.mxu3  ;;  %v24413_v48 = vld [vmem:[%s34262_s1 + $0xb40] sm:$0xff]  ;;  %v6927_v42 = vpack.c.b16 %v35454_v50, %v35453_v36 }
 0x5e3   : > { %v10478_v46 = vadd.f32 %v31314_v27, %v10449_v28  ;;  %v35452_v27 = vunpack.c.h.b16 %v35417_v20  ;;  %v35456_v20 = vunpack.c.l.b16 %v35455_v13  ;;  %v35460_v28 = vunpack.c.l.b16 %v28824_v49  ;;  %v21700_v13 = vld [vmem:[%s25576_s24 + $0x180] sm:$0xf] }
 0x5e4   : > { %10787 = vmatpush.bf16.msra.mxu1 %v24413_v48  ;;  %15098 = vmatpush.bf16.msra.mxu0 %v25014_v39  ;;  %v35466_v48 = vunpack.c.h.b16 %v28907_v5 }
 0x5e5   : > { %v10507_v37 = vadd.f32 %v31316_v2, %v10478_v46  ;;  %v6924_v19 = vpack.c.b16 %v35452_v27, %v35451_v53  ;;  %v6833_v38 = vpack.c.b16 %v35456_v20, %v6785_v62  ;;  %v6975_v46 = vpack.c.b16 %v35461_v26, %v35460_v28  ;;  %v24845_v20 = vld [vmem:[%s25576_s24 + $0x23c] sm:$0xf0] }
 0x5e7   : > { %v31438_v57 = vadd.f32 %v10535_v12, %v10507_v37  ;;  %v35458_v12 = vunpack.c.h.b16 %v35424_v24  ;;  %v35464_v24 = vunpack.c.l.b16 %v28907_v5  ;;  %v25044_v5 = vld [vmem:[%s34262_s1 + $0x18f8] sm:$0xff] }
 0x5e8   : > { %v10451_v2 = vpop.f32.mrf.mxu1  ;;  %v10538_v21 = vpop.f32.mrf.mxu0  ;;  %15099 = vmatpush.bf16.msra.mxu0 %v25013_v29  ;;  %15179 = vmatpush.bf16.msra.mxu3 %v25044_v5  ;;  %v21701_v29 = vor.u32 %v24845_v20, %v21700_v13  ;;  %v24893_v5 = vld [vmem:[%s25576_s24 + $0x3bc] sm:$0xf0]  ;;  %v35474_v13 = vunpack.c.h.b16 %v28649_v31  ;;  %v35475_v20 = vunpack.c.h.b16 %v28730_v52 }
 0x5e9   : > { %v10452_v6 = vadd.f32 %v10451_v2, %v31249_v11  ;;  %v10487_v47 = vpop.f32.mrf.mxu2  ;;  %v10516_v7 = vpop.f32.mrf.mxu3 }
 0x5eb   : > { %v10481_v9 = vadd.f32 %v31350_v25, %v10452_v6  ;;  %10682 = vmatmul.bf16.gmra.mxu1 %v6924_v19  ;;  %10769 = vmatmul.bf16.gmra.mxu0 %v6927_v42  ;;  %v6784_v6 = vunpack.c.h.b16 %v31283_v44 }
 0x5ed   : > { %v10510_v32 = vadd.f32 %v31352_v58, %v10481_v9  ;;  %10817 = vmatmul.bf16.vlgmr.msrb.gmra.mxu2 %v6833_v38  ;;  %10846 = vmatmul.bf16.vlgmr.msrb.gmra.mxu3 %v6834_v17  ;;  %v35459_v58 = vunpack.c.h.b16 %v28593_v56  ;;  %v25043_v38 = vld [vmem:[%s34262_s1 + $0x18f0] sm:$0xff]  ;;  %v35467_v9 = vunpack.c.h.b16 %v28646_v8 }
 0x5ee   : > { %15180 = vmatpush.bf16.msra.mxu3 %v25043_v38  ;;  %v6880_v38 = vpack.c.b16 %v35475_v20, %v35474_v13 }
 0x5ef   : > { %v31461_v11 = vadd.f32 %v10538_v21, %v10510_v32  ;;  %v6972_v34 = vpack.c.b16 %v35459_v58, %v35458_v12  ;;  %v25035_v21 = vld [vmem:[%s34262_s1 + $0x18b0] sm:$0xff]  ;;  %v35470_v12 = vld [vmem:[#allocation138_spill] sm:$0xff] }
 0x5f0   : > { %v10453_v22 = vpop.f32.mrf.mxu1  ;;  %v10540_v15 = vpop.f32.mrf.mxu0  ;;  %v35471_v58 = vunpack.c.l.b16 %v35470_v12  ;;  %v35473_v28 = vunpack.c.h.b16 %v35470_v12 }
 0x5f1   : > { %v10454_v43 = vadd.f32 %v10453_v22, %v31254_v10  ;;  %v10586_v23 = vpop.f32.mrf.mxu2  ;;  %v10615_v25 = vpop.f32.mrf.mxu3  ;;  %v25042_v22 = vld [vmem:[%s34262_s1 + $0x18e8] sm:$0xff] }
 0x5f2   : > { %15181 = vmatpush.bf16.msra.mxu3 %v25042_v22  ;;  %v35478_v22 = vld [vmem:[#allocation140_spill] sm:$0xff] }
 0x5f3   : > { %v10483_v63 = vadd.f32 %v31391_v55, %v10454_v43  ;;  %v35481_v12 = vunpack.c.h.b16 %v35478_v22 }
 0x5f5   : > { %v10512_v4 = vadd.f32 %v31393_v14, %v10483_v63  ;;  %v35462_v14 = vld [vmem:[#allocation136_spill] sm:$0xff]  ;;  %v35468_v63 = vld [vmem:[#allocation137_spill] sm:$0xff] }
 0x5f6   : > { %v35463_v62 = vunpack.c.l.b16 %v35462_v14  ;;  %v35465_v56 = vunpack.c.h.b16 %v35462_v14  ;;  %v25027_v14 = vld [vmem:[%s34262_s1 + $0x1870] sm:$0xff] }
 0x5f7   : > { %v31466_v35 = vadd.f32 %v10540_v15, %v10512_v4  ;;  %v35469_v4 = vunpack.c.l.b16 %v35468_v63 }
 0x5f8   : > { %v10456_v45 = vpop.f32.mrf.mxu1  ;;  %v10543_v10 = vpop.f32.mrf.mxu0  ;;  %v6881_v61 = vpack.c.b16 %v35464_v24, %v35463_v62  ;;  %v6882_v53 = vpack.c.b16 %v35466_v48, %v35465_v56  ;;  %v25032_v62 = vld [vmem:[%s34262_s1 + $0x1898] sm:$0xff] }
 0x5f9   : > { %v10457_v33 = vadd.f32 %v10456_v45, %v31280_v30  ;;  %v31477_v37 = vpop.f32.mrf.mxu2  ;;  %v31479_v55 = vpop.f32.mrf.mxu3  ;;  %v25036_v30 = vld [vmem:[%s34262_s1 + $0x18b8] sm:$0xff]  ;;  %v6929_v8 = vpack.c.b16 %v35471_v58, %v35469_v4 }
 0x5fa   : > { %15150 = vmatpush.bf16.msra.mxu2 %v25036_v30  ;;  %v25052_v56 = vld [vmem:[%s34262_s1 + $0x1938] sm:$0xff]  ;;  %v25031_v30 = vld [vmem:[%s34262_s1 + $0x1890] sm:$0xff] }
 0x5fb   : > { %v10486_v27 = vadd.f32 %v10485_v0, %v10457_v33  ;;  %10687 = vmatmul.bf16.gmra.mxu1 %v6972_v34  ;;  %10774 = vmatmul.bf16.gmra.mxu0 %v6975_v46  ;;  %v35472_v34 = vunpack.c.h.b16 %v35468_v63  ;;  %v25028_v46 = vld [vmem:[%s34262_s1 + $0x1878] sm:$0xff] }
 0x5fc   : > { %15121 = vmatpush.bf16.msrb.mxu1 %v25028_v46  ;;  %15208 = vmatpush.bf16.msrb.mxu0 %v25052_v56  ;;  %v24941_v56 = vld [vmem:[%s25576_s24 + $0x53c] sm:$0xf0] }
 0x5fd   : > { %v10515_v19 = vadd.f32 %v10514_v40, %v10486_v27  ;;  %10822 = vmatmul.bf16.gmra.mxu2 %v6881_v61  ;;  %10851 = vmatmul.bf16.gmra.mxu3 %v6882_v53  ;;  %v6930_v26 = vpack.c.b16 %v35473_v28, %v35472_v34  ;;  %v25037_v28 = vld [vmem:[%s34262_s1 + $0x18c0] sm:$0xff] }
 0x5fe   : > { %15151 = vmatpush.bf16.msra.mxu2 %v25035_v21 }
 0x5ff   : > { %v31492_v36 = vadd.f32 %v10543_v10, %v10515_v19  ;;  %v25041_v10 = vld [vmem:[%s34262_s1 + $0x18e0] sm:$0xff]  ;;  %v25026_v19 = vld [vmem:[%s34262_s1 + $0x1868] sm:$0xff] }
 0x600   : > { %v10458_v50 = vpop.f32.mrf.mxu1  ;;  %v10545_v42 = vpop.f32.mrf.mxu0  ;;  %15182 = vmatpush.bf16.msra.mxu3 %v25041_v10  ;;  %15122 = vmatpush.bf16.msrb.mxu1 %v25027_v14 }
 0x601   : > { %v10459_v0 = vadd.f32 %v10458_v50, %v31304_v16  ;;  %v31498_v40 = vpop.f32.mrf.mxu2  ;;  %v31500_v2 = vpop.f32.mrf.mxu3 }
 0x602   : > { %15152 = vmatpush.bf16.msra.mxu2 %v25034_v60 }
 0x603   : > { %v10488_v39 = vadd.f32 %v10487_v47, %v10459_v0  ;;  %v6832_v47 = vpack.c.b16 %v35467_v9, %v6784_v6  ;;  %v25051_v0 = vld [vmem:[%s34262_s1 + $0x1930] sm:$0xff]  ;;  %v25038_v9 = vld [vmem:[%s34262_s1 + $0x18c8] sm:$0xff] }
 0x604   : > { %15123 = vmatpush.bf16.msrb.mxu1 %v25026_v19  ;;  %15209 = vmatpush.bf16.msrb.mxu0 %v25051_v0  ;;  %v21708_v19 = vld [vmem:[%s25576_s24 + $0x188] sm:$0xf] }
 0x605   : > { %v10517_v16 = vadd.f32 %v10516_v7, %v10488_v39  ;;  %v25030_v39 = vld [vmem:[%s34262_s1 + $0x1888] sm:$0xff] }
 0x606   : > { %v24846_v0 = vld [vmem:[%s25576_s24 + $0x244] sm:$0xf0] }
 0x607   : > { %v31514_v17 = vadd.f32 %v10545_v42, %v10517_v16  ;;  %v21892_v42 = vld [vmem:[%s25576_s24 + $0x300] sm:$0xf] }
 0x608   : > { %v10557_v44 = vpop.f32.mrf.mxu1  ;;  %v10644_v32 = vpop.f32.mrf.mxu0  ;;  %v21893_v16 = vor.u32 %v24893_v5, %v21892_v42  ;;  %v35482_v42 = vunpack.c.h.b16 %v28733_v41  ;;  %v21709_v41 = vor.u32 %v24846_v0, %v21708_v19  ;;  %v21716_v19 = vld [vmem:[%s25576_s24 + $0x190] sm:$0xf] }
 0x609   : > { %v10558_v7 = vadd.f32 %v10557_v44, %v31341_v3  ;;  %v31522_v15 = vpop.f32.mrf.mxu2  ;;  %v31524_v43 = vpop.f32.mrf.mxu3  ;;  %v25033_v3 = vld [vmem:[%s34262_s1 + $0x18a0] sm:$0xff]  ;;  %v35476_v44 = vld [vmem:[#allocation139_spill] sm:$0xff] }
 0x60a   : > { %15153 = vmatpush.bf16.msra.mxu2 %v25033_v3  ;;  %v35480_v4 = vunpack.c.h.b16 %v35476_v44 }
 0x60b   : > { %v10587_v45 = vadd.f32 %v10586_v23, %v10558_v7  ;;  %10788 = vmatmul.bf16.vlgmr.msra.gmra.mxu1 %v6832_v47  ;;  %15100 = vmatmul.bf16.vlgmr.msra.gmra.mxu0 %v21701_v29  ;;  %v25050_v47 = vld [vmem:[%s34262_s1 + $0x1928] sm:$0xff]  ;;  %v35479_v7 = vunpack.c.l.b16 %v35478_v22 }
 0x60c   : > { %v6978_v58 = vpack.c.b16 %v35481_v12, %v35480_v4  ;;  %15210 = vmatpush.bf16.msrb.mxu0 %v25050_v47  ;;  %v21900_v4 = vld [vmem:[%s25576_s24 + $0x308] sm:$0xf] }
 0x60d   : > { %v10616_v33 = vadd.f32 %v10615_v25, %v10587_v45  ;;  %10827 = vmatmul.bf16.gmra.mxu2 %v6929_v8  ;;  %10856 = vmatmul.bf16.gmra.mxu3 %v6930_v26  ;;  %v25040_v25 = vld [vmem:[%s34262_s1 + $0x18d8] sm:$0xff]  ;;  %v25049_v26 = vld [vmem:[%s34262_s1 + $0x1920] sm:$0xff] }
 0x60e   : > { %15154 = vmatpush.bf16.msra.mxu2 %v25032_v62  ;;  %15183 = vmatpush.bf16.msra.mxu3 %v25040_v25  ;;  %v25024_v8 = vld [vmem:[%s34262_s1 + $0x1858] sm:$0xff]  ;;  %v22084_v25 = vld [vmem:[%s25576_s24 + $0x480] sm:$0xf] }
 0x60f   : > { %v31549_v23 = vadd.f32 %v10644_v32, %v10616_v33  ;;  %v35477_v32 = vunpack.c.l.b16 %v35476_v44 }
 0x610   : > { %v10559_v24 = vpop.f32.mrf.mxu1  ;;  %v10646_v61 = vpop.f32.mrf.mxu0  ;;  %15211 = vmatpush.bf16.msrb.mxu0 %v25049_v26 }
 0x611   : > { %v10560_v48 = vadd.f32 %v10559_v24, %v31374_v59  ;;  %v31558_v53 = vpop.f32.mrf.mxu2  ;;  %v31560_v27 = vpop.f32.mrf.mxu3  ;;  %v25039_v59 = vld [vmem:[%s34262_s1 + $0x18d0] sm:$0xff]  ;;  %v6977_v63 = vpack.c.b16 %v35479_v7, %v35477_v32  ;;  %v25022_v24 = vld [vmem:[%s34262_s1 + $0x1848] sm:$0xff]  ;;  %v22276_v7 = vld [vmem:[%s25576_s24 + $0x600] sm:$0xf] }
 0x612   : > { %15155 = vmatpush.bf16.msra.mxu2 %v25031_v30  ;;  %15184 = vmatpush.bf16.msra.mxu3 %v25039_v59  ;;  %v25021_v30 = vld [vmem:[%s34262_s1 + $0x1840] sm:$0xff]  ;;  %v22085_v59 = vor.u32 %v24941_v56, %v22084_v25  ;;  %v25067_v25 = vld [vmem:[%s34262_s1 + $0x19b0] sm:$0xff] }
 0x613   : > { %v10589_v50 = vadd.f32 %v31477_v37, %v10560_v48  ;;  %v25025_v37 = vld [vmem:[%s34262_s1 + $0x1860] sm:$0xff] }
 0x614   : > { %15124 = vmatpush.bf16.msrb.mxu1 %v25025_v37  ;;  %v21710_v37 = vld [vmem:[%s25576_s24 + $0x248] sm:$0xf0] }
 0x615   : > { %v10618_v21 = vadd.f32 %v31479_v55, %v10589_v50 }
 0x616   : > { %15156 = vmatpush.bf16.msra.mxu2 %v25030_v39  ;;  %15185 = vmatpush.bf16.msra.mxu3 %v25038_v9 }
 0x617   : > { %v31584_v6 = vadd.f32 %v10646_v61, %v10618_v21  ;;  %v24822_v21 = vld [vmem:[%s25576_s24 + $0x18c] sm:$0xf] }
 0x618   : > { %v10562_v60 = vpop.f32.mrf.mxu1  ;;  %v10649_v55 = vpop.f32.mrf.mxu0  ;;  %15125 = vmatpush.bf16.msrb.mxu1 %v25024_v8 }
 0x619   : > { %v10563_v29 = vadd.f32 %v10562_v60, %v31420_v51  ;;  %v31597_v31 = vpop.f32.mrf.mxu2  ;;  %v31599_v52 = vpop.f32.mrf.mxu3  ;;  %v25029_v51 = vld [vmem:[%s34262_s1 + $0x1880] sm:$0xff]  ;;  %v21713_v60 = vor.u32 %v24822_v21, %v21710_v37  ;;  %v24942_v37 = vld [vmem:[%s25576_s24 + $0x544] sm:$0xf0] }
 0x61a   : > { %15157 = vmatpush.bf16.msra.mxu2 %v25029_v51  ;;  %15186 = vmatpush.bf16.msra.mxu3 %v25037_v28  ;;  %v21902_v28 = vld [vmem:[%s25576_s24 + $0x3c8] sm:$0xf0] }
 0x61b   : > { %v10592_v34 = vadd.f32 %v31498_v40, %v10563_v29  ;;  %10793 = vmatmul.bf16.gmra.mxu1 %v6880_v38  ;;  %15105 = vmatmul.bf16.gmra.mxu0 %v21893_v16  ;;  %v25023_v40 = vld [vmem:[%s34262_s1 + $0x1850] sm:$0xff] }
 0x61c   : > { %15126 = vmatpush.bf16.msrb.mxu1 %v25023_v40 }
 0x61d   : > { %v10621_v46 = vadd.f32 %v31500_v2, %v10592_v34  ;;  %10832 = vmatmul.bf16.gmra.mxu2 %v6977_v63  ;;  %10861 = vmatmul.bf16.gmra.mxu3 %v6978_v58  ;;  %v25048_v2 = vld [vmem:[%s34262_s1 + $0x1918] sm:$0xff]  ;;  %v35484_v58 = vunpack.c.h.b16 %v28824_v49  ;;  %v24870_v34 = vld [vmem:[%s25576_s24 + $0x30c] sm:$0xf] }
 0x61e   : > { %15212 = vmatpush.bf16.msrb.mxu0 %v25048_v2  ;;  %15266 = vmatpush.bf16.msrb.mxu2 %v25068_v18  ;;  %v25062_v18 = vld [vmem:[%s34262_s1 + $0x1988] sm:$0xff] }
 0x61f   : > { %v31626_v3 = vadd.f32 %v10649_v55, %v10621_v46  ;;  %v25045_v55 = vld [vmem:[%s34262_s1 + $0x1900] sm:$0xff]  ;;  %v6976_v8 = vpack.c.b16 %v2584_v54, %v35484_v58 }
 0x620   : > { %v10564_v45 = vpop.f32.mrf.mxu1  ;;  %v10651_v10 = vpop.f32.mrf.mxu0  ;;  %15127 = vmatpush.bf16.msrb.mxu1 %v25022_v24 }
 0x621   : > { %v10565_v33 = vadd.f32 %v10564_v45, %v31438_v57  ;;  %v10601_v14 = vpop.f32.mrf.mxu2  ;;  %v31632_v62 = vpop.f32.mrf.mxu3  ;;  %v25047_v57 = vld [vmem:[%s34262_s1 + $0x1910] sm:$0xff] }
 0x622   : > { %15213 = vmatpush.bf16.msrb.mxu0 %v25047_v57  ;;  %v24821_v57 = vld [vmem:[%s25576_s24 + $0x184] sm:$0xf]  ;;  %15267 = vmatpush.bf16.msrb.mxu2 %v25067_v25  ;;  %v24966_v25 = vld [vmem:[%s25576_s24 + $0x60c] sm:$0xf] }
 0x623   : > { %v10594_v61 = vadd.f32 %v31522_v15, %v10565_v33  ;;  %v35483_v15 = vunpack.c.h.b16 %v28821_v1 }
 0x624   : > { %15128 = vmatpush.bf16.msrb.mxu1 %v25021_v30  ;;  %v24847_v30 = vld [vmem:[%s25576_s24 + $0x24c] sm:$0xf0] }
 0x625   : > { %v10623_v48 = vadd.f32 %v31524_v43, %v10594_v61  ;;  %v6928_v5 = vpack.c.b16 %v35483_v15, %v35482_v42  ;;  %v25046_v43 = vld [vmem:[%s34262_s1 + $0x1908] sm:$0xff]  ;;  %v21717_v21 = vor.u32 %v24847_v30, %v21716_v19 }
 0x626   : > { %15214 = vmatpush.bf16.msrb.mxu0 %v25046_v43  ;;  %v22092_v15 = vld [vmem:[%s25576_s24 + $0x488] sm:$0xf] }
 0x627   : > { %v31648_v50 = vadd.f32 %v10651_v10, %v10623_v48  ;;  %v21905_v10 = vor.u32 %v24870_v34, %v21902_v28  ;;  %v21702_v48 = vld [vmem:[%s25576_s24 + $0x240] sm:$0xf0]  ;;  %v25063_v34 = vld [vmem:[%s34262_s1 + $0x1990] sm:$0xff]  ;;  %v25082_v19 = vld [vmem:[%s34262_s1 + $0x1a28] sm:$0xff] }
 0x628   : > { %v10567_v39 = vpop.f32.mrf.mxu1  ;;  %v10654_v13 = vpop.f32.mrf.mxu0  ;;  %v21705_v0 = vor.u32 %v24821_v57, %v21702_v48  ;;  %v25070_v48 = vld [vmem:[%s34262_s1 + $0x19c8] sm:$0xff] }
 0x629   : > { %v10568_v20 = vadd.f32 %v10567_v39, %v31461_v11  ;;  %v10603_v38 = vpop.f32.mrf.mxu2  ;;  %v10632_v16 = vpop.f32.mrf.mxu3  ;;  %v24918_v39 = vld [vmem:[%s25576_s24 + $0x48c] sm:$0xf] }
 0x62a   : > { %15215 = vmatpush.bf16.msrb.mxu0 %v25045_v55 }
 0x62b   : > { %v10597_v1 = vadd.f32 %v31558_v53, %v10568_v20  ;;  %10798 = vmatmul.bf16.gmra.mxu1 %v6928_v5  ;;  %15110 = vmatmul.bf16.gmra.mxu0 %v22085_v59  ;;  %v25066_v5 = vld [vmem:[%s34262_s1 + $0x19a8] sm:$0xff] }
 0x62c   : > { %15268 = vmatpush.bf16.msrb.mxu2 %v25066_v5 }
 0x62d   : > { %v10626_v9 = vadd.f32 %v31560_v27, %v10597_v1  ;;  %15158 = vmatmul.bf16.vlgmr.msra.gmra.mxu2 %v21709_v41  ;;  %15187 = vmatmul.bf16.vlgmr.msra.gmra.mxu3 %v21713_v60  ;;  %v24989_v27 = vld [vmem:[%s25576_s24 + $0x6bc] sm:$0xf0]  ;;  %v22093_v1 = vor.u32 %v24942_v37, %v22092_v15 }
 0x62e   : > { %v22277_v51 = vor.u32 %v24989_v27, %v22276_v7 }
 0x62f   : > { %v31666_v11 = vadd.f32 %v10654_v13, %v10626_v9  ;;  %v22094_v13 = vld [vmem:[%s25576_s24 + $0x548] sm:$0xf0]  ;;  %v25060_v9 = vld [vmem:[%s34262_s1 + $0x1978] sm:$0xff] }
 0x630   : > { %v10569_v47 = vpop.f32.mrf.mxu1  ;;  %v10656_v53 = vpop.f32.mrf.mxu0  ;;  %v22097_v55 = vor.u32 %v24918_v39, %v22094_v13  ;;  %15237 = vmatpush.bf16.msra.mxu1 %v25060_v9  ;;  %v25081_v39 = vld [vmem:[%s34262_s1 + $0x1a20] sm:$0xff]  ;;  %v25054_v9 = vld [vmem:[%s34262_s1 + $0x1948] sm:$0xff] }
 0x631   : > { %v10570_v29 = vadd.f32 %v10569_v47, %v31466_v35  ;;  %v31669_v44 = vpop.f32.mrf.mxu2  ;;  %v31671_v32 = vpop.f32.mrf.mxu3  ;;  %v24894_v35 = vld [vmem:[%s25576_s24 + $0x3c4] sm:$0xf0]  ;;  %v25065_v47 = vld [vmem:[%s34262_s1 + $0x19a0] sm:$0xff] }
 0x632   : > { %15269 = vmatpush.bf16.msrb.mxu2 %v25065_v47 }
 0x633   : > { %v10599_v22 = vadd.f32 %v31597_v31, %v10570_v29 }
 0x635   : > { %v10628_v63 = vadd.f32 %v31599_v52, %v10599_v22  ;;  %v21901_v52 = vor.u32 %v24894_v35, %v21900_v4  ;;  %v25059_v22 = vld [vmem:[%s34262_s1 + $0x1970] sm:$0xff]  ;;  %v25084_v4 = vld [vmem:[%s34262_s1 + $0x1a38] sm:$0xff]  ;;  %v25058_v35 = vld [vmem:[%s34262_s1 + $0x1968] sm:$0xff] }
 0x636   : > { %15238 = vmatpush.bf16.msra.mxu1 %v25059_v22  ;;  %15324 = vmatpush.bf16.msra.mxu0 %v25084_v4  ;;  %v24943_v22 = vld [vmem:[%s25576_s24 + $0x54c] sm:$0xf0] }
 0x637   : > { %v31678_v12 = vadd.f32 %v10656_v53, %v10628_v63 }
 0x638   : > { %v10572_v26 = vpop.f32.mrf.mxu1  ;;  %v10659_v46 = vpop.f32.mrf.mxu0 }
 0x639   : > { %v10573_v31 = vadd.f32 %v10572_v26, %v31492_v36  ;;  %v31688_v40 = vpop.f32.mrf.mxu2  ;;  %v31690_v45 = vpop.f32.mrf.mxu3  ;;  %v24869_v26 = vld [vmem:[%s25576_s24 + $0x304] sm:$0xf] }
 0x63a   : > { %15239 = vmatpush.bf16.msra.mxu1 %v25058_v35  ;;  %v24824_v35 = vld [vmem:[%s25576_s24 + $0x19c] sm:$0xf] }
 0x63b   : > { %v10602_v2 = vadd.f32 %v10601_v14, %v10573_v31  ;;  %10803 = vmatmul.bf16.gmra.mxu1 %v6976_v8  ;;  %15115 = vmatmul.bf16.gmra.mxu0 %v22277_v51  ;;  %v25076_v14 = vld [vmem:[%s34262_s1 + $0x19f8] sm:$0xff]  ;;  %v24895_v31 = vld [vmem:[%s25576_s24 + $0x3cc] sm:$0xf0] }
 0x63c   : > { %15295 = vmatpush.bf16.msrb.mxu3 %v25076_v14 }
 0x63d   : > { %v10631_v49 = vadd.f32 %v31632_v62, %v10602_v2  ;;  %15163 = vmatmul.bf16.gmra.mxu2 %v21901_v52  ;;  %15192 = vmatmul.bf16.gmra.mxu3 %v21905_v10  ;;  %v25071_v52 = vld [vmem:[%s34262_s1 + $0x19d0] sm:$0xff]  ;;  %v22284_v2 = vld [vmem:[%s25576_s24 + $0x608] sm:$0xf] }
 0x63e   : > { %v25083_v10 = vld [vmem:[%s34262_s1 + $0x1a30] sm:$0xff] }
 0x63f   : > { %v31696_v54 = vadd.f32 %v10659_v46, %v10631_v49  ;;  %v21894_v46 = vld [vmem:[%s25576_s24 + $0x3c0] sm:$0xf0]  ;;  %15325 = vmatpush.bf16.msra.mxu0 %v25083_v10 }
 0x640   : > { %v10574_v36 = vpop.f32.mrf.mxu1  ;;  %v10661_v33 = vpop.f32.mrf.mxu0  ;;  %v25057_v49 = vld [vmem:[%s34262_s1 + $0x1960] sm:$0xff] }
 0x641   : > { %v10575_v62 = vadd.f32 %v10574_v36, %v31514_v17  ;;  %v31702_v24 = vpop.f32.mrf.mxu2  ;;  %v31704_v61 = vpop.f32.mrf.mxu3  ;;  %v25075_v17 = vld [vmem:[%s34262_s1 + $0x19f0] sm:$0xff]  ;;  %15240 = vmatpush.bf16.msra.mxu1 %v25057_v49 }
 0x642   : > { %15296 = vmatpush.bf16.msrb.mxu3 %v25075_v17 }
 0x643   : > { %v10604_v56 = vadd.f32 %v10603_v38, %v10575_v62  ;;  %v25074_v38 = vld [vmem:[%s34262_s1 + $0x19e8] sm:$0xff]  ;;  %15326 = vmatpush.bf16.msra.mxu0 %v25082_v19  ;;  %v21916_v19 = vld [vmem:[%s25576_s24 + $0x318] sm:$0xf] }
 0x644   : > { %v24990_v62 = vld [vmem:[%s25576_s24 + $0x6c4] sm:$0xf0] }
 0x645   : > { %v10633_v42 = vadd.f32 %v10632_v16, %v10604_v56  ;;  %v22286_v56 = vld [vmem:[%s25576_s24 + $0x6c8] sm:$0xf0]  ;;  %v22285_v15 = vor.u32 %v24990_v62, %v22284_v2  ;;  %v25077_v2 = vld [vmem:[%s34262_s1 + $0x1a00] sm:$0xff] }
 0x646   : > { %15297 = vmatpush.bf16.msrb.mxu3 %v25074_v38  ;;  %v22289_v5 = vor.u32 %v24966_v25, %v22286_v56  ;;  %v22278_v56 = vld [vmem:[%s25576_s24 + $0x6c0] sm:$0xf0] }
 0x647   : > { %v31720_v59 = vadd.f32 %v10661_v33, %v10633_v42  ;;  %v21897_v33 = vor.u32 %v24869_v26, %v21894_v46  ;;  %15327 = vmatpush.bf16.msra.mxu0 %v25081_v39 }
 0x648   : > { %v10673_v43 = vpop.f32.mrf.mxu1  ;;  %v10760_v20 = vpop.f32.mrf.mxu0 }
 0x649   : > { %v10674_v16 = vadd.f32 %v10673_v43, %v31549_v23  ;;  %v31729_v41 = vpop.f32.mrf.mxu2  ;;  %v31731_v60 = vpop.f32.mrf.mxu3  ;;  %v25073_v23 = vld [vmem:[%s34262_s1 + $0x19e0] sm:$0xff] }
 0x64a   : > { %15298 = vmatpush.bf16.msrb.mxu3 %v25073_v23  ;;  %v22086_v23 = vld [vmem:[%s25576_s24 + $0x540] sm:$0xf0] }
 0x64b   : > { %v10703_v53 = vadd.f32 %v31669_v44, %v10674_v16  ;;  %15129 = vmatmul.bf16.vlgmr.msrb.gmra.mxu1 %v21705_v0  ;;  %15216 = vmatmul.bf16.vlgmr.msrb.gmra.mxu0 %v21717_v21  ;;  %v25064_v44 = vld [vmem:[%s34262_s1 + $0x1998] sm:$0xff]  ;;  %v25061_v21 = vld [vmem:[%s34262_s1 + $0x1980] sm:$0xff] }
 0x64c   : > { %15270 = vmatpush.bf16.msrb.mxu2 %v25064_v44  ;;  %v25056_v0 = vld [vmem:[%s34262_s1 + $0x1958] sm:$0xff] }
 0x64d   : > { %v10732_v29 = vadd.f32 %v31671_v32, %v10703_v53  ;;  %15168 = vmatmul.bf16.gmra.mxu2 %v22093_v1  ;;  %15197 = vmatmul.bf16.gmra.mxu3 %v22097_v55  ;;  %v25072_v32 = vld [vmem:[%s34262_s1 + $0x19d8] sm:$0xff]  ;;  %v24917_v53 = vld [vmem:[%s25576_s24 + $0x484] sm:$0xf] }
 0x64e   : > { %15299 = vmatpush.bf16.msrb.mxu3 %v25072_v32  ;;  %15241 = vmatpush.bf16.msra.mxu1 %v25056_v0  ;;  %v24896_v0 = vld [vmem:[%s25576_s24 + $0x3d4] sm:$0xf0] }
 0x64f   : > { %v31750_v7 = vadd.f32 %v10760_v20, %v10732_v29  ;;  %v22100_v29 = vld [vmem:[%s25576_s24 + $0x490] sm:$0xf] }
 0x650   : > { %v10675_v27 = vpop.f32.mrf.mxu1  ;;  %v10762_v63 = vpop.f32.mrf.mxu0  ;;  %15271 = vmatpush.bf16.msrb.mxu2 %v25063_v34  ;;  %v22101_v4 = vor.u32 %v24943_v22, %v22100_v29  ;;  %v21726_v34 = vld [vmem:[%s25576_s24 + $0x258] sm:$0xf0]  ;;  %v24823_v22 = vld [vmem:[%s25576_s24 + $0x194] sm:$0xf] }
 0x651   : > { %v10676_v58 = vadd.f32 %v10675_v27, %v31584_v6  ;;  %v31759_v8 = vpop.f32.mrf.mxu2  ;;  %v31761_v51 = vpop.f32.mrf.mxu3  ;;  %v21908_v6 = vld [vmem:[%s25576_s24 + $0x310] sm:$0xf]  ;;  %v21724_v27 = vld [vmem:[%s25576_s24 + $0x198] sm:$0xf]  ;;  %v21729_v10 = vor.u32 %v24824_v35, %v21726_v34 }
 0x652   : > { %v21909_v14 = vor.u32 %v24895_v31, %v21908_v6  ;;  %15300 = vmatpush.bf16.msrb.mxu3 %v25071_v52 }
 0x653   : > { %v10705_v28 = vadd.f32 %v31688_v40, %v10676_v58  ;;  %v24848_v58 = vld [vmem:[%s25576_s24 + $0x254] sm:$0xf0] }
 0x654   : > { %15272 = vmatpush.bf16.msrb.mxu2 %v25062_v18  ;;  %v21725_v52 = vor.u32 %v24848_v58, %v21724_v27  ;;  %v24849_v27 = vld [vmem:[%s25576_s24 + $0x25c] sm:$0xf0] }
 0x655   : > { %v10734_v40 = vadd.f32 %v31690_v45, %v10705_v28 }
 0x656   : > { %15301 = vmatpush.bf16.msrb.mxu3 %v25070_v48 }
 0x657   : > { %v31788_v36 = vadd.f32 %v10762_v63, %v10734_v40  ;;  %v25053_v63 = vld [vmem:[%s34262_s1 + $0x1940] sm:$0xff] }
 0x658   : > { %v10678_v57 = vpop.f32.mrf.mxu1  ;;  %v10765_v45 = vpop.f32.mrf.mxu0  ;;  %15273 = vmatpush.bf16.msrb.mxu2 %v25061_v21  ;;  %v24872_v21 = vld [vmem:[%s25576_s24 + $0x31c] sm:$0xf] }
 0x659   : > { %v10679_v30 = vadd.f32 %v10678_v57, %v31626_v3  ;;  %v31800_v17 = vpop.f32.mrf.mxu2  ;;  %v31802_v42 = vpop.f32.mrf.mxu3  ;;  %v25069_v3 = vld [vmem:[%s34262_s1 + $0x19c0] sm:$0xff]  ;;  %v22292_v57 = vld [vmem:[%s25576_s24 + $0x610] sm:$0xf] }
 0x65a   : > { %15302 = vmatpush.bf16.msrb.mxu3 %v25069_v3 }
 0x65b   : > { %v10708_v37 = vadd.f32 %v31702_v24, %v10679_v30  ;;  %15134 = vmatmul.bf16.gmra.mxu1 %v21897_v33  ;;  %15221 = vmatmul.bf16.gmra.mxu0 %v21909_v14  ;;  %v25055_v24 = vld [vmem:[%s34262_s1 + $0x1950] sm:$0xff] }
 0x65c   : > { %15242 = vmatpush.bf16.msra.mxu1 %v25055_v24  ;;  %v21917_v24 = vor.u32 %v24896_v0, %v21916_v19  ;;  %v25095_v0 = vld [vmem:[%s34262_s1 + $0x1a90] sm:$0xff] }
 0x65d   : > { %v10737_v13 = vadd.f32 %v31704_v61, %v10708_v37  ;;  %15173 = vmatmul.bf16.gmra.mxu2 %v22285_v15  ;;  %15202 = vmatmul.bf16.gmra.mxu3 %v22289_v5  ;;  %v25080_v61 = vld [vmem:[%s34262_s1 + $0x1a18] sm:$0xff] }
 0x65e   : > { %15328 = vmatpush.bf16.msra.mxu0 %v25080_v61 }
 0x65f   : > { %v31821_v43 = vadd.f32 %v10765_v45, %v10737_v13  ;;  %v24991_v45 = vld [vmem:[%s25576_s24 + $0x6cc] sm:$0xf0] }
 0x660   : > { %v10680_v20 = vpop.f32.mrf.mxu1  ;;  %v10767_v38 = vpop.f32.mrf.mxu0  ;;  %15243 = vmatpush.bf16.msra.mxu1 %v25054_v9  ;;  %v22293_v5 = vor.u32 %v24991_v45, %v22292_v57  ;;  %v25116_v45 = vld [vmem:[%s34262_s1 + $0x1b38] sm:$0xff] }
 0x661   : > { %v10681_v16 = vadd.f32 %v10680_v20, %v31648_v50  ;;  %v31827_v1 = vpop.f32.mrf.mxu2  ;;  %v31829_v55 = vpop.f32.mrf.mxu3  ;;  %v25079_v50 = vld [vmem:[%s34262_s1 + $0x1a10] sm:$0xff] }
 0x662   : > { %15329 = vmatpush.bf16.msra.mxu0 %v25079_v50  ;;  %v21718_v50 = vld [vmem:[%s25576_s24 + $0x250] sm:$0xf0] }
 0x663   : > { %v10710_v47 = vadd.f32 %v31729_v41, %v10681_v16  ;;  %v22089_v41 = vor.u32 %v24917_v53, %v22086_v23  ;;  %v25099_v23 = vld [vmem:[%s34262_s1 + $0x1ab0] sm:$0xff]  ;;  %v21721_v35 = vor.u32 %v24823_v22, %v21718_v50  ;;  %v25114_v22 = vld [vmem:[%s34262_s1 + $0x1b28] sm:$0xff] }
 0x664   : > { %15244 = vmatpush.bf16.msra.mxu1 %v25053_v63 }
 0x665   : > { %v10739_v44 = vadd.f32 %v31731_v60, %v10710_v47  ;;  %v25078_v60 = vld [vmem:[%s34262_s1 + $0x1a08] sm:$0xff] }
 0x666   : > { %15330 = vmatpush.bf16.msra.mxu0 %v25078_v60  ;;  %v22110_v60 = vld [vmem:[%s25576_s24 + $0x558] sm:$0xf0] }
 0x667   : > { %v31847_v32 = vadd.f32 %v10767_v38, %v10739_v44  ;;  %v21732_v44 = vld [vmem:[%s25576_s24 + $0x1a0] sm:$0xf] }
 0x668   : > { %v10683_v28 = vpop.f32.mrf.mxu1  ;;  %v10770_v26 = vpop.f32.mrf.mxu0  ;;  %v21733_v34 = vor.u32 %v24849_v27, %v21732_v44 }
 0x669   : > { %v10684_v46 = vadd.f32 %v10683_v28, %v31666_v11  ;;  %v10719_v6 = vpop.f32.mrf.mxu2  ;;  %v10748_v31 = vpop.f32.mrf.mxu3  ;;  %v24944_v28 = vld [vmem:[%s25576_s24 + $0x554] sm:$0xf0] }
 0x66a   : > { %15331 = vmatpush.bf16.msra.mxu0 %v25077_v2 }
 0x66b   : > { %v10713_v40 = vadd.f32 %v31759_v8, %v10684_v46  ;;  %15139 = vmatmul.bf16.gmra.mxu1 %v22089_v41  ;;  %15226 = vmatmul.bf16.gmra.mxu0 %v22101_v4  ;;  %v22108_v41 = vld [vmem:[%s25576_s24 + $0x498] sm:$0xf]  ;;  %v25098_v4 = vld [vmem:[%s34262_s1 + $0x1aa8] sm:$0xff] }
 0x66c   : > { %v22109_v2 = vor.u32 %v24944_v28, %v22108_v41  ;;  %v25088_v41 = vld [vmem:[%s34262_s1 + $0x1a58] sm:$0xff] }
 0x66d   : > { %v10742_v49 = vadd.f32 %v31761_v51, %v10713_v40  ;;  %15274 = vmatmul.bf16.vlgmr.msrb.gmra.mxu2 %v21725_v52  ;;  %15303 = vmatmul.bf16.vlgmr.msrb.gmra.mxu3 %v21729_v10  ;;  %v24965_v51 = vld [vmem:[%s25576_s24 + $0x604] sm:$0xf] }
 0x66e   : > { %v22281_v15 = vor.u32 %v24965_v51, %v22278_v56  ;;  %v25091_v51 = vld [vmem:[%s34262_s1 + $0x1a70] sm:$0xff]  ;;  %15440 = vmatpush.bf16.msrb.mxu0 %v25116_v45  ;;  %v24850_v45 = vld [vmem:[%s25576_s24 + $0x264] sm:$0xf0] }
 0x66f   : > { %v31861_v11 = vadd.f32 %v10770_v26, %v10742_v49  ;;  %v24920_v26 = vld [vmem:[%s25576_s24 + $0x49c] sm:$0xf] }
 0x670   : > { %v10685_v18 = vpop.f32.mrf.mxu1  ;;  %v10772_v8 = vpop.f32.mrf.mxu0  ;;  %v22113_v49 = vor.u32 %v24920_v26, %v22110_v60 }
 0x671   : > { %v10686_v33 = vadd.f32 %v10685_v18, %v31678_v12  ;;  %v31864_v14 = vpop.f32.mrf.mxu2  ;;  %v31866_v62 = vpop.f32.mrf.mxu3  ;;  %v21918_v12 = vld [vmem:[%s25576_s24 + $0x3d8] sm:$0xf0] }
 0x672   : > { %v21921_v20 = vor.u32 %v24872_v21, %v21918_v12  ;;  %v25092_v18 = vld [vmem:[%s34262_s1 + $0x1a78] sm:$0xff]  ;;  %v24871_v12 = vld [vmem:[%s25576_s24 + $0x314] sm:$0xf] }
 0x673   : > { %v10715_v25 = vadd.f32 %v31800_v17, %v10686_v33  ;;  %15353 = vmatpush.bf16.msrb.mxu1 %v25092_v18  ;;  %v24919_v18 = vld [vmem:[%s25576_s24 + $0x494] sm:$0xf] }
 0x675   : > { %v10744_v48 = vadd.f32 %v31802_v42, %v10715_v25 }
 0x677   : > { %v31875_v30 = vadd.f32 %v10772_v8, %v10744_v48  ;;  %v25097_v8 = vld [vmem:[%s34262_s1 + $0x1aa0] sm:$0xff]  ;;  %15354 = vmatpush.bf16.msrb.mxu1 %v25091_v51 }
 0x678   : > { %v10688_v37 = vpop.f32.mrf.mxu1  ;;  %v10775_v3 = vpop.f32.mrf.mxu0 }
 0x679   : > { %v10689_v39 = vadd.f32 %v10688_v37, %v31696_v54  ;;  %v31881_v13 = vpop.f32.mrf.mxu2  ;;  %v31883_v17 = vpop.f32.mrf.mxu3  ;;  %v25100_v54 = vld [vmem:[%s34262_s1 + $0x1ab8] sm:$0xff]  ;;  %v21910_v37 = vld [vmem:[%s25576_s24 + $0x3d0] sm:$0xf0] }
 0x67a   : > { %15382 = vmatpush.bf16.msra.mxu2 %v25100_v54  ;;  %v21913_v54 = vor.u32 %v24871_v12, %v21910_v37 }
 0x67b   : > { %v10718_v42 = vadd.f32 %v31827_v1, %v10689_v39  ;;  %15144 = vmatmul.bf16.gmra.mxu1 %v22281_v15  ;;  %15231 = vmatmul.bf16.gmra.mxu0 %v22293_v5  ;;  %v25108_v1 = vld [vmem:[%s34262_s1 + $0x1af8] sm:$0xff]  ;;  %v25090_v5 = vld [vmem:[%s34262_s1 + $0x1a68] sm:$0xff]  ;;  %v25103_v39 = vld [vmem:[%s34262_s1 + $0x1ad0] sm:$0xff] }
 0x67c   : > { %15411 = vmatpush.bf16.msra.mxu3 %v25108_v1  ;;  %15355 = vmatpush.bf16.msrb.mxu1 %v25090_v5  ;;  %v24968_v1 = vld [vmem:[%s25576_s24 + $0x61c] sm:$0xf]  ;;  %v21742_v5 = vld [vmem:[%s25576_s24 + $0x268] sm:$0xf0] }
 0x67d   : > { %v10747_v38 = vadd.f32 %v31829_v55, %v10718_v42  ;;  %15279 = vmatmul.bf16.gmra.mxu2 %v21917_v24  ;;  %15308 = vmatmul.bf16.gmra.mxu3 %v21921_v20  ;;  %v25115_v24 = vld [vmem:[%s34262_s1 + $0x1b30] sm:$0xff]  ;;  %v22300_v20 = vld [vmem:[%s25576_s24 + $0x618] sm:$0xf]  ;;  %v25089_v42 = vld [vmem:[%s34262_s1 + $0x1a60] sm:$0xff] }
 0x67e   : > { %15383 = vmatpush.bf16.msra.mxu2 %v25099_v23  ;;  %15441 = vmatpush.bf16.msrb.mxu0 %v25115_v24 }
 0x67f   : > { %v31890_v61 = vadd.f32 %v10775_v3, %v10747_v38  ;;  %v24897_v3 = vld [vmem:[%s25576_s24 + $0x3dc] sm:$0xf0]  ;;  %v25094_v38 = vld [vmem:[%s34262_s1 + $0x1a88] sm:$0xff] }
 0x680   : > { %v10690_v16 = vpop.f32.mrf.mxu1  ;;  %v10777_v9 = vpop.f32.mrf.mxu0  ;;  %15356 = vmatpush.bf16.msrb.mxu1 %v25089_v42 }
 0x681   : > { %v10691_v55 = vadd.f32 %v10690_v16, %v31720_v59  ;;  %v31896_v47 = vpop.f32.mrf.mxu2  ;;  %v31898_v53 = vpop.f32.mrf.mxu3  ;;  %v25107_v59 = vld [vmem:[%s34262_s1 + $0x1af0] sm:$0xff] }
 0x682   : > { %15412 = vmatpush.bf16.msra.mxu3 %v25107_v59  ;;  %15384 = vmatpush.bf16.msra.mxu2 %v25098_v4  ;;  %v25093_v4 = vld [vmem:[%s34262_s1 + $0x1a80] sm:$0xff] }
 0x683   : > { %v10720_v29 = vadd.f32 %v10719_v6, %v10691_v55  ;;  %v22302_v55 = vld [vmem:[%s25576_s24 + $0x6d8] sm:$0xf0]  ;;  %15442 = vmatpush.bf16.msrb.mxu0 %v25114_v22  ;;  %v21932_v22 = vld [vmem:[%s25576_s24 + $0x328] sm:$0xf] }
 0x684   : > { %15357 = vmatpush.bf16.msrb.mxu1 %v25088_v41  ;;  %v24874_v41 = vld [vmem:[%s25576_s24 + $0x32c] sm:$0xf] }
 0x685   : > { %v10749_v63 = vadd.f32 %v10748_v31, %v10720_v29  ;;  %v25106_v31 = vld [vmem:[%s34262_s1 + $0x1ae8] sm:$0xff] }
 0x686   : > { %15413 = vmatpush.bf16.msra.mxu3 %v25106_v31  ;;  %15385 = vmatpush.bf16.msra.mxu2 %v25097_v8  ;;  %v22102_v8 = vld [vmem:[%s25576_s24 + $0x550] sm:$0xf0] }
 0x687   : > { %v31914_v58 = vadd.f32 %v10777_v9, %v10749_v63  ;;  %v24992_v9 = vld [vmem:[%s25576_s24 + $0x6d4] sm:$0xf0]  ;;  %v22305_v63 = vor.u32 %v24968_v1, %v22302_v55  ;;  %v24967_v1 = vld [vmem:[%s25576_s24 + $0x614] sm:$0xf]  ;;  %v22308_v55 = vld [vmem:[%s25576_s24 + $0x620] sm:$0xf] }
 0x688   : > { %v10789_v46 = vpop.f32.mrf.mxu1  ;;  %v31919_v6 = vpop.f32.mrf.mxu0  ;;  %v22301_v59 = vor.u32 %v24992_v9, %v22300_v20  ;;  %v25109_v20 = vld [vmem:[%s34262_s1 + $0x1b00] sm:$0xff] }
 0x689   : > { %v10790_v52 = vadd.f32 %v10789_v46, %v31750_v7  ;;  %v31925_v10 = vpop.f32.mrf.mxu2  ;;  %v31927_v40 = vpop.f32.mrf.mxu3  ;;  %v25105_v7 = vld [vmem:[%s34262_s1 + $0x1ae0] sm:$0xff] }
 0x68a   : > { %15414 = vmatpush.bf16.msra.mxu3 %v25105_v7  ;;  %v24945_v7 = vld [vmem:[%s25576_s24 + $0x55c] sm:$0xf0] }
 0x68b   : > { %v10819_v33 = vadd.f32 %v31864_v14, %v10790_v52  ;;  %15245 = vmatmul.bf16.vlgmr.msra.gmra.mxu1 %v21721_v35  ;;  %15332 = vmatmul.bf16.vlgmr.msra.gmra.mxu0 %v21733_v34  ;;  %v25096_v14 = vld [vmem:[%s34262_s1 + $0x1a98] sm:$0xff]  ;;  %v25113_v34 = vld [vmem:[%s34262_s1 + $0x1b20] sm:$0xff] }
 0x68c   : > { %15386 = vmatpush.bf16.msra.mxu2 %v25096_v14  ;;  %15443 = vmatpush.bf16.msrb.mxu0 %v25113_v34  ;;  %v21740_v14 = vld [vmem:[%s25576_s24 + $0x1a8] sm:$0xf] }
 0x68d   : > { %v31940_v25 = vadd.f32 %v31866_v62, %v10819_v33  ;;  %15284 = vmatmul.bf16.gmra.mxu2 %v22109_v2  ;;  %15313 = vmatmul.bf16.gmra.mxu3 %v22113_v49  ;;  %v25104_v62 = vld [vmem:[%s34262_s1 + $0x1ad8] sm:$0xff]  ;;  %v25086_v2 = vld [vmem:[%s34262_s1 + $0x1a48] sm:$0xff]  ;;  %v22116_v33 = vld [vmem:[%s25576_s24 + $0x4a0] sm:$0xf] }
 0x68e   : > { %15415 = vmatpush.bf16.msra.mxu3 %v25104_v62  ;;  %v22105_v62 = vor.u32 %v24919_v18, %v22102_v8  ;;  %v25131_v8 = vld [vmem:[%s34262_s1 + $0x1bb0] sm:$0xff] }
 0x690   : > { %v10791_v56 = vpop.f32.mrf.mxu1  ;;  %v31948_v57 = vpop.f32.mrf.mxu0  ;;  %15387 = vmatpush.bf16.msra.mxu2 %v25095_v0 }
 0x691   : > { %v10792_v48 = vadd.f32 %v10791_v56, %v31788_v36  ;;  %v31957_v19 = vpop.f32.mrf.mxu2  ;;  %v31959_v15 = vpop.f32.mrf.mxu3  ;;  %v21924_v36 = vld [vmem:[%s25576_s24 + $0x320] sm:$0xf] }
 0x692   : > { %v21925_v16 = vor.u32 %v24897_v3, %v21924_v36  ;;  %15416 = vmatpush.bf16.msra.mxu3 %v25103_v39  ;;  %v25085_v56 = vld [vmem:[%s34262_s1 + $0x1a40] sm:$0xff]  ;;  %v21741_v3 = vor.u32 %v24850_v45, %v21740_v14  ;;  %v21748_v14 = vld [vmem:[%s25576_s24 + $0x1b0] sm:$0xf]  ;;  %v25130_v45 = vld [vmem:[%s34262_s1 + $0x1ba8] sm:$0xff] }
 0x693   : > { %v10821_v21 = vadd.f32 %v31881_v13, %v10792_v48  ;;  %v24826_v48 = vld [vmem:[%s25576_s24 + $0x1ac] sm:$0xf] }
 0x694   : > { %15388 = vmatpush.bf16.msra.mxu2 %v25094_v38  ;;  %v21745_v39 = vor.u32 %v24826_v48, %v21742_v5 }
 0x695   : > { %v31979_v13 = vadd.f32 %v31883_v17, %v10821_v21  ;;  %v25102_v17 = vld [vmem:[%s34262_s1 + $0x1ac8] sm:$0xff] }
 0x696   : > { %15417 = vmatpush.bf16.msra.mxu3 %v25102_v17 }
 0x698   : > { %v10794_v23 = vpop.f32.mrf.mxu1  ;;  %v31991_v29 = vpop.f32.mrf.mxu0  ;;  %15389 = vmatpush.bf16.msra.mxu2 %v25093_v4  ;;  %v21934_v4 = vld [vmem:[%s25576_s24 + $0x3e8] sm:$0xf0] }
 0x699   : > { %v10795_v50 = vadd.f32 %v10794_v23, %v31821_v43  ;;  %v32000_v44 = vpop.f32.mrf.mxu2  ;;  %v32002_v27 = vpop.f32.mrf.mxu3  ;;  %v25101_v43 = vld [vmem:[%s34262_s1 + $0x1ac0] sm:$0xff] }
 0x69a   : > { %15418 = vmatpush.bf16.msra.mxu3 %v25101_v43  ;;  %v24993_v23 = vld [vmem:[%s25576_s24 + $0x6dc] sm:$0xf0] }
 0x69b   : > { %v10824_v35 = vadd.f32 %v31896_v47, %v10795_v50  ;;  %15250 = vmatmul.bf16.gmra.mxu1 %v21913_v54  ;;  %15337 = vmatmul.bf16.gmra.mxu0 %v21925_v16  ;;  %v25087_v47 = vld [vmem:[%s34262_s1 + $0x1a50] sm:$0xff] }
 0x69c   : > { %15358 = vmatpush.bf16.msrb.mxu1 %v25087_v47 }
 0x69d   : > { %v32018_v28 = vadd.f32 %v31898_v53, %v10824_v35  ;;  %15289 = vmatmul.bf16.gmra.mxu2 %v22301_v59  ;;  %15318 = vmatmul.bf16.gmra.mxu3 %v22305_v63  ;;  %v25112_v53 = vld [vmem:[%s34262_s1 + $0x1b18] sm:$0xff]  ;;  %v22309_v59 = vor.u32 %v24993_v23, %v22308_v55  ;;  %v24898_v63 = vld [vmem:[%s25576_s24 + $0x3e4] sm:$0xf0]  ;;  %v25123_v23 = vld [vmem:[%s34262_s1 + $0x1b70] sm:$0xff] }
 0x69e   : > { %15444 = vmatpush.bf16.msrb.mxu0 %v25112_v53  ;;  %v21933_v47 = vor.u32 %v24898_v63, %v21932_v22  ;;  %v25148_v63 = vld [vmem:[%s34262_s1 + $0x1c38] sm:$0xff] }
 0x6a0   : > { %v10796_v26 = vpop.f32.mrf.mxu1  ;;  %v32023_v60 = vpop.f32.mrf.mxu0  ;;  %15359 = vmatpush.bf16.msrb.mxu1 %v25086_v2 }
 0x6a1   : > { %v10797_v46 = vadd.f32 %v10796_v26, %v31847_v32  ;;  %v10833_v31 = vpop.f32.mrf.mxu2  ;;  %v32029_v52 = vpop.f32.mrf.mxu3  ;;  %v25111_v32 = vld [vmem:[%s34262_s1 + $0x1b10] sm:$0xff]  ;;  %v21937_v26 = vor.u32 %v24874_v41, %v21934_v4 }
 0x6a2   : > { %15445 = vmatpush.bf16.msrb.mxu0 %v25111_v32  ;;  %v21734_v32 = vld [vmem:[%s25576_s24 + $0x260] sm:$0xf0] }
 0x6a3   : > { %v10826_v49 = vadd.f32 %v31925_v10, %v10797_v46  ;;  %v22117_v10 = vor.u32 %v24945_v7, %v22116_v33  ;;  %v24825_v7 = vld [vmem:[%s25576_s24 + $0x1a4] sm:$0xf] }
 0x6a4   : > { %15360 = vmatpush.bf16.msrb.mxu1 %v25085_v56  ;;  %v24851_v56 = vld [vmem:[%s25576_s24 + $0x26c] sm:$0xf0]  ;;  %v21737_v48 = vor.u32 %v24825_v7, %v21734_v32  ;;  %v25126_v7 = vld [vmem:[%s34262_s1 + $0x1b88] sm:$0xff] }
 0x6a5   : > { %v32043_v51 = vadd.f32 %v31927_v40, %v10826_v49  ;;  %v25110_v40 = vld [vmem:[%s34262_s1 + $0x1b08] sm:$0xff]  ;;  %v21749_v5 = vor.u32 %v24851_v56, %v21748_v14 }
 0x6a6   : > { %15446 = vmatpush.bf16.msrb.mxu0 %v25110_v40  ;;  %v24922_v40 = vld [vmem:[%s25576_s24 + $0x4ac] sm:$0xf] }
 0x6a7   : > { %35485 = vst [vmem:[#allocation3_spill] sm:$0xff] %v32043_v51 }
 0x6a8   : > { %v10799_v0 = vpop.f32.mrf.mxu1  ;;  %v32052_v21 = vpop.f32.mrf.mxu0 }
 0x6a9   : > { %v10800_v12 = vadd.f32 %v10799_v0, %v31861_v11  ;;  %v10835_v37 = vpop.f32.mrf.mxu2  ;;  %v10864_v36 = vpop.f32.mrf.mxu3  ;;  %v24946_v0 = vld [vmem:[%s25576_s24 + $0x564] sm:$0xf0] }
 0x6aa   : > { %15447 = vmatpush.bf16.msrb.mxu0 %v25109_v20 }
 0x6ab   : > { %v10829_v24 = vadd.f32 %v31957_v19, %v10800_v12  ;;  %15255 = vmatmul.bf16.gmra.mxu1 %v22105_v62  ;;  %15342 = vmatmul.bf16.gmra.mxu0 %v22117_v10  ;;  %v22124_v10 = vld [vmem:[%s25576_s24 + $0x4a8] sm:$0xf]  ;;  %v22126_v12 = vld [vmem:[%s25576_s24 + $0x568] sm:$0xf0] }
 0x6ad   : > { %v32063_v11 = vadd.f32 %v31959_v15, %v10829_v24  ;;  %15390 = vmatmul.bf16.vlgmr.msra.gmra.mxu2 %v21741_v3  ;;  %15419 = vmatmul.bf16.vlgmr.msra.gmra.mxu3 %v21745_v39  ;;  %v22294_v15 = vld [vmem:[%s25576_s24 + $0x6d0] sm:$0xf0]  ;;  %v25138_v39 = vld [vmem:[%s34262_s1 + $0x1be8] sm:$0xff] }
 0x6ae   : > { %v22297_v50 = vor.u32 %v24967_v1, %v22294_v15  ;;  %v25129_v1 = vld [vmem:[%s34262_s1 + $0x1ba0] sm:$0xff]  ;;  %15556 = vmatpush.bf16.msra.mxu0 %v25148_v63 }
 0x6af   : > { %35486 = vst [vmem:[#allocation4_spill] sm:$0xff] %v32063_v11  ;;  %v24921_v63 = vld [vmem:[%s25576_s24 + $0x4a4] sm:$0xf] }
 0x6b0   : > { %v10801_v42 = vpop.f32.mrf.mxu1  ;;  %v32065_v19 = vpop.f32.mrf.mxu0 }
 0x6b1   : > { %v10802_v38 = vadd.f32 %v10801_v42, %v31875_v30  ;;  %v32068_v54 = vpop.f32.mrf.mxu2  ;;  %v32070_v16 = vpop.f32.mrf.mxu3  ;;  %v22125_v42 = vor.u32 %v24946_v0, %v22124_v10  ;;  %v24970_v10 = vld [vmem:[%s25576_s24 + $0x62c] sm:$0xf] }
 0x6b2   : > { %v25146_v0 = vld [vmem:[%s34262_s1 + $0x1c28] sm:$0xff] }
 0x6b3   : > { %v10831_v9 = vadd.f32 %v32000_v44, %v10802_v38  ;;  %v22129_v38 = vor.u32 %v24922_v40, %v22126_v12 }
 0x6b5   : > { %v32078_v17 = vadd.f32 %v32002_v27, %v10831_v9  ;;  %v25124_v9 = vld [vmem:[%s34262_s1 + $0x1b78] sm:$0xff] }
 0x6b6   : > { %15469 = vmatpush.bf16.msra.mxu1 %v25124_v9  ;;  %v25145_v9 = vld [vmem:[%s34262_s1 + $0x1c20] sm:$0xff] }
 0x6b7   : > { %35487 = vst [vmem:[#allocation6_spill] sm:$0xff] %v32078_v17 }
 0x6b8   : > { %v10804_v30 = vpop.f32.mrf.mxu1  ;;  %v32084_v35 = vpop.f32.mrf.mxu0 }
 0x6b9   : > { %v10805_v43 = vadd.f32 %v10804_v30, %v31890_v61  ;;  %v32087_v34 = vpop.f32.mrf.mxu2  ;;  %v32089_v44 = vpop.f32.mrf.mxu3  ;;  %v25132_v61 = vld [vmem:[%s34262_s1 + $0x1bb8] sm:$0xff] }
 0x6ba   : > { %15498 = vmatpush.bf16.msrb.mxu2 %v25132_v61  ;;  %15470 = vmatpush.bf16.msra.mxu1 %v25123_v23  ;;  %v21926_v61 = vld [vmem:[%s25576_s24 + $0x3e0] sm:$0xf0] }
 0x6bb   : > { %v10834_v53 = vadd.f32 %v10833_v31, %v10805_v43  ;;  %15260 = vmatmul.bf16.gmra.mxu1 %v22297_v50  ;;  %15347 = vmatmul.bf16.gmra.mxu0 %v22309_v59  ;;  %v25140_v31 = vld [vmem:[%s34262_s1 + $0x1bf8] sm:$0xff]  ;;  %v25122_v43 = vld [vmem:[%s34262_s1 + $0x1b68] sm:$0xff] }
 0x6bc   : > { %15527 = vmatpush.bf16.msrb.mxu3 %v25140_v31  ;;  %v25135_v31 = vld [vmem:[%s34262_s1 + $0x1bd0] sm:$0xff] }
 0x6bd   : > { %v32092_v27 = vadd.f32 %v32029_v52, %v10834_v53  ;;  %15395 = vmatmul.bf16.gmra.mxu2 %v21933_v47  ;;  %15424 = vmatmul.bf16.gmra.mxu3 %v21937_v26  ;;  %v25127_v47 = vld [vmem:[%s34262_s1 + $0x1b90] sm:$0xff]  ;;  %v24873_v53 = vld [vmem:[%s25576_s24 + $0x324] sm:$0xf] }
 0x6be   : > { %15499 = vmatpush.bf16.msrb.mxu2 %v25131_v8  ;;  %15471 = vmatpush.bf16.msra.mxu1 %v25122_v43  ;;  %v22316_v8 = vld [vmem:[%s25576_s24 + $0x628] sm:$0xf]  ;;  %v21929_v14 = vor.u32 %v24873_v53, %v21926_v61  ;;  %v22132_v43 = vld [vmem:[%s25576_s24 + $0x4b0] sm:$0xf]  ;;  %v21756_v53 = vld [vmem:[%s25576_s24 + $0x1b8] sm:$0xf] }
 0x6bf   : > { %35488 = vst [vmem:[#allocation5_spill] sm:$0xff] %v32092_v27  ;;  %v25117_v61 = vld [vmem:[%s34262_s1 + $0x1b40] sm:$0xff] }
 0x6c0   : > { %v10806_v46 = vpop.f32.mrf.mxu1  ;;  %v32097_v2 = vpop.f32.mrf.mxu0 }
 0x6c1   : > { %v10807_v52 = vadd.f32 %v10806_v46, %v31914_v58  ;;  %v32103_v49 = vpop.f32.mrf.mxu2  ;;  %v32105_v18 = vpop.f32.mrf.mxu3  ;;  %v25139_v58 = vld [vmem:[%s34262_s1 + $0x1bf0] sm:$0xff] }
 0x6c2   : > { %15528 = vmatpush.bf16.msrb.mxu3 %v25139_v58  ;;  %15500 = vmatpush.bf16.msrb.mxu2 %v25130_v45  ;;  %v24899_v46 = vld [vmem:[%s25576_s24 + $0x3ec] sm:$0xf0]  ;;  %v24994_v58 = vld [vmem:[%s25576_s24 + $0x6e4] sm:$0xf0]  ;;  %v22318_v45 = vld [vmem:[%s25576_s24 + $0x6e8] sm:$0xf0] }
 0x6c3   : > { %v10836_v33 = vadd.f32 %v10835_v37, %v10807_v52  ;;  %v25147_v52 = vld [vmem:[%s34262_s1 + $0x1c30] sm:$0xff] }
 0x6c4   : > { %15557 = vmatpush.bf16.msra.mxu0 %v25147_v52  ;;  %v24828_v52 = vld [vmem:[%s25576_s24 + $0x1bc] sm:$0xf] }
 0x6c5   : > { %v32117_v62 = vadd.f32 %v10864_v36, %v10836_v33  ;;  %v25121_v33 = vld [vmem:[%s34262_s1 + $0x1b60] sm:$0xff] }
 0x6c6   : > { %15529 = vmatpush.bf16.msrb.mxu3 %v25138_v39  ;;  %15501 = vmatpush.bf16.msrb.mxu2 %v25129_v1  ;;  %v22321_v39 = vor.u32 %v24970_v10, %v22318_v45 }
 0x6c7   : > { %35489 = vst [vmem:[#allocation8_spill] sm:$0xff] %v32117_v62  ;;  %15472 = vmatpush.bf16.msra.mxu1 %v25121_v33 }
 0x6c8   : > { %v15130_v37 = vpop.f32.mrf.mxu1  ;;  %v15217_v3 = vpop.f32.mrf.mxu0  ;;  %15558 = vmatpush.bf16.msra.mxu0 %v25146_v0 }
 0x6c9   : > { %v15131_v36 = vadd.f32 %v15130_v37, %v31919_v6  ;;  %v32130_v24 = vpop.f32.mrf.mxu2  ;;  %v32132_v20 = vpop.f32.mrf.mxu3  ;;  %v25137_v6 = vld [vmem:[%s34262_s1 + $0x1be0] sm:$0xff] }
 0x6ca   : > { %15530 = vmatpush.bf16.msrb.mxu3 %v25137_v6 }
 0x6cb   : > { %v15160_v15 = vadd.f32 %v32068_v54, %v15131_v36  ;;  %15361 = vmatmul.bf16.vlgmr.msrb.gmra.mxu1 %v21737_v48  ;;  %15448 = vmatmul.bf16.vlgmr.msrb.gmra.mxu0 %v21749_v5  ;;  %v25128_v54 = vld [vmem:[%s34262_s1 + $0x1b98] sm:$0xff]  ;;  %v25134_v5 = vld [vmem:[%s34262_s1 + $0x1bc8] sm:$0xff] }
 0x6cc   : > { %15502 = vmatpush.bf16.msrb.mxu2 %v25128_v54  ;;  %v25120_v36 = vld [vmem:[%s34262_s1 + $0x1b58] sm:$0xff]  ;;  %15559 = vmatpush.bf16.msra.mxu0 %v25145_v9 }
 0x6cd   : > { %v15189_v55 = vadd.f32 %v32070_v16, %v15160_v15  ;;  %15400 = vmatmul.bf16.gmra.mxu2 %v22125_v42  ;;  %15429 = vmatmul.bf16.gmra.mxu3 %v22129_v38  ;;  %v25136_v16 = vld [vmem:[%s34262_s1 + $0x1bd8] sm:$0xff]  ;;  %v25125_v42 = vld [vmem:[%s34262_s1 + $0x1b80] sm:$0xff] }
 0x6ce   : > { %15531 = vmatpush.bf16.msrb.mxu3 %v25136_v16  ;;  %15473 = vmatpush.bf16.msra.mxu1 %v25120_v36  ;;  %v22310_v36 = vld [vmem:[%s25576_s24 + $0x6e0] sm:$0xf0]  ;;  %v21948_v9 = vld [vmem:[%s25576_s24 + $0x338] sm:$0xf] }
 0x6cf   : > { %v32151_v22 = vadd.f32 %v15217_v3, %v15189_v55  ;;  %v22317_v3 = vor.u32 %v24994_v58, %v22316_v8 }
 0x6d0   : > { %v15132_v50 = vpop.f32.mrf.mxu1  ;;  %v15219_v59 = vpop.f32.mrf.mxu0  ;;  %15503 = vmatpush.bf16.msrb.mxu2 %v25127_v47  ;;  %v24947_v47 = vld [vmem:[%s25576_s24 + $0x56c] sm:$0xf0] }
 0x6d1   : > { %v15133_v41 = vadd.f32 %v15132_v50, %v31948_v57  ;;  %v32160_v4 = vpop.f32.mrf.mxu2  ;;  %v32162_v30 = vpop.f32.mrf.mxu3  ;;  %v21940_v57 = vld [vmem:[%s25576_s24 + $0x330] sm:$0xf] }
 0x6d2   : > { %v21941_v56 = vor.u32 %v24899_v46, %v21940_v57  ;;  %15532 = vmatpush.bf16.msrb.mxu3 %v25135_v31  ;;  %v22133_v46 = vor.u32 %v24947_v47, %v22132_v43  ;;  %v24852_v31 = vld [vmem:[%s25576_s24 + $0x274] sm:$0xf0] }
 0x6d3   : > { %v15162_v26 = vadd.f32 %v32087_v34, %v15133_v41  ;;  %v22118_v41 = vld [vmem:[%s25576_s24 + $0x560] sm:$0xf0]  ;;  %v21757_v58 = vor.u32 %v24852_v31, %v21756_v53 }
 0x6d4   : > { %15504 = vmatpush.bf16.msrb.mxu2 %v25126_v7 }
 0x6d5   : > { %v15191_v34 = vadd.f32 %v32089_v44, %v15162_v26 }
 0x6d6   : > { %15533 = vmatpush.bf16.msrb.mxu3 %v25134_v5 }
 0x6d7   : > { %v32189_v32 = vadd.f32 %v15219_v59, %v15191_v34  ;;  %v25118_v59 = vld [vmem:[%s34262_s1 + $0x1b48] sm:$0xff]  ;;  %v21758_v34 = vld [vmem:[%s25576_s24 + $0x278] sm:$0xf0] }
 0x6d8   : > { %v15135_v48 = vpop.f32.mrf.mxu1  ;;  %v15222_v44 = vpop.f32.mrf.mxu0  ;;  %15505 = vmatpush.bf16.msrb.mxu2 %v25125_v42  ;;  %v21761_v10 = vor.u32 %v24828_v52, %v21758_v34  ;;  %v22324_v42 = vld [vmem:[%s25576_s24 + $0x630] sm:$0xf]  ;;  %v24827_v52 = vld [vmem:[%s25576_s24 + $0x1b4] sm:$0xf] }
 0x6d9   : > { %v15136_v40 = vadd.f32 %v15135_v48, %v31991_v29  ;;  %v32201_v12 = vpop.f32.mrf.mxu2  ;;  %v32203_v37 = vpop.f32.mrf.mxu3  ;;  %v25133_v29 = vld [vmem:[%s34262_s1 + $0x1bc0] sm:$0xff]  ;;  %v21750_v34 = vld [vmem:[%s25576_s24 + $0x270] sm:$0xf0] }
 0x6da   : > { %15534 = vmatpush.bf16.msrb.mxu3 %v25133_v29  ;;  %v25141_v48 = vld [vmem:[%s34262_s1 + $0x1c00] sm:$0xff] }
 0x6db   : > { %v15165_v38 = vadd.f32 %v32103_v49, %v15136_v40  ;;  %15366 = vmatmul.bf16.gmra.mxu1 %v21929_v14  ;;  %15453 = vmatmul.bf16.gmra.mxu0 %v21941_v56  ;;  %v25119_v49 = vld [vmem:[%s34262_s1 + $0x1b50] sm:$0xff] }
 0x6dc   : > { %15474 = vmatpush.bf16.msra.mxu1 %v25119_v49 }
 0x6dd   : > { %v15194_v1 = vadd.f32 %v32105_v18, %v15165_v38  ;;  %15405 = vmatmul.bf16.gmra.mxu2 %v22317_v3  ;;  %15434 = vmatmul.bf16.gmra.mxu3 %v22321_v39  ;;  %v25144_v18 = vld [vmem:[%s34262_s1 + $0x1c18] sm:$0xff]  ;;  %v24995_v38 = vld [vmem:[%s25576_s24 + $0x6ec] sm:$0xf0] }
 0x6de   : > { %15560 = vmatpush.bf16.msra.mxu0 %v25144_v18  ;;  %v24876_v18 = vld [vmem:[%s25576_s24 + $0x33c] sm:$0xf] }
 0x6df   : > { %v32222_v15 = vadd.f32 %v15222_v44, %v15194_v1 }
 0x6e0   : > { %v15137_v6 = vpop.f32.mrf.mxu1  ;;  %v15224_v55 = vpop.f32.mrf.mxu0  ;;  %15475 = vmatpush.bf16.msra.mxu1 %v25118_v59 }
 0x6e1   : > { %v15138_v23 = vadd.f32 %v15137_v6, %v32023_v60  ;;  %v32228_v54 = vpop.f32.mrf.mxu2  ;;  %v32230_v50 = vpop.f32.mrf.mxu3  ;;  %v25143_v60 = vld [vmem:[%s34262_s1 + $0x1c10] sm:$0xff]  ;;  %v22325_v6 = vor.u32 %v24995_v38, %v22324_v42 }
 0x6e2   : > { %15561 = vmatpush.bf16.msra.mxu0 %v25143_v60 }
 0x6e3   : > { %v15167_v16 = vadd.f32 %v32130_v24, %v15138_v23  ;;  %v22121_v24 = vor.u32 %v24921_v63, %v22118_v41 }
 0x6e4   : > { %15476 = vmatpush.bf16.msra.mxu1 %v25117_v61 }
 0x6e5   : > { %v15196_v26 = vadd.f32 %v32132_v20, %v15167_v16  ;;  %v25142_v20 = vld [vmem:[%s34262_s1 + $0x1c08] sm:$0xff] }
 0x6e6   : > { %15562 = vmatpush.bf16.msra.mxu0 %v25142_v20 }
 0x6e7   : > { %v32248_v57 = vadd.f32 %v15224_v55, %v15196_v26  ;;  %v24900_v55 = vld [vmem:[%s25576_s24 + $0x3f4] sm:$0xf0] }
 0x6e8   : > { %v15140_v8 = vpop.f32.mrf.mxu1  ;;  %v15227_v33 = vpop.f32.mrf.mxu0  ;;  %v21949_v41 = vor.u32 %v24900_v55, %v21948_v9  ;;  %v25161_v9 = vld [vmem:[%s34262_s1 + $0x1ca0] sm:$0xff]  ;;  %v25155_v55 = vld [vmem:[%s34262_s1 + $0x1c70] sm:$0xff] }
 0x6e9   : > { %v15141_v7 = vadd.f32 %v15140_v8, %v32052_v21  ;;  %v15176_v14 = vpop.f32.mrf.mxu2  ;;  %v15205_v56 = vpop.f32.mrf.mxu3  ;;  %v21764_v8 = vld [vmem:[%s25576_s24 + $0x1c0] sm:$0xf] }
 0x6ea   : > { %15563 = vmatpush.bf16.msra.mxu0 %v25141_v48  ;;  %v24948_v48 = vld [vmem:[%s25576_s24 + $0x574] sm:$0xf0] }
 0x6eb   : > { %v15170_v45 = vadd.f32 %v32160_v4, %v15141_v7  ;;  %15371 = vmatmul.bf16.gmra.mxu1 %v22121_v24  ;;  %15458 = vmatmul.bf16.gmra.mxu0 %v22133_v46  ;;  %v25163_v46 = vld [vmem:[%s34262_s1 + $0x1cb0] sm:$0xff]  ;;  %v22140_v7 = vld [vmem:[%s25576_s24 + $0x4b8] sm:$0xf] }
 0x6ec   : > { %v22141_v42 = vor.u32 %v24948_v48, %v22140_v7  ;;  %v24972_v7 = vld [vmem:[%s25576_s24 + $0x63c] sm:$0xf]  ;;  %v25178_v48 = vld [vmem:[%s34262_s1 + $0x1d28] sm:$0xff] }
 0x6ed   : > { %v15199_v44 = vadd.f32 %v32162_v30, %v15170_v45  ;;  %15506 = vmatmul.bf16.vlgmr.msrb.gmra.mxu2 %v21757_v58  ;;  %15535 = vmatmul.bf16.vlgmr.msrb.gmra.mxu3 %v21761_v10  ;;  %v24969_v30 = vld [vmem:[%s25576_s24 + $0x624] sm:$0xf]  ;;  %v25162_v58 = vld [vmem:[%s34262_s1 + $0x1ca8] sm:$0xff] }
 0x6ee   : > { %v22313_v49 = vor.u32 %v24969_v30, %v22310_v36 }
 0x6ef   : > { %v32262_v21 = vadd.f32 %v15227_v33, %v15199_v44  ;;  %v24853_v33 = vld [vmem:[%s25576_s24 + $0x27c] sm:$0xf0]  ;;  %v24924_v44 = vld [vmem:[%s25576_s24 + $0x4bc] sm:$0xf] }
 0x6f0   : > { %v15142_v5 = vpop.f32.mrf.mxu1  ;;  %v15229_v4 = vpop.f32.mrf.mxu0  ;;  %v21765_v45 = vor.u32 %v24853_v33, %v21764_v8 }
 0x6f1   : > { %v15143_v0 = vadd.f32 %v15142_v5, %v32065_v19  ;;  %v32265_v40 = vpop.f32.mrf.mxu2  ;;  %v32267_v3 = vpop.f32.mrf.mxu3  ;;  %v21950_v19 = vld [vmem:[%s25576_s24 + $0x3f8] sm:$0xf0] }
 0x6f2   : > { %v21953_v43 = vor.u32 %v24876_v18, %v21950_v19  ;;  %v22142_v5 = vld [vmem:[%s25576_s24 + $0x578] sm:$0xf0] }
 0x6f3   : > { %v15172_v39 = vadd.f32 %v32201_v12, %v15143_v0  ;;  %v22145_v38 = vor.u32 %v24924_v44, %v22142_v5 }
 0x6f5   : > { %v15201_v29 = vadd.f32 %v32203_v37, %v15172_v39 }
 0x6f7   : > { %v32276_v1 = vadd.f32 %v15229_v4, %v15201_v29  ;;  %v25156_v29 = vld [vmem:[%s34262_s1 + $0x1c78] sm:$0xff] }
 0x6f8   : > { %v15145_v23 = vpop.f32.mrf.mxu1  ;;  %v15232_v59 = vpop.f32.mrf.mxu0  ;;  %15585 = vmatpush.bf16.msrb.mxu1 %v25156_v29  ;;  %v25177_v29 = vld [vmem:[%s34262_s1 + $0x1d20] sm:$0xff] }
 0x6f9   : > { %v15146_v16 = vadd.f32 %v15145_v23, %v32084_v35  ;;  %v32282_v63 = vpop.f32.mrf.mxu2  ;;  %v32284_v12 = vpop.f32.mrf.mxu3  ;;  %v25164_v35 = vld [vmem:[%s34262_s1 + $0x1cb8] sm:$0xff] }
 0x6fa   : > { %15614 = vmatpush.bf16.msra.mxu2 %v25164_v35 }
 0x6fb   : > { %v15175_v37 = vadd.f32 %v32228_v54, %v15146_v16  ;;  %15376 = vmatmul.bf16.gmra.mxu1 %v22313_v49  ;;  %15463 = vmatmul.bf16.gmra.mxu0 %v22325_v6  ;;  %v25172_v54 = vld [vmem:[%s34262_s1 + $0x1cf8] sm:$0xff] }
 0x6fc   : > { %15643 = vmatpush.bf16.msra.mxu3 %v25172_v54  ;;  %15586 = vmatpush.bf16.msrb.mxu1 %v25155_v55  ;;  %v24901_v54 = vld [vmem:[%s25576_s24 + $0x3fc] sm:$0xf0] }
 0x6fd   : > { %v15204_v47 = vadd.f32 %v32230_v50, %v15175_v37  ;;  %15511 = vmatmul.bf16.gmra.mxu2 %v21949_v41  ;;  %15540 = vmatmul.bf16.gmra.mxu3 %v21953_v43  ;;  %v25154_v37 = vld [vmem:[%s34262_s1 + $0x1c68] sm:$0xff] }
 0x6fe   : > { %15615 = vmatpush.bf16.msra.mxu2 %v25163_v46  ;;  %v25179_v46 = vld [vmem:[%s34262_s1 + $0x1d30] sm:$0xff] }
 0x6ff   : > { %v32291_v60 = vadd.f32 %v15232_v59, %v15204_v47  ;;  %v25180_v59 = vld [vmem:[%s34262_s1 + $0x1d38] sm:$0xff]  ;;  %v25159_v47 = vld [vmem:[%s34262_s1 + $0x1c90] sm:$0xff] }
 0x700   : > { %v15147_v26 = vpop.f32.mrf.mxu1  ;;  %v15234_v53 = vpop.f32.mrf.mxu0  ;;  %15672 = vmatpush.bf16.msrb.mxu0 %v25180_v59  ;;  %15587 = vmatpush.bf16.msrb.mxu1 %v25154_v37  ;;  %v24923_v59 = vld [vmem:[%s25576_s24 + $0x4b4] sm:$0xf]  ;;  %v22148_v37 = vld [vmem:[%s25576_s24 + $0x4c0] sm:$0xf] }
 0x701   : > { %v15148_v50 = vadd.f32 %v15147_v26, %v32097_v2  ;;  %v32297_v61 = vpop.f32.mrf.mxu2  ;;  %v32299_v24 = vpop.f32.mrf.mxu3  ;;  %v25171_v2 = vld [vmem:[%s34262_s1 + $0x1cf0] sm:$0xff] }
 0x702   : > { %15644 = vmatpush.bf16.msra.mxu3 %v25171_v2  ;;  %15616 = vmatpush.bf16.msra.mxu2 %v25162_v58  ;;  %v24875_v26 = vld [vmem:[%s25576_s24 + $0x334] sm:$0xf]  ;;  %v22334_v58 = vld [vmem:[%s25576_s24 + $0x6f8] sm:$0xf0] }
 0x703   : > { %v15177_v31 = vadd.f32 %v15176_v14, %v15148_v50  ;;  %v21753_v14 = vor.u32 %v24827_v52, %v21750_v34  ;;  %v25167_v50 = vld [vmem:[%s34262_s1 + $0x1cd0] sm:$0xff]  ;;  %v25153_v52 = vld [vmem:[%s34262_s1 + $0x1c60] sm:$0xff]  ;;  %v25158_v34 = vld [vmem:[%s34262_s1 + $0x1c88] sm:$0xff] }
 0x704   : > { %15673 = vmatpush.bf16.msrb.mxu0 %v25179_v46  ;;  %15588 = vmatpush.bf16.msrb.mxu1 %v25153_v52  ;;  %v24830_v46 = vld [vmem:[%s25576_s24 + $0x1cc] sm:$0xf] }
 0x705   : > { %v15206_v20 = vadd.f32 %v15205_v56, %v15177_v31  ;;  %v25170_v56 = vld [vmem:[%s34262_s1 + $0x1ce8] sm:$0xff]  ;;  %v22332_v31 = vld [vmem:[%s25576_s24 + $0x638] sm:$0xf] }
 0x706   : > { %15645 = vmatpush.bf16.msra.mxu3 %v25170_v56  ;;  %15617 = vmatpush.bf16.msra.mxu2 %v25161_v9  ;;  %v22337_v56 = vor.u32 %v24972_v7, %v22334_v58 }
 0x707   : > { %v32315_v10 = vadd.f32 %v15234_v53, %v15206_v20  ;;  %v21942_v53 = vld [vmem:[%s25576_s24 + $0x3f0] sm:$0xf0]  ;;  %v24996_v20 = vld [vmem:[%s25576_s24 + $0x6f4] sm:$0xf0] }
 0x708   : > { %v15246_v4 = vpop.f32.mrf.mxu1  ;;  %v15333_v0 = vpop.f32.mrf.mxu0  ;;  %v21945_v33 = vor.u32 %v24875_v26, %v21942_v53  ;;  %15674 = vmatpush.bf16.msrb.mxu0 %v25178_v48  ;;  %v21772_v26 = vld [vmem:[%s25576_s24 + $0x1c8] sm:$0xf]  ;;  %v25149_v53 = vld [vmem:[%s34262_s1 + $0x1c40] sm:$0xff] }
 0x709   : > { %v15247_v39 = vadd.f32 %v15246_v4, %v32151_v22  ;;  %v32324_v30 = vpop.f32.mrf.mxu2  ;;  %v32326_v36 = vpop.f32.mrf.mxu3  ;;  %v25169_v22 = vld [vmem:[%s34262_s1 + $0x1ce0] sm:$0xff] }
 0x70a   : > { %15646 = vmatpush.bf16.msra.mxu3 %v25169_v22 }
 0x70b   : > { %v15276_v49 = vadd.f32 %v32265_v40, %v15247_v39  ;;  %15477 = vmatmul.bf16.vlgmr.msra.gmra.mxu1 %v21753_v14  ;;  %15564 = vmatmul.bf16.vlgmr.msra.gmra.mxu0 %v21765_v45  ;;  %v25160_v40 = vld [vmem:[%s34262_s1 + $0x1c98] sm:$0xff]  ;;  %v25166_v45 = vld [vmem:[%s34262_s1 + $0x1cc8] sm:$0xff] }
 0x70c   : > { %15618 = vmatpush.bf16.msra.mxu2 %v25160_v40  ;;  %v25152_v39 = vld [vmem:[%s34262_s1 + $0x1c58] sm:$0xff]  ;;  %15675 = vmatpush.bf16.msrb.mxu0 %v25177_v29  ;;  %v21964_v29 = vld [vmem:[%s25576_s24 + $0x348] sm:$0xf] }
 0x70d   : > { %v15305_v6 = vadd.f32 %v32267_v3, %v15276_v49  ;;  %15516 = vmatmul.bf16.gmra.mxu2 %v22141_v42  ;;  %15545 = vmatmul.bf16.gmra.mxu3 %v22145_v38  ;;  %v25168_v3 = vld [vmem:[%s34262_s1 + $0x1cd8] sm:$0xff]  ;;  %v25157_v42 = vld [vmem:[%s34262_s1 + $0x1c80] sm:$0xff] }
 0x70e   : > { %15647 = vmatpush.bf16.msra.mxu3 %v25168_v3  ;;  %15589 = vmatpush.bf16.msrb.mxu1 %v25152_v39  ;;  %v22326_v39 = vld [vmem:[%s25576_s24 + $0x6f0] sm:$0xf0] }
 0x70f   : > { %v32345_v18 = vadd.f32 %v15333_v0, %v15305_v6  ;;  %v22333_v0 = vor.u32 %v24996_v20, %v22332_v31 }
 0x710   : > { %v15248_v19 = vpop.f32.mrf.mxu1  ;;  %v15335_v23 = vpop.f32.mrf.mxu0  ;;  %15619 = vmatpush.bf16.msra.mxu2 %v25159_v47  ;;  %v24949_v47 = vld [vmem:[%s25576_s24 + $0x57c] sm:$0xf0] }
 0x711   : > { %v15249_v16 = vadd.f32 %v15248_v19, %v32189_v32  ;;  %v32354_v41 = vpop.f32.mrf.mxu2  ;;  %v32356_v43 = vpop.f32.mrf.mxu3  ;;  %v21956_v32 = vld [vmem:[%s25576_s24 + $0x340] sm:$0xf] }
 0x712   : > { %v21957_v2 = vor.u32 %v24901_v54, %v21956_v32  ;;  %15648 = vmatpush.bf16.msra.mxu3 %v25167_v50  ;;  %v22149_v54 = vor.u32 %v24949_v47, %v22148_v37  ;;  %v24854_v50 = vld [vmem:[%s25576_s24 + $0x284] sm:$0xf0] }
 0x713   : > { %v15278_v35 = vadd.f32 %v32282_v63, %v15249_v16  ;;  %v22134_v16 = vld [vmem:[%s25576_s24 + $0x570] sm:$0xf0]  ;;  %v21773_v20 = vor.u32 %v24854_v50, %v21772_v26 }
 0x714   : > { %15620 = vmatpush.bf16.msra.mxu2 %v25158_v34 }
 0x715   : > { %v15307_v63 = vadd.f32 %v32284_v12, %v15278_v35 }
 0x716   : > { %15649 = vmatpush.bf16.msra.mxu3 %v25166_v45 }
 0x717   : > { %v32383_v8 = vadd.f32 %v15335_v23, %v15307_v63  ;;  %v25150_v23 = vld [vmem:[%s34262_s1 + $0x1c48] sm:$0xff] }
 0x718   : > { %v15251_v14 = vpop.f32.mrf.mxu1  ;;  %v15338_v12 = vpop.f32.mrf.mxu0  ;;  %15621 = vmatpush.bf16.msra.mxu2 %v25157_v42  ;;  %v21774_v63 = vld [vmem:[%s25576_s24 + $0x288] sm:$0xf0]  ;;  %v22340_v42 = vld [vmem:[%s25576_s24 + $0x640] sm:$0xf] }
 0x719   : > { %v15252_v44 = vadd.f32 %v15251_v14, %v32222_v15  ;;  %v32395_v5 = vpop.f32.mrf.mxu2  ;;  %v32397_v4 = vpop.f32.mrf.mxu3  ;;  %v25165_v15 = vld [vmem:[%s34262_s1 + $0x1cc0] sm:$0xff]  ;;  %v21777_v7 = vor.u32 %v24830_v46, %v21774_v63 }
 0x71a   : > { %15650 = vmatpush.bf16.msra.mxu3 %v25165_v15  ;;  %v25173_v14 = vld [vmem:[%s34262_s1 + $0x1d00] sm:$0xff] }
 0x71b   : > { %v15281_v38 = vadd.f32 %v32297_v61, %v15252_v44  ;;  %15482 = vmatmul.bf16.gmra.mxu1 %v21945_v33  ;;  %15569 = vmatmul.bf16.gmra.mxu0 %v21957_v2  ;;  %v25151_v61 = vld [vmem:[%s34262_s1 + $0x1c50] sm:$0xff]  ;;  %v24829_v46 = vld [vmem:[%s25576_s24 + $0x1c4] sm:$0xf] }
 0x71c   : > { %15590 = vmatpush.bf16.msrb.mxu1 %v25151_v61  ;;  %v21766_v63 = vld [vmem:[%s25576_s24 + $0x280] sm:$0xf0] }
 0x71d   : > { %v15310_v9 = vadd.f32 %v32299_v24, %v15281_v38  ;;  %15521 = vmatmul.bf16.gmra.mxu2 %v22333_v0  ;;  %15550 = vmatmul.bf16.gmra.mxu3 %v22337_v56  ;;  %v25176_v24 = vld [vmem:[%s34262_s1 + $0x1d18] sm:$0xff]  ;;  %v24997_v38 = vld [vmem:[%s25576_s24 + $0x6fc] sm:$0xf0] }
 0x71e   : > { %15676 = vmatpush.bf16.msrb.mxu0 %v25176_v24  ;;  %v24878_v24 = vld [vmem:[%s25576_s24 + $0x34c] sm:$0xf] }
 0x71f   : > { %v32416_v49 = vadd.f32 %v15338_v12, %v15310_v9 }
 0x720   : > { %v15253_v22 = vpop.f32.mrf.mxu1  ;;  %v15340_v6 = vpop.f32.mrf.mxu0  ;;  %15591 = vmatpush.bf16.msrb.mxu1 %v25150_v23 }
 0x721   : > { %v15254_v55 = vadd.f32 %v15253_v22, %v32248_v57  ;;  %v32422_v40 = vpop.f32.mrf.mxu2  ;;  %v32424_v19 = vpop.f32.mrf.mxu3  ;;  %v25175_v57 = vld [vmem:[%s34262_s1 + $0x1d10] sm:$0xff]  ;;  %v22341_v22 = vor.u32 %v24997_v38, %v22340_v42 }
 0x722   : > { %15677 = vmatpush.bf16.msrb.mxu0 %v25175_v57 }
 0x723   : > { %v15283_v3 = vadd.f32 %v32324_v30, %v15254_v55  ;;  %v22137_v30 = vor.u32 %v24923_v59, %v22134_v16 }
 0x724   : > { %15592 = vmatpush.bf16.msrb.mxu1 %v25149_v53 }
 0x725   : > { %v15312_v35 = vadd.f32 %v32326_v36, %v15283_v3  ;;  %v25174_v36 = vld [vmem:[%s34262_s1 + $0x1d08] sm:$0xff] }
 0x726   : > { %15678 = vmatpush.bf16.msrb.mxu0 %v25174_v36 }
 0x727   : > { %v32442_v32 = vadd.f32 %v15340_v6, %v15312_v35  ;;  %v24902_v6 = vld [vmem:[%s25576_s24 + $0x404] sm:$0xf0] }
 0x728   : > { %v15256_v31 = vpop.f32.mrf.mxu1  ;;  %v15343_v52 = vpop.f32.mrf.mxu0  ;;  %v21965_v16 = vor.u32 %v24902_v6, %v21964_v29  ;;  %v25193_v29 = vld [vmem:[%s34262_s1 + $0x1da0] sm:$0xff]  ;;  %v25187_v6 = vld [vmem:[%s34262_s1 + $0x1d70] sm:$0xff] }
 0x729   : > { %v15257_v34 = vadd.f32 %v15256_v31, %v32262_v21  ;;  %v15292_v33 = vpop.f32.mrf.mxu2  ;;  %v15321_v2 = vpop.f32.mrf.mxu3  ;;  %v21780_v31 = vld [vmem:[%s25576_s24 + $0x1d0] sm:$0xf] }
 0x72a   : > { %15679 = vmatpush.bf16.msrb.mxu0 %v25173_v14  ;;  %v24950_v14 = vld [vmem:[%s25576_s24 + $0x584] sm:$0xf0] }
 0x72b   : > { %v15286_v58 = vadd.f32 %v32354_v41, %v15257_v34  ;;  %15487 = vmatmul.bf16.gmra.mxu1 %v22137_v30  ;;  %15574 = vmatmul.bf16.gmra.mxu0 %v22149_v54  ;;  %v25195_v54 = vld [vmem:[%s34262_s1 + $0x1db0] sm:$0xff]  ;;  %v22156_v34 = vld [vmem:[%s25576_s24 + $0x4c8] sm:$0xf] }
 0x72c   : > { %v22157_v42 = vor.u32 %v24950_v14, %v22156_v34  ;;  %v24974_v34 = vld [vmem:[%s25576_s24 + $0x64c] sm:$0xf] }
 0x72d   : > { %v15315_v12 = vadd.f32 %v32356_v43, %v15286_v58  ;;  %15622 = vmatmul.bf16.vlgmr.msra.gmra.mxu2 %v21773_v20  ;;  %15651 = vmatmul.bf16.vlgmr.msra.gmra.mxu3 %v21777_v7  ;;  %v24971_v43 = vld [vmem:[%s25576_s24 + $0x634] sm:$0xf]  ;;  %v25194_v20 = vld [vmem:[%s34262_s1 + $0x1da8] sm:$0xff] }
 0x72e   : > { %v22329_v61 = vor.u32 %v24971_v43, %v22326_v39  ;;  %v25210_v14 = vld [vmem:[%s34262_s1 + $0x1e28] sm:$0xff] }
 0x72f   : > { %v32456_v21 = vadd.f32 %v15343_v52, %v15315_v12  ;;  %v24855_v52 = vld [vmem:[%s25576_s24 + $0x28c] sm:$0xf0]  ;;  %v24926_v12 = vld [vmem:[%s25576_s24 + $0x4cc] sm:$0xf] }
 0x730   : > { %v15258_v45 = vpop.f32.mrf.mxu1  ;;  %v15345_v41 = vpop.f32.mrf.mxu0  ;;  %v21781_v58 = vor.u32 %v24855_v52, %v21780_v31 }
 0x731   : > { %v15259_v48 = vadd.f32 %v15258_v45, %v32276_v1  ;;  %v32459_v44 = vpop.f32.mrf.mxu2  ;;  %v32461_v0 = vpop.f32.mrf.mxu3  ;;  %v21966_v1 = vld [vmem:[%s25576_s24 + $0x408] sm:$0xf0] }
 0x732   : > { %v21969_v37 = vor.u32 %v24878_v24, %v21966_v1  ;;  %v22158_v45 = vld [vmem:[%s25576_s24 + $0x588] sm:$0xf0] }
 0x733   : > { %v15288_v56 = vadd.f32 %v32395_v5, %v15259_v48  ;;  %v22161_v38 = vor.u32 %v24926_v12, %v22158_v45 }
 0x735   : > { %v15317_v15 = vadd.f32 %v32397_v4, %v15288_v56 }
 0x737   : > { %v32470_v9 = vadd.f32 %v15345_v41, %v15317_v15  ;;  %v25188_v15 = vld [vmem:[%s34262_s1 + $0x1d78] sm:$0xff] }
 0x738   : > { %v15261_v55 = vpop.f32.mrf.mxu1  ;;  %v15348_v23 = vpop.f32.mrf.mxu0  ;;  %15701 = vmatpush.bf16.msra.mxu1 %v25188_v15  ;;  %v25209_v15 = vld [vmem:[%s34262_s1 + $0x1e20] sm:$0xff] }
 0x739   : > { %v15262_v3 = vadd.f32 %v15261_v55, %v32291_v60  ;;  %v32476_v59 = vpop.f32.mrf.mxu2  ;;  %v32478_v5 = vpop.f32.mrf.mxu3  ;;  %v25196_v60 = vld [vmem:[%s34262_s1 + $0x1db8] sm:$0xff] }
 0x73a   : > { %15730 = vmatpush.bf16.msrb.mxu2 %v25196_v60 }
 0x73b   : > { %v15291_v4 = vadd.f32 %v32422_v40, %v15262_v3  ;;  %15492 = vmatmul.bf16.gmra.mxu1 %v22329_v61  ;;  %15579 = vmatmul.bf16.gmra.mxu0 %v22341_v22  ;;  %v25204_v40 = vld [vmem:[%s34262_s1 + $0x1df8] sm:$0xff] }
 0x73c   : > { %15759 = vmatpush.bf16.msrb.mxu3 %v25204_v40  ;;  %15702 = vmatpush.bf16.msra.mxu1 %v25187_v6  ;;  %v24903_v40 = vld [vmem:[%s25576_s24 + $0x40c] sm:$0xf0] }
 0x73d   : > { %v15320_v47 = vadd.f32 %v32424_v19, %v15291_v4  ;;  %15627 = vmatmul.bf16.gmra.mxu2 %v21965_v16  ;;  %15656 = vmatmul.bf16.gmra.mxu3 %v21969_v37  ;;  %v25186_v4 = vld [vmem:[%s34262_s1 + $0x1d68] sm:$0xff] }
 0x73e   : > { %15731 = vmatpush.bf16.msrb.mxu2 %v25195_v54  ;;  %v25211_v54 = vld [vmem:[%s34262_s1 + $0x1e30] sm:$0xff] }
 0x73f   : > { %v32485_v57 = vadd.f32 %v15348_v23, %v15320_v47  ;;  %v25212_v23 = vld [vmem:[%s34262_s1 + $0x1e38] sm:$0xff]  ;;  %v25191_v47 = vld [vmem:[%s34262_s1 + $0x1d90] sm:$0xff] }
 0x740   : > { %v15263_v35 = vpop.f32.mrf.mxu1  ;;  %v15350_v26 = vpop.f32.mrf.mxu0  ;;  %15788 = vmatpush.bf16.msra.mxu0 %v25212_v23  ;;  %15703 = vmatpush.bf16.msra.mxu1 %v25186_v4  ;;  %v24925_v23 = vld [vmem:[%s25576_s24 + $0x4c4] sm:$0xf]  ;;  %v22164_v4 = vld [vmem:[%s25576_s24 + $0x4d0] sm:$0xf] }
 0x741   : > { %v15264_v19 = vadd.f32 %v15263_v35, %v32315_v10  ;;  %v32491_v53 = vpop.f32.mrf.mxu2  ;;  %v32493_v30 = vpop.f32.mrf.mxu3  ;;  %v25203_v10 = vld [vmem:[%s34262_s1 + $0x1df0] sm:$0xff]  ;;  %v24877_v35 = vld [vmem:[%s25576_s24 + $0x344] sm:$0xf] }
 0x742   : > { %15760 = vmatpush.bf16.msrb.mxu3 %v25203_v10  ;;  %15732 = vmatpush.bf16.msrb.mxu2 %v25194_v20  ;;  %v22350_v20 = vld [vmem:[%s25576_s24 + $0x708] sm:$0xf0] }
 0x743   : > { %v15293_v50 = vadd.f32 %v15292_v33, %v15264_v19  ;;  %v21769_v33 = vor.u32 %v24829_v46, %v21766_v63  ;;  %v25199_v19 = vld [vmem:[%s34262_s1 + $0x1dd0] sm:$0xff]  ;;  %v25185_v46 = vld [vmem:[%s34262_s1 + $0x1d60] sm:$0xff]  ;;  %v25190_v63 = vld [vmem:[%s34262_s1 + $0x1d88] sm:$0xff] }
 0x744   : > { %15789 = vmatpush.bf16.msra.mxu0 %v25211_v54  ;;  %15704 = vmatpush.bf16.msra.mxu1 %v25185_v46  ;;  %v24832_v54 = vld [vmem:[%s25576_s24 + $0x1dc] sm:$0xf] }
 0x745   : > { %v15322_v36 = vadd.f32 %v15321_v2, %v15293_v50  ;;  %v25202_v2 = vld [vmem:[%s34262_s1 + $0x1de8] sm:$0xff] }
 0x746   : > { %15761 = vmatpush.bf16.msrb.mxu3 %v25202_v2  ;;  %15733 = vmatpush.bf16.msrb.mxu2 %v25193_v29  ;;  %v22348_v50 = vld [vmem:[%s25576_s24 + $0x648] sm:$0xf]  ;;  %v22353_v2 = vor.u32 %v24974_v34, %v22350_v20 }
 0x747   : > { %v32509_v7 = vadd.f32 %v15350_v26, %v15322_v36  ;;  %v21958_v26 = vld [vmem:[%s25576_s24 + $0x400] sm:$0xf0]  ;;  %v24998_v36 = vld [vmem:[%s25576_s24 + $0x704] sm:$0xf0] }
 0x748   : > { %v15362_v41 = vpop.f32.mrf.mxu1  ;;  %v15449_v48 = vpop.f32.mrf.mxu0  ;;  %v21961_v52 = vor.u32 %v24877_v35, %v21958_v26  ;;  %15790 = vmatpush.bf16.msra.mxu0 %v25210_v14  ;;  %v21788_v35 = vld [vmem:[%s25576_s24 + $0x1d8] sm:$0xf]  ;;  %v25181_v26 = vld [vmem:[%s34262_s1 + $0x1d40] sm:$0xff] }
 0x749   : > { %v15363_v56 = vadd.f32 %v15362_v41, %v32345_v18  ;;  %v32518_v43 = vpop.f32.mrf.mxu2  ;;  %v32520_v39 = vpop.f32.mrf.mxu3  ;;  %v25201_v18 = vld [vmem:[%s34262_s1 + $0x1de0] sm:$0xff] }
 0x74a   : > { %15762 = vmatpush.bf16.msrb.mxu3 %v25201_v18 }
 0x74b   : > { %v15392_v61 = vadd.f32 %v32459_v44, %v15363_v56  ;;  %15593 = vmatmul.bf16.vlgmr.msrb.gmra.mxu1 %v21769_v33  ;;  %15680 = vmatmul.bf16.vlgmr.msrb.gmra.mxu0 %v21781_v58  ;;  %v25192_v44 = vld [vmem:[%s34262_s1 + $0x1d98] sm:$0xff]  ;;  %v25198_v58 = vld [vmem:[%s34262_s1 + $0x1dc8] sm:$0xff] }
 0x74c   : > { %15734 = vmatpush.bf16.msrb.mxu2 %v25192_v44  ;;  %v25184_v56 = vld [vmem:[%s34262_s1 + $0x1d58] sm:$0xff]  ;;  %15791 = vmatpush.bf16.msra.mxu0 %v25209_v15 }
 0x74d   : > { %v15421_v22 = vadd.f32 %v32461_v0, %v15392_v61  ;;  %15632 = vmatmul.bf16.gmra.mxu2 %v22157_v42  ;;  %15661 = vmatmul.bf16.gmra.mxu3 %v22161_v38  ;;  %v25200_v0 = vld [vmem:[%s34262_s1 + $0x1dd8] sm:$0xff]  ;;  %v25189_v42 = vld [vmem:[%s34262_s1 + $0x1d80] sm:$0xff] }
 0x74e   : > { %15763 = vmatpush.bf16.msrb.mxu3 %v25200_v0  ;;  %15705 = vmatpush.bf16.msra.mxu1 %v25184_v56  ;;  %v22342_v56 = vld [vmem:[%s25576_s24 + $0x700] sm:$0xf0]  ;;  %v21980_v15 = vld [vmem:[%s25576_s24 + $0x358] sm:$0xf] }
 0x74f   : > { %v32539_v24 = vadd.f32 %v15449_v48, %v15421_v22  ;;  %v22349_v48 = vor.u32 %v24998_v36, %v22348_v50 }
 0x750   : > { %v15364_v1 = vpop.f32.mrf.mxu1  ;;  %v15451_v55 = vpop.f32.mrf.mxu0  ;;  %15735 = vmatpush.bf16.msrb.mxu2 %v25191_v47  ;;  %v24951_v47 = vld [vmem:[%s25576_s24 + $0x58c] sm:$0xf0] }
 0x751   : > { %v15365_v3 = vadd.f32 %v15364_v1, %v32383_v8  ;;  %v32548_v16 = vpop.f32.mrf.mxu2  ;;  %v32550_v37 = vpop.f32.mrf.mxu3  ;;  %v21972_v8 = vld [vmem:[%s25576_s24 + $0x350] sm:$0xf] }
 0x752   : > { %v21973_v10 = vor.u32 %v24903_v40, %v21972_v8  ;;  %15764 = vmatpush.bf16.msrb.mxu3 %v25199_v19  ;;  %v22165_v40 = vor.u32 %v24951_v47, %v22164_v4  ;;  %v24856_v19 = vld [vmem:[%s25576_s24 + $0x294] sm:$0xf0] }
 0x753   : > { %v15394_v60 = vadd.f32 %v32476_v59, %v15365_v3  ;;  %v22150_v3 = vld [vmem:[%s25576_s24 + $0x580] sm:$0xf0]  ;;  %v21789_v36 = vor.u32 %v24856_v19, %v21788_v35 }
 0x754   : > { %15736 = vmatpush.bf16.msrb.mxu2 %v25190_v63 }
 0x755   : > { %v15423_v59 = vadd.f32 %v32478_v5, %v15394_v60 }
 0x756   : > { %15765 = vmatpush.bf16.msrb.mxu3 %v25198_v58 }
 0x757   : > { %v32577_v31 = vadd.f32 %v15451_v55, %v15423_v59  ;;  %v25182_v55 = vld [vmem:[%s34262_s1 + $0x1d48] sm:$0xff]  ;;  %v21790_v59 = vld [vmem:[%s25576_s24 + $0x298] sm:$0xf0] }
 0x758   : > { %v15367_v33 = vpop.f32.mrf.mxu1  ;;  %v15454_v5 = vpop.f32.mrf.mxu0  ;;  %15737 = vmatpush.bf16.msrb.mxu2 %v25189_v42  ;;  %v21793_v34 = vor.u32 %v24832_v54, %v21790_v59  ;;  %v22356_v42 = vld [vmem:[%s25576_s24 + $0x650] sm:$0xf]  ;;  %v24831_v54 = vld [vmem:[%s25576_s24 + $0x1d4] sm:$0xf] }
 0x759   : > { %v15368_v12 = vadd.f32 %v15367_v33, %v32416_v49  ;;  %v32589_v45 = vpop.f32.mrf.mxu2  ;;  %v32591_v41 = vpop.f32.mrf.mxu3  ;;  %v25197_v49 = vld [vmem:[%s34262_s1 + $0x1dc0] sm:$0xff]  ;;  %v21782_v59 = vld [vmem:[%s25576_s24 + $0x290] sm:$0xf0] }
 0x75a   : > { %15766 = vmatpush.bf16.msrb.mxu3 %v25197_v49  ;;  %v25205_v33 = vld [vmem:[%s34262_s1 + $0x1e00] sm:$0xff] }
 0x75b   : > { %v15397_v38 = vadd.f32 %v32491_v53, %v15368_v12  ;;  %15598 = vmatmul.bf16.gmra.mxu1 %v21961_v52  ;;  %15685 = vmatmul.bf16.gmra.mxu0 %v21973_v10  ;;  %v25183_v53 = vld [vmem:[%s34262_s1 + $0x1d50] sm:$0xff] }
 0x75c   : > { %15706 = vmatpush.bf16.msra.mxu1 %v25183_v53 }
 0x75d   : > { %v15426_v29 = vadd.f32 %v32493_v30, %v15397_v38  ;;  %15637 = vmatmul.bf16.gmra.mxu2 %v22349_v48  ;;  %15666 = vmatmul.bf16.gmra.mxu3 %v22353_v2  ;;  %v25208_v30 = vld [vmem:[%s34262_s1 + $0x1e18] sm:$0xff]  ;;  %v24999_v38 = vld [vmem:[%s25576_s24 + $0x70c] sm:$0xf0] }
 0x75e   : > { %15792 = vmatpush.bf16.msra.mxu0 %v25208_v30  ;;  %v24880_v30 = vld [vmem:[%s25576_s24 + $0x35c] sm:$0xf] }
 0x75f   : > { %v32610_v61 = vadd.f32 %v15454_v5, %v15426_v29 }
 0x760   : > { %v15369_v18 = vpop.f32.mrf.mxu1  ;;  %v15456_v22 = vpop.f32.mrf.mxu0  ;;  %15707 = vmatpush.bf16.msra.mxu1 %v25182_v55 }
 0x761   : > { %v15370_v6 = vadd.f32 %v15369_v18, %v32442_v32  ;;  %v32616_v44 = vpop.f32.mrf.mxu2  ;;  %v32618_v1 = vpop.f32.mrf.mxu3  ;;  %v25207_v32 = vld [vmem:[%s34262_s1 + $0x1e10] sm:$0xff]  ;;  %v22357_v18 = vor.u32 %v24999_v38, %v22356_v42 }
 0x762   : > { %15793 = vmatpush.bf16.msra.mxu0 %v25207_v32 }
 0x763   : > { %v15399_v0 = vadd.f32 %v32518_v43, %v15370_v6  ;;  %v22153_v43 = vor.u32 %v24925_v23, %v22150_v3 }
 0x764   : > { %15708 = vmatpush.bf16.msra.mxu1 %v25181_v26 }
 0x765   : > { %v15428_v60 = vadd.f32 %v32520_v39, %v15399_v0  ;;  %v25206_v39 = vld [vmem:[%s34262_s1 + $0x1e08] sm:$0xff] }
 0x766   : > { %15794 = vmatpush.bf16.msra.mxu0 %v25206_v39 }
 0x767   : > { %v32636_v8 = vadd.f32 %v15456_v22, %v15428_v60  ;;  %v24904_v22 = vld [vmem:[%s25576_s24 + $0x414] sm:$0xf0] }
 0x768   : > { %v15372_v50 = vpop.f32.mrf.mxu1  ;;  %v15459_v46 = vpop.f32.mrf.mxu0  ;;  %v21981_v3 = vor.u32 %v24904_v22, %v21980_v15  ;;  %v25225_v15 = vld [vmem:[%s34262_s1 + $0x1ea0] sm:$0xff]  ;;  %v25219_v22 = vld [vmem:[%s34262_s1 + $0x1e70] sm:$0xff] }
 0x769   : > { %v15373_v63 = vadd.f32 %v15372_v50, %v32456_v21  ;;  %v15408_v52 = vpop.f32.mrf.mxu2  ;;  %v15437_v10 = vpop.f32.mrf.mxu3  ;;  %v21796_v50 = vld [vmem:[%s25576_s24 + $0x1e0] sm:$0xf] }
 0x76a   : > { %15795 = vmatpush.bf16.msra.mxu0 %v25205_v33  ;;  %v24952_v33 = vld [vmem:[%s25576_s24 + $0x594] sm:$0xf0] }
 0x76b   : > { %v15402_v20 = vadd.f32 %v32548_v16, %v15373_v63  ;;  %15603 = vmatmul.bf16.gmra.mxu1 %v22153_v43  ;;  %15690 = vmatmul.bf16.gmra.mxu0 %v22165_v40  ;;  %v25227_v40 = vld [vmem:[%s34262_s1 + $0x1eb0] sm:$0xff]  ;;  %v22172_v63 = vld [vmem:[%s25576_s24 + $0x4d8] sm:$0xf] }
 0x76c   : > { %v22173_v42 = vor.u32 %v24952_v33, %v22172_v63  ;;  %v24976_v63 = vld [vmem:[%s25576_s24 + $0x65c] sm:$0xf]  ;;  %v25242_v33 = vld [vmem:[%s34262_s1 + $0x1f28] sm:$0xff] }
 0x76d   : > { %v15431_v5 = vadd.f32 %v32550_v37, %v15402_v20  ;;  %15738 = vmatmul.bf16.vlgmr.msrb.gmra.mxu2 %v21789_v36  ;;  %15767 = vmatmul.bf16.vlgmr.msrb.gmra.mxu3 %v21793_v34  ;;  %v24973_v37 = vld [vmem:[%s25576_s24 + $0x644] sm:$0xf]  ;;  %v25226_v36 = vld [vmem:[%s34262_s1 + $0x1ea8] sm:$0xff] }
 0x76e   : > { %v22345_v53 = vor.u32 %v24973_v37, %v22342_v56 }
 0x76f   : > { %v32650_v21 = vadd.f32 %v15459_v46, %v15431_v5  ;;  %v24857_v46 = vld [vmem:[%s25576_s24 + $0x29c] sm:$0xf0]  ;;  %v24928_v5 = vld [vmem:[%s25576_s24 + $0x4dc] sm:$0xf] }
 0x770   : > { %v15374_v58 = vpop.f32.mrf.mxu1  ;;  %v15461_v16 = vpop.f32.mrf.mxu0  ;;  %v21797_v20 = vor.u32 %v24857_v46, %v21796_v50 }
 0x771   : > { %v15375_v14 = vadd.f32 %v15374_v58, %v32470_v9  ;;  %v32653_v12 = vpop.f32.mrf.mxu2  ;;  %v32655_v48 = vpop.f32.mrf.mxu3  ;;  %v21982_v9 = vld [vmem:[%s25576_s24 + $0x418] sm:$0xf0] }
 0x772   : > { %v21985_v4 = vor.u32 %v24880_v30, %v21982_v9  ;;  %v22174_v58 = vld [vmem:[%s25576_s24 + $0x598] sm:$0xf0] }
 0x773   : > { %v15404_v2 = vadd.f32 %v32589_v45, %v15375_v14  ;;  %v22177_v38 = vor.u32 %v24928_v5, %v22174_v58 }
 0x775   : > { %v15433_v49 = vadd.f32 %v32591_v41, %v15404_v2 }
 0x777   : > { %v32664_v29 = vadd.f32 %v15461_v16, %v15433_v49  ;;  %v25220_v49 = vld [vmem:[%s34262_s1 + $0x1e78] sm:$0xff] }
 0x778   : > { %v15377_v6 = vpop.f32.mrf.mxu1  ;;  %v15464_v55 = vpop.f32.mrf.mxu0  ;;  %15817 = vmatpush.bf16.msrb.mxu1 %v25220_v49  ;;  %v25241_v49 = vld [vmem:[%s34262_s1 + $0x1f20] sm:$0xff] }
 0x779   : > { %v15378_v0 = vadd.f32 %v15377_v6, %v32485_v57  ;;  %v32670_v23 = vpop.f32.mrf.mxu2  ;;  %v32672_v45 = vpop.f32.mrf.mxu3  ;;  %v25228_v57 = vld [vmem:[%s34262_s1 + $0x1eb8] sm:$0xff] }
 0x77a   : > { %15846 = vmatpush.bf16.msra.mxu2 %v25228_v57 }
 0x77b   : > { %v15407_v41 = vadd.f32 %v32616_v44, %v15378_v0  ;;  %15608 = vmatmul.bf16.gmra.mxu1 %v22345_v53  ;;  %15695 = vmatmul.bf16.gmra.mxu0 %v22357_v18  ;;  %v25236_v44 = vld [vmem:[%s34262_s1 + $0x1ef8] sm:$0xff] }
 0x77c   : > { %15875 = vmatpush.bf16.msra.mxu3 %v25236_v44  ;;  %15818 = vmatpush.bf16.msrb.mxu1 %v25219_v22  ;;  %v24905_v44 = vld [vmem:[%s25576_s24 + $0x41c] sm:$0xf0] }
 0x77d   : > { %v15436_v47 = vadd.f32 %v32618_v1, %v15407_v41  ;;  %15743 = vmatmul.bf16.gmra.mxu2 %v21981_v3  ;;  %15772 = vmatmul.bf16.gmra.mxu3 %v21985_v4  ;;  %v25218_v41 = vld [vmem:[%s34262_s1 + $0x1e68] sm:$0xff] }
 0x77e   : > { %15847 = vmatpush.bf16.msra.mxu2 %v25227_v40  ;;  %v25243_v40 = vld [vmem:[%s34262_s1 + $0x1f30] sm:$0xff] }
 0x77f   : > { %v32679_v32 = vadd.f32 %v15464_v55, %v15436_v47  ;;  %v25244_v55 = vld [vmem:[%s34262_s1 + $0x1f38] sm:$0xff]  ;;  %v25223_v47 = vld [vmem:[%s34262_s1 + $0x1e90] sm:$0xff] }
 0x780   : > { %v15379_v60 = vpop.f32.mrf.mxu1  ;;  %v15466_v35 = vpop.f32.mrf.mxu0  ;;  %15904 = vmatpush.bf16.msrb.mxu0 %v25244_v55  ;;  %15819 = vmatpush.bf16.msrb.mxu1 %v25218_v41  ;;  %v24927_v55 = vld [vmem:[%s25576_s24 + $0x4d4] sm:$0xf]  ;;  %v22180_v41 = vld [vmem:[%s25576_s24 + $0x4e0] sm:$0xf] }
 0x781   : > { %v15380_v1 = vadd.f32 %v15379_v60, %v32509_v7  ;;  %v32685_v26 = vpop.f32.mrf.mxu2  ;;  %v32687_v43 = vpop.f32.mrf.mxu3  ;;  %v25235_v7 = vld [vmem:[%s34262_s1 + $0x1ef0] sm:$0xff] }
 0x782   : > { %15876 = vmatpush.bf16.msra.mxu3 %v25235_v7  ;;  %15848 = vmatpush.bf16.msra.mxu2 %v25226_v36  ;;  %v24879_v60 = vld [vmem:[%s25576_s24 + $0x354] sm:$0xf]  ;;  %v22366_v36 = vld [vmem:[%s25576_s24 + $0x718] sm:$0xf0] }
 0x783   : > { %v15409_v19 = vadd.f32 %v15408_v52, %v15380_v1  ;;  %v21785_v52 = vor.u32 %v24831_v54, %v21782_v59  ;;  %v25231_v1 = vld [vmem:[%s34262_s1 + $0x1ed0] sm:$0xff]  ;;  %v25217_v54 = vld [vmem:[%s34262_s1 + $0x1e60] sm:$0xff]  ;;  %v25222_v59 = vld [vmem:[%s34262_s1 + $0x1e88] sm:$0xff] }
 0x784   : > { %15905 = vmatpush.bf16.msrb.mxu0 %v25243_v40  ;;  %15820 = vmatpush.bf16.msrb.mxu1 %v25217_v54  ;;  %v24834_v40 = vld [vmem:[%s25576_s24 + $0x1ec] sm:$0xf] }
 0x785   : > { %v15438_v39 = vadd.f32 %v15437_v10, %v15409_v19  ;;  %v25234_v10 = vld [vmem:[%s34262_s1 + $0x1ee8] sm:$0xff]  ;;  %v22364_v19 = vld [vmem:[%s25576_s24 + $0x658] sm:$0xf] }
 0x786   : > { %15877 = vmatpush.bf16.msra.mxu3 %v25234_v10  ;;  %15849 = vmatpush.bf16.msra.mxu2 %v25225_v15  ;;  %v22369_v10 = vor.u32 %v24976_v63, %v22366_v36 }
 0x787   : > { %v32703_v34 = vadd.f32 %v15466_v35, %v15438_v39  ;;  %v21974_v35 = vld [vmem:[%s25576_s24 + $0x410] sm:$0xf0]  ;;  %v25000_v39 = vld [vmem:[%s25576_s24 + $0x714] sm:$0xf0] }
 0x788   : > { %v15478_v16 = vpop.f32.mrf.mxu1  ;;  %v15565_v14 = vpop.f32.mrf.mxu0  ;;  %v21977_v46 = vor.u32 %v24879_v60, %v21974_v35  ;;  %15906 = vmatpush.bf16.msrb.mxu0 %v25242_v33  ;;  %v21804_v60 = vld [vmem:[%s25576_s24 + $0x1e8] sm:$0xf]  ;;  %v25213_v35 = vld [vmem:[%s34262_s1 + $0x1e40] sm:$0xff] }
 0x789   : > { %v15479_v2 = vadd.f32 %v15478_v16, %v32539_v24  ;;  %v32712_v37 = vpop.f32.mrf.mxu2  ;;  %v32714_v56 = vpop.f32.mrf.mxu3  ;;  %v25233_v24 = vld [vmem:[%s34262_s1 + $0x1ee0] sm:$0xff] }
 0x78a   : > { %15878 = vmatpush.bf16.msra.mxu3 %v25233_v24 }
 0x78b   : > { %v15508_v53 = vadd.f32 %v32653_v12, %v15479_v2  ;;  %15709 = vmatmul.bf16.vlgmr.msra.gmra.mxu1 %v21785_v52  ;;  %15796 = vmatmul.bf16.vlgmr.msra.gmra.mxu0 %v21797_v20  ;;  %v25224_v12 = vld [vmem:[%s34262_s1 + $0x1e98] sm:$0xff]  ;;  %v25230_v20 = vld [vmem:[%s34262_s1 + $0x1ec8] sm:$0xff] }
 0x78c   : > { %15850 = vmatpush.bf16.msra.mxu2 %v25224_v12  ;;  %v25216_v2 = vld [vmem:[%s34262_s1 + $0x1e58] sm:$0xff]  ;;  %15907 = vmatpush.bf16.msrb.mxu0 %v25241_v49  ;;  %v21996_v49 = vld [vmem:[%s25576_s24 + $0x368] sm:$0xf] }
 0x78d   : > { %v15537_v18 = vadd.f32 %v32655_v48, %v15508_v53  ;;  %15748 = vmatmul.bf16.gmra.mxu2 %v22173_v42  ;;  %15777 = vmatmul.bf16.gmra.mxu3 %v22177_v38  ;;  %v25232_v48 = vld [vmem:[%s34262_s1 + $0x1ed8] sm:$0xff]  ;;  %v25221_v42 = vld [vmem:[%s34262_s1 + $0x1e80] sm:$0xff] }
 0x78e   : > { %15879 = vmatpush.bf16.msra.mxu3 %v25232_v48  ;;  %15821 = vmatpush.bf16.msrb.mxu1 %v25216_v2  ;;  %v22358_v2 = vld [vmem:[%s25576_s24 + $0x710] sm:$0xf0] }
 0x78f   : > { %v32733_v30 = vadd.f32 %v15565_v14, %v15537_v18  ;;  %v22365_v14 = vor.u32 %v25000_v39, %v22364_v19 }
 0x790   : > { %v15480_v9 = vpop.f32.mrf.mxu1  ;;  %v15567_v6 = vpop.f32.mrf.mxu0  ;;  %15851 = vmatpush.bf16.msra.mxu2 %v25223_v47  ;;  %v24953_v47 = vld [vmem:[%s25576_s24 + $0x59c] sm:$0xf0] }
 0x791   : > { %v15481_v0 = vadd.f32 %v15480_v9, %v32577_v31  ;;  %v32742_v3 = vpop.f32.mrf.mxu2  ;;  %v32744_v4 = vpop.f32.mrf.mxu3  ;;  %v21988_v31 = vld [vmem:[%s25576_s24 + $0x360] sm:$0xf] }
 0x792   : > { %v21989_v7 = vor.u32 %v24905_v44, %v21988_v31  ;;  %15880 = vmatpush.bf16.msra.mxu3 %v25231_v1  ;;  %v22181_v44 = vor.u32 %v24953_v47, %v22180_v41  ;;  %v24858_v1 = vld [vmem:[%s25576_s24 + $0x2a4] sm:$0xf0] }
 0x793   : > { %v15510_v57 = vadd.f32 %v32670_v23, %v15481_v0  ;;  %v22166_v0 = vld [vmem:[%s25576_s24 + $0x590] sm:$0xf0]  ;;  %v21805_v39 = vor.u32 %v24858_v1, %v21804_v60 }
 0x794   : > { %15852 = vmatpush.bf16.msra.mxu2 %v25222_v59 }
 0x795   : > { %v15539_v23 = vadd.f32 %v32672_v45, %v15510_v57 }
 0x796   : > { %15881 = vmatpush.bf16.msra.mxu3 %v25230_v20 }
 0x797   : > { %v32771_v50 = vadd.f32 %v15567_v6, %v15539_v23  ;;  %v25214_v6 = vld [vmem:[%s34262_s1 + $0x1e48] sm:$0xff] }
 0x798   : > { %v15483_v52 = vpop.f32.mrf.mxu1  ;;  %v15570_v45 = vpop.f32.mrf.mxu0  ;;  %15853 = vmatpush.bf16.msra.mxu2 %v25221_v42  ;;  %v21806_v23 = vld [vmem:[%s25576_s24 + $0x2a8] sm:$0xf0]  ;;  %v22372_v42 = vld [vmem:[%s25576_s24 + $0x660] sm:$0xf] }
 0x799   : > { %v15484_v5 = vadd.f32 %v15483_v52, %v32610_v61  ;;  %v32783_v58 = vpop.f32.mrf.mxu2  ;;  %v32785_v16 = vpop.f32.mrf.mxu3  ;;  %v25229_v61 = vld [vmem:[%s34262_s1 + $0x1ec0] sm:$0xff]  ;;  %v21809_v63 = vor.u32 %v24834_v40, %v21806_v23 }
 0x79a   : > { %15882 = vmatpush.bf16.msra.mxu3 %v25229_v61  ;;  %v25237_v52 = vld [vmem:[%s34262_s1 + $0x1f00] sm:$0xff] }
 0x79b   : > { %v15513_v38 = vadd.f32 %v32685_v26, %v15484_v5  ;;  %15714 = vmatmul.bf16.gmra.mxu1 %v21977_v46  ;;  %15801 = vmatmul.bf16.gmra.mxu0 %v21989_v7  ;;  %v25215_v26 = vld [vmem:[%s34262_s1 + $0x1e50] sm:$0xff]  ;;  %v24833_v40 = vld [vmem:[%s25576_s24 + $0x1e4] sm:$0xf] }
 0x79c   : > { %15822 = vmatpush.bf16.msrb.mxu1 %v25215_v26  ;;  %v21798_v23 = vld [vmem:[%s25576_s24 + $0x2a0] sm:$0xf0] }
 0x79d   : > { %v15542_v15 = vadd.f32 %v32687_v43, %v15513_v38  ;;  %15753 = vmatmul.bf16.gmra.mxu2 %v22365_v14  ;;  %15782 = vmatmul.bf16.gmra.mxu3 %v22369_v10  ;;  %v25240_v43 = vld [vmem:[%s34262_s1 + $0x1f18] sm:$0xff]  ;;  %v25001_v38 = vld [vmem:[%s25576_s24 + $0x71c] sm:$0xf0] }
 0x79e   : > { %15908 = vmatpush.bf16.msrb.mxu0 %v25240_v43  ;;  %v24882_v43 = vld [vmem:[%s25576_s24 + $0x36c] sm:$0xf] }
 0x79f   : > { %v32804_v53 = vadd.f32 %v15570_v45, %v15542_v15 }
 0x7a0   : > { %v15485_v24 = vpop.f32.mrf.mxu1  ;;  %v15572_v18 = vpop.f32.mrf.mxu0  ;;  %15823 = vmatpush.bf16.msrb.mxu1 %v25214_v6 }
 0x7a1   : > { %v15486_v22 = vadd.f32 %v15485_v24, %v32636_v8  ;;  %v32810_v12 = vpop.f32.mrf.mxu2  ;;  %v32812_v9 = vpop.f32.mrf.mxu3  ;;  %v25239_v8 = vld [vmem:[%s34262_s1 + $0x1f10] sm:$0xff]  ;;  %v22373_v24 = vor.u32 %v25001_v38, %v22372_v42 }
 0x7a2   : > { %15909 = vmatpush.bf16.msrb.mxu0 %v25239_v8 }
 0x7a3   : > { %v15515_v48 = vadd.f32 %v32712_v37, %v15486_v22  ;;  %v22169_v37 = vor.u32 %v24927_v55, %v22166_v0 }
 0x7a4   : > { %15824 = vmatpush.bf16.msrb.mxu1 %v25213_v35 }
 0x7a5   : > { %v15544_v57 = vadd.f32 %v32714_v56, %v15515_v48  ;;  %v25238_v56 = vld [vmem:[%s34262_s1 + $0x1f08] sm:$0xff] }
 0x7a6   : > { %15910 = vmatpush.bf16.msrb.mxu0 %v25238_v56 }
 0x7a7   : > { %v32830_v31 = vadd.f32 %v15572_v18, %v15544_v57  ;;  %v24906_v18 = vld [vmem:[%s25576_s24 + $0x424] sm:$0xf0] }
 0x7a8   : > { %v15488_v19 = vpop.f32.mrf.mxu1  ;;  %v15575_v54 = vpop.f32.mrf.mxu0  ;;  %v21997_v0 = vor.u32 %v24906_v18, %v21996_v49  ;;  %v25257_v49 = vld [vmem:[%s34262_s1 + $0x1fa0] sm:$0xff]  ;;  %v25251_v18 = vld [vmem:[%s34262_s1 + $0x1f70] sm:$0xff] }
 0x7a9   : > { %v15489_v59 = vadd.f32 %v15488_v19, %v32650_v21  ;;  %v15524_v46 = vpop.f32.mrf.mxu2  ;;  %v15553_v7 = vpop.f32.mrf.mxu3  ;;  %v21812_v19 = vld [vmem:[%s25576_s24 + $0x1f0] sm:$0xf] }
 0x7aa   : > { %15911 = vmatpush.bf16.msrb.mxu0 %v25237_v52  ;;  %v24954_v52 = vld [vmem:[%s25576_s24 + $0x5a4] sm:$0xf0] }
 0x7ab   : > { %v15518_v36 = vadd.f32 %v32742_v3, %v15489_v59  ;;  %15719 = vmatmul.bf16.gmra.mxu1 %v22169_v37  ;;  %15806 = vmatmul.bf16.gmra.mxu0 %v22181_v44  ;;  %v25259_v44 = vld [vmem:[%s34262_s1 + $0x1fb0] sm:$0xff]  ;;  %v22188_v59 = vld [vmem:[%s25576_s24 + $0x4e8] sm:$0xf] }
 0x7ac   : > { %v22189_v42 = vor.u32 %v24954_v52, %v22188_v59  ;;  %v24978_v59 = vld [vmem:[%s25576_s24 + $0x66c] sm:$0xf] }
 0x7ad   : > { %v15547_v45 = vadd.f32 %v32744_v4, %v15518_v36  ;;  %15854 = vmatmul.bf16.vlgmr.msra.gmra.mxu2 %v21805_v39  ;;  %15883 = vmatmul.bf16.vlgmr.msra.gmra.mxu3 %v21809_v63  ;;  %v24975_v4 = vld [vmem:[%s25576_s24 + $0x654] sm:$0xf]  ;;  %v25258_v39 = vld [vmem:[%s34262_s1 + $0x1fa8] sm:$0xff] }
 0x7ae   : > { %v22361_v26 = vor.u32 %v24975_v4, %v22358_v2  ;;  %v25274_v52 = vld [vmem:[%s34262_s1 + $0x2028] sm:$0xff] }
 0x7af   : > { %v32844_v21 = vadd.f32 %v15575_v54, %v15547_v45  ;;  %v24859_v54 = vld [vmem:[%s25576_s24 + $0x2ac] sm:$0xf0]  ;;  %v24930_v45 = vld [vmem:[%s25576_s24 + $0x4ec] sm:$0xf] }
 0x7b0   : > { %v15490_v20 = vpop.f32.mrf.mxu1  ;;  %v15577_v3 = vpop.f32.mrf.mxu0  ;;  %v21813_v36 = vor.u32 %v24859_v54, %v21812_v19 }
 0x7b1   : > { %v15491_v33 = vadd.f32 %v15490_v20, %v32664_v29  ;;  %v32847_v5 = vpop.f32.mrf.mxu2  ;;  %v32849_v14 = vpop.f32.mrf.mxu3  ;;  %v21998_v29 = vld [vmem:[%s25576_s24 + $0x428] sm:$0xf0] }
 0x7b2   : > { %v22001_v41 = vor.u32 %v24882_v43, %v21998_v29  ;;  %v22190_v20 = vld [vmem:[%s25576_s24 + $0x5a8] sm:$0xf0] }
 0x7b3   : > { %v15520_v10 = vadd.f32 %v32783_v58, %v15491_v33  ;;  %v22193_v38 = vor.u32 %v24930_v45, %v22190_v20 }
 0x7b5   : > { %v15549_v61 = vadd.f32 %v32785_v16, %v15520_v10 }
 0x7b7   : > { %v32858_v15 = vadd.f32 %v15577_v3, %v15549_v61  ;;  %v25252_v61 = vld [vmem:[%s34262_s1 + $0x1f78] sm:$0xff] }
 0x7b8   : > { %v15493_v22 = vpop.f32.mrf.mxu1  ;;  %v15580_v6 = vpop.f32.mrf.mxu0  ;;  %15933 = vmatpush.bf16.msra.mxu1 %v25252_v61  ;;  %v25273_v61 = vld [vmem:[%s34262_s1 + $0x2020] sm:$0xff] }
 0x7b9   : > { %v15494_v48 = vadd.f32 %v15493_v22, %v32679_v32  ;;  %v32864_v55 = vpop.f32.mrf.mxu2  ;;  %v32866_v58 = vpop.f32.mrf.mxu3  ;;  %v25260_v32 = vld [vmem:[%s34262_s1 + $0x1fb8] sm:$0xff] }
 0x7ba   : > { %15962 = vmatpush.bf16.msrb.mxu2 %v25260_v32 }
 0x7bb   : > { %v15523_v16 = vadd.f32 %v32810_v12, %v15494_v48  ;;  %15724 = vmatmul.bf16.gmra.mxu1 %v22361_v26  ;;  %15811 = vmatmul.bf16.gmra.mxu0 %v22373_v24  ;;  %v25268_v12 = vld [vmem:[%s34262_s1 + $0x1ff8] sm:$0xff] }
 0x7bc   : > { %15991 = vmatpush.bf16.msrb.mxu3 %v25268_v12  ;;  %15934 = vmatpush.bf16.msra.mxu1 %v25251_v18  ;;  %v24907_v12 = vld [vmem:[%s25576_s24 + $0x42c] sm:$0xf0] }
 0x7bd   : > { %v15552_v47 = vadd.f32 %v32812_v9, %v15523_v16  ;;  %15859 = vmatmul.bf16.gmra.mxu2 %v21997_v0  ;;  %15888 = vmatmul.bf16.gmra.mxu3 %v22001_v41  ;;  %v25250_v16 = vld [vmem:[%s34262_s1 + $0x1f68] sm:$0xff] }
 0x7be   : > { %15963 = vmatpush.bf16.msrb.mxu2 %v25259_v44  ;;  %v25275_v44 = vld [vmem:[%s34262_s1 + $0x2030] sm:$0xff] }
 0x7bf   : > { %v32873_v8 = vadd.f32 %v15580_v6, %v15552_v47  ;;  %v25276_v6 = vld [vmem:[%s34262_s1 + $0x2038] sm:$0xff]  ;;  %v25255_v47 = vld [vmem:[%s34262_s1 + $0x1f90] sm:$0xff] }
 0x7c0   : > { %v15495_v57 = vpop.f32.mrf.mxu1  ;;  %v15582_v60 = vpop.f32.mrf.mxu0  ;;  %16020 = vmatpush.bf16.msra.mxu0 %v25276_v6  ;;  %15935 = vmatpush.bf16.msra.mxu1 %v25250_v16  ;;  %v24929_v6 = vld [vmem:[%s25576_s24 + $0x4e4] sm:$0xf]  ;;  %v22196_v16 = vld [vmem:[%s25576_s24 + $0x4f0] sm:$0xf] }
 0x7c1   : > { %v15496_v9 = vadd.f32 %v15495_v57, %v32703_v34  ;;  %v32879_v35 = vpop.f32.mrf.mxu2  ;;  %v32881_v37 = vpop.f32.mrf.mxu3  ;;  %v25267_v34 = vld [vmem:[%s34262_s1 + $0x1ff0] sm:$0xff]  ;;  %v24881_v57 = vld [vmem:[%s25576_s24 + $0x364] sm:$0xf] }
 0x7c2   : > { %15992 = vmatpush.bf16.msrb.mxu3 %v25267_v34  ;;  %15964 = vmatpush.bf16.msrb.mxu2 %v25258_v39  ;;  %v22382_v39 = vld [vmem:[%s25576_s24 + $0x728] sm:$0xf0] }
 0x7c3   : > { %v15525_v1 = vadd.f32 %v15524_v46, %v15496_v9  ;;  %v21801_v46 = vor.u32 %v24833_v40, %v21798_v23  ;;  %v25263_v9 = vld [vmem:[%s34262_s1 + $0x1fd0] sm:$0xff]  ;;  %v25249_v40 = vld [vmem:[%s34262_s1 + $0x1f60] sm:$0xff]  ;;  %v25254_v23 = vld [vmem:[%s34262_s1 + $0x1f88] sm:$0xff] }
 0x7c4   : > { %16021 = vmatpush.bf16.msra.mxu0 %v25275_v44  ;;  %15936 = vmatpush.bf16.msra.mxu1 %v25249_v40  ;;  %v24836_v44 = vld [vmem:[%s25576_s24 + $0x1fc] sm:$0xf] }
 0x7c5   : > { %v15554_v56 = vadd.f32 %v15553_v7, %v15525_v1  ;;  %v25266_v7 = vld [vmem:[%s34262_s1 + $0x1fe8] sm:$0xff] }
 0x7c6   : > { %15993 = vmatpush.bf16.msrb.mxu3 %v25266_v7  ;;  %15965 = vmatpush.bf16.msrb.mxu2 %v25257_v49  ;;  %v22380_v1 = vld [vmem:[%s25576_s24 + $0x668] sm:$0xf]  ;;  %v22385_v7 = vor.u32 %v24978_v59, %v22382_v39 }
 0x7c7   : > { %v32897_v63 = vadd.f32 %v15582_v60, %v15554_v56  ;;  %v21990_v60 = vld [vmem:[%s25576_s24 + $0x420] sm:$0xf0]  ;;  %v25002_v56 = vld [vmem:[%s25576_s24 + $0x724] sm:$0xf0] }
 0x7c8   : > { %v15594_v3 = vpop.f32.mrf.mxu1  ;;  %v15681_v33 = vpop.f32.mrf.mxu0  ;;  %v21993_v54 = vor.u32 %v24881_v57, %v21990_v60  ;;  %16022 = vmatpush.bf16.msra.mxu0 %v25274_v52  ;;  %v21820_v57 = vld [vmem:[%s25576_s24 + $0x1f8] sm:$0xf]  ;;  %v25245_v60 = vld [vmem:[%s34262_s1 + $0x1f40] sm:$0xff] }
 0x7c9   : > { %v15595_v10 = vadd.f32 %v15594_v3, %v32733_v30  ;;  %v32906_v4 = vpop.f32.mrf.mxu2  ;;  %v32908_v2 = vpop.f32.mrf.mxu3  ;;  %v25265_v30 = vld [vmem:[%s34262_s1 + $0x1fe0] sm:$0xff] }
 0x7ca   : > { %15994 = vmatpush.bf16.msrb.mxu3 %v25265_v30 }
 0x7cb   : > { %v15624_v26 = vadd.f32 %v32847_v5, %v15595_v10  ;;  %15825 = vmatmul.bf16.vlgmr.msrb.gmra.mxu1 %v21801_v46  ;;  %15912 = vmatmul.bf16.vlgmr.msrb.gmra.mxu0 %v21813_v36  ;;  %v25256_v5 = vld [vmem:[%s34262_s1 + $0x1f98] sm:$0xff]  ;;  %v25262_v36 = vld [vmem:[%s34262_s1 + $0x1fc8] sm:$0xff] }
 0x7cc   : > { %15966 = vmatpush.bf16.msrb.mxu2 %v25256_v5  ;;  %v25248_v10 = vld [vmem:[%s34262_s1 + $0x1f58] sm:$0xff]  ;;  %16023 = vmatpush.bf16.msra.mxu0 %v25273_v61 }
 0x7cd   : > { %v15653_v24 = vadd.f32 %v32849_v14, %v15624_v26  ;;  %15864 = vmatmul.bf16.gmra.mxu2 %v22189_v42  ;;  %15893 = vmatmul.bf16.gmra.mxu3 %v22193_v38  ;;  %v25264_v14 = vld [vmem:[%s34262_s1 + $0x1fd8] sm:$0xff]  ;;  %v25253_v42 = vld [vmem:[%s34262_s1 + $0x1f80] sm:$0xff] }
 0x7ce   : > { %15995 = vmatpush.bf16.msrb.mxu3 %v25264_v14  ;;  %15937 = vmatpush.bf16.msra.mxu1 %v25248_v10  ;;  %v22374_v10 = vld [vmem:[%s25576_s24 + $0x720] sm:$0xf0]  ;;  %v22012_v61 = vld [vmem:[%s25576_s24 + $0x378] sm:$0xf] }
 0x7cf   : > { %v32927_v43 = vadd.f32 %v15681_v33, %v15653_v24  ;;  %v22381_v33 = vor.u32 %v25002_v56, %v22380_v1 }
 0x7d0   : > { %v15596_v29 = vpop.f32.mrf.mxu1  ;;  %v15683_v22 = vpop.f32.mrf.mxu0  ;;  %15967 = vmatpush.bf16.msrb.mxu2 %v25255_v47  ;;  %v24955_v47 = vld [vmem:[%s25576_s24 + $0x5ac] sm:$0xf0] }
 0x7d1   : > { %v15597_v48 = vadd.f32 %v15596_v29, %v32771_v50  ;;  %v32936_v0 = vpop.f32.mrf.mxu2  ;;  %v32938_v41 = vpop.f32.mrf.mxu3  ;;  %v22004_v50 = vld [vmem:[%s25576_s24 + $0x370] sm:$0xf] }
 0x7d2   : > { %v22005_v34 = vor.u32 %v24907_v12, %v22004_v50  ;;  %15996 = vmatpush.bf16.msrb.mxu3 %v25263_v9  ;;  %v22197_v12 = vor.u32 %v24955_v47, %v22196_v16  ;;  %v24860_v9 = vld [vmem:[%s25576_s24 + $0x2b4] sm:$0xf0] }
 0x7d3   : > { %v15626_v32 = vadd.f32 %v32864_v55, %v15597_v48  ;;  %v22182_v48 = vld [vmem:[%s25576_s24 + $0x5a0] sm:$0xf0]  ;;  %v21821_v56 = vor.u32 %v24860_v9, %v21820_v57 }
 0x7d4   : > { %15968 = vmatpush.bf16.msrb.mxu2 %v25254_v23 }
 0x7d5   : > { %v15655_v55 = vadd.f32 %v32866_v58, %v15626_v32 }
 0x7d6   : > { %15997 = vmatpush.bf16.msrb.mxu3 %v25262_v36 }
 0x7d7   : > { %v32965_v19 = vadd.f32 %v15683_v22, %v15655_v55  ;;  %v25246_v22 = vld [vmem:[%s34262_s1 + $0x1f48] sm:$0xff]  ;;  %v21822_v55 = vld [vmem:[%s25576_s24 + $0x2b8] sm:$0xf0] }
 0x7d8   : > { %v15599_v46 = vpop.f32.mrf.mxu1  ;;  %v15686_v58 = vpop.f32.mrf.mxu0  ;;  %15969 = vmatpush.bf16.msrb.mxu2 %v25253_v42  ;;  %v21825_v59 = vor.u32 %v24836_v44, %v21822_v55  ;;  %v22388_v42 = vld [vmem:[%s25576_s24 + $0x670] sm:$0xf]  ;;  %v24835_v44 = vld [vmem:[%s25576_s24 + $0x1f4] sm:$0xf] }
 0x7d9   : > { %v15600_v45 = vadd.f32 %v15599_v46, %v32804_v53  ;;  %v32977_v20 = vpop.f32.mrf.mxu2  ;;  %v32979_v3 = vpop.f32.mrf.mxu3  ;;  %v25261_v53 = vld [vmem:[%s34262_s1 + $0x1fc0] sm:$0xff]  ;;  %v21814_v55 = vld [vmem:[%s25576_s24 + $0x2b0] sm:$0xf0] }
 0x7da   : > { %15998 = vmatpush.bf16.msrb.mxu3 %v25261_v53  ;;  %v25269_v46 = vld [vmem:[%s34262_s1 + $0x2000] sm:$0xff] }
 0x7db   : > { %v15629_v38 = vadd.f32 %v32879_v35, %v15600_v45  ;;  %15830 = vmatmul.bf16.gmra.mxu1 %v21993_v54  ;;  %15917 = vmatmul.bf16.gmra.mxu0 %v22005_v34  ;;  %v25247_v35 = vld [vmem:[%s34262_s1 + $0x1f50] sm:$0xff] }
 0x7dc   : > { %15938 = vmatpush.bf16.msra.mxu1 %v25247_v35 }
 0x7dd   : > { %v15658_v49 = vadd.f32 %v32881_v37, %v15629_v38  ;;  %15869 = vmatmul.bf16.gmra.mxu2 %v22381_v33  ;;  %15898 = vmatmul.bf16.gmra.mxu3 %v22385_v7  ;;  %v25272_v37 = vld [vmem:[%s34262_s1 + $0x2018] sm:$0xff]  ;;  %v25003_v38 = vld [vmem:[%s25576_s24 + $0x72c] sm:$0xf0] }
 0x7de   : > { %16024 = vmatpush.bf16.msra.mxu0 %v25272_v37  ;;  %v24884_v37 = vld [vmem:[%s25576_s24 + $0x37c] sm:$0xf] }
 0x7df   : > { %v32998_v26 = vadd.f32 %v15686_v58, %v15658_v49 }
 0x7e0   : > { %v15601_v30 = vpop.f32.mrf.mxu1  ;;  %v15688_v24 = vpop.f32.mrf.mxu0  ;;  %15939 = vmatpush.bf16.msra.mxu1 %v25246_v22 }
 0x7e1   : > { %v15602_v18 = vadd.f32 %v15601_v30, %v32830_v31  ;;  %v33004_v5 = vpop.f32.mrf.mxu2  ;;  %v33006_v29 = vpop.f32.mrf.mxu3  ;;  %v25271_v31 = vld [vmem:[%s34262_s1 + $0x2010] sm:$0xff]  ;;  %v22389_v30 = vor.u32 %v25003_v38, %v22388_v42 }
 0x7e2   : > { %16025 = vmatpush.bf16.msra.mxu0 %v25271_v31 }
 0x7e3   : > { %v15631_v14 = vadd.f32 %v32906_v4, %v15602_v18  ;;  %v22185_v4 = vor.u32 %v24929_v6, %v22182_v48 }
 0x7e4   : > { %15940 = vmatpush.bf16.msra.mxu1 %v25245_v60 }
 0x7e5   : > { %v15660_v32 = vadd.f32 %v32908_v2, %v15631_v14  ;;  %v25270_v2 = vld [vmem:[%s34262_s1 + $0x2008] sm:$0xff] }
 0x7e6   : > { %16026 = vmatpush.bf16.msra.mxu0 %v25270_v2 }
 0x7e7   : > { %v33024_v50 = vadd.f32 %v15688_v24, %v15660_v32  ;;  %v24908_v24 = vld [vmem:[%s25576_s24 + $0x434] sm:$0xf0] }
 0x7e8   : > { %v15604_v1 = vpop.f32.mrf.mxu1  ;;  %v15691_v40 = vpop.f32.mrf.mxu0  ;;  %v22013_v48 = vor.u32 %v24908_v24, %v22012_v61  ;;  %v25289_v61 = vld [vmem:[%s34262_s1 + $0x20a0] sm:$0xff]  ;;  %v25283_v24 = vld [vmem:[%s34262_s1 + $0x2070] sm:$0xff] }
 0x7e9   : > { %v15605_v23 = vadd.f32 %v15604_v1, %v32844_v21  ;;  %v15640_v54 = vpop.f32.mrf.mxu2  ;;  %v15669_v34 = vpop.f32.mrf.mxu3  ;;  %v21828_v1 = vld [vmem:[%s25576_s24 + $0x200] sm:$0xf] }
 0x7ea   : > { %16027 = vmatpush.bf16.msra.mxu0 %v25269_v46  ;;  %v24956_v46 = vld [vmem:[%s25576_s24 + $0x5b4] sm:$0xf0] }
 0x7eb   : > { %v15634_v39 = vadd.f32 %v32936_v0, %v15605_v23  ;;  %15835 = vmatmul.bf16.gmra.mxu1 %v22185_v4  ;;  %15922 = vmatmul.bf16.gmra.mxu0 %v22197_v12  ;;  %v25291_v12 = vld [vmem:[%s34262_s1 + $0x20b0] sm:$0xff]  ;;  %v22204_v23 = vld [vmem:[%s25576_s24 + $0x4f8] sm:$0xf] }
 0x7ec   : > { %v22205_v42 = vor.u32 %v24956_v46, %v22204_v23  ;;  %v24980_v23 = vld [vmem:[%s25576_s24 + $0x67c] sm:$0xf]  ;;  %v25306_v46 = vld [vmem:[%s34262_s1 + $0x2128] sm:$0xff] }
 0x7ed   : > { %v15663_v58 = vadd.f32 %v32938_v41, %v15634_v39  ;;  %15970 = vmatmul.bf16.vlgmr.msrb.gmra.mxu2 %v21821_v56  ;;  %15999 = vmatmul.bf16.vlgmr.msrb.gmra.mxu3 %v21825_v59  ;;  %v24977_v41 = vld [vmem:[%s25576_s24 + $0x664] sm:$0xf]  ;;  %v25290_v56 = vld [vmem:[%s34262_s1 + $0x20a8] sm:$0xff] }
 0x7ee   : > { %v22377_v35 = vor.u32 %v24977_v41, %v22374_v10 }
 0x7ef   : > { %v33038_v21 = vadd.f32 %v15691_v40, %v15663_v58  ;;  %v24861_v40 = vld [vmem:[%s25576_s24 + $0x2bc] sm:$0xf0]  ;;  %v24932_v58 = vld [vmem:[%s25576_s24 + $0x4fc] sm:$0xf] }
 0x7f0   : > { %v15606_v36 = vpop.f32.mrf.mxu1  ;;  %v15693_v0 = vpop.f32.mrf.mxu0  ;;  %v21829_v39 = vor.u32 %v24861_v40, %v21828_v1 }
 0x7f1   : > { %v15607_v52 = vadd.f32 %v15606_v36, %v32858_v15  ;;  %v33041_v45 = vpop.f32.mrf.mxu2  ;;  %v33043_v33 = vpop.f32.mrf.mxu3  ;;  %v22014_v15 = vld [vmem:[%s25576_s24 + $0x438] sm:$0xf0] }
 0x7f2   : > { %v22017_v16 = vor.u32 %v24884_v37, %v22014_v15  ;;  %v22206_v36 = vld [vmem:[%s25576_s24 + $0x5b8] sm:$0xf0] }
 0x7f3   : > { %v15636_v7 = vadd.f32 %v32977_v20, %v15607_v52  ;;  %v22209_v38 = vor.u32 %v24932_v58, %v22206_v36 }
 0x7f5   : > { %v15665_v53 = vadd.f32 %v32979_v3, %v15636_v7 }
 0x7f7   : > { %v33052_v49 = vadd.f32 %v15693_v0, %v15665_v53  ;;  %v25284_v53 = vld [vmem:[%s34262_s1 + $0x2078] sm:$0xff] }
 0x7f8   : > { %v15609_v18 = vpop.f32.mrf.mxu1  ;;  %v15696_v22 = vpop.f32.mrf.mxu0  ;;  %16049 = vmatpush.bf16.msrb.mxu1 %v25284_v53  ;;  %v25305_v53 = vld [vmem:[%s34262_s1 + $0x2120] sm:$0xff] }
 0x7f9   : > { %v15610_v14 = vadd.f32 %v15609_v18, %v32873_v8  ;;  %v33058_v6 = vpop.f32.mrf.mxu2  ;;  %v33060_v20 = vpop.f32.mrf.mxu3  ;;  %v25292_v8 = vld [vmem:[%s34262_s1 + $0x20b8] sm:$0xff] }
 0x7fa   : > { %16078 = vmatpush.bf16.msra.mxu2 %v25292_v8 }
 0x7fb   : > { %v15639_v3 = vadd.f32 %v33004_v5, %v15610_v14  ;;  %15840 = vmatmul.bf16.gmra.mxu1 %v22377_v35  ;;  %15927 = vmatmul.bf16.gmra.mxu0 %v22389_v30  ;;  %v25300_v5 = vld [vmem:[%s34262_s1 + $0x20f8] sm:$0xff] }
 0x7fc   : > { %16107 = vmatpush.bf16.msra.mxu3 %v25300_v5  ;;  %16050 = vmatpush.bf16.msrb.mxu1 %v25283_v24  ;;  %v24909_v5 = vld [vmem:[%s25576_s24 + $0x43c] sm:$0xf0] }
 0x7fd   : > { %v15668_v47 = vadd.f32 %v33006_v29, %v15639_v3  ;;  %15975 = vmatmul.bf16.gmra.mxu2 %v22013_v48  ;;  %16004 = vmatmul.bf16.gmra.mxu3 %v22017_v16  ;;  %v25282_v3 = vld [vmem:[%s34262_s1 + $0x2068] sm:$0xff] }
 0x7fe   : > { %16079 = vmatpush.bf16.msra.mxu2 %v25291_v12  ;;  %v25307_v12 = vld [vmem:[%s34262_s1 + $0x2130] sm:$0xff] }
 0x7ff   : > { %v33067_v31 = vadd.f32 %v15696_v22, %v15668_v47  ;;  %v25308_v22 = vld [vmem:[%s34262_s1 + $0x2138] sm:$0xff]  ;;  %v25287_v47 = vld [vmem:[%s34262_s1 + $0x2090] sm:$0xff] }
 0x800   : > { %v15611_v32 = vpop.f32.mrf.mxu1  ;;  %v15698_v57 = vpop.f32.mrf.mxu0  ;;  %16136 = vmatpush.bf16.msrb.mxu0 %v25308_v22  ;;  %16051 = vmatpush.bf16.msrb.mxu1 %v25282_v3  ;;  %v24931_v22 = vld [vmem:[%s25576_s24 + $0x4f4] sm:$0xf]  ;;  %v22212_v3 = vld [vmem:[%s25576_s24 + $0x500] sm:$0xf] }
 0x801   : > { %v15612_v29 = vadd.f32 %v15611_v32, %v32897_v63  ;;  %v33073_v60 = vpop.f32.mrf.mxu2  ;;  %v33075_v4 = vpop.f32.mrf.mxu3  ;;  %v25299_v63 = vld [vmem:[%s34262_s1 + $0x20f0] sm:$0xff] }
 0x802   : > { %16108 = vmatpush.bf16.msra.mxu3 %v25299_v63  ;;  %16080 = vmatpush.bf16.msra.mxu2 %v25290_v56  ;;  %v24883_v32 = vld [vmem:[%s25576_s24 + $0x374] sm:$0xf]  ;;  %v22398_v56 = vld [vmem:[%s25576_s24 + $0x738] sm:$0xf0] }
 0x803   : > { %v15641_v9 = vadd.f32 %v15640_v54, %v15612_v29  ;;  %v21817_v54 = vor.u32 %v24835_v44, %v21814_v55  ;;  %v25295_v29 = vld [vmem:[%s34262_s1 + $0x20d0] sm:$0xff]  ;;  %v25281_v44 = vld [vmem:[%s34262_s1 + $0x2060] sm:$0xff]  ;;  %v25286_v55 = vld [vmem:[%s34262_s1 + $0x2088] sm:$0xff] }
 0x804   : > { %16137 = vmatpush.bf16.msrb.mxu0 %v25307_v12  ;;  %16052 = vmatpush.bf16.msrb.mxu1 %v25281_v44  ;;  %v24838_v12 = vld [vmem:[%s25576_s24 + $0x20c] sm:$0xf] }
 0x805   : > { %v15670_v2 = vadd.f32 %v15669_v34, %v15641_v9  ;;  %v25298_v34 = vld [vmem:[%s34262_s1 + $0x20e8] sm:$0xff]  ;;  %v22396_v9 = vld [vmem:[%s25576_s24 + $0x678] sm:$0xf] }
 0x806   : > { %16109 = vmatpush.bf16.msra.mxu3 %v25298_v34  ;;  %16081 = vmatpush.bf16.msra.mxu2 %v25289_v61  ;;  %v22401_v34 = vor.u32 %v24980_v23, %v22398_v56 }
 0x807   : > { %v33091_v59 = vadd.f32 %v15698_v57, %v15670_v2  ;;  %v22006_v57 = vld [vmem:[%s25576_s24 + $0x430] sm:$0xf0]  ;;  %v25004_v2 = vld [vmem:[%s25576_s24 + $0x734] sm:$0xf0] }
 0x808   : > { %v15710_v0 = vpop.f32.mrf.mxu1  ;;  %v15797_v52 = vpop.f32.mrf.mxu0  ;;  %v22009_v40 = vor.u32 %v24883_v32, %v22006_v57  ;;  %16138 = vmatpush.bf16.msrb.mxu0 %v25306_v46  ;;  %v21836_v32 = vld [vmem:[%s25576_s24 + $0x208] sm:$0xf]  ;;  %v25277_v57 = vld [vmem:[%s34262_s1 + $0x2040] sm:$0xff] }
 0x809   : > { %v15711_v7 = vadd.f32 %v15710_v0, %v32927_v43  ;;  %v33100_v41 = vpop.f32.mrf.mxu2  ;;  %v33102_v10 = vpop.f32.mrf.mxu3  ;;  %v25297_v43 = vld [vmem:[%s34262_s1 + $0x20e0] sm:$0xff] }
 0x80a   : > { %16110 = vmatpush.bf16.msra.mxu3 %v25297_v43 }
 0x80b   : > { %v15740_v35 = vadd.f32 %v33041_v45, %v15711_v7  ;;  %15941 = vmatmul.bf16.vlgmr.msra.gmra.mxu1 %v21817_v54  ;;  %16028 = vmatmul.bf16.vlgmr.msra.gmra.mxu0 %v21829_v39  ;;  %v25288_v45 = vld [vmem:[%s34262_s1 + $0x2098] sm:$0xff]  ;;  %v25294_v39 = vld [vmem:[%s34262_s1 + $0x20c8] sm:$0xff] }
 0x80c   : > { %16082 = vmatpush.bf16.msra.mxu2 %v25288_v45  ;;  %v25280_v7 = vld [vmem:[%s34262_s1 + $0x2058] sm:$0xff]  ;;  %16139 = vmatpush.bf16.msrb.mxu0 %v25305_v53  ;;  %v22028_v53 = vld [vmem:[%s25576_s24 + $0x388] sm:$0xf] }
 0x80d   : > { %v15769_v30 = vadd.f32 %v33043_v33, %v15740_v35  ;;  %15980 = vmatmul.bf16.gmra.mxu2 %v22205_v42  ;;  %16009 = vmatmul.bf16.gmra.mxu3 %v22209_v38  ;;  %v25296_v33 = vld [vmem:[%s34262_s1 + $0x20d8] sm:$0xff]  ;;  %v25285_v42 = vld [vmem:[%s34262_s1 + $0x2080] sm:$0xff] }
 0x80e   : > { %16111 = vmatpush.bf16.msra.mxu3 %v25296_v33  ;;  %16053 = vmatpush.bf16.msrb.mxu1 %v25280_v7  ;;  %v22390_v7 = vld [vmem:[%s25576_s24 + $0x730] sm:$0xf0] }
 0x80f   : > { %v33121_v37 = vadd.f32 %v15797_v52, %v15769_v30  ;;  %v22397_v52 = vor.u32 %v25004_v2, %v22396_v9 }
 0x810   : > { %v15712_v15 = vpop.f32.mrf.mxu1  ;;  %v15799_v18 = vpop.f32.mrf.mxu0  ;;  %16083 = vmatpush.bf16.msra.mxu2 %v25287_v47  ;;  %v24957_v47 = vld [vmem:[%s25576_s24 + $0x5bc] sm:$0xf0] }
 0x811   : > { %v15713_v14 = vadd.f32 %v15712_v15, %v32965_v19  ;;  %v33130_v48 = vpop.f32.mrf.mxu2  ;;  %v33132_v16 = vpop.f32.mrf.mxu3  ;;  %v22020_v19 = vld [vmem:[%s25576_s24 + $0x380] sm:$0xf] }
 0x812   : > { %v22021_v63 = vor.u32 %v24909_v5, %v22020_v19  ;;  %16112 = vmatpush.bf16.msra.mxu3 %v25295_v29  ;;  %v22213_v5 = vor.u32 %v24957_v47, %v22212_v3  ;;  %v24862_v29 = vld [vmem:[%s25576_s24 + $0x2c4] sm:$0xf0] }
 0x813   : > { %v15742_v8 = vadd.f32 %v33058_v6, %v15713_v14  ;;  %v22198_v14 = vld [vmem:[%s25576_s24 + $0x5b0] sm:$0xf0]  ;;  %v21837_v2 = vor.u32 %v24862_v29, %v21836_v32 }
 0x814   : > { %16084 = vmatpush.bf16.msra.mxu2 %v25286_v55 }
 0x815   : > { %v15771_v6 = vadd.f32 %v33060_v20, %v15742_v8 }
 0x816   : > { %16113 = vmatpush.bf16.msra.mxu3 %v25294_v39 }
 0x817   : > { %v33159_v1 = vadd.f32 %v15799_v18, %v15771_v6  ;;  %v25278_v18 = vld [vmem:[%s34262_s1 + $0x2048] sm:$0xff] }
 0x818   : > { %v15715_v54 = vpop.f32.mrf.mxu1  ;;  %v15802_v20 = vpop.f32.mrf.mxu0  ;;  %16085 = vmatpush.bf16.msra.mxu2 %v25285_v42  ;;  %v21838_v6 = vld [vmem:[%s25576_s24 + $0x2c8] sm:$0xf0]  ;;  %v22404_v42 = vld [vmem:[%s25576_s24 + $0x680] sm:$0xf] }
 0x819   : > { %v15716_v58 = vadd.f32 %v15715_v54, %v32998_v26  ;;  %v33171_v36 = vpop.f32.mrf.mxu2  ;;  %v33173_v0 = vpop.f32.mrf.mxu3  ;;  %v25293_v26 = vld [vmem:[%s34262_s1 + $0x20c0] sm:$0xff]  ;;  %v21841_v23 = vor.u32 %v24838_v12, %v21838_v6 }
 0x81a   : > { %16114 = vmatpush.bf16.msra.mxu3 %v25293_v26  ;;  %v25301_v54 = vld [vmem:[%s34262_s1 + $0x2100] sm:$0xff] }
 0x81b   : > { %v15745_v38 = vadd.f32 %v33073_v60, %v15716_v58  ;;  %15946 = vmatmul.bf16.gmra.mxu1 %v22009_v40  ;;  %16033 = vmatmul.bf16.gmra.mxu0 %v22021_v63  ;;  %v25279_v60 = vld [vmem:[%s34262_s1 + $0x2050] sm:$0xff]  ;;  %v24837_v12 = vld [vmem:[%s25576_s24 + $0x204] sm:$0xf] }
 0x81c   : > { %16054 = vmatpush.bf16.msrb.mxu1 %v25279_v60  ;;  %v21830_v6 = vld [vmem:[%s25576_s24 + $0x2c0] sm:$0xf0] }
 0x81d   : > { %v15774_v61 = vadd.f32 %v33075_v4, %v15745_v38  ;;  %15985 = vmatmul.bf16.gmra.mxu2 %v22397_v52  ;;  %16014 = vmatmul.bf16.gmra.mxu3 %v22401_v34  ;;  %v25304_v4 = vld [vmem:[%s34262_s1 + $0x2118] sm:$0xff]  ;;  %v25005_v38 = vld [vmem:[%s25576_s24 + $0x73c] sm:$0xf0] }
 0x81e   : > { %16140 = vmatpush.bf16.msrb.mxu0 %v25304_v4  ;;  %v24886_v4 = vld [vmem:[%s25576_s24 + $0x38c] sm:$0xf] }
 0x81f   : > { %v33192_v35 = vadd.f32 %v15802_v20, %v15774_v61 }
 0x820   : > { %v15717_v43 = vpop.f32.mrf.mxu1  ;;  %v15804_v30 = vpop.f32.mrf.mxu0  ;;  %16055 = vmatpush.bf16.msrb.mxu1 %v25278_v18 }
 0x821   : > { %v15718_v24 = vadd.f32 %v15717_v43, %v33024_v50  ;;  %v33198_v45 = vpop.f32.mrf.mxu2  ;;  %v33200_v15 = vpop.f32.mrf.mxu3  ;;  %v25303_v50 = vld [vmem:[%s34262_s1 + $0x2110] sm:$0xff]  ;;  %v22405_v43 = vor.u32 %v25005_v38, %v22404_v42 }
 0x822   : > { %16141 = vmatpush.bf16.msrb.mxu0 %v25303_v50 }
 0x823   : > { %v15747_v33 = vadd.f32 %v33100_v41, %v15718_v24  ;;  %v22201_v41 = vor.u32 %v24931_v22, %v22198_v14 }
 0x824   : > { %16056 = vmatpush.bf16.msrb.mxu1 %v25277_v57 }
 0x825   : > { %v15776_v8 = vadd.f32 %v33102_v10, %v15747_v33  ;;  %v25302_v10 = vld [vmem:[%s34262_s1 + $0x2108] sm:$0xff] }
 0x826   : > { %16142 = vmatpush.bf16.msrb.mxu0 %v25302_v10 }
 0x827   : > { %v33218_v19 = vadd.f32 %v15804_v30, %v15776_v8  ;;  %v24910_v30 = vld [vmem:[%s25576_s24 + $0x444] sm:$0xf0] }
 0x828   : > { %v15720_v9 = vpop.f32.mrf.mxu1  ;;  %v15807_v44 = vpop.f32.mrf.mxu0  ;;  %v22029_v14 = vor.u32 %v24910_v30, %v22028_v53  ;;  %v25321_v53 = vld [vmem:[%s34262_s1 + $0x21a0] sm:$0xff]  ;;  %v25315_v30 = vld [vmem:[%s34262_s1 + $0x2170] sm:$0xff] }
 0x829   : > { %v15721_v55 = vadd.f32 %v15720_v9, %v33038_v21  ;;  %v15756_v40 = vpop.f32.mrf.mxu2  ;;  %v15785_v63 = vpop.f32.mrf.mxu3  ;;  %v21844_v9 = vld [vmem:[%s25576_s24 + $0x210] sm:$0xf] }
 0x82a   : > { %16143 = vmatpush.bf16.msrb.mxu0 %v25301_v54  ;;  %v24958_v54 = vld [vmem:[%s25576_s24 + $0x5c4] sm:$0xf0] }
 0x82b   : > { %v15750_v56 = vadd.f32 %v33130_v48, %v15721_v55  ;;  %15951 = vmatmul.bf16.gmra.mxu1 %v22201_v41  ;;  %16038 = vmatmul.bf16.gmra.mxu0 %v22213_v5  ;;  %v25323_v5 = vld [vmem:[%s34262_s1 + $0x21b0] sm:$0xff]  ;;  %v22220_v55 = vld [vmem:[%s25576_s24 + $0x508] sm:$0xf] }
 0x82c   : > { %v22221_v42 = vor.u32 %v24958_v54, %v22220_v55  ;;  %v24982_v55 = vld [vmem:[%s25576_s24 + $0x68c] sm:$0xf] }
 0x82d   : > { %v15779_v20 = vadd.f32 %v33132_v16, %v15750_v56  ;;  %16086 = vmatmul.bf16.vlgmr.msra.gmra.mxu2 %v21837_v2  ;;  %16115 = vmatmul.bf16.vlgmr.msra.gmra.mxu3 %v21841_v23  ;;  %v24979_v16 = vld [vmem:[%s25576_s24 + $0x674] sm:$0xf]  ;;  %v25322_v2 = vld [vmem:[%s34262_s1 + $0x21a8] sm:$0xff] }
 0x82e   : > { %v22393_v60 = vor.u32 %v24979_v16, %v22390_v7  ;;  %v25338_v54 = vld [vmem:[%s34262_s1 + $0x2228] sm:$0xff] }
 0x82f   : > { %v33232_v21 = vadd.f32 %v15807_v44, %v15779_v20  ;;  %v24863_v44 = vld [vmem:[%s25576_s24 + $0x2cc] sm:$0xf0]  ;;  %v24934_v20 = vld [vmem:[%s25576_s24 + $0x50c] sm:$0xf] }
 0x830   : > { %v15722_v39 = vpop.f32.mrf.mxu1  ;;  %v15809_v48 = vpop.f32.mrf.mxu0  ;;  %v21845_v56 = vor.u32 %v24863_v44, %v21844_v9 }
 0x831   : > { %v15723_v46 = vadd.f32 %v15722_v39, %v33052_v49  ;;  %v33235_v58 = vpop.f32.mrf.mxu2  ;;  %v33237_v52 = vpop.f32.mrf.mxu3  ;;  %v22030_v49 = vld [vmem:[%s25576_s24 + $0x448] sm:$0xf0] }
 0x832   : > { %v22033_v3 = vor.u32 %v24886_v4, %v22030_v49  ;;  %v22222_v39 = vld [vmem:[%s25576_s24 + $0x5c8] sm:$0xf0] }
 0x833   : > { %v15752_v34 = vadd.f32 %v33171_v36, %v15723_v46  ;;  %v22225_v38 = vor.u32 %v24934_v20, %v22222_v39 }
 0x835   : > { %v15781_v26 = vadd.f32 %v33173_v0, %v15752_v34 }
 0x837   : > { %v33246_v61 = vadd.f32 %v15809_v48, %v15781_v26  ;;  %v25316_v26 = vld [vmem:[%s34262_s1 + $0x2178] sm:$0xff] }
 0x838   : > { %v15725_v24 = vpop.f32.mrf.mxu1  ;;  %v15812_v18 = vpop.f32.mrf.mxu0  ;;  %16165 = vmatpush.bf16.msra.mxu1 %v25316_v26  ;;  %v25337_v26 = vld [vmem:[%s34262_s1 + $0x2220] sm:$0xff] }
 0x839   : > { %v15726_v33 = vadd.f32 %v15725_v24, %v33067_v31  ;;  %v33252_v22 = vpop.f32.mrf.mxu2  ;;  %v33254_v36 = vpop.f32.mrf.mxu3  ;;  %v25324_v31 = vld [vmem:[%s34262_s1 + $0x21b8] sm:$0xff] }
 0x83a   : > { %16194 = vmatpush.bf16.msrb.mxu2 %v25324_v31 }
 0x83b   : > { %v15755_v0 = vadd.f32 %v33198_v45, %v15726_v33  ;;  %15956 = vmatmul.bf16.gmra.mxu1 %v22393_v60  ;;  %16043 = vmatmul.bf16.gmra.mxu0 %v22405_v43  ;;  %v25332_v45 = vld [vmem:[%s34262_s1 + $0x21f8] sm:$0xff] }
 0x83c   : > { %16223 = vmatpush.bf16.msrb.mxu3 %v25332_v45  ;;  %16166 = vmatpush.bf16.msra.mxu1 %v25315_v30  ;;  %v24911_v45 = vld [vmem:[%s25576_s24 + $0x44c] sm:$0xf0] }
 0x83d   : > { %v15784_v47 = vadd.f32 %v33200_v15, %v15755_v0  ;;  %16091 = vmatmul.bf16.gmra.mxu2 %v22029_v14  ;;  %16120 = vmatmul.bf16.gmra.mxu3 %v22033_v3  ;;  %v25314_v0 = vld [vmem:[%s34262_s1 + $0x2168] sm:$0xff] }
 0x83e   : > { %16195 = vmatpush.bf16.msrb.mxu2 %v25323_v5  ;;  %v25339_v5 = vld [vmem:[%s34262_s1 + $0x2230] sm:$0xff] }
 0x83f   : > { %v33261_v50 = vadd.f32 %v15812_v18, %v15784_v47  ;;  %v25340_v18 = vld [vmem:[%s34262_s1 + $0x2238] sm:$0xff]  ;;  %v25319_v47 = vld [vmem:[%s34262_s1 + $0x2190] sm:$0xff] }
 0x840   : > { %v15727_v8 = vpop.f32.mrf.mxu1  ;;  %v15814_v32 = vpop.f32.mrf.mxu0  ;;  %16252 = vmatpush.bf16.msra.mxu0 %v25340_v18  ;;  %16167 = vmatpush.bf16.msra.mxu1 %v25314_v0  ;;  %v24933_v18 = vld [vmem:[%s25576_s24 + $0x504] sm:$0xf]  ;;  %v22228_v0 = vld [vmem:[%s25576_s24 + $0x510] sm:$0xf] }
 0x841   : > { %v15728_v15 = vadd.f32 %v15727_v8, %v33091_v59  ;;  %v33267_v57 = vpop.f32.mrf.mxu2  ;;  %v33269_v41 = vpop.f32.mrf.mxu3  ;;  %v25331_v59 = vld [vmem:[%s34262_s1 + $0x21f0] sm:$0xff]  ;;  %v24885_v8 = vld [vmem:[%s25576_s24 + $0x384] sm:$0xf] }
 0x842   : > { %16224 = vmatpush.bf16.msrb.mxu3 %v25331_v59  ;;  %16196 = vmatpush.bf16.msrb.mxu2 %v25322_v2  ;;  %v22414_v2 = vld [vmem:[%s25576_s24 + $0x748] sm:$0xf0] }
 0x843   : > { %v15757_v29 = vadd.f32 %v15756_v40, %v15728_v15  ;;  %v21833_v40 = vor.u32 %v24837_v12, %v21830_v6  ;;  %v25327_v15 = vld [vmem:[%s34262_s1 + $0x21d0] sm:$0xff]  ;;  %v25313_v12 = vld [vmem:[%s34262_s1 + $0x2160] sm:$0xff]  ;;  %v25318_v6 = vld [vmem:[%s34262_s1 + $0x2188] sm:$0xff] }
 0x844   : > { %16253 = vmatpush.bf16.msra.mxu0 %v25339_v5  ;;  %16168 = vmatpush.bf16.msra.mxu1 %v25313_v12  ;;  %v24840_v5 = vld [vmem:[%s25576_s24 + $0x21c] sm:$0xf] }
 0x845   : > { %v15786_v10 = vadd.f32 %v15785_v63, %v15757_v29  ;;  %v25330_v63 = vld [vmem:[%s34262_s1 + $0x21e8] sm:$0xff] }
 0x846   : > { %16225 = vmatpush.bf16.msrb.mxu3 %v25330_v63  ;;  %16197 = vmatpush.bf16.msrb.mxu2 %v25321_v53  ;;  %v22412_v29 = vld [vmem:[%s25576_s24 + $0x688] sm:$0xf]  ;;  %v22417_v63 = vor.u32 %v24982_v55, %v22414_v2 }
 0x847   : > { %v33285_v23 = vadd.f32 %v15814_v32, %v15786_v10  ;;  %v22022_v32 = vld [vmem:[%s25576_s24 + $0x440] sm:$0xf0]  ;;  %v25006_v10 = vld [vmem:[%s25576_s24 + $0x744] sm:$0xf0] }
 0x848   : > { %v15826_v48 = vpop.f32.mrf.mxu1  ;;  %v15913_v46 = vpop.f32.mrf.mxu0  ;;  %v22025_v44 = vor.u32 %v24885_v8, %v22022_v32  ;;  %16254 = vmatpush.bf16.msra.mxu0 %v25338_v54  ;;  %v21852_v8 = vld [vmem:[%s25576_s24 + $0x218] sm:$0xf]  ;;  %v25309_v32 = vld [vmem:[%s34262_s1 + $0x2140] sm:$0xff] }
 0x849   : > { %v15827_v34 = vadd.f32 %v15826_v48, %v33121_v37  ;;  %v33294_v16 = vpop.f32.mrf.mxu2  ;;  %v33296_v7 = vpop.f32.mrf.mxu3  ;;  %v25329_v37 = vld [vmem:[%s34262_s1 + $0x21e0] sm:$0xff] }
 0x84a   : > { %16226 = vmatpush.bf16.msrb.mxu3 %v25329_v37 }
 0x84b   : > { %v15856_v60 = vadd.f32 %v33235_v58, %v15827_v34  ;;  %16057 = vmatmul.bf16.vlgmr.msrb.gmra.mxu1 %v21833_v40  ;;  %16144 = vmatmul.bf16.vlgmr.msrb.gmra.mxu0 %v21845_v56  ;;  %v25320_v58 = vld [vmem:[%s34262_s1 + $0x2198] sm:$0xff]  ;;  %v25326_v56 = vld [vmem:[%s34262_s1 + $0x21c8] sm:$0xff] }
 0x84c   : > { %16198 = vmatpush.bf16.msrb.mxu2 %v25320_v58  ;;  %v25312_v34 = vld [vmem:[%s34262_s1 + $0x2158] sm:$0xff]  ;;  %16255 = vmatpush.bf16.msra.mxu0 %v25337_v26 }
 0x84d   : > { %v15885_v43 = vadd.f32 %v33237_v52, %v15856_v60  ;;  %16096 = vmatmul.bf16.gmra.mxu2 %v22221_v42  ;;  %16125 = vmatmul.bf16.gmra.mxu3 %v22225_v38  ;;  %v25328_v52 = vld [vmem:[%s34262_s1 + $0x21d8] sm:$0xff]  ;;  %v25317_v42 = vld [vmem:[%s34262_s1 + $0x2180] sm:$0xff] }
 0x84e   : > { %16227 = vmatpush.bf16.msrb.mxu3 %v25328_v52  ;;  %16169 = vmatpush.bf16.msra.mxu1 %v25312_v34  ;;  %v22406_v34 = vld [vmem:[%s25576_s24 + $0x740] sm:$0xf0]  ;;  %v22044_v26 = vld [vmem:[%s25576_s24 + $0x398] sm:$0xf] }
 0x84f   : > { %v33315_v4 = vadd.f32 %v15913_v46, %v15885_v43  ;;  %v22413_v46 = vor.u32 %v25006_v10, %v22412_v29 }
 0x850   : > { %v15828_v49 = vpop.f32.mrf.mxu1  ;;  %v15915_v24 = vpop.f32.mrf.mxu0  ;;  %16199 = vmatpush.bf16.msrb.mxu2 %v25319_v47  ;;  %v24959_v47 = vld [vmem:[%s25576_s24 + $0x5cc] sm:$0xf0] }
 0x851   : > { %v15829_v33 = vadd.f32 %v15828_v49, %v33159_v1  ;;  %v33324_v14 = vpop.f32.mrf.mxu2  ;;  %v33326_v3 = vpop.f32.mrf.mxu3  ;;  %v22036_v1 = vld [vmem:[%s25576_s24 + $0x390] sm:$0xf] }
 0x852   : > { %v22037_v59 = vor.u32 %v24911_v45, %v22036_v1  ;;  %16228 = vmatpush.bf16.msrb.mxu3 %v25327_v15  ;;  %v22229_v45 = vor.u32 %v24959_v47, %v22228_v0  ;;  %v24864_v15 = vld [vmem:[%s25576_s24 + $0x2d4] sm:$0xf0] }
 0x853   : > { %v15858_v31 = vadd.f32 %v33252_v22, %v15829_v33  ;;  %v22214_v33 = vld [vmem:[%s25576_s24 + $0x5c0] sm:$0xf0]  ;;  %v21853_v10 = vor.u32 %v24864_v15, %v21852_v8 }
 0x854   : > { %16200 = vmatpush.bf16.msrb.mxu2 %v25318_v6 }
 0x855   : > { %v15887_v22 = vadd.f32 %v33254_v36, %v15858_v31 }
 0x856   : > { %16229 = vmatpush.bf16.msrb.mxu3 %v25326_v56 }
 0x857   : > { %v33353_v9 = vadd.f32 %v15915_v24, %v15887_v22  ;;  %v25310_v24 = vld [vmem:[%s34262_s1 + $0x2148] sm:$0xff]  ;;  %v21854_v22 = vld [vmem:[%s25576_s24 + $0x2d8] sm:$0xf0] }
 0x858   : > { %v15831_v40 = vpop.f32.mrf.mxu1  ;;  %v15918_v36 = vpop.f32.mrf.mxu0  ;;  %16201 = vmatpush.bf16.msrb.mxu2 %v25317_v42  ;;  %v21857_v55 = vor.u32 %v24840_v5, %v21854_v22  ;;  %v22420_v42 = vld [vmem:[%s25576_s24 + $0x690] sm:$0xf]  ;;  %v24839_v5 = vld [vmem:[%s25576_s24 + $0x214] sm:$0xf] }
 0x859   : > { %v15832_v20 = vadd.f32 %v15831_v40, %v33192_v35  ;;  %v33365_v39 = vpop.f32.mrf.mxu2  ;;  %v33367_v48 = vpop.f32.mrf.mxu3  ;;  %v25325_v35 = vld [vmem:[%s34262_s1 + $0x21c0] sm:$0xff]  ;;  %v21846_v22 = vld [vmem:[%s25576_s24 + $0x2d0] sm:$0xf0] }
 0x85a   : > { %16230 = vmatpush.bf16.msrb.mxu3 %v25325_v35  ;;  %v25333_v40 = vld [vmem:[%s34262_s1 + $0x2200] sm:$0xff] }
 0x85b   : > { %v15861_v38 = vadd.f32 %v33267_v57, %v15832_v20  ;;  %16062 = vmatmul.bf16.gmra.mxu1 %v22025_v44  ;;  %16149 = vmatmul.bf16.gmra.mxu0 %v22037_v59  ;;  %v25311_v57 = vld [vmem:[%s34262_s1 + $0x2150] sm:$0xff] }
 0x85c   : > { %16170 = vmatpush.bf16.msra.mxu1 %v25311_v57 }
 0x85d   : > { %v15890_v53 = vadd.f32 %v33269_v41, %v15861_v38  ;;  %16101 = vmatmul.bf16.gmra.mxu2 %v22413_v46  ;;  %16130 = vmatmul.bf16.gmra.mxu3 %v22417_v63  ;;  %v25336_v41 = vld [vmem:[%s34262_s1 + $0x2218] sm:$0xff]  ;;  %v25007_v38 = vld [vmem:[%s25576_s24 + $0x74c] sm:$0xf0] }
 0x85e   : > { %16256 = vmatpush.bf16.msra.mxu0 %v25336_v41  ;;  %v24888_v41 = vld [vmem:[%s25576_s24 + $0x39c] sm:$0xf] }
 0x85f   : > { %v33386_v60 = vadd.f32 %v15918_v36, %v15890_v53 }
 0x860   : > { %v15833_v37 = vpop.f32.mrf.mxu1  ;;  %v15920_v43 = vpop.f32.mrf.mxu0  ;;  %16171 = vmatpush.bf16.msra.mxu1 %v25310_v24 }
 0x861   : > { %v15834_v30 = vadd.f32 %v15833_v37, %v33218_v19  ;;  %v33392_v58 = vpop.f32.mrf.mxu2  ;;  %v33394_v49 = vpop.f32.mrf.mxu3  ;;  %v25335_v19 = vld [vmem:[%s34262_s1 + $0x2210] sm:$0xff]  ;;  %v22421_v37 = vor.u32 %v25007_v38, %v22420_v42 }
 0x862   : > { %16257 = vmatpush.bf16.msra.mxu0 %v25335_v19 }
 0x863   : > { %v15863_v52 = vadd.f32 %v33294_v16, %v15834_v30  ;;  %v22217_v16 = vor.u32 %v24933_v18, %v22214_v33 }
 0x864   : > { %16172 = vmatpush.bf16.msra.mxu1 %v25309_v32 }
 0x865   : > { %v15892_v31 = vadd.f32 %v33296_v7, %v15863_v52  ;;  %v25334_v7 = vld [vmem:[%s34262_s1 + $0x2208] sm:$0xff] }
 0x866   : > { %16258 = vmatpush.bf16.msra.mxu0 %v25334_v7 }
 0x867   : > { %v33412_v1 = vadd.f32 %v15920_v43, %v15892_v31  ;;  %v24912_v43 = vld [vmem:[%s25576_s24 + $0x454] sm:$0xf0] }
 0x868   : > { %v15836_v29 = vpop.f32.mrf.mxu1  ;;  %v15923_v12 = vpop.f32.mrf.mxu0  ;;  %v22045_v33 = vor.u32 %v24912_v43, %v22044_v26  ;;  %v25353_v26 = vld [vmem:[%s34262_s1 + $0x22a0] sm:$0xff]  ;;  %v25347_v43 = vld [vmem:[%s34262_s1 + $0x2270] sm:$0xff] }
 0x869   : > { %v15837_v6 = vadd.f32 %v15836_v29, %v33232_v21  ;;  %v15872_v44 = vpop.f32.mrf.mxu2  ;;  %v15901_v59 = vpop.f32.mrf.mxu3  ;;  %v21860_v29 = vld [vmem:[%s25576_s24 + $0x220] sm:$0xf] }
 0x86a   : > { %16259 = vmatpush.bf16.msra.mxu0 %v25333_v40  ;;  %v24960_v40 = vld [vmem:[%s25576_s24 + $0x5d4] sm:$0xf0] }
 0x86b   : > { %v15866_v2 = vadd.f32 %v33324_v14, %v15837_v6  ;;  %16067 = vmatmul.bf16.gmra.mxu1 %v22217_v16  ;;  %16154 = vmatmul.bf16.gmra.mxu0 %v22229_v45  ;;  %v25355_v45 = vld [vmem:[%s34262_s1 + $0x22b0] sm:$0xff]  ;;  %v22236_v6 = vld [vmem:[%s25576_s24 + $0x518] sm:$0xf] }
 0x86c   : > { %v22237_v42 = vor.u32 %v24960_v40, %v22236_v6  ;;  %v24984_v6 = vld [vmem:[%s25576_s24 + $0x69c] sm:$0xf]  ;;  %v25370_v40 = vld [vmem:[%s34262_s1 + $0x2328] sm:$0xff] }
 0x86d   : > { %v15895_v36 = vadd.f32 %v33326_v3, %v15866_v2  ;;  %16202 = vmatmul.bf16.vlgmr.msrb.gmra.mxu2 %v21853_v10  ;;  %16231 = vmatmul.bf16.vlgmr.msrb.gmra.mxu3 %v21857_v55  ;;  %v24981_v3 = vld [vmem:[%s25576_s24 + $0x684] sm:$0xf]  ;;  %v25354_v10 = vld [vmem:[%s34262_s1 + $0x22a8] sm:$0xff] }
 0x86e   : > { %v22409_v57 = vor.u32 %v24981_v3, %v22406_v34 }
 0x86f   : > { %v33426_v21 = vadd.f32 %v15923_v12, %v15895_v36  ;;  %v24865_v12 = vld [vmem:[%s25576_s24 + $0x2dc] sm:$0xf0]  ;;  %v24936_v36 = vld [vmem:[%s25576_s24 + $0x51c] sm:$0xf] }
 0x870   : > { %v15838_v56 = vpop.f32.mrf.mxu1  ;;  %v15925_v14 = vpop.f32.mrf.mxu0  ;;  %v21861_v2 = vor.u32 %v24865_v12, %v21860_v29 }
 0x871   : > { %v15839_v54 = vadd.f32 %v15838_v56, %v33246_v61  ;;  %v33429_v20 = vpop.f32.mrf.mxu2  ;;  %v33431_v46 = vpop.f32.mrf.mxu3  ;;  %v22046_v61 = vld [vmem:[%s25576_s24 + $0x458] sm:$0xf0] }
 0x872   : > { %v22049_v0 = vor.u32 %v24888_v41, %v22046_v61  ;;  %v22238_v56 = vld [vmem:[%s25576_s24 + $0x5d8] sm:$0xf0] }
 0x873   : > { %v15868_v63 = vadd.f32 %v33365_v39, %v15839_v54  ;;  %v22241_v38 = vor.u32 %v24936_v36, %v22238_v56 }
 0x875   : > { %v15897_v35 = vadd.f32 %v33367_v48, %v15868_v63 }
 0x877   : > { %v33440_v53 = vadd.f32 %v15925_v14, %v15897_v35  ;;  %v25348_v35 = vld [vmem:[%s34262_s1 + $0x2278] sm:$0xff] }
 0x878   : > { %v15841_v30 = vpop.f32.mrf.mxu1  ;;  %v15928_v24 = vpop.f32.mrf.mxu0  ;;  %16281 = vmatpush.bf16.msrb.mxu1 %v25348_v35  ;;  %v25369_v35 = vld [vmem:[%s34262_s1 + $0x2320] sm:$0xff] }
 0x879   : > { %v15842_v52 = vadd.f32 %v15841_v30, %v33261_v50  ;;  %v33446_v18 = vpop.f32.mrf.mxu2  ;;  %v33448_v39 = vpop.f32.mrf.mxu3  ;;  %v25356_v50 = vld [vmem:[%s34262_s1 + $0x22b8] sm:$0xff] }
 0x87a   : > { %16310 = vmatpush.bf16.msra.mxu2 %v25356_v50 }
 0x87b   : > { %v15871_v48 = vadd.f32 %v33392_v58, %v15842_v52  ;;  %16072 = vmatmul.bf16.gmra.mxu1 %v22409_v57  ;;  %16159 = vmatmul.bf16.gmra.mxu0 %v22421_v37  ;;  %v25364_v58 = vld [vmem:[%s34262_s1 + $0x22f8] sm:$0xff] }
 0x87c   : > { %16339 = vmatpush.bf16.msra.mxu3 %v25364_v58  ;;  %16282 = vmatpush.bf16.msrb.mxu1 %v25347_v43  ;;  %v24913_v58 = vld [vmem:[%s25576_s24 + $0x45c] sm:$0xf0] }
 0x87d   : > { %v15900_v47 = vadd.f32 %v33394_v49, %v15871_v48  ;;  %16207 = vmatmul.bf16.gmra.mxu2 %v22045_v33  ;;  %16236 = vmatmul.bf16.gmra.mxu3 %v22049_v0  ;;  %v25346_v48 = vld [vmem:[%s34262_s1 + $0x2268] sm:$0xff] }
 0x87e   : > { %16311 = vmatpush.bf16.msra.mxu2 %v25355_v45  ;;  %v25371_v45 = vld [vmem:[%s34262_s1 + $0x2330] sm:$0xff] }
 0x87f   : > { %v33455_v19 = vadd.f32 %v15928_v24, %v15900_v47  ;;  %v25372_v24 = vld [vmem:[%s34262_s1 + $0x2338] sm:$0xff]  ;;  %v25351_v47 = vld [vmem:[%s34262_s1 + $0x2290] sm:$0xff] }
 0x880   : > { %v15843_v31 = vpop.f32.mrf.mxu1  ;;  %v15930_v8 = vpop.f32.mrf.mxu0  ;;  %16368 = vmatpush.bf16.msrb.mxu0 %v25372_v24  ;;  %16283 = vmatpush.bf16.msrb.mxu1 %v25346_v48  ;;  %v24935_v24 = vld [vmem:[%s25576_s24 + $0x514] sm:$0xf]  ;;  %v22244_v48 = vld [vmem:[%s25576_s24 + $0x520] sm:$0xf] }
 0x881   : > { %v15844_v49 = vadd.f32 %v15843_v31, %v33285_v23  ;;  %v33461_v32 = vpop.f32.mrf.mxu2  ;;  %v33463_v16 = vpop.f32.mrf.mxu3  ;;  %v25363_v23 = vld [vmem:[%s34262_s1 + $0x22f0] sm:$0xff] }
 0x882   : > { %16340 = vmatpush.bf16.msra.mxu3 %v25363_v23  ;;  %16312 = vmatpush.bf16.msra.mxu2 %v25354_v10  ;;  %v24887_v31 = vld [vmem:[%s25576_s24 + $0x394] sm:$0xf]  ;;  %v22430_v10 = vld [vmem:[%s25576_s24 + $0x758] sm:$0xf0] }
 0x883   : > { %v15873_v15 = vadd.f32 %v15872_v44, %v15844_v49  ;;  %v21849_v44 = vor.u32 %v24839_v5, %v21846_v22  ;;  %v25359_v49 = vld [vmem:[%s34262_s1 + $0x22d0] sm:$0xff]  ;;  %v25345_v5 = vld [vmem:[%s34262_s1 + $0x2260] sm:$0xff]  ;;  %v25350_v22 = vld [vmem:[%s34262_s1 + $0x2288] sm:$0xff] }
 0x884   : > { %16369 = vmatpush.bf16.msrb.mxu0 %v25371_v45  ;;  %16284 = vmatpush.bf16.msrb.mxu1 %v25345_v5  ;;  %v24842_v45 = vld [vmem:[%s25576_s24 + $0x22c] sm:$0xf] }
 0x885   : > { %v15902_v7 = vadd.f32 %v15901_v59, %v15873_v15  ;;  %v25362_v59 = vld [vmem:[%s34262_s1 + $0x22e8] sm:$0xff]  ;;  %v22428_v15 = vld [vmem:[%s25576_s24 + $0x698] sm:$0xf] }
 0x886   : > { %16341 = vmatpush.bf16.msra.mxu3 %v25362_v59  ;;  %16313 = vmatpush.bf16.msra.mxu2 %v25353_v26  ;;  %v22433_v59 = vor.u32 %v24984_v6, %v22430_v10 }
 0x887   : > { %v33479_v55 = vadd.f32 %v15930_v8, %v15902_v7  ;;  %v22038_v8 = vld [vmem:[%s25576_s24 + $0x450] sm:$0xf0]  ;;  %v25008_v7 = vld [vmem:[%s25576_s24 + $0x754] sm:$0xf0] }
 0x888   : > { %v15942_v14 = vpop.f32.mrf.mxu1  ;;  %v16029_v54 = vpop.f32.mrf.mxu0  ;;  %v22041_v12 = vor.u32 %v24887_v31, %v22038_v8  ;;  %16370 = vmatpush.bf16.msrb.mxu0 %v25370_v40  ;;  %v21868_v31 = vld [vmem:[%s25576_s24 + $0x228] sm:$0xf]  ;;  %v25341_v8 = vld [vmem:[%s34262_s1 + $0x2240] sm:$0xff] }
 0x889   : > { %v15943_v63 = vadd.f32 %v15942_v14, %v33315_v4  ;;  %v33488_v3 = vpop.f32.mrf.mxu2  ;;  %v33490_v34 = vpop.f32.mrf.mxu3  ;;  %v25361_v4 = vld [vmem:[%s34262_s1 + $0x22e0] sm:$0xff] }
 0x88a   : > { %16342 = vmatpush.bf16.msra.mxu3 %v25361_v4 }
 0x88b   : > { %v15972_v57 = vadd.f32 %v33429_v20, %v15943_v63  ;;  %16173 = vmatmul.bf16.vlgmr.msra.gmra.mxu1 %v21849_v44  ;;  %16260 = vmatmul.bf16.vlgmr.msra.gmra.mxu0 %v21861_v2  ;;  %v25352_v20 = vld [vmem:[%s34262_s1 + $0x2298] sm:$0xff]  ;;  %v25358_v2 = vld [vmem:[%s34262_s1 + $0x22c8] sm:$0xff] }
 0x88c   : > { %16314 = vmatpush.bf16.msra.mxu2 %v25352_v20  ;;  %v25344_v63 = vld [vmem:[%s34262_s1 + $0x2258] sm:$0xff]  ;;  %16371 = vmatpush.bf16.msrb.mxu0 %v25369_v35  ;;  %v22060_v35 = vld [vmem:[%s25576_s24 + $0x3a8] sm:$0xf] }
 0x88d   : > { %v16001_v37 = vadd.f32 %v33431_v46, %v15972_v57  ;;  %16212 = vmatmul.bf16.gmra.mxu2 %v22237_v42  ;;  %16241 = vmatmul.bf16.gmra.mxu3 %v22241_v38  ;;  %v25360_v46 = vld [vmem:[%s34262_s1 + $0x22d8] sm:$0xff]  ;;  %v25349_v42 = vld [vmem:[%s34262_s1 + $0x2280] sm:$0xff] }
 0x88e   : > { %16343 = vmatpush.bf16.msra.mxu3 %v25360_v46  ;;  %16285 = vmatpush.bf16.msrb.mxu1 %v25344_v63  ;;  %v22422_v63 = vld [vmem:[%s25576_s24 + $0x750] sm:$0xf0] }
 0x88f   : > { %v33509_v41 = vadd.f32 %v16029_v54, %v16001_v37  ;;  %v22429_v54 = vor.u32 %v25008_v7, %v22428_v15 }
 0x890   : > { %v15944_v61 = vpop.f32.mrf.mxu1  ;;  %v16031_v30 = vpop.f32.mrf.mxu0  ;;  %16315 = vmatpush.bf16.msra.mxu2 %v25351_v47  ;;  %v24961_v47 = vld [vmem:[%s25576_s24 + $0x5dc] sm:$0xf0] }
 0x891   : > { %v15945_v52 = vadd.f32 %v15944_v61, %v33353_v9  ;;  %v33518_v33 = vpop.f32.mrf.mxu2  ;;  %v33520_v0 = vpop.f32.mrf.mxu3  ;;  %v22052_v9 = vld [vmem:[%s25576_s24 + $0x3a0] sm:$0xf] }
 0x892   : > { %v22053_v23 = vor.u32 %v24913_v58, %v22052_v9  ;;  %16344 = vmatpush.bf16.msra.mxu3 %v25359_v49  ;;  %v22245_v58 = vor.u32 %v24961_v47, %v22244_v48  ;;  %v24866_v49 = vld [vmem:[%s25576_s24 + $0x2e4] sm:$0xf0] }
 0x893   : > { %v15974_v50 = vadd.f32 %v33446_v18, %v15945_v52  ;;  %v22230_v52 = vld [vmem:[%s25576_s24 + $0x5d0] sm:$0xf0]  ;;  %v21869_v7 = vor.u32 %v24866_v49, %v21868_v31  ;;  %v24841_v49 = vld [vmem:[%s25576_s24 + $0x224] sm:$0xf] }
 0x894   : > { %16316 = vmatpush.bf16.msra.mxu2 %v25350_v22 }
 0x895   : > { %v16003_v18 = vadd.f32 %v33448_v39, %v15974_v50 }
 0x896   : > { %16345 = vmatpush.bf16.msra.mxu3 %v25358_v2 }
 0x897   : > { %v33547_v29 = vadd.f32 %v16031_v30, %v16003_v18  ;;  %v25342_v30 = vld [vmem:[%s34262_s1 + $0x2248] sm:$0xff] }
 0x898   : > { %v15947_v44 = vpop.f32.mrf.mxu1  ;;  %v16034_v39 = vpop.f32.mrf.mxu0  ;;  %16317 = vmatpush.bf16.msra.mxu2 %v25349_v42  ;;  %v21870_v18 = vld [vmem:[%s25576_s24 + $0x2e8] sm:$0xf0]  ;;  %v22436_v42 = vld [vmem:[%s25576_s24 + $0x6a0] sm:$0xf] }
 0x899   : > { %v15948_v36 = vadd.f32 %v15947_v44, %v33386_v60  ;;  %v33559_v56 = vpop.f32.mrf.mxu2  ;;  %v33561_v14 = vpop.f32.mrf.mxu3  ;;  %v25357_v60 = vld [vmem:[%s34262_s1 + $0x22c0] sm:$0xff]  ;;  %v21873_v6 = vor.u32 %v24842_v45, %v21870_v18 }
 0x89a   : > { %16346 = vmatpush.bf16.msra.mxu3 %v25357_v60  ;;  %v25365_v44 = vld [vmem:[%s34262_s1 + $0x2300] sm:$0xff] }
 0x89b   : > { %v15977_v38 = vadd.f32 %v33461_v32, %v15948_v36  ;;  %16178 = vmatmul.bf16.gmra.mxu1 %v22041_v12  ;;  %16265 = vmatmul.bf16.gmra.mxu0 %v22053_v23  ;;  %v25343_v32 = vld [vmem:[%s34262_s1 + $0x2250] sm:$0xff]  ;;  %v21862_v45 = vld [vmem:[%s25576_s24 + $0x2e0] sm:$0xf0] }
 0x89c   : > { %16286 = vmatpush.bf16.msrb.mxu1 %v25343_v32 }
 0x89d   : > { %v16006_v26 = vadd.f32 %v33463_v16, %v15977_v38  ;;  %16217 = vmatmul.bf16.gmra.mxu2 %v22429_v54  ;;  %16246 = vmatmul.bf16.gmra.mxu3 %v22433_v59  ;;  %v25368_v16 = vld [vmem:[%s34262_s1 + $0x2318] sm:$0xff]  ;;  %v25009_v38 = vld [vmem:[%s25576_s24 + $0x75c] sm:$0xf0] }
 0x89e   : > { %16372 = vmatpush.bf16.msrb.mxu0 %v25368_v16  ;;  %v24890_v16 = vld [vmem:[%s25576_s24 + $0x3ac] sm:$0xf] }
 0x89f   : > { %v33580_v57 = vadd.f32 %v16034_v39, %v16006_v26 }
 0x8a0   : > { %v15949_v4 = vpop.f32.mrf.mxu1  ;;  %v16036_v37 = vpop.f32.mrf.mxu0  ;;  %16287 = vmatpush.bf16.msrb.mxu1 %v25342_v30 }
 0x8a1   : > { %v15950_v43 = vadd.f32 %v15949_v4, %v33412_v1  ;;  %v33586_v20 = vpop.f32.mrf.mxu2  ;;  %v33588_v61 = vpop.f32.mrf.mxu3  ;;  %v25367_v1 = vld [vmem:[%s34262_s1 + $0x2310] sm:$0xff]  ;;  %v22437_v4 = vor.u32 %v25009_v38, %v22436_v42  ;;  %v25380_v38 = vld [vmem:[%s34262_s1 + $0x2378] sm:$0xff] }
 0x8a2   : > { %16373 = vmatpush.bf16.msrb.mxu0 %v25367_v1 }
 0x8a3   : > { %v15979_v46 = vadd.f32 %v33488_v3, %v15950_v43  ;;  %v22233_v3 = vor.u32 %v24935_v24, %v22230_v52 }
 0x8a4   : > { %16288 = vmatpush.bf16.msrb.mxu1 %v25341_v8 }
 0x8a5   : > { %v16008_v50 = vadd.f32 %v33490_v34, %v15979_v46  ;;  %v25366_v34 = vld [vmem:[%s34262_s1 + $0x2308] sm:$0xff] }
 0x8a6   : > { %16374 = vmatpush.bf16.msrb.mxu0 %v25366_v34 }
 0x8a7   : > { %v33606_v9 = vadd.f32 %v16036_v37, %v16008_v50  ;;  %v24914_v37 = vld [vmem:[%s25576_s24 + $0x464] sm:$0xf0] }
 0x8a8   : > { %v15952_v15 = vpop.f32.mrf.mxu1  ;;  %v16039_v5 = vpop.f32.mrf.mxu0  ;;  %v22061_v52 = vor.u32 %v24914_v37, %v22060_v35  ;;  %16397 = vmatpush.bf16.msra.mxu1 %v25380_v38 }
 0x8a9   : > { %v15953_v22 = vadd.f32 %v15952_v15, %v33426_v21  ;;  %v15988_v12 = vpop.f32.mrf.mxu2  ;;  %v16017_v23 = vpop.f32.mrf.mxu3  ;;  %v21876_v15 = vld [vmem:[%s25576_s24 + $0x230] sm:$0xf] }
 0x8aa   : > { %16375 = vmatpush.bf16.msrb.mxu0 %v25365_v44  ;;  %v24962_v44 = vld [vmem:[%s25576_s24 + $0x5e4] sm:$0xf0] }
 0x8ab   : > { %v15982_v10 = vadd.f32 %v33518_v33, %v15953_v22  ;;  %16183 = vmatmul.bf16.gmra.mxu1 %v22233_v3  ;;  %16270 = vmatmul.bf16.gmra.mxu0 %v22245_v58  ;;  %v25387_v3 = vld [vmem:[%s34262_s1 + $0x23b0] sm:$0xff]  ;;  %v22252_v22 = vld [vmem:[%s25576_s24 + $0x528] sm:$0xf] }
 0x8ad   : > { %v16011_v39 = vadd.f32 %v33520_v0, %v15982_v10  ;;  %16318 = vmatmul.bf16.vlgmr.msra.gmra.mxu2 %v21869_v7  ;;  %16347 = vmatmul.bf16.vlgmr.msra.gmra.mxu3 %v21873_v6  ;;  %v24983_v0 = vld [vmem:[%s25576_s24 + $0x694] sm:$0xf]  ;;  %v25386_v7 = vld [vmem:[%s34262_s1 + $0x23a8] sm:$0xff]  ;;  %v21865_v6 = vor.u32 %v24841_v49, %v21862_v45 }
 0x8ae   : > { %v22425_v32 = vor.u32 %v24983_v0, %v22422_v63  ;;  %v22253_v63 = vor.u32 %v24962_v44, %v22252_v22  ;;  %v25010_v45 = vld [vmem:[%s25576_s24 + $0x764] sm:$0xf0]  ;;  %v25381_v44 = vld [vmem:[%s34262_s1 + $0x2380] sm:$0xff] }
 0x8af   : > { %v33620_v21 = vadd.f32 %v16039_v5, %v16011_v39  ;;  %v24867_v5 = vld [vmem:[%s25576_s24 + $0x2ec] sm:$0xf0]  ;;  %v24938_v39 = vld [vmem:[%s25576_s24 + $0x52c] sm:$0xf] }
 0x8b0   : > { %v15954_v2 = vpop.f32.mrf.mxu1  ;;  %v16041_v33 = vpop.f32.mrf.mxu0  ;;  %v21877_v10 = vor.u32 %v24867_v5, %v21876_v15  ;;  %v22446_v15 = vld [vmem:[%s25576_s24 + $0x768] sm:$0xf0] }
 0x8b1   : > { %v15955_v40 = vadd.f32 %v15954_v2, %v33440_v53  ;;  %v33623_v36 = vpop.f32.mrf.mxu2  ;;  %v33625_v54 = vpop.f32.mrf.mxu3  ;;  %v22062_v53 = vld [vmem:[%s25576_s24 + $0x468] sm:$0xf0] }
 0x8b2   : > { %v22065_v48 = vor.u32 %v24890_v16, %v22062_v53  ;;  %v22254_v2 = vld [vmem:[%s25576_s24 + $0x5e8] sm:$0xf0] }
 0x8b3   : > { %v15984_v59 = vadd.f32 %v33559_v56, %v15955_v40  ;;  %v25394_v40 = vld [vmem:[%s34262_s1 + $0x23e8] sm:$0xff]  ;;  %v22257_v42 = vor.u32 %v24938_v39, %v22254_v2 }
 0x8b5   : > { %v16013_v60 = vadd.f32 %v33561_v14, %v15984_v59 }
 0x8b7   : > { %v33634_v26 = vadd.f32 %v16041_v33, %v16013_v60  ;;  %v25385_v60 = vld [vmem:[%s34262_s1 + $0x23a0] sm:$0xff] }
 0x8b8   : > { %v15957_v43 = vpop.f32.mrf.mxu1  ;;  %v16044_v24 = vpop.f32.mrf.mxu0 }
 0x8b9   : > { %v15958_v30 = vadd.f32 %v15957_v43, %v33455_v19  ;;  %v33640_v46 = vpop.f32.mrf.mxu2  ;;  %v33642_v56 = vpop.f32.mrf.mxu3  ;;  %v25388_v19 = vld [vmem:[%s34262_s1 + $0x23b8] sm:$0xff] }
 0x8ba   : > { %16426 = vmatpush.bf16.msrb.mxu2 %v25388_v19  ;;  %v25391_v19 = vld [vmem:[%s34262_s1 + $0x23d0] sm:$0xff] }
 0x8bb   : > { %v15987_v14 = vadd.f32 %v33586_v20, %v15958_v30  ;;  %16188 = vmatmul.bf16.gmra.mxu1 %v22425_v32  ;;  %16275 = vmatmul.bf16.gmra.mxu0 %v22437_v4  ;;  %v25396_v20 = vld [vmem:[%s34262_s1 + $0x23f8] sm:$0xff]  ;;  %v25379_v4 = vld [vmem:[%s34262_s1 + $0x2370] sm:$0xff]  ;;  %v25378_v30 = vld [vmem:[%s34262_s1 + $0x2368] sm:$0xff] }
 0x8bc   : > { %16455 = vmatpush.bf16.msrb.mxu3 %v25396_v20  ;;  %16398 = vmatpush.bf16.msra.mxu1 %v25379_v4  ;;  %v24963_v4 = vld [vmem:[%s25576_s24 + $0x5ec] sm:$0xf0] }
 0x8bd   : > { %v16016_v47 = vadd.f32 %v33588_v61, %v15987_v14  ;;  %16323 = vmatmul.bf16.gmra.mxu2 %v22061_v52  ;;  %16352 = vmatmul.bf16.gmra.mxu3 %v22065_v48  ;;  %v24889_v48 = vld [vmem:[%s25576_s24 + $0x3a4] sm:$0xf] }
 0x8be   : > { %16427 = vmatpush.bf16.msrb.mxu2 %v25387_v3  ;;  %v22054_v14 = vld [vmem:[%s25576_s24 + $0x460] sm:$0xf0]  ;;  %v25382_v3 = vld [vmem:[%s34262_s1 + $0x2388] sm:$0xff] }
 0x8bf   : > { %v33649_v1 = vadd.f32 %v16044_v24, %v16016_v47  ;;  %v25383_v24 = vld [vmem:[%s34262_s1 + $0x2390] sm:$0xff] }
 0x8c0   : > { %v15959_v50 = vpop.f32.mrf.mxu1  ;;  %v16046_v18 = vpop.f32.mrf.mxu0  ;;  %v24915_v47 = vld [vmem:[%s25576_s24 + $0x46c] sm:$0xf0]  ;;  %16399 = vmatpush.bf16.msra.mxu1 %v25378_v30  ;;  %v24868_v30 = vld [vmem:[%s25576_s24 + $0x2f4] sm:$0xf0] }
 0x8c1   : > { %v15960_v31 = vadd.f32 %v15959_v50, %v33479_v55  ;;  %v33655_v61 = vpop.f32.mrf.mxu2  ;;  %v33657_v8 = vpop.f32.mrf.mxu3  ;;  %v25395_v55 = vld [vmem:[%s34262_s1 + $0x23f0] sm:$0xff] }
 0x8c2   : > { %16456 = vmatpush.bf16.msrb.mxu3 %v25395_v55  ;;  %16428 = vmatpush.bf16.msrb.mxu2 %v25386_v7 }
 0x8c3   : > { %v15989_v58 = vadd.f32 %v15988_v12, %v15960_v31  ;;  %v25377_v31 = vld [vmem:[%s34262_s1 + $0x2360] sm:$0xff] }
 0x8c4   : > { %16400 = vmatpush.bf16.msra.mxu1 %v25377_v31 }
 0x8c5   : > { %v16018_v34 = vadd.f32 %v16017_v23, %v15989_v58  ;;  %v22057_v58 = vor.u32 %v24889_v48, %v22054_v14 }
 0x8c6   : > { %16457 = vmatpush.bf16.msrb.mxu3 %v25394_v40  ;;  %16429 = vmatpush.bf16.msrb.mxu2 %v25385_v60  ;;  %v24937_v60 = vld [vmem:[%s25576_s24 + $0x524] sm:$0xf] }
 0x8c7   : > { %v33673_v12 = vadd.f32 %v16046_v18, %v16018_v34  ;;  %v24986_v18 = vld [vmem:[%s25576_s24 + $0x6ac] sm:$0xf] }
 0x8c8   : > { %v16058_v33 = vpop.f32.mrf.mxu1  ;;  %v33730_v20 = vpop.f32.mrf.mxu0 }
 0x8c9   : > { %v16059_v23 = vadd.f32 %v16058_v33, %v33509_v41  ;;  %v33682_v59 = vpop.f32.mrf.mxu2  ;;  %v33684_v0 = vpop.f32.mrf.mxu3  ;;  %v25393_v41 = vld [vmem:[%s34262_s1 + $0x23e0] sm:$0xff] }
 0x8ca   : > { %16458 = vmatpush.bf16.msrb.mxu3 %v25393_v41  ;;  %v22260_v41 = vld [vmem:[%s25576_s24 + $0x530] sm:$0xf] }
 0x8cb   : > { %v16088_v35 = vadd.f32 %v33623_v36, %v16059_v23  ;;  %16289 = vmatmul.bf16.vlgmr.msrb.gmra.mxu1 %v21865_v6  ;;  %16376 = vmatmul.bf16.vlgmr.msrb.gmra.mxu0 %v21877_v10  ;;  %v25384_v36 = vld [vmem:[%s34262_s1 + $0x2398] sm:$0xff]  ;;  %v22449_v6 = vor.u32 %v24986_v18, %v22446_v15  ;;  %v22438_v15 = vld [vmem:[%s25576_s24 + $0x760] sm:$0xf0] }
 0x8cc   : > { %16430 = vmatpush.bf16.msrb.mxu2 %v25384_v36  ;;  %v25376_v10 = vld [vmem:[%s34262_s1 + $0x2358] sm:$0xff] }
 0x8cd   : > { %v33697_v32 = vadd.f32 %v33625_v54, %v16088_v35  ;;  %16328 = vmatmul.bf16.gmra.mxu2 %v22253_v63  ;;  %16357 = vmatmul.bf16.gmra.mxu3 %v22257_v42  ;;  %v25392_v54 = vld [vmem:[%s34262_s1 + $0x23d8] sm:$0xff]  ;;  %v25374_v42 = vld [vmem:[%s34262_s1 + $0x2348] sm:$0xff]  ;;  %v22246_v35 = vld [vmem:[%s25576_s24 + $0x5e0] sm:$0xf0] }
 0x8ce   : > { %16459 = vmatpush.bf16.msrb.mxu3 %v25392_v54  ;;  %16401 = vmatpush.bf16.msra.mxu1 %v25376_v10  ;;  %v22249_v54 = vor.u32 %v24937_v60, %v22246_v35  ;;  %v24916_v10 = vld [vmem:[%s25576_s24 + $0x474] sm:$0xf0] }
 0x8d0   : > { %v16060_v37 = vpop.f32.mrf.mxu1  ;;  %16431 = vmatpush.bf16.msrb.mxu2 %v25383_v24  ;;  %v33762_v33 = vpop.f32.mrf.mxu0  ;;  %v24844_v24 = vld [vmem:[%s25576_s24 + $0x23c] sm:$0xf] }
 0x8d1   : > { %v16061_v16 = vadd.f32 %v16060_v37, %v33547_v29  ;;  %v33709_v53 = vpop.f32.mrf.mxu2  ;;  %v33711_v43 = vpop.f32.mrf.mxu3  ;;  %v22068_v29 = vld [vmem:[%s25576_s24 + $0x3b0] sm:$0xf]  ;;  %v21884_v37 = vld [vmem:[%s25576_s24 + $0x238] sm:$0xf] }
 0x8d2   : > { %v22069_v49 = vor.u32 %v24915_v47, %v22068_v29  ;;  %16460 = vmatpush.bf16.msrb.mxu3 %v25391_v19 }
 0x8d3   : > { %v16090_v52 = vadd.f32 %v33640_v46, %v16061_v16  ;;  %v22444_v46 = vld [vmem:[%s25576_s24 + $0x6a8] sm:$0xf]  ;;  %v22261_v16 = vor.u32 %v24963_v4, %v22260_v41 }
 0x8d4   : > { %16432 = vmatpush.bf16.msrb.mxu2 %v25382_v3  ;;  %v22445_v7 = vor.u32 %v25010_v45, %v22444_v46 }
 0x8d5   : > { %v33728_v50 = vadd.f32 %v33642_v56, %v16090_v52  ;;  %v25390_v56 = vld [vmem:[%s34262_s1 + $0x23c8] sm:$0xff]  ;;  %v21886_v52 = vld [vmem:[%s25576_s24 + $0x2f8] sm:$0xf0] }
 0x8d6   : > { %16461 = vmatpush.bf16.msrb.mxu3 %v25390_v56  ;;  %v21889_v19 = vor.u32 %v24844_v24, %v21886_v52  ;;  %v22270_v24 = vld [vmem:[%s25576_s24 + $0x5f8] sm:$0xf0] }
 0x8d8   : > { %v16063_v5 = vpop.f32.mrf.mxu1  ;;  %16433 = vmatpush.bf16.msrb.mxu2 %v25381_v44  ;;  %v33784_v47 = vpop.f32.mrf.mxu0  ;;  %v24892_v44 = vld [vmem:[%s25576_s24 + $0x3bc] sm:$0xf] }
 0x8d9   : > { %v16064_v55 = vadd.f32 %v16063_v5, %v33580_v57  ;;  %v16099_v34 = vpop.f32.mrf.mxu2  ;;  %v16128_v22 = vpop.f32.mrf.mxu3  ;;  %v25389_v57 = vld [vmem:[%s34262_s1 + $0x23c0] sm:$0xff]  ;;  %v22452_v5 = vld [vmem:[%s25576_s24 + $0x6b0] sm:$0xf] }
 0x8da   : > { %16462 = vmatpush.bf16.msrb.mxu3 %v25389_v57 }
 0x8db   : > { %v16093_v39 = vadd.f32 %v33655_v61, %v16064_v55  ;;  %16294 = vmatmul.bf16.gmra.mxu1 %v22057_v58  ;;  %16381 = vmatmul.bf16.gmra.mxu0 %v22069_v49  ;;  %v25375_v61 = vld [vmem:[%s34262_s1 + $0x2350] sm:$0xff]  ;;  %v22076_v55 = vld [vmem:[%s25576_s24 + $0x3b8] sm:$0xf] }
 0x8dc   : > { %16402 = vmatpush.bf16.msra.mxu1 %v25375_v61 }
 0x8dd   : > { %v33757_v2 = vadd.f32 %v33657_v8, %v16093_v39  ;;  %16333 = vmatmul.bf16.gmra.mxu2 %v22445_v7  ;;  %16362 = vmatmul.bf16.gmra.mxu3 %v22449_v6  ;;  %v22078_v39 = vld [vmem:[%s25576_s24 + $0x478] sm:$0xf0] }
 0x8e0   : > { %v16065_v40 = vpop.f32.mrf.mxu1  ;;  %16403 = vmatpush.bf16.msra.mxu1 %v25374_v42  ;;  %v33796_v18 = vpop.f32.mrf.mxu0 }
 0x8e1   : > { %v16066_v23 = vadd.f32 %v16065_v40, %v33606_v9  ;;  %v16102_v8 = vpop.f32.mrf.mxu2  ;;  %v16131_v63 = vpop.f32.mrf.mxu3  ;;  %v25373_v9 = vld [vmem:[%s34262_s1 + $0x2340] sm:$0xff]  ;;  %v22077_v40 = vor.u32 %v24916_v10, %v22076_v55  ;;  %v22462_v55 = vld [vmem:[%s25576_s24 + $0x778] sm:$0xf0] }
 0x8e3   : > { %v16095_v38 = vadd.f32 %v33682_v59, %v16066_v23  ;;  %v22081_v23 = vor.u32 %v24892_v44, %v22078_v39 }
 0x8e4   : > { %16404 = vmatpush.bf16.msra.mxu1 %v25373_v9 }
 0x8e5   : > { %v33774_v36 = vadd.f32 %v33684_v0, %v16095_v38  ;;  %v21885_v0 = vor.u32 %v24868_v30, %v21884_v37  ;;  %v21878_v37 = vld [vmem:[%s25576_s24 + $0x2f0] sm:$0xf0]  ;;  %v24940_v30 = vld [vmem:[%s25576_s24 + $0x53c] sm:$0xf] }
 0x8e8   : > { %v16068_v48 = vpop.f32.mrf.mxu1  ;;  %v33814_v38 = vpop.f32.mrf.mxu0 }
 0x8e9   : > { %v16069_v59 = vadd.f32 %v16068_v48, %v33620_v21  ;;  %v16104_v14 = vpop.f32.mrf.mxu2  ;;  %v16133_v29 = vpop.f32.mrf.mxu3 }
 0x8eb   : > { %v16098_v46 = vadd.f32 %v33709_v53, %v16069_v59  ;;  %16299 = vmatmul.bf16.gmra.mxu1 %v22249_v54  ;;  %16386 = vmatmul.bf16.gmra.mxu0 %v22261_v16  ;;  %v24985_v53 = vld [vmem:[%s25576_s24 + $0x6a4] sm:$0xf]  ;;  %v22268_v54 = vld [vmem:[%s25576_s24 + $0x538] sm:$0xf] }
 0x8ec   : > { %v22441_v7 = vor.u32 %v24985_v53, %v22438_v15  ;;  %v22460_v53 = vld [vmem:[%s25576_s24 + $0x6b8] sm:$0xf] }
 0x8ed   : > { %v33788_v31 = vadd.f32 %v33711_v43, %v16098_v46  ;;  %16434 = vmatmul.bf16.vlgmr.msrb.gmra.mxu2 %v21885_v0  ;;  %16463 = vmatmul.bf16.vlgmr.msrb.gmra.mxu3 %v21889_v19  ;;  %v25011_v43 = vld [vmem:[%s25576_s24 + $0x76c] sm:$0xf0] }
 0x8ee   : > { %v22453_v6 = vor.u32 %v25011_v43, %v22452_v5  ;;  %v25012_v5 = vld [vmem:[%s25576_s24 + $0x774] sm:$0xf0]  ;;  %v24988_v43 = vld [vmem:[%s25576_s24 + $0x6bc] sm:$0xf] }
 0x8ef   : > { %v22461_v44 = vor.u32 %v25012_v5, %v22460_v53  ;;  %v22465_v39 = vor.u32 %v24988_v43, %v22462_v55 }
 0x8f0   : > { %v16070_v21 = vpop.f32.mrf.mxu1  ;;  %v33827_v52 = vpop.f32.mrf.mxu0 }
 0x8f1   : > { %v16071_v3 = vadd.f32 %v16070_v21, %v33634_v26  ;;  %v33791_v58 = vpop.f32.mrf.mxu2  ;;  %v33793_v49 = vpop.f32.mrf.mxu3 }
 0x8f3   : > { %v16100_v45 = vadd.f32 %v16099_v34, %v16071_v3  ;;  %v24891_v3 = vld [vmem:[%s25576_s24 + $0x3b4] sm:$0xf] }
 0x8f5   : > { %v33801_v56 = vadd.f32 %v16128_v22, %v16100_v45  ;;  %v22070_v45 = vld [vmem:[%s25576_s24 + $0x470] sm:$0xf0] }
 0x8f6   : > { %v22073_v15 = vor.u32 %v24891_v3, %v22070_v45 }
 0x8f8   : > { %v16073_v26 = vpop.f32.mrf.mxu1  ;;  %v16160_v21 = vpop.f32.mrf.mxu0 }
 0x8f9   : > { %v16074_v57 = vadd.f32 %v16073_v26, %v33649_v1  ;;  %v33808_v61 = vpop.f32.mrf.mxu2  ;;  %v33810_v34 = vpop.f32.mrf.mxu3 }
 0x8fb   : > { %v16103_v22 = vadd.f32 %v16102_v8, %v16074_v57  ;;  %16304 = vmatmul.bf16.gmra.mxu1 %v22441_v7  ;;  %16391 = vmatmul.bf16.gmra.mxu0 %v22453_v6  ;;  %v24843_v8 = vld [vmem:[%s25576_s24 + $0x234] sm:$0xf] }
 0x8fc   : > { %v21881_v16 = vor.u32 %v24843_v8, %v21878_v37 }
 0x8fd   : > { %v33812_v42 = vadd.f32 %v16131_v63, %v16103_v22  ;;  %16439 = vmatmul.bf16.gmra.mxu2 %v22077_v40  ;;  %16468 = vmatmul.bf16.gmra.mxu3 %v22081_v23  ;;  %v24964_v63 = vld [vmem:[%s25576_s24 + $0x5f4] sm:$0xf0]  ;;  %v24939_v22 = vld [vmem:[%s25576_s24 + $0x534] sm:$0xf] }
 0x8ff   : > { %v16161_v3 = vadd.f32 %v16160_v21, %v33812_v42 }
 0x900   : > { %v16075_v1 = vpop.f32.mrf.mxu1  ;;  %v16162_v26 = vpop.f32.mrf.mxu0 }
 0x901   : > { %v16076_v60 = vadd.f32 %v16075_v1, %v33673_v12  ;;  %v33817_v35 = vpop.f32.mrf.mxu2  ;;  %v33819_v41 = vpop.f32.mrf.mxu3  ;;  %v22262_v1 = vld [vmem:[%s25576_s24 + $0x5f0] sm:$0xf0] }
 0x903   : > { %v16105_v4 = vadd.f32 %v16104_v14, %v16076_v60  ;;  %v22269_v14 = vor.u32 %v24964_v63, %v22268_v54 }
 0x905   : > { %v16134_v9 = vadd.f32 %v16133_v29, %v16105_v4  ;;  %v22273_v29 = vor.u32 %v24940_v30, %v22270_v24  ;;  %v22265_v4 = vor.u32 %v24939_v22, %v22262_v1 }
 0x908   : > { %v33829_v48 = vpop.f32.mrf.mxu1  ;;  %v33861_v60 = vpop.f32.mrf.mxu0 }
 0x909   : > { %v33831_v12 = vpop.f32.mrf.mxu2  ;;  %v33833_v59 = vpop.f32.mrf.mxu3 }
 0x90b   : > { %16405 = vmatmul.bf16.vlgmr.msra.gmra.mxu1 %v21881_v16 }
 0x90d   : > { %16444 = vmatmul.bf16.gmra.mxu2 %v22269_v14  ;;  %16473 = vmatmul.bf16.gmra.mxu3 %v22273_v29  ;;  %v24987_v14 = vld [vmem:[%s25576_s24 + $0x6b4] sm:$0xf] }
 0x90e   : > { %v22454_v29 = vld [vmem:[%s25576_s24 + $0x770] sm:$0xf0] }
 0x90f   : > { %v22457_v45 = vor.u32 %v24987_v14, %v22454_v29 }
 0x910   : > { %v33835_v0 = vpop.f32.mrf.mxu1  ;;  %v33869_v16 = vpop.f32.mrf.mxu0 }
 0x911   : > { %v33837_v19 = vpop.f32.mrf.mxu2  ;;  %v33839_v46 = vpop.f32.mrf.mxu3 }
 0x918   : > { %v33847_v7 = vpop.f32.mrf.mxu1  ;;  %v33886_v55 = vpop.f32.mrf.mxu0 }
 0x919   : > { %v33849_v6 = vpop.f32.mrf.mxu2  ;;  %v33851_v10 = vpop.f32.mrf.mxu3 }
 0x91b   : > { %16410 = vmatmul.bf16.gmra.mxu1 %v22073_v15 }
 0x91d   : > { %16449 = vmatmul.bf16.gmra.mxu2 %v22461_v44  ;;  %16478 = vmatmul.bf16.gmra.mxu3 %v22465_v39  ;;  %v16163_v44 = vadd.f32 %v16162_v26, %v16134_v9 }
 0x920   : > { %v33853_v57 = vpop.f32.mrf.mxu1  ;;  %v33894_v42 = vpop.f32.mrf.mxu0 }
 0x921   : > { %v33855_v40 = vpop.f32.mrf.mxu2  ;;  %v33857_v23 = vpop.f32.mrf.mxu3 }
 0x922   : > { %35490 = vst [vmem:[#allocation2_spill] sm:$0xff] %v33857_v23 }
 0x928   : > { %v33863_v8 = vpop.f32.mrf.mxu1 }
 0x929   : > { %v33865_v37 = vpop.f32.mrf.mxu2  ;;  %v33867_v54 = vpop.f32.mrf.mxu3 }
 0x92a   : > { %35491 = vst [vmem:[#allocation7_spill] sm:$0xff] %v33865_v37 }
 0x92b   : > { %35492 = vst [vmem:[#allocation10_spill] sm:$0xff] %v33867_v54  ;;  %16415 = vmatmul.bf16.gmra.mxu1 %v22265_v4 }
 0x930   : > { %v33871_v63 = vpop.f32.mrf.mxu1 }
 0x931   : > { %v33873_v30 = vpop.f32.mrf.mxu2  ;;  %v33875_v24 = vpop.f32.mrf.mxu3 }
 0x938   : > { %v16189_v53 = vpop.f32.mrf.mxu1 }
 0x939   : > { %v33880_v15 = vadd.f32 %v16189_v53, %v16161_v3  ;;  %v33882_v5 = vpop.f32.mrf.mxu2  ;;  %v33884_v43 = vpop.f32.mrf.mxu3 }
 0x93a   : > { %v33900_v3 = vpop.f32.mrf.mxu0 }
 0x93b   : > { %16420 = vmatmul.bf16.gmra.mxu1 %v22457_v45 }
 0x940   : > { %v16191_v39 = vpop.f32.mrf.mxu1 }
 0x941   : > { %v33888_v22 = vadd.f32 %v16191_v39, %v16163_v44  ;;  %v33890_v1 = vpop.f32.mrf.mxu2  ;;  %v33892_v4 = vpop.f32.mrf.mxu3 }
 0x942   : > { %v33906_v26 = vpop.f32.mrf.mxu0 }
 0x943   : > { %35493 = vst [vmem:[#allocation9_spill] sm:$0xff] %v33888_v22  ;;  %v16146_v22 = vadd.f32 %v33730_v20, %v33697_v32  ;;  %v16513_v20 = vld [vmem:[%s34264_s3 + $0x8] sm:$0xff] }
 0x945   : > { %v16175_v23 = vadd.f32 %v33829_v48, %v16146_v22  ;;  %v16148_v22 = vadd.f32 %v33762_v33, %v33728_v50  ;;  %v16151_v50 = vadd.f32 %v33784_v47, %v33757_v2 }
 0x947   : > { %v16204_v32 = vadd.f32 %v33791_v58, %v16175_v23  ;;  %v16177_v58 = vadd.f32 %v33835_v0, %v16148_v22 }
 0x948   : > { %v16290_v21 = vpop.f32.mrf.mxu1 }
 0x949   : > { %v33896_v14 = vpop.f32.mrf.mxu2  ;;  %v33898_v29 = vpop.f32.mrf.mxu3 }
 0x94a   : > { %v33914_v17 = vpop.f32.mrf.mxu0 }
 0x94b   : > { %35496 = vst [vmem:[#allocation13_spill] sm:$0xff] %v33914_v17 }
 0x950   : > { %v16292_v53 = vpop.f32.mrf.mxu1 }
 0x951   : > { %v33902_v62 = vpop.f32.mrf.mxu2  ;;  %v33904_v9 = vpop.f32.mrf.mxu3 }
 0x952   : > { %v33924_v51 = vpop.f32.mrf.mxu0 }
 0x953   : > { %35499 = vst [vmem:[#allocation18_spill] sm:$0xff] %v33924_v51 }
 0x958   : > { %v16295_v45 = vpop.f32.mrf.mxu1 }
 0x959   : > { %v33908_v44 = vpop.f32.mrf.mxu2  ;;  %v33912_v27 = vpop.f32.mrf.mxu3 }
 0x95a   : > { %35494 = vst [vmem:[#allocation12_spill] sm:$0xff] %v33908_v44  ;;  %v16515_v44 = vld [vmem:[%s34264_s3 + $0x18] sm:$0xff]  ;;  %v16377_v23 = vpop.f32.mrf.mxu0 }
 0x95b   : > { %35495 = vst [vmem:[#allocation11_spill] sm:$0xff] %v33912_v27  ;;  %16557 = vmatpush.msra.mxu0 %v16515_v44  ;;  %25405 = vmatpush.msra.mxu2 %v16515_v44  ;;  %v16514_v27 = vld [vmem:[%s34264_s3 + $0x10] sm:$0xff]  ;;  %v16512_v44 = vld [vmem:[%s34264_s3] sm:$0xff] }
 0x95d   : > { %16558 = vmatpush.msra.mxu0 %v16514_v27  ;;  %25406 = vmatpush.msra.mxu2 %v16514_v27  ;;  %v16233_v27 = vadd.f32 %v33793_v49, %v16204_v32 }
 0x95f   : > { %16559 = vmatpush.msra.mxu0 %v16513_v20  ;;  %25407 = vmatpush.msra.mxu2 %v16513_v20  ;;  %v16262_v20 = vadd.f32 %v33861_v60, %v16233_v27 }
 0x960   : > { %v33910_v39 = vpop.f32.mrf.mxu1 }
 0x961   : > { %v33918_v54 = vpop.f32.mrf.mxu2  ;;  %v33920_v37 = vpop.f32.mrf.mxu3  ;;  %16560 = vmatpush.msra.mxu0 %v16512_v44  ;;  %25408 = vmatpush.msra.mxu2 %v16512_v44  ;;  %v16291_v33 = vadd.f32 %v16290_v21, %v16262_v20  ;;  %v16180_v44 = vadd.f32 %v33847_v7, %v16151_v50 }
 0x962   : > { %35497 = vst [vmem:[#allocation15_spill] sm:$0xff] %v33918_v54  ;;  %v16379_v0 = vpop.f32.mrf.mxu0 }
 0x963   : > { %35498 = vst [vmem:[#allocation14_spill] sm:$0xff] %v33920_v37  ;;  %v16320_v49 = vadd.f32 %v33873_v30, %v16291_v33  ;;  %v16209_v60 = vadd.f32 %v33817_v35, %v16180_v44 }
 0x965   : > { %v16349_v2 = vadd.f32 %v33875_v24, %v16320_v49 }
 0x968   : > { %v33916_v11 = vpop.f32.mrf.mxu1 }
 0x969   : > { %v33939_v48 = vpop.f32.mrf.mxu2  ;;  %v33946_v37 = vpop.f32.mrf.mxu3 }
 0x96a   : > { %35501 = vst [vmem:[#allocation19_spill] sm:$0xff] %v33939_v48  ;;  %v16206_v48 = vadd.f32 %v33808_v61, %v16177_v58  ;;  %v16153_v61 = vadd.f32 %v33796_v18, %v33774_v36  ;;  %v16382_v20 = vpop.f32.mrf.mxu0  ;;  %v16156_v36 = vadd.f32 %v33814_v38, %v33788_v31 }
 0x96b   : > { %35502 = vst [vmem:[#allocation21_spill] sm:$0xff] %v33946_v37 }
 0x96c   : > { %v16235_v37 = vadd.f32 %v33810_v34, %v16206_v48  ;;  %v16238_v34 = vadd.f32 %v33819_v41, %v16209_v60  ;;  %v16182_v7 = vadd.f32 %v33853_v57, %v16153_v61  ;;  %v16378_v48 = vadd.f32 %v16377_v23, %v16349_v2 }
 0x96e   : > { %v16264_v22 = vadd.f32 %v33869_v16, %v16235_v37  ;;  %v16267_v37 = vadd.f32 %v33886_v55, %v16238_v34  ;;  %v16211_v35 = vadd.f32 %v33831_v12, %v16182_v7  ;;  %v33979_v55 = vld [vmem:[%s34263_s2] ss:$0 sm:$0xff] }
 0x970   : > { %v33933_v54 = vpop.f32.mrf.mxu1  ;;  %v16293_v47 = vadd.f32 %v16292_v53, %v16264_v22  ;;  %v16296_v41 = vadd.f32 %v16295_v45, %v16267_v37  ;;  %v16240_v57 = vadd.f32 %v33833_v59, %v16211_v35  ;;  %v16185_v53 = vadd.f32 %v33863_v8, %v16156_v36 }
 0x971   : > { %35500 = vst [vmem:[#allocation16_spill] sm:$0xff] %v33933_v54  ;;  %v16435_v17 = vpop.f32.mrf.mxu2  ;;  %v16464_v54 = vpop.f32.mrf.mxu3 }
 0x972   : > { %v16322_v30 = vadd.f32 %v33882_v5, %v16293_v47  ;;  %v16325_v23 = vadd.f32 %v33890_v1, %v16296_v41  ;;  %v16384_v49 = vpop.f32.mrf.mxu0 }
 0x974   : > { %v16351_v18 = vadd.f32 %v33884_v43, %v16322_v30  ;;  %v16269_v43 = vadd.f32 %v33894_v42, %v16240_v57  ;;  %v16354_v33 = vadd.f32 %v33892_v4, %v16325_v23  ;;  %v35506_v57 = vld [vmem:[#allocation3_spill] sm:$0xff] }
 0x976   : > { %v16380_v12 = vadd.f32 %v16379_v0, %v16351_v18  ;;  %v16298_v1 = vadd.f32 %v33910_v39, %v16269_v43  ;;  %v35504_v18 = vld [vmem:[#allocation2_spill] sm:$0xff] }
 0x978   : > { %v33950_v51 = vpop.f32.mrf.mxu1  ;;  %v35503_v35 = vld [vmem:[#allocation16_spill] sm:$0xff] }
 0x979   : > { %v16437_v21 = vpop.f32.mrf.mxu2  ;;  %v16466_v58 = vpop.f32.mrf.mxu3 }
 0x980   : > { %v33959_v32 = vpop.f32.mrf.mxu1 }
 0x981   : > { %v16440_v38 = vpop.f32.mrf.mxu2  ;;  %v16469_v45 = vpop.f32.mrf.mxu3 }
 0x988   : > { %v16406_v27 = vpop.f32.mrf.mxu1 }
 0x989   : > { %v16407_v16 = vadd.f32 %v16406_v27, %v16378_v48  ;;  %v16219_v27 = vadd.f32 %v33855_v40, %v33880_v15 }
 0x98b   : > { %v16436_v24 = vadd.f32 %v16435_v17, %v16407_v16  ;;  %v16214_v17 = vadd.f32 %v33837_v19, %v16185_v53 }
 0x98d   : > { %v16465_v5 = vadd.f32 %v16464_v54, %v16436_v24  ;;  %v16158_v54 = vadd.f32 %v33827_v52, %v33801_v56  ;;  %v16243_v42 = vadd.f32 %v33839_v46, %v16214_v17  ;;  %v16383_v56 = vadd.f32 %v16382_v20, %v16354_v33 }
 0x98e   : > { %v16327_v52 = vadd.f32 %v33896_v14, %v16298_v1  ;;  %v16471_v14 = vpop.f32.mrf.mxu3 }
 0x98f   : > { %v16484_v50 = vadd.f32 %v16465_v5, %v31940_v25  ;;  %v16187_v19 = vadd.f32 %v33871_v63, %v16158_v54  ;;  %v16272_v39 = vadd.f32 %v33900_v3, %v16243_v42  ;;  %v16442_v63 = vpop.f32.mrf.mxu2 }
 0x990   : > { %v16408_v31 = vpop.f32.mrf.mxu1  ;;  %v16356_v2 = vadd.f32 %v33898_v29, %v16327_v52 }
 0x991   : > { %v33986_v59 = vadd.f32 %v33979_v55, %v16484_v50  ;;  %v16409_v8 = vadd.f32 %v16408_v31, %v16380_v12  ;;  %v16216_v60 = vadd.f32 %v33849_v6, %v16187_v19  ;;  %v16301_v47 = vadd.f32 %v33916_v11, %v16272_v39  ;;  %v16387_v6 = vpop.f32.mrf.mxu0  ;;  %v35507_v12 = vld [vmem:[#allocation13_spill] sm:$0xff]  ;;  %v35509_v31 = vld [vmem:[#allocation7_spill] sm:$0xff] }
 0x992   : > { %v16385_v3 = vadd.f32 %v16384_v49, %v16356_v2  ;;  %v35508_v50 = vld [vmem:[#allocation9_spill] sm:$0xff] }
 0x993   : > { %v16504_v25 = vmax.f32 %v33986_v59, 0.0  ;;  %v16438_v44 = vadd.f32 %v16437_v21, %v16409_v8  ;;  %v16330_v48 = vadd.f32 %v33902_v62, %v16301_v47  ;;  %v35510_v8 = vld [vmem:[#allocation11_spill] sm:$0xff] }
 0x995   : > { %v16467_v0 = vadd.f32 %v16466_v58, %v16438_v44  ;;  %24002 = vmatmul.msk.f32.vlgmr.msra.gmra.mxu0 %vm16520_vm0, %v16504_v25  ;;  %v16359_v37 = vadd.f32 %v33904_v9, %v16330_v48  ;;  %v35511_v44 = vld [vmem:[#allocation10_spill] sm:$0xff] }
 0x996   : > { %v16474_v40 = vpop.f32.mrf.mxu3 }
 0x997   : > { %v16485_v4 = vadd.f32 %v16467_v0, %v31979_v13  ;;  %v16245_v13 = vadd.f32 %v33851_v10, %v16216_v60  ;;  %v16445_v62 = vpop.f32.mrf.mxu2  ;;  %v16388_v15 = vadd.f32 %v16387_v6, %v16359_v37 }
 0x998   : > { %v16411_v22 = vpop.f32.mrf.mxu1 }
 0x999   : > { %v16412_v61 = vadd.f32 %v16411_v22, %v16383_v56  ;;  %v34003_v46 = vadd.f32 %v33979_v55, %v16485_v4  ;;  %v16274_v11 = vadd.f32 %v33906_v26, %v16245_v13  ;;  %v35505_v26 = vld [vmem:[#allocation12_spill] sm:$0xff]  ;;  %v16389_v9 = vpop.f32.mrf.mxu0  ;;  %v35512_v56 = vld [vmem:[#allocation15_spill] sm:$0xff] }
 0x99a   : > { %v35513_v4 = vld [vmem:[#allocation4_spill] sm:$0xff] }
 0x99b   : > { %v16441_v34 = vadd.f32 %v16440_v38, %v16412_v61  ;;  %v16505_v7 = vmax.f32 %v34003_v46, 0.0  ;;  %v16303_v16 = vadd.f32 %v35503_v35, %v16274_v11  ;;  %v16221_v38 = vadd.f32 %v35509_v31, %v35508_v50  ;;  %v35514_v61 = vld [vmem:[#allocation18_spill] sm:$0xff] }
 0x99c   : > { %v35517_v11 = vld [vmem:[#allocation6_spill] sm:$0xff] }
 0x99d   : > { %v16470_v21 = vadd.f32 %v16469_v45, %v16441_v34  ;;  %24003 = vmatmul.msk.f32.gmra.mxu0 %vm16520_vm0, %v16505_v7  ;;  %v16332_v24 = vadd.f32 %v35505_v26, %v16303_v16  ;;  %v16250_v49 = vadd.f32 %v35511_v44, %v16221_v38  ;;  %v35515_v34 = vld [vmem:[#allocation14_spill] sm:$0xff]  ;;  %v35519_v26 = vld [vmem:[#allocation5_spill] sm:$0xff]  ;;  %v35520_v38 = vld [vmem:[#allocation8_spill] sm:$0xff] }
 0x99e   : > { %v16476_v39 = vpop.f32.mrf.mxu3 }
 0x99f   : > { %v16486_v30 = vadd.f32 %v16470_v21, %v32018_v28  ;;  %v16248_v28 = vadd.f32 %v35504_v18, %v16219_v27  ;;  %v16361_v54 = vadd.f32 %v35510_v8, %v16332_v24  ;;  %v16447_v19 = vpop.f32.mrf.mxu2 }
 0x9a0   : > { %v16413_v29 = vpop.f32.mrf.mxu1 }
 0x9a1   : > { %v16414_v58 = vadd.f32 %v16413_v29, %v16385_v3  ;;  %v34018_v10 = vadd.f32 %v33979_v55, %v16486_v30  ;;  %v16277_v23 = vadd.f32 %v35507_v12, %v16248_v28  ;;  %v16390_v0 = vadd.f32 %v16389_v9, %v16361_v54  ;;  %v16392_v47 = vpop.f32.mrf.mxu0  ;;  %v35516_v30 = vld [vmem:[#allocation19_spill] sm:$0xff] }
 0x9a3   : > { %v16443_v20 = vadd.f32 %v16442_v63, %v16414_v58  ;;  %v16506_v36 = vmax.f32 %v34018_v10, 0.0  ;;  %v16306_v45 = vadd.f32 %v33950_v51, %v16277_v23  ;;  %v16279_v51 = vadd.f32 %v35514_v61, %v16250_v49  ;;  %v25449_v49 = vld [vmem:[%s34265_s4] ss:$0 sm:$0xff] }
 0x9a5   : > { %v16472_v41 = vadd.f32 %v16471_v14, %v16443_v20  ;;  %24004 = vmatmul.msk.f32.gmra.mxu0 %vm16520_vm0, %v16506_v36  ;;  %v16335_v52 = vadd.f32 %v35512_v56, %v16306_v45  ;;  %v16308_v13 = vadd.f32 %v33959_v32, %v16279_v51  ;;  %v35518_v20 = vld [vmem:[#allocation21_spill] sm:$0xff] }
 0x9a6   : > { %v16479_v32 = vpop.f32.mrf.mxu3 }
 0x9a7   : > { %v16487_v53 = vadd.f32 %v16472_v41, %v35506_v57  ;;  %v16364_v14 = vadd.f32 %v35515_v34, %v16335_v52  ;;  %v16337_v29 = vadd.f32 %v35516_v30, %v16308_v13  ;;  %v16450_v58 = vpop.f32.mrf.mxu2 }
 0x9a8   : > { %v16416_v5 = vpop.f32.mrf.mxu1 }
 0x9a9   : > { %v16417_v43 = vadd.f32 %v16416_v5, %v16388_v15  ;;  %v34033_v17 = vadd.f32 %v33979_v55, %v16487_v53  ;;  %v16393_v48 = vadd.f32 %v16392_v47, %v16364_v14  ;;  %v16394_v41 = vpop.f32.mrf.mxu0 }
 0x9ab   : > { %v16446_v33 = vadd.f32 %v16445_v62, %v16417_v43  ;;  %v16507_v1 = vmax.f32 %v34033_v17, 0.0  ;;  %v16366_v62 = vadd.f32 %v35518_v20, %v16337_v29 }
 0x9ad   : > { %v16475_v42 = vadd.f32 %v16474_v40, %v16446_v33  ;;  %24005 = vmatmul.msk.f32.gmra.mxu0 %vm16520_vm0, %v16507_v1  ;;  %v16395_v15 = vadd.f32 %v16394_v41, %v16366_v62 }
 0x9ae   : > { %v16481_v50 = vpop.f32.mrf.mxu3 }
 0x9af   : > { %v16488_v22 = vadd.f32 %v16475_v42, %v35513_v4  ;;  %v16452_v5 = vpop.f32.mrf.mxu2 }
 0x9b0   : > { %v16418_v60 = vpop.f32.mrf.mxu1 }
 0x9b1   : > { %v16419_v63 = vadd.f32 %v16418_v60, %v16390_v0  ;;  %v34046_v2 = vadd.f32 %v33979_v55, %v16488_v22 }
 0x9b3   : > { %v16448_v21 = vadd.f32 %v16447_v19, %v16419_v63  ;;  %v16508_v6 = vmax.f32 %v34046_v2, 0.0 }
 0x9b5   : > { %v16477_v3 = vadd.f32 %v16476_v39, %v16448_v21  ;;  %24006 = vmatmul.msk.f32.gmra.mxu0 %vm16520_vm0, %v16508_v6 }
 0x9b7   : > { %v16489_v27 = vadd.f32 %v16477_v3, %v35517_v11 }
 0x9b8   : > { %v16421_v37 = vpop.f32.mrf.mxu1 }
 0x9b9   : > { %v16422_v35 = vadd.f32 %v16421_v37, %v16393_v48  ;;  %v34057_v16 = vadd.f32 %v33979_v55, %v16489_v27 }
 0x9bb   : > { %v16451_v18 = vadd.f32 %v16450_v58, %v16422_v35  ;;  %v16509_v28 = vmax.f32 %v34057_v16, 0.0 }
 0x9bd   : > { %v16480_v40 = vadd.f32 %v16479_v32, %v16451_v18  ;;  %24007 = vmatmul.msk.f32.gmra.mxu0 %vm16520_vm0, %v16509_v28 }
 0x9bf   : > { %v16490_v24 = vadd.f32 %v16480_v40, %v35519_v26 }
 0x9c0   : > { %v16423_v57 = vpop.f32.mrf.mxu1 }
 0x9c1   : > { %v34066_v53 = vadd.f32 %v33979_v55, %v16490_v24  ;;  %v16424_v9 = vadd.f32 %v16423_v57, %v16395_v15 }
 0x9c3   : > { %v16510_v12 = vmax.f32 %v34066_v53, 0.0  ;;  %v16453_v23 = vadd.f32 %v16452_v5, %v16424_v9 }
 0x9c5   : > { %v16482_v31 = vadd.f32 %v16481_v50, %v16453_v23  ;;  %24008 = vmatmul.msk.f32.vlgmr.msra.gmra.mxu2 %vm16520_vm0, %v16510_v12 }
 0x9c7   : > { %v16491_v43 = vadd.f32 %v16482_v31, %v35520_v38 }
 0x9c9   : > { %v34074_v8 = vadd.f32 %v33979_v55, %v16491_v43 }
 0x9cb   : > { %v16511_v54 = vmax.f32 %v34074_v8, 0.0 }
 0x9cd   : > { %24009 = vmatmul.msk.f32.gmra.mxu2 %vm16520_vm0, %v16511_v54 }
 0xa12   : > { %v16562_v45 = vpop.f32.mrf.mxu0 }
 0xa13   : > { %v34095_v39 = vadd.f32 %v25449_v49, %v16562_v45 }
 0xa1a   : > { %v16565_v33 = vpop.f32.mrf.mxu0 }
 0xa1b   : > { %v34098_v63 = vadd.f32 %v25449_v49, %v16565_v33 }
 0xa1d   : > { %v25443_v23 = vpack.i.bf16 %v34095_v39, %v34098_v63 }
 0xa22   : > { %v16568_v44 = vpop.f32.mrf.mxu0 }
 0xa23   : > { %v34086_v0 = vadd.f32 %v25449_v49, %v16568_v44 }
 0xa2a   : > { %v16571_v42 = vpop.f32.mrf.mxu0 }
 0xa2b   : > { %v34083_v19 = vadd.f32 %v25449_v49, %v16571_v42 }
 0xa2d   : > { %16600 = vrot.lane.b32.xlu2 %v34083_v19, %s25494_s29 }
 0xa32   : > { %v16574_v55 = vpop.f32.mrf.mxu0 }
 0xa33   : > { %v34092_v4 = vadd.f32 %v25449_v49, %v16574_v55 }
 0xa35   : > { %16598 = vrot.lane.b32.xlu2 %v34086_v0, %s25494_s29 }
 0xa3a   : > { %v16577_v56 = vpop.f32.mrf.mxu0 }
 0xa3b   : > { %v34089_v52 = vadd.f32 %v25449_v49, %v16577_v56 }
 0xa3d   : > { %16604 = vrot.lane.b32.xlu1 %v34089_v52, %s25494_s29  ;;  %v25433_v41 = vpack.i.bf16 %v34092_v4, %v34089_v52 }
 0xa45   : > { %16602 = vrot.lane.b32.xlu1 %v34092_v4, %s25494_s29 }
 0xa48   : > { %v16580_v22 = vpop.f32.mrf.mxu2 }
 0xa49   : > { %v16581_v51 = vadd.f32 %v25449_v49, %v16580_v22 }
 0xa4d   : > { %16594 = vrot.lane.b32.xlu1 %v34095_v39, %s25494_s29 }
 0xa50   : > { %v16583_v60 = vpop.f32.mrf.mxu2 }
 0xa51   : > { %v16584_v61 = vadd.f32 %v25449_v49, %v16583_v60 }
 0xa53   : > { %16608 = vrot.lane.b32.xlu0 %v16584_v61, %s25494_s29  ;;  %v25428_v26 = vpack.i.bf16 %v16581_v51, %v16584_v61 }
 0xa5b   : > { %16606 = vrot.lane.b32.xlu0 %v16581_v51, %s25494_s29 }
 0xa63   : > { %16596 = vrot.lane.b32.xlu0 %v34098_v63, %s25494_s29 }
 0xa87   : > { %v16601_v13 = vpop.permute.xlu2 %16600 }
 0xa8f   : > { %v16599_v3 = vpop.permute.xlu2 %16598 }
 0xaaf   : > { %v16605_v34 = vpop.permute.xlu1 %16604 }
 0xab7   : > { %v16603_v21 = vpop.permute.xlu1 %16602 }
 0xabf   : > { %v16595_v30 = vpop.permute.xlu1 %16594 }
 0xac5   : > { %v16609_v47 = vpop.permute.xlu0 %16608 }
 0xac6   : > { %24010 = vmatpush.xpose.msk.msrb.mxu1 %vm16610_vm1, %v16609_v47  ;;  %25409 = vmatpush.xpose.msk.msra.mxu3 %vm16610_vm1, %v16609_v47 }
 0xacd   : > { %v16607_v14 = vpop.permute.xlu0 %16606 }
 0xace   : > { %24011 = vmatpush.xpose.msk.msrb.mxu1 %vm16610_vm1, %v16607_v14  ;;  %25410 = vmatpush.xpose.msk.msra.mxu3 %vm16610_vm1, %v16607_v14 }
 0xad2   : > { %24012 = vmatpush.xpose.msk.msrb.mxu1 %vm16610_vm1, %v16605_v34  ;;  %25411 = vmatpush.xpose.msk.msra.mxu3 %vm16610_vm1, %v16605_v34  ;;  %v25438_v34 = vpack.i.bf16 %v34086_v0, %v34083_v19 }
 0xad5   : > { %v16597_v48 = vpop.permute.xlu0 %16596 }
 0xad6   : > { %24013 = vmatpush.xpose.msk.msrb.mxu1 %vm16610_vm1, %v16603_v21  ;;  %25412 = vmatpush.xpose.msk.msra.mxu3 %vm16610_vm1, %v16603_v21 }
 0xada   : > { %24014 = vmatpush.xpose.msk.msrb.mxu1 %vm16610_vm1, %v16601_v13  ;;  %25413 = vmatpush.xpose.msk.msra.mxu3 %vm16610_vm1, %v16601_v13 }
 0xade   : > { %24015 = vmatpush.xpose.msk.msrb.mxu1 %vm16610_vm1, %v16599_v3  ;;  %25414 = vmatpush.xpose.msk.msra.mxu3 %vm16610_vm1, %v16599_v3 }
 0xae2   : > { %24016 = vmatpush.xpose.msk.msrb.mxu1 %vm16610_vm1, %v16597_v48  ;;  %25415 = vmatpush.xpose.msk.msra.mxu3 %vm16610_vm1, %v16597_v48 }
 0xae6   : > { %24017 = vmatpush.xpose.msk.msrb.mxu1 %vm16610_vm1, %v16595_v30  ;;  %25416 = vmatpush.xpose.msk.msra.mxu3 %vm16610_vm1, %v16595_v30 }
 0xae9   : > { %24018 = vmatmul.msk.f32.vlgmr.msrb.gmra.mxu1 %vm16610_vm1, %v34095_v39  ;;  %24024 = vmatmul.msk.f32.vlgmr.msra.gmra.mxu3 %vm16610_vm1, %v16581_v51 }
 0xaf1   : > { %24019 = vmatmul.msk.f32.gmra.mxu1 %vm16610_vm1, %v34098_v63  ;;  %24025 = vmatmul.msk.f32.gmra.mxu3 %vm16610_vm1, %v16584_v61 }
 0xaf9   : > { %24020 = vmatmul.msk.f32.gmra.mxu1 %vm16610_vm1, %v34086_v0 }
 0xb01   : > { %24021 = vmatmul.msk.f32.gmra.mxu1 %vm16610_vm1, %v34083_v19 }
 0xb09   : > { %24022 = vmatmul.msk.f32.gmra.mxu1 %vm16610_vm1, %v34092_v4 }
 0xb11   : > { %24023 = vmatmul.msk.f32.gmra.mxu1 %vm16610_vm1, %v34089_v52 }
 0xb66   : > { %v16660_v29 = vpop.f32.mrf.mxu1 }
 0xb67   : > { %v16685_v11 = vsel %vm16684_vm2, %v16660_v29, -inf }
 0xb68   : > { %16686 = vmax.xlane.f32.xlu2 %v16685_v11 }
 0xb6c   : > { %v16678_v27 = vpop.f32.mrf.mxu3 }
 0xb6d   : > { %v16703_v37 = vsel %vm16684_vm2, %v16678_v27, -inf }
 0xb6e   : > { %v16663_v58 = vpop.f32.mrf.mxu1 }
 0xb6f   : > { %v16688_v35 = vsel %vm16684_vm2, %v16663_v58, -inf }
 0xb70   : > { %16704 = vmax.xlane.f32.xlu2 %v16703_v37  ;;  %16689 = vmax.xlane.f32.xlu0 %v16688_v35 }
 0xb74   : > { %v34145_v9 = vpop.f32.mrf.mxu3 }
 0xb75   : > { %v16706_v5 = vsel %vm16684_vm2, %v34145_v9, -inf }
 0xb76   : > { %v34134_v32 = vpop.f32.mrf.mxu1 }
 0xb77   : > { %v16691_v20 = vsel %vm16684_vm2, %v34134_v32, -inf }
 0xb78   : > { %16692 = vmax.xlane.f32.xlu1 %v16691_v20 }
 0xb7e   : > { %v16669_v62 = vpop.f32.mrf.mxu1 }
 0xb7f   : > { %v16694_v18 = vsel %vm16684_vm2, %v16669_v62, -inf }
 0xb80   : > { %16695 = vmax.xlane.f32.xlu2 %v16694_v18 }
 0xb84   : > { %25434 = vrot.lane.b32.xlu0 %v25433_v41, %s25495_s30 }
 0xb86   : > { %v16672_v40 = vpop.f32.mrf.mxu1 }
 0xb87   : > { %v16697_v15 = vsel %vm16684_vm2, %v16672_v40, -inf }
 0xb88   : > { %16698 = vmax.xlane.f32.xlu2 %v16697_v15 }
 0xb8e   : > { %v16675_v24 = vpop.f32.mrf.mxu1 }
 0xb8f   : > { %v16700_v57 = vsel %vm16684_vm2, %v16675_v24, -inf }
 0xb91   : > { %25429 = vrot.lane.b32.xlu1 %v25428_v26, %s25495_s30 }
 0xbae   : > { %16701 = vmax.xlane.f32.xlu0 %v16700_v57 }
 0xbbb   : > { %16707 = vmax.xlane.f32.xlu1 %v16706_v5 }
 0xbc2   : > { %25444 = vrot.lane.b32.xlu0 %v25443_v23, %s25495_s30 }
 0xbdb   : > { %v16687_v50 = vpop.xlane.xlu2 %16686 }
 0xbdc   : > { %v16709_v31 = vsub.f32 %v16660_v29, %v16687_v50 }
 0xbde   : > { %v16717_v38 = vmul.f32 1.442695, %v16709_v31 }
 0xbe0   : > { %25451 = vpow2.f32 %v16717_v38 }
 0xbe3   : > { %v16690_v43 = vpop.xlane.xlu0 %16689  ;;  %v16705_v42 = vpop.xlane.xlu2 %16704 }
 0xbe4   : > { %v16710_v45 = vsub.f32 %v16663_v58, %v16690_v43  ;;  %v16715_v63 = vsub.f32 %v16678_v27, %v16705_v42 }
 0xbe6   : > { %v34152_v33 = vpop.eup %25451  ;;  %v16719_v44 = vmul.f32 1.442695, %v16710_v45  ;;  %v16729_v13 = vmul.f32 1.442695, %v16715_v63 }
 0xbe7   : > { %v16733_v49 = vsel %vm16684_vm2, %v34152_v33, 0.0 }
 0xbe8   : > { %16734 = vadd.xlane.f32.xlu2 %v16733_v49  ;;  %25453 = vpow2.f32 %v16719_v44 }
 0xbeb   : > { %v16693_v39 = vpop.xlane.xlu1 %16692 }
 0xbec   : > { %v16711_v37 = vsub.f32 %v34134_v32, %v16693_v39 }
 0xbee   : > { %v34156_v55 = vpop.eup %25453  ;;  %v16721_v35 = vmul.f32 1.442695, %v16711_v37 }
 0xbef   : > { %v16736_v56 = vsel %vm16684_vm2, %v34156_v55, 0.0 }
 0xbf0   : > { %16737 = vadd.xlane.f32.xlu0 %v16736_v56 }
 0xbf3   : > { %v16696_v52 = vpop.xlane.xlu2 %16695 }
 0xbf4   : > { %v16712_v4 = vsub.f32 %v16669_v62, %v16696_v52 }
 0xbf6   : > { %v16723_v22 = vmul.f32 1.442695, %v16712_v4  ;;  %v25435_v48 = vpop.permute.xlu0 %25434 }
 0xbf7   : > { %v25436_v19 = vunpack.i.l.bf16 %v25435_v48  ;;  %v25437_v0 = vunpack.i.h.bf16 %v25435_v48 }
 0xbf8   : > { %25455 = vpow2.f32 %v16723_v22 }
 0xbfb   : > { %v16699_v60 = vpop.xlane.xlu2 %16698 }
 0xbfc   : > { %v16713_v61 = vsub.f32 %v16672_v40, %v16699_v60 }
 0xbfe   : > { %v34160_v51 = vpop.eup %25455  ;;  %v16725_v47 = vmul.f32 1.442695, %v16713_v61 }
 0xbff   : > { %v16742_v14 = vsel %vm16684_vm2, %v34160_v51, 0.0 }
 0xc00   : > { %25457 = vpow2.f32 %v16725_v47  ;;  %16743 = vadd.xlane.f32.xlu1 %v16742_v14  ;;  %25439 = vrot.lane.b32.xlu2 %v25438_v34, %s25495_s30 }
 0xc01   : > { %25459 = vpow2.f32 %v16729_v13 }
 0xc02   : > { %25461 = vpow2.f32 %v16721_v35 }
 0xc03   : > { %v25430_v21 = vpop.permute.xlu1 %25429 }
 0xc04   : > { %v25431_v3 = vunpack.i.l.bf16 %v25430_v21  ;;  %v25432_v29 = vunpack.i.h.bf16 %v25430_v21 }
 0xc06   : > { %v34167_v30 = vpop.eup %25457  ;;  %16829 = vmatpush.msrb.mxu2 %v25431_v3 }
 0xc07   : > { %v16745_v11 = vsel %vm16684_vm2, %v34167_v30, 0.0  ;;  %v34171_v27 = vpop.eup %25459 }
 0xc08   : > { %16830 = vmatpush.msrb.mxu2 %v25432_v29  ;;  %16746 = vadd.xlane.f32.xlu1 %v16745_v11  ;;  %v16751_v58 = vsel %vm16684_vm2, %v34171_v27, 0.0  ;;  %v25462_v41 = vpop.eup %25461 }
 0xc09   : > { %v16739_v40 = vsel %vm16684_vm2, %v25462_v41, 0.0 }
 0xc0a   : > { %16831 = vmatpush.msrb.mxu2 %v25436_v19 }
 0xc0c   : > { %16832 = vmatpush.msrb.mxu2 %v25437_v0 }
 0xc10   : > { %16752 = vadd.xlane.f32.xlu1 %v16751_v58 }
 0xc21   : > { %v16702_v20 = vpop.xlane.xlu0 %16701 }
 0xc22   : > { %v16714_v62 = vsub.f32 %v16675_v24, %v16702_v20 }
 0xc24   : > { %v16727_v18 = vmul.f32 1.442695, %v16714_v62 }
 0xc26   : > { %25463 = vpow2.f32 %v16727_v18 }
 0xc29   : > { %16740 = vadd.xlane.f32.xlu2 %v16739_v40  ;;  %v16952_v40 = vld [vmem:[%s34268_s7 + $0x18] sm:$0xff] }
 0xc2a   : > { %16989 = vmatpush.msrb.mxu0 %v16952_v40 }
 0xc2c   : > { %v25464_v15 = vpop.eup %25463 }
 0xc2d   : > { %v16748_v26 = vsel %vm16684_vm2, %v25464_v15, 0.0 }
 0xc2e   : > { %v16708_v57 = vpop.xlane.xlu1 %16707  ;;  %16749 = vadd.xlane.f32.xlu0 %v16748_v26  ;;  %v16950_v26 = vld [vmem:[%s34268_s7 + $0x8] sm:$0xff] }
 0xc2f   : > { %v16716_v5 = vsub.f32 %v34145_v9, %v16708_v57  ;;  %v16949_v57 = vld [vmem:[%s34268_s7] sm:$0xff] }
 0xc31   : > { %v16731_v23 = vmul.f32 1.442695, %v16716_v5  ;;  %v25450_v5 = vld [vmem:[%s34267_s6] ss:$0 sm:$0xff] }
 0xc33   : > { %25465 = vpow2.f32 %v16731_v23 }
 0xc34   : > { %v25445_v31 = vpop.permute.xlu0 %25444 }
 0xc35   : > { %v25446_v42 = vunpack.i.l.bf16 %v25445_v31  ;;  %v25447_v56 = vunpack.i.h.bf16 %v25445_v31 }
 0xc39   : > { %v25466_v32 = vpop.eup %25465 }
 0xc3a   : > { %v16754_v50 = vsel %vm16684_vm2, %v25466_v32, 0.0 }
 0xc3b   : > { %16755 = vadd.xlane.f32.xlu0 %v16754_v50 }
 0xc5b   : > { %v16735_v24 = vpop.xlane.xlu2 %16734 }
 0xc5c   : > { %25467 = vrcp.f32 %v16735_v24 }
 0xc62   : > { %v25468_v49 = vpop.eup %25467 }
 0xc63   : > { %v25440_v38 = vpop.permute.xlu2 %25439  ;;  %v16738_v44 = vpop.xlane.xlu0 %16737  ;;  %v16765_v9 = vmul.f32 %v25468_v49, %v34152_v33 }
 0xc64   : > { %v25441_v43 = vunpack.i.l.bf16 %v25440_v38  ;;  %v25442_v45 = vunpack.i.h.bf16 %v25440_v38  ;;  %25469 = vrcp.f32 %v16738_v44 }
 0xc66   : > { %16833 = vmatpush.msrb.mxu2 %v25441_v43 }
 0xc68   : > { %16834 = vmatpush.msrb.mxu2 %v25442_v45 }
 0xc6a   : > { %16835 = vmatpush.msrb.mxu2 %v25446_v42  ;;  %v25470_v52 = vpop.eup %25469 }
 0xc6b   : > { %v16766_v4 = vmul.f32 %v25470_v52, %v34156_v55  ;;  %v16863_v55 = vld [vmem:[%s34266_s5 + $0x8] sm:$0xff] }
 0xc6c   : > { %16836 = vmatpush.msrb.mxu2 %v25447_v56  ;;  %16906 = vmatpush.msrb.mxu3 %v16863_v55 }
 0xc6d   : > { %24026 = vmatmul.msk.f32.vlgmr.msrb.gmra.mxu2 %vm16684_vm2, %v16765_v9 }
 0xc73   : > { %v16744_v39 = vpop.xlane.xlu1 %16743 }
 0xc75   : > { %24027 = vmatmul.msk.f32.gmra.mxu2 %vm16684_vm2, %v16766_v4 }
 0xc7b   : > { %v16747_v63 = vpop.xlane.xlu1 %16746 }
 0xc83   : > { %v16753_v21 = vpop.xlane.xlu1 %16752 }
 0xc9c   : > { %v16741_v22 = vpop.xlane.xlu2 %16740 }
 0xc9d   : > { %25471 = vrcp.f32 %v16741_v22 }
 0xc9e   : > { %25473 = vrcp.f32 %v16744_v39 }
 0xc9f   : > { %25475 = vrcp.f32 %v16747_v63 }
 0xca1   : > { %v16750_v34 = vpop.xlane.xlu0 %16749 }
 0xca2   : > { %25477 = vrcp.f32 %v16750_v34 }
 0xca3   : > { %v25472_v60 = vpop.eup %25471  ;;  %25479 = vrcp.f32 %v16753_v21 }
 0xca4   : > { %v16767_v61 = vmul.f32 %v25472_v60, %v25462_v41  ;;  %v25474_v47 = vpop.eup %25473 }
 0xca5   : > { %v16768_v33 = vmul.f32 %v25474_v47, %v34160_v51  ;;  %v25476_v14 = vpop.eup %25475 }
 0xca6   : > { %24028 = vmatmul.msk.f32.gmra.mxu2 %vm16684_vm2, %v16767_v61  ;;  %v16769_v13 = vmul.f32 %v25476_v14, %v34167_v30  ;;  %v16862_v30 = vld [vmem:[%s34266_s5] sm:$0xff] }
 0xca7   : > { %16907 = vmatpush.msrb.mxu3 %v16862_v30 }
 0xca8   : > { %v25478_v3 = vpop.eup %25477 }
 0xca9   : > { %v16770_v48 = vmul.f32 %v25478_v3, %v25464_v15  ;;  %v25480_v29 = vpop.eup %25479  ;;  %v16951_v15 = vld [vmem:[%s34268_s7 + $0x10] sm:$0xff] }
 0xcaa   : > { %v16771_v11 = vmul.f32 %v25480_v29, %v34171_v27  ;;  %16990 = vmatpush.msrb.mxu0 %v16951_v15 }
 0xcac   : > { %16991 = vmatpush.msrb.mxu0 %v16950_v26 }
 0xcae   : > { %24029 = vmatmul.msk.f32.gmra.mxu2 %vm16684_vm2, %v16768_v33  ;;  %v16756_v51 = vpop.xlane.xlu0 %16755  ;;  %16992 = vmatpush.msrb.mxu0 %v16949_v57 }
 0xcaf   : > { %25481 = vrcp.f32 %v16756_v51 }
 0xcb5   : > { %v25482_v19 = vpop.eup %25481 }
 0xcb6   : > { %24030 = vmatmul.msk.f32.gmra.mxu2 %vm16684_vm2, %v16769_v13  ;;  %v16772_v0 = vmul.f32 %v25482_v19, %v25466_v32 }
 0xcbe   : > { %24031 = vmatmul.msk.f32.gmra.mxu2 %vm16684_vm2, %v16770_v48 }
 0xcc6   : > { %24032 = vmatmul.msk.f32.gmra.mxu2 %vm16684_vm2, %v16771_v11 }
 0xcce   : > { %24033 = vmatmul.msk.f32.gmra.mxu2 %vm16684_vm2, %v16772_v0 }
 0xcf0   : > { %v16838_v58 = vpop.f32.mrf.mxu2 }
 0xcf1   : > { %24034 = vmatmul.msk.f32.vlgmr.msrb.gmra.mxu3 %vm16610_vm1, %v16838_v58 }
 0xcf8   : > { %v16841_v37 = vpop.f32.mrf.mxu2 }
 0xcf9   : > { %24035 = vmatmul.msk.f32.gmra.mxu3 %vm16610_vm1, %v16841_v37 }
 0xd29   : > { %v16844_v35 = vpop.f32.mrf.mxu2 }
 0xd2a   : > { %24036 = vmatmul.msk.f32.gmra.mxu3 %vm16610_vm1, %v16844_v35 }
 0xd31   : > { %v16847_v27 = vpop.f32.mrf.mxu2 }
 0xd32   : > { %24037 = vmatmul.msk.f32.gmra.mxu3 %vm16610_vm1, %v16847_v27 }
 0xd39   : > { %v16850_v20 = vpop.f32.mrf.mxu2 }
 0xd3a   : > { %24038 = vmatmul.msk.f32.gmra.mxu3 %vm16610_vm1, %v16850_v20 }
 0xd41   : > { %v16853_v62 = vpop.f32.mrf.mxu2 }
 0xd42   : > { %24039 = vmatmul.msk.f32.gmra.mxu3 %vm16610_vm1, %v16853_v62 }
 0xd49   : > { %v16856_v18 = vpop.f32.mrf.mxu2 }
 0xd4a   : > { %24040 = vmatmul.msk.f32.gmra.mxu3 %vm16610_vm1, %v16856_v18 }
 0xd51   : > { %v16859_v41 = vpop.f32.mrf.mxu2 }
 0xd52   : > { %24041 = vmatmul.msk.f32.gmra.mxu3 %vm16610_vm1, %v16859_v41 }
 0xd74   : > { %v16909_v23 = vpop.f32.mrf.mxu3 }
 0xd75   : > { %v16910_v32 = vadd.f32 %v25450_v5, %v16909_v23 }
 0xd77   : > { %v16933_v50 = vadd.f32 %v16910_v32, %v16504_v25 }
 0xd79   : > { %v16941_v24 = vmax.f32 %v16933_v50, 0.0 }
 0xd7b   : > { %24042 = vmatmul.msk.f32.vlgmr.msrb.gmra.mxu0 %vm16520_vm0, %v16941_v24 }
 0xd7c   : > { %v16912_v31 = vpop.f32.mrf.mxu3 }
 0xd7d   : > { %v16913_v38 = vadd.f32 %v25450_v5, %v16912_v31 }
 0xd7f   : > { %v16934_v43 = vadd.f32 %v16913_v38, %v16505_v7 }
 0xd81   : > { %v16942_v45 = vmax.f32 %v16934_v43, 0.0 }
 0xd83   : > { %24043 = vmatmul.msk.f32.gmra.mxu0 %vm16520_vm0, %v16942_v45 }
 0xdad   : > { %v16915_v44 = vpop.f32.mrf.mxu3 }
 0xdae   : > { %v16916_v49 = vadd.f32 %v25450_v5, %v16915_v44 }
 0xdb0   : > { %v16935_v42 = vadd.f32 %v16916_v49, %v16506_v36 }
 0xdb2   : > { %v16943_v56 = vmax.f32 %v16935_v42, 0.0 }
 0xdb4   : > { %24044 = vmatmul.msk.f32.gmra.mxu0 %vm16520_vm0, %v16943_v56 }
 0xdb5   : > { %v16918_v59 = vpop.f32.mrf.mxu3 }
 0xdb6   : > { %v16919_v25 = vadd.f32 %v25450_v5, %v16918_v59 }
 0xdb8   : > { %v16936_v9 = vadd.f32 %v16919_v25, %v16507_v1 }
 0xdba   : > { %v16944_v52 = vmax.f32 %v16936_v9, 0.0 }
 0xdbc   : > { %24045 = vmatmul.msk.f32.gmra.mxu0 %vm16520_vm0, %v16944_v52 }
 0xdbd   : > { %v16921_v46 = vpop.f32.mrf.mxu3 }
 0xdbe   : > { %v16922_v7 = vadd.f32 %v25450_v5, %v16921_v46 }
 0xdc0   : > { %v16937_v4 = vadd.f32 %v16922_v7, %v16508_v6 }
 0xdc2   : > { %v16945_v22 = vmax.f32 %v16937_v4, 0.0 }
 0xdc4   : > { %24046 = vmatmul.msk.f32.gmra.mxu0 %vm16520_vm0, %v16945_v22 }
 0xdc5   : > { %v16924_v10 = vpop.f32.mrf.mxu3 }
 0xdc6   : > { %v16925_v36 = vadd.f32 %v25450_v5, %v16924_v10 }
 0xdc8   : > { %v16938_v39 = vadd.f32 %v16925_v36, %v16509_v28 }
 0xdca   : > { %v16946_v60 = vmax.f32 %v16938_v39, 0.0 }
 0xdcc   : > { %24047 = vmatmul.msk.f32.gmra.mxu0 %vm16520_vm0, %v16946_v60 }
 0xdcd   : > { %v16927_v17 = vpop.f32.mrf.mxu3 }
 0xdce   : > { %v16928_v1 = vadd.f32 %v25450_v5, %v16927_v17 }
 0xdd0   : > { %v16939_v61 = vadd.f32 %v16928_v1, %v16510_v12 }
 0xdd2   : > { %v16947_v63 = vmax.f32 %v16939_v61, 0.0 }
 0xdd4   : > { %24048 = vmatmul.msk.f32.gmra.mxu0 %vm16520_vm0, %v16947_v63 }
 0xdd5   : > { %v16930_v2 = vpop.f32.mrf.mxu3 }
 0xdd6   : > { %v16931_v6 = vadd.f32 %v25450_v5, %v16930_v2 }
 0xdd8   : > { %v16940_v47 = vadd.f32 %v16931_v6, %v16511_v54 }
 0xdda   : > { %v16948_v33 = vmax.f32 %v16940_v47, 0.0 }
 0xddc   : > { %24049 = vmatmul.msk.f32.gmra.mxu0 %vm16520_vm0, %v16948_v33 }
 0xdf8   : > { %v16994_v16 = vpop.f32.mrf.mxu0 }
 0xdf9   : > { %17019 = vst.msk [vmem:[%s305_s26] sm:$0xff] %vm17018_vm3, %v16994_v16 }
 0xe00   : > { %v16997_v28 = vpop.f32.mrf.mxu0 }
 0xe01   : > { %17020 = vst.msk [vmem:[%s305_s26 + $0x8] sm:$0xff] %vm17018_vm3, %v16997_v28 }
 0xe31   : > { %v17000_v53 = vpop.f32.mrf.mxu0 }
 0xe32   : > { %17021 = vst.msk [vmem:[%s305_s26 + $0x10] sm:$0xff] %vm17018_vm3, %v17000_v53 }
 0xe39   : > { %v17003_v12 = vpop.f32.mrf.mxu0 }
 0xe3a   : > { %17022 = vst.msk [vmem:[%s305_s26 + $0x18] sm:$0xff] %vm17018_vm3, %v17003_v12 }
 0xe41   : > { %v17006_v8 = vpop.f32.mrf.mxu0 }
 0xe42   : > { %17023 = vst.msk [vmem:[%s305_s26 + $0x20] sm:$0xff] %vm17018_vm3, %v17006_v8 }
 0xe49   : > { %v17009_v54 = vpop.f32.mrf.mxu0 }
 0xe4a   : > { %17024 = vst.msk [vmem:[%s305_s26 + $0x28] sm:$0xff] %vm17018_vm3, %v17009_v54 }
 0xe51   : > { %v17012_v55 = vpop.f32.mrf.mxu0 }
 0xe52   : > { %17025 = vst.msk [vmem:[%s305_s26 + $0x30] sm:$0xff] %vm17018_vm3, %v17012_v55 }
 0xe59   : > { %v17015_v34 = vpop.f32.mrf.mxu0 }
 0xe5a   : > { %17026 = vst.msk [vmem:[%s305_s26 + $0x38] sm:$0xff] %vm17018_vm3, %v17015_v34 }
 0xe5b PF: > { %s18_s27 = sadd.s32 1, %s25492_s27  }
 0xe5c   : > { %p15_p4 = scmp.ge.s32.totalorder %s18_s27, 4  }
 0xe5e   :  { %17 = sbr.rel (!%p15_p4) target bundleno = 1 (0x1), region = 84 }

</bundles_post_ra>
